<compile_context>
chip_gen: v5e
topology: v5e:2x2
jax: 0.10.0
libtpu: 0.0.40
codegen_flags: <defaults>
</compile_context>

<pallas_src>
import functools
import math

import jax
import jax.numpy as jnp
from jax import lax
from jax.experimental import pallas as pl
from jax.experimental.pallas import tpu as pltpu


# ----------------------------------------------------------------------------
# shape helpers
# ----------------------------------------------------------------------------
def _conv_shapes(H, W):
    OH1, OW1 = (H - 8) // 4 + 1, (W - 8) // 4 + 1      # conv1: k=8, s=4
    OH2, OW2 = (OH1 - 4) // 2 + 1, (OW1 - 4) // 2 + 1  # conv2: k=4, s=2
    OH3, OW3 = OH2 - 2, OW2 - 2                        # conv3: k=3, s=1
    return OH1, OW1, OH2, OW2, OH3, OW3


# ----------------------------------------------------------------------------
# the fused kernel (one batch tile per grid step)
# ----------------------------------------------------------------------------
def _atari_pgn_kernel(x_ref,                     # (H/4, W/4, BT, 16*C) bf16  (s2d frames)
                      w1_ref, b1_ref,            # (4, 16*C, 32) bf16, (1, 32) f32
                      w2_ref, b2_ref,            # (16, 32, 64)  bf16, (1, 64) f32
                      w3_ref, b3_ref,            # (9, 64, 64)   bf16, (1, 64) f32
                      w4_ref, b4_ref,            # (OH3*OW3, 64, 512) bf16, (1, 512) f32
                      w5_ref, b5_ref,            # (512, A) bf16, (1, A) f32
                      out_ref,                   # (BT, A) f32
                      act1_ref, act2_ref, act3_ref):   # VMEM f32 scratch
    f32 = jnp.float32
    bf16 = jnp.bfloat16
    BT = out_ref.shape[0]

    # ---- conv1: 2x2, stride 1 on the space-to-depth(4) frames ---------------
    F0 = x_ref.shape[-1]
    h1h, _, h1w, _, _, OC1 = act1_ref.shape      # (OH1/2, 2, OW1/2, 2, BT, 32)
    OH1, OW1 = 2 * h1h, 2 * h1w
    M1 = OH1 * OW1 * BT
    acc = jnp.zeros((M1, OC1), f32)
    for a in range(2):
        for b in range(2):
            win = x_ref[pl.ds(a, OH1), pl.ds(b, OW1), :, :]          # (OH1, OW1, BT, F0)
            acc = acc + jnp.dot(win.reshape(M1, F0), w1_ref[a * 2 + b],
                                preferred_element_type=f32)
    h1 = jnp.maximum(acc * (1.0 / 256.0) + b1_ref[...], 0.0)         # x.float()/256 folded in
    # store phase-split for the stride-2 conv2: spatial (2m+p, 2n+q) -> [m, p, n, q]
    act1_ref[...] = h1.reshape(h1h, 2, h1w, 2, BT, OC1)

    # ---- conv2: 4x4, stride 2 (contiguous reads from the phase-split scratch)
    OH2, OW2, _, OC2 = act2_ref.shape
    M2 = OH2 * OW2 * BT
    acc = jnp.zeros((M2, OC2), f32)
    for i in range(4):
        for j in range(4):
            win = act1_ref[pl.ds(i // 2, OH2), i % 2,
                           pl.ds(j // 2, OW2), j % 2, :, :]          # (OH2, OW2, BT, OC1)
            acc = acc + jnp.dot(win.reshape(M2, OC1).astype(bf16), w2_ref[i * 4 + j],
                                preferred_element_type=f32)
    h2 = jnp.maximum(acc + b2_ref[...], 0.0)
    act2_ref[...] = h2.reshape(OH2, OW2, BT, OC2)

    # ---- conv3: 3x3, stride 1 ------------------------------------------------
    OH3, OW3, _, OC3 = act3_ref.shape
    M3 = OH3 * OW3 * BT
    acc = jnp.zeros((M3, OC3), f32)
    for i in range(3):
        for j in range(3):
            win = act2_ref[pl.ds(i, OH3), pl.ds(j, OW3), :, :]       # (OH3, OW3, BT, OC2)
            acc = acc + jnp.dot(win.reshape(M3, OC2).astype(bf16), w3_ref[i * 3 + j],
                                preferred_element_type=f32)
    h3 = jnp.maximum(acc + b3_ref[...], 0.0)
    act3_ref[...] = h3.reshape(OH3, OW3, BT, OC3)

    # ---- fc1 (sum over conv3 spatial positions; absorbs the NCHW flatten) ----
    N4 = w4_ref.shape[-1]
    acc = jnp.zeros((BT, N4), f32)
    for s in range(OH3 * OW3):
        acc = acc + jnp.dot(act3_ref[s // OW3, s % OW3, :, :].astype(bf16), w4_ref[s],
                            preferred_element_type=f32)
    h4 = jnp.maximum(acc + b4_ref[...], 0.0)

    # ---- fc2 (fused epilogue) -------------------------------------------------
    out_ref[...] = jnp.dot(h4.astype(bf16), w5_ref[...],
                           preferred_element_type=f32) + b5_ref[...]


# ----------------------------------------------------------------------------
# parameter init (PyTorch layouts + PyTorch-style U(-1/sqrt(fan_in), 1/sqrt(fan_in)))
# ----------------------------------------------------------------------------
def init_params(key, input_shape, num_actions):
    C, H, W = input_shape
    _, _, _, _, OH3, OW3 = _conv_shapes(H, W)
    conv_out = 64 * OH3 * OW3
    ks = jax.random.split(key, 10)

    def u(k, shape, fan_in):
        b = 1.0 / math.sqrt(fan_in)
        return jax.random.uniform(k, shape, jnp.float32, -b, b)

    return {
        "w1": u(ks[0], (32, C, 8, 8), C * 64), "b1": u(ks[1], (32,), C * 64),
        "w2": u(ks[2], (64, 32, 4, 4), 32 * 16), "b2": u(ks[3], (64,), 32 * 16),
        "w3": u(ks[4], (64, 64, 3, 3), 64 * 9), "b3": u(ks[5], (64,), 64 * 9),
        "w4": u(ks[6], (512, conv_out), conv_out), "b4": u(ks[7], (512,), conv_out),
        "w5": u(ks[8], (num_actions, 512), 512), "b5": u(ks[9], (num_actions,), 512),
    }


# ----------------------------------------------------------------------------
# one-time conversion of PyTorch-layout params into the kernel layout
# ----------------------------------------------------------------------------
def prepare_params(p, input_shape):
    C, H, W = input_shape
    _, _, _, _, OH3, OW3 = _conv_shapes(H, W)
    OC1, OC2, OC3 = 32, 64, 64
    bf16 = jnp.bfloat16
    f32 = jnp.float32

    # conv1 weight remapped for the space-to-depth(4) input:
    #   w1p[a*2+b, (p*4+q)*C + c, oc] = w1[oc, c, 4a+p, 4b+q]
    w1p = p["w1"].reshape(OC1, C, 2, 4, 2, 4)          # (oc, c, a, p, b, q)
    w1p = w1p.transpose(2, 4, 3, 5, 1, 0)              # (a, b, p, q, c, oc)
    w1p = w1p.reshape(4, 16 * C, OC1).astype(bf16)

    # conv2/conv3: w[kk=i*KW+j, c, oc] = w_torch[oc, c, i, j]
    w2p = p["w2"].transpose(2, 3, 1, 0).reshape(16, OC1, OC2).astype(bf16)
    w3p = p["w3"].transpose(2, 3, 1, 0).reshape(9, OC2, OC3).astype(bf16)

    # fc1: torch weight (512, conv_out) acts on the NCHW flatten (c, y, x);
    #      re-layout to (y*OW3+x, c, 512) so fc1 = sum over spatial positions.
    w4p = p["w4"].T.reshape(OC3, OH3, OW3, 512)        # rows (c, y, x)
    w4p = w4p.transpose(1, 2, 0, 3).reshape(OH3 * OW3, OC3, 512).astype(bf16)

    w5p = p["w5"].T.astype(bf16)                       # (512, A)

    return {
        "w1": w1p, "b1": p["b1"].reshape(1, -1).astype(f32),
        "w2": w2p, "b2": p["b2"].reshape(1, -1).astype(f32),
        "w3": w3p, "b3": p["b3"].reshape(1, -1).astype(f32),
        "w4": w4p, "b4": p["b4"].reshape(1, -1).astype(f32),
        "w5": w5p, "b5": p["b5"].reshape(1, -1).astype(f32),
    }


# ----------------------------------------------------------------------------
# forward pass
# ----------------------------------------------------------------------------
def atari_pgn_forward(kparams, x, *, block_batch=16):
    """x: (B, C, H, W) raw frames (uint8 or float, pixel scale 0..255)."""
    B, C, H, W = x.shape
    assert H % 4 == 0 and W % 4 == 0, "frame size must be a multiple of 4"
    OH1, OW1, OH2, OW2, OH3, OW3 = _conv_shapes(H, W)
    assert OH1 % 2 == 0 and OW1 % 2 == 0, "conv1 output size must be even"
    assert min(OH3, OW3) >= 1, "input too small for the conv stack"
    # TODO(synk): pad batch / odd conv1 output sizes instead of asserting.
    BT = block_batch if B >= block_batch else B
    assert B % BT == 0, "batch must be a multiple of the batch tile"
    OC1, OC2, OC3 = 32, 64, 64
    A = kparams["w5"].shape[-1]
    Hs, Ws, F0 = H // 4, W // 4, 16 * C

    # space-to-depth by 4 on the raw frames (only XLA-side data movement):
    # (B, C, H, W) -> (H/4, W/4, B, 16*C) with feature order (p, q, c), in bf16.
    xs = x.reshape(B, C, Hs, 4, Ws, 4)
    xs = xs.transpose(2, 4, 0, 3, 5, 1).reshape(Hs, Ws, B, F0).astype(jnp.bfloat16)

    weight_args = (kparams["w1"], kparams["b1"], kparams["w2"], kparams["b2"],
                   kparams["w3"], kparams["b3"], kparams["w4"], kparams["b4"],
                   kparams["w5"], kparams["b5"])

    in_specs = [pl.BlockSpec((Hs, Ws, BT, F0), lambda b: (0, 0, b, 0))]
    for arr in weight_args:  # weights/biases: full array, resident across the grid
        in_specs.append(pl.BlockSpec(arr.shape, lambda b, _nd=arr.ndim: (0,) * _nd))

    flops = 2 * B * (OH1 * OW1 * (64 * C) * OC1
                     + OH2 * OW2 * (16 * OC1) * OC2
                     + OH3 * OW3 * (9 * OC2) * OC3
                     + (OH3 * OW3 * OC3) * 512
                     + 512 * A)
    bytes_accessed = (xs.size * 2
                      + sum(a.size * a.dtype.itemsize for a in weight_args)
                      + B * A * 4)

    grid_spec = pltpu.PrefetchScalarGridSpec(
        num_scalar_prefetch=0,
        grid=(B // BT,),
        in_specs=in_specs,
        out_specs=pl.BlockSpec((BT, A), lambda b: (b, 0)),
        scratch_shapes=[
            pltpu.VMEM((OH1 // 2, 2, OW1 // 2, 2, BT, OC1), jnp.float32),
            pltpu.VMEM((OH2, OW2, BT, OC2), jnp.float32),
            pltpu.VMEM((OH3, OW3, BT, OC3), jnp.float32),
        ],
    )

    fused = pl.pallas_call(
        _atari_pgn_kernel,
        out_shape=jax.ShapeDtypeStruct((B, A), jnp.float32),
        grid_spec=grid_spec,
        compiler_params=pltpu.CompilerParams(
            dimension_semantics=("parallel",),
            vmem_limit_bytes=32 * 1024 * 1024,
        ),
        cost_estimate=pl.CostEstimate(flops=flops, transcendentals=0,
                                      bytes_accessed=bytes_accessed),
    )
    return fused(xs, *weight_args)


# ----------------------------------------------------------------------------
# pure-JAX f32 reference of the PyTorch forward (for validation)
# ----------------------------------------------------------------------------
def atari_pgn_reference(params, x):
    fx = x.astype(jnp.float32) / 256.0
    prec = lax.Precision.HIGHEST

    def conv(h, w, b, stride):
        out = lax.conv_general_dilated(
            h, w, window_strides=(stride, stride), padding="VALID",
            dimension_numbers=("NCHW", "OIHW", "NCHW"), precision=prec)
        return jax.nn.relu(out + b.reshape(1, -1, 1, 1))

    h = conv(fx, params["w1"], params["b1"], 4)
    h = conv(h, params["w2"], params["b2"], 2)
    h = conv(h, params["w3"], params["b3"], 1)
    h = h.reshape(h.shape[0], -1)
    h = jax.nn.relu(jnp.dot(h, params["w4"].T, precision=prec) + params["b4"])
    return jnp.dot(h, params["w5"].T, precision=prec) + params["b5"]


if __name__ == "__main__":
    # Small conv-valid demo shapes: 36x36 frames -> conv stack 8x8 -> 3x3 -> 1x1
    # (same structure as the real 84x84 Atari config which gives 20 -> 9 -> 7).
    B, C, H, W = 32, 4, 36, 36
    NUM_ACTIONS = 6

    key = jax.random.PRNGKey(0)
    k_x, k_p = jax.random.split(key)
    x = jax.random.randint(k_x, (B, C, H, W), 0, 256, dtype=jnp.int32).astype(jnp.uint8)

    params = init_params(k_p, (C, H, W), NUM_ACTIONS)
    kparams = prepare_params(params, (C, H, W))

    fwd = jax.jit(functools.partial(atari_pgn_forward, block_batch=16))
    logits = jax.block_until_ready(fwd(kparams, x))

    assert logits.shape == (B, NUM_ACTIONS), logits.shape
    assert logits.dtype == jnp.float32
    assert bool(jnp.all(jnp.isfinite(logits)))

    # validate against the pure-JAX f32 reference (bf16 weights/activations in the
    # kernel -> allow a small relative tolerance)
    ref = jax.block_until_ready(atari_pgn_reference(params, x))
    err = float(jnp.max(jnp.abs(logits - ref)))
    scale = float(jnp.max(jnp.abs(ref)))
    assert err <= 0.06 * scale + 3e-4, (err, scale)

    print("KERNEL_OK")
</pallas_src>

<mosaic_0001>
module attributes {stable_mosaic.version = 11 : i64} {
  func.func @_atari_pgn_kernel(%arg0: i32, %arg1: memref<9x9x16x64xbf16, #tpu.memory_space<vmem>>, %arg2: memref<4x64x32xbf16, #tpu.memory_space<vmem>>, %arg3: memref<1x32xf32, #tpu.memory_space<vmem>>, %arg4: memref<16x32x64xbf16, #tpu.memory_space<vmem>>, %arg5: memref<1x64xf32, #tpu.memory_space<vmem>>, %arg6: memref<9x64x64xbf16, #tpu.memory_space<vmem>>, %arg7: memref<1x64xf32, #tpu.memory_space<vmem>>, %arg8: memref<1x64x512xbf16, #tpu.memory_space<vmem>>, %arg9: memref<1x512xf32, #tpu.memory_space<vmem>>, %arg10: memref<512x6xbf16, #tpu.memory_space<vmem>>, %arg11: memref<1x6xf32, #tpu.memory_space<vmem>>, %arg12: memref<16x6xf32, #tpu.memory_space<vmem>>, %arg13: memref<4x2x4x2x16x32xf32, #tpu.memory_space<vmem>>, %arg14: memref<3x3x16x64xf32, #tpu.memory_space<vmem>>, %arg15: memref<1x1x16x64xf32, #tpu.memory_space<vmem>>) attributes {dimension_semantics = [#tpu.dimension_semantics<parallel>], iteration_bounds = array<i64: 2>, scalar_prefetch = 0 : i64, scratch_operands = 3 : i64, tpu.core_type = #tpu.core_type<tc>, window_params = [{transform_indices = @transform_0, window_bounds = array<i64: 9, 9, 16, 64>}, {pipeline_mode = #tpu.pipeline_mode<synchronous>, transform_indices = @transform_1, window_bounds = array<i64: 4, 64, 32>}, {pipeline_mode = #tpu.pipeline_mode<synchronous>, transform_indices = @transform_2, window_bounds = array<i64: 1, 32>}, {pipeline_mode = #tpu.pipeline_mode<synchronous>, transform_indices = @transform_3, window_bounds = array<i64: 16, 32, 64>}, {pipeline_mode = #tpu.pipeline_mode<synchronous>, transform_indices = @transform_4, window_bounds = array<i64: 1, 64>}, {pipeline_mode = #tpu.pipeline_mode<synchronous>, transform_indices = @transform_5, window_bounds = array<i64: 9, 64, 64>}, {pipeline_mode = #tpu.pipeline_mode<synchronous>, transform_indices = @transform_6, window_bounds = array<i64: 1, 64>}, {pipeline_mode = #tpu.pipeline_mode<synchronous>, transform_indices = @transform_7, window_bounds = array<i64: 1, 64, 512>}, {pipeline_mode = #tpu.pipeline_mode<synchronous>, transform_indices = @transform_8, window_bounds = array<i64: 1, 512>}, {pipeline_mode = #tpu.pipeline_mode<synchronous>, transform_indices = @transform_9, window_bounds = array<i64: 512, 6>}, {pipeline_mode = #tpu.pipeline_mode<synchronous>, transform_indices = @transform_10, window_bounds = array<i64: 1, 6>}, {transform_indices = @transform_11, window_bounds = array<i64: 16, 6>}]} {
    %cst = arith.constant 0.000000e+00 : f32
    %0 = vector.broadcast %cst : f32 to vector<1024x32xf32>
    %c0 = arith.constant 0 : index
    %c0_0 = arith.constant 0 : index
    %c0_1 = arith.constant 0 : index
    %c0_2 = arith.constant 0 : index
    %1 = vector.load %arg1[%c0, %c0_0, %c0_1, %c0_2] : memref<9x9x16x64xbf16, #tpu.memory_space<vmem>>, vector<8x8x16x64xbf16>
    %2 = vector.shape_cast %1 : vector<8x8x16x64xbf16> to vector<1024x64xbf16>
    %c0_3 = arith.constant 0 : index
    %c0_4 = arith.constant 0 : index
    %c0_5 = arith.constant 0 : index
    %3 = vector.load %arg2[%c0_3, %c0_4, %c0_5] : memref<4x64x32xbf16, #tpu.memory_space<vmem>>, vector<1x64x32xbf16>
    %4 = vector.shape_cast %3 : vector<1x64x32xbf16> to vector<64x32xbf16>
    %cst_6 = arith.constant dense<0.000000e+00> : vector<1024x32xf32>
    %5 = tpu.matmul %2, %4, %cst_6 {dimension_numbers = #tpu.dot_dimension_numbers<[1], [0], [0], [1], [0, 0, 1, 1], [], []>} : vector<1024x64xbf16>, vector<64x32xbf16>, vector<1024x32xf32> -> vector<1024x32xf32>
    %6 = arith.addf %0, %5 : vector<1024x32xf32>
    %c0_7 = arith.constant 0 : index
    %c1 = arith.constant 1 : index
    %c0_8 = arith.constant 0 : index
    %c0_9 = arith.constant 0 : index
    %7 = vector.load %arg1[%c0_7, %c1, %c0_8, %c0_9] : memref<9x9x16x64xbf16, #tpu.memory_space<vmem>>, vector<8x8x16x64xbf16>
    %8 = vector.shape_cast %7 : vector<8x8x16x64xbf16> to vector<1024x64xbf16>
    %c1_10 = arith.constant 1 : index
    %c0_11 = arith.constant 0 : index
    %c0_12 = arith.constant 0 : index
    %9 = vector.load %arg2[%c1_10, %c0_11, %c0_12] : memref<4x64x32xbf16, #tpu.memory_space<vmem>>, vector<1x64x32xbf16>
    %10 = vector.shape_cast %9 : vector<1x64x32xbf16> to vector<64x32xbf16>
    %cst_13 = arith.constant dense<0.000000e+00> : vector<1024x32xf32>
    %11 = tpu.matmul %8, %10, %cst_13 {dimension_numbers = #tpu.dot_dimension_numbers<[1], [0], [0], [1], [0, 0, 1, 1], [], []>} : vector<1024x64xbf16>, vector<64x32xbf16>, vector<1024x32xf32> -> vector<1024x32xf32>
    %12 = arith.addf %6, %11 : vector<1024x32xf32>
    %c1_14 = arith.constant 1 : index
    %c0_15 = arith.constant 0 : index
    %c0_16 = arith.constant 0 : index
    %c0_17 = arith.constant 0 : index
    %13 = vector.load %arg1[%c1_14, %c0_15, %c0_16, %c0_17] : memref<9x9x16x64xbf16, #tpu.memory_space<vmem>>, vector<8x8x16x64xbf16>
    %14 = vector.shape_cast %13 : vector<8x8x16x64xbf16> to vector<1024x64xbf16>
    %c2 = arith.constant 2 : index
    %c0_18 = arith.constant 0 : index
    %c0_19 = arith.constant 0 : index
    %15 = vector.load %arg2[%c2, %c0_18, %c0_19] : memref<4x64x32xbf16, #tpu.memory_space<vmem>>, vector<1x64x32xbf16>
    %16 = vector.shape_cast %15 : vector<1x64x32xbf16> to vector<64x32xbf16>
    %cst_20 = arith.constant dense<0.000000e+00> : vector<1024x32xf32>
    %17 = tpu.matmul %14, %16, %cst_20 {dimension_numbers = #tpu.dot_dimension_numbers<[1], [0], [0], [1], [0, 0, 1, 1], [], []>} : vector<1024x64xbf16>, vector<64x32xbf16>, vector<1024x32xf32> -> vector<1024x32xf32>
    %18 = arith.addf %12, %17 : vector<1024x32xf32>
    %c1_21 = arith.constant 1 : index
    %c1_22 = arith.constant 1 : index
    %c0_23 = arith.constant 0 : index
    %c0_24 = arith.constant 0 : index
    %19 = vector.load %arg1[%c1_21, %c1_22, %c0_23, %c0_24] : memref<9x9x16x64xbf16, #tpu.memory_space<vmem>>, vector<8x8x16x64xbf16>
    %20 = vector.shape_cast %19 : vector<8x8x16x64xbf16> to vector<1024x64xbf16>
    %c3 = arith.constant 3 : index
    %c0_25 = arith.constant 0 : index
    %c0_26 = arith.constant 0 : index
    %21 = vector.load %arg2[%c3, %c0_25, %c0_26] : memref<4x64x32xbf16, #tpu.memory_space<vmem>>, vector<1x64x32xbf16>
    %22 = vector.shape_cast %21 : vector<1x64x32xbf16> to vector<64x32xbf16>
    %cst_27 = arith.constant dense<0.000000e+00> : vector<1024x32xf32>
    %23 = tpu.matmul %20, %22, %cst_27 {dimension_numbers = #tpu.dot_dimension_numbers<[1], [0], [0], [1], [0, 0, 1, 1], [], []>} : vector<1024x64xbf16>, vector<64x32xbf16>, vector<1024x32xf32> -> vector<1024x32xf32>
    %24 = arith.addf %18, %23 : vector<1024x32xf32>
    %cst_28 = arith.constant 3.906250e-03 : f32
    %25 = vector.broadcast %cst_28 : f32 to vector<1024x32xf32>
    %26 = arith.mulf %24, %25 : vector<1024x32xf32>
    %c0_29 = arith.constant 0 : index
    %c0_30 = arith.constant 0 : index
    %27 = vector.load %arg3[%c0_29, %c0_30] : memref<1x32xf32, #tpu.memory_space<vmem>>, vector<1x32xf32>
    %28 = vector.broadcast %27 : vector<1x32xf32> to vector<1024x32xf32>
    %29 = arith.addf %26, %28 : vector<1024x32xf32>
    %cst_31 = arith.constant 0.000000e+00 : f32
    %30 = vector.broadcast %cst_31 : f32 to vector<1024x32xf32>
    %31 = arith.maximumf %29, %30 : vector<1024x32xf32>
    %32 = vector.shape_cast %31 : vector<1024x32xf32> to vector<4x2x4x2x16x32xf32>
    %c0_32 = arith.constant 0 : index
    %c0_33 = arith.constant 0 : index
    %c0_34 = arith.constant 0 : index
    %c0_35 = arith.constant 0 : index
    %c0_36 = arith.constant 0 : index
    %c0_37 = arith.constant 0 : index
    %33 = vector.load %arg13[%c0_32, %c0_33, %c0_34, %c0_35, %c0_36, %c0_37] : memref<4x2x4x2x16x32xf32, #tpu.memory_space<vmem>>, vector<4x2x4x2x16x32xf32>
    tpu.vector_store %arg13[%c0_32, %c0_33, %c0_34, %c0_35, %c0_36, %c0_37], %32 {strides = array<i32>} : memref<4x2x4x2x16x32xf32, #tpu.memory_space<vmem>>, vector<4x2x4x2x16x32xf32>,
    %cst_38 = arith.constant 0.000000e+00 : f32
    %34 = vector.broadcast %cst_38 : f32 to vector<144x64xf32>
    %c0_39 = arith.constant 0 : index
    %c0_40 = arith.constant 0 : index
    %c0_41 = arith.constant 0 : index
    %c0_42 = arith.constant 0 : index
    %c0_43 = arith.constant 0 : index
    %c0_44 = arith.constant 0 : index
    %35 = vector.load %arg13[%c0_39, %c0_40, %c0_41, %c0_42, %c0_43, %c0_44] : memref<4x2x4x2x16x32xf32, #tpu.memory_space<vmem>>, vector<3x1x3x1x16x32xf32>
    %36 = vector.shape_cast %35 : vector<3x1x3x1x16x32xf32> to vector<3x3x16x32xf32>
    %37 = vector.shape_cast %36 : vector<3x3x16x32xf32> to vector<144x32xf32>
    %38 = arith.truncf %37 : vector<144x32xf32> to vector<144x32xbf16>
    %c0_45 = arith.constant 0 : index
    %c0_46 = arith.constant 0 : index
    %c0_47 = arith.constant 0 : index
    %39 = vector.load %arg4[%c0_45, %c0_46, %c0_47] : memref<16x32x64xbf16, #tpu.memory_space<vmem>>, vector<1x32x64xbf16>
    %40 = vector.shape_cast %39 : vector<1x32x64xbf16> to vector<32x64xbf16>
    %cst_48 = arith.constant dense<0.000000e+00> : vector<144x64xf32>
    %41 = tpu.matmul %38, %40, %cst_48 {dimension_numbers = #tpu.dot_dimension_numbers<[1], [0], [0], [1], [0, 0, 1, 1], [], []>} : vector<144x32xbf16>, vector<32x64xbf16>, vector<144x64xf32> -> vector<144x64xf32>
    %42 = arith.addf %34, %41 : vector<144x64xf32>
    %c0_49 = arith.constant 0 : index
    %c0_50 = arith.constant 0 : index
    %c0_51 = arith.constant 0 : index
    %c1_52 = arith.constant 1 : index
    %c0_53 = arith.constant 0 : index
    %c0_54 = arith.constant 0 : index
    %43 = vector.load %arg13[%c0_49, %c0_50, %c0_51, %c1_52, %c0_53, %c0_54] : memref<4x2x4x2x16x32xf32, #tpu.memory_space<vmem>>, vector<3x1x3x1x16x32xf32>
    %44 = vector.shape_cast %43 : vector<3x1x3x1x16x32xf32> to vector<3x3x16x32xf32>
    %45 = vector.shape_cast %44 : vector<3x3x16x32xf32> to vector<144x32xf32>
    %46 = arith.truncf %45 : vector<144x32xf32> to vector<144x32xbf16>
    %c1_55 = arith.constant 1 : index
    %c0_56 = arith.constant 0 : index
    %c0_57 = arith.constant 0 : index
    %47 = vector.load %arg4[%c1_55, %c0_56, %c0_57] : memref<16x32x64xbf16, #tpu.memory_space<vmem>>, vector<1x32x64xbf16>
    %48 = vector.shape_cast %47 : vector<1x32x64xbf16> to vector<32x64xbf16>
    %cst_58 = arith.constant dense<0.000000e+00> : vector<144x64xf32>
    %49 = tpu.matmul %46, %48, %cst_58 {dimension_numbers = #tpu.dot_dimension_numbers<[1], [0], [0], [1], [0, 0, 1, 1], [], []>} : vector<144x32xbf16>, vector<32x64xbf16>, vector<144x64xf32> -> vector<144x64xf32>
    %50 = arith.addf %42, %49 : vector<144x64xf32>
    %c0_59 = arith.constant 0 : index
    %c0_60 = arith.constant 0 : index
    %c1_61 = arith.constant 1 : index
    %c0_62 = arith.constant 0 : index
    %c0_63 = arith.constant 0 : index
    %c0_64 = arith.constant 0 : index
    %51 = vector.load %arg13[%c0_59, %c0_60, %c1_61, %c0_62, %c0_63, %c0_64] : memref<4x2x4x2x16x32xf32, #tpu.memory_space<vmem>>, vector<3x1x3x1x16x32xf32>
    %52 = vector.shape_cast %51 : vector<3x1x3x1x16x32xf32> to vector<3x3x16x32xf32>
    %53 = vector.shape_cast %52 : vector<3x3x16x32xf32> to vector<144x32xf32>
    %54 = arith.truncf %53 : vector<144x32xf32> to vector<144x32xbf16>
    %c2_65 = arith.constant 2 : index
    %c0_66 = arith.constant 0 : index
    %c0_67 = arith.constant 0 : index
    %55 = vector.load %arg4[%c2_65, %c0_66, %c0_67] : memref<16x32x64xbf16, #tpu.memory_space<vmem>>, vector<1x32x64xbf16>
    %56 = vector.shape_cast %55 : vector<1x32x64xbf16> to vector<32x64xbf16>
    %cst_68 = arith.constant dense<0.000000e+00> : vector<144x64xf32>
    %57 = tpu.matmul %54, %56, %cst_68 {dimension_numbers = #tpu.dot_dimension_numbers<[1], [0], [0], [1], [0, 0, 1, 1], [], []>} : vector<144x32xbf16>, vector<32x64xbf16>, vector<144x64xf32> -> vector<144x64xf32>
    %58 = arith.addf %50, %57 : vector<144x64xf32>
    %c0_69 = arith.constant 0 : index
    %c0_70 = arith.constant 0 : index
    %c1_71 = arith.constant 1 : index
    %c1_72 = arith.constant 1 : index
    %c0_73 = arith.constant 0 : index
    %c0_74 = arith.constant 0 : index
    %59 = vector.load %arg13[%c0_69, %c0_70, %c1_71, %c1_72, %c0_73, %c0_74] : memref<4x2x4x2x16x32xf32, #tpu.memory_space<vmem>>, vector<3x1x3x1x16x32xf32>
    %60 = vector.shape_cast %59 : vector<3x1x3x1x16x32xf32> to vector<3x3x16x32xf32>
    %61 = vector.shape_cast %60 : vector<3x3x16x32xf32> to vector<144x32xf32>
    %62 = arith.truncf %61 : vector<144x32xf32> to vector<144x32xbf16>
    %c3_75 = arith.constant 3 : index
    %c0_76 = arith.constant 0 : index
    %c0_77 = arith.constant 0 : index
    %63 = vector.load %arg4[%c3_75, %c0_76, %c0_77] : memref<16x32x64xbf16, #tpu.memory_space<vmem>>, vector<1x32x64xbf16>
    %64 = vector.shape_cast %63 : vector<1x32x64xbf16> to vector<32x64xbf16>
    %cst_78 = arith.constant dense<0.000000e+00> : vector<144x64xf32>
    %65 = tpu.matmul %62, %64, %cst_78 {dimension_numbers = #tpu.dot_dimension_numbers<[1], [0], [0], [1], [0, 0, 1, 1], [], []>} : vector<144x32xbf16>, vector<32x64xbf16>, vector<144x64xf32> -> vector<144x64xf32>
    %66 = arith.addf %58, %65 : vector<144x64xf32>
    %c0_79 = arith.constant 0 : index
    %c1_80 = arith.constant 1 : index
    %c0_81 = arith.constant 0 : index
    %c0_82 = arith.constant 0 : index
    %c0_83 = arith.constant 0 : index
    %c0_84 = arith.constant 0 : index
    %67 = vector.load %arg13[%c0_79, %c1_80, %c0_81, %c0_82, %c0_83, %c0_84] : memref<4x2x4x2x16x32xf32, #tpu.memory_space<vmem>>, vector<3x1x3x1x16x32xf32>
    %68 = vector.shape_cast %67 : vector<3x1x3x1x16x32xf32> to vector<3x3x16x32xf32>
    %69 = vector.shape_cast %68 : vector<3x3x16x32xf32> to vector<144x32xf32>
    %70 = arith.truncf %69 : vector<144x32xf32> to vector<144x32xbf16>
    %c4 = arith.constant 4 : index
    %c0_85 = arith.constant 0 : index
    %c0_86 = arith.constant 0 : index
    %71 = vector.load %arg4[%c4, %c0_85, %c0_86] : memref<16x32x64xbf16, #tpu.memory_space<vmem>>, vector<1x32x64xbf16>
    %72 = vector.shape_cast %71 : vector<1x32x64xbf16> to vector<32x64xbf16>
    %cst_87 = arith.constant dense<0.000000e+00> : vector<144x64xf32>
    %73 = tpu.matmul %70, %72, %cst_87 {dimension_numbers = #tpu.dot_dimension_numbers<[1], [0], [0], [1], [0, 0, 1, 1], [], []>} : vector<144x32xbf16>, vector<32x64xbf16>, vector<144x64xf32> -> vector<144x64xf32>
    %74 = arith.addf %66, %73 : vector<144x64xf32>
    %c0_88 = arith.constant 0 : index
    %c1_89 = arith.constant 1 : index
    %c0_90 = arith.constant 0 : index
    %c1_91 = arith.constant 1 : index
    %c0_92 = arith.constant 0 : index
    %c0_93 = arith.constant 0 : index
    %75 = vector.load %arg13[%c0_88, %c1_89, %c0_90, %c1_91, %c0_92, %c0_93] : memref<4x2x4x2x16x32xf32, #tpu.memory_space<vmem>>, vector<3x1x3x1x16x32xf32>
    %76 = vector.shape_cast %75 : vector<3x1x3x1x16x32xf32> to vector<3x3x16x32xf32>
    %77 = vector.shape_cast %76 : vector<3x3x16x32xf32> to vector<144x32xf32>
    %78 = arith.truncf %77 : vector<144x32xf32> to vector<144x32xbf16>
    %c5 = arith.constant 5 : index
    %c0_94 = arith.constant 0 : index
    %c0_95 = arith.constant 0 : index
    %79 = vector.load %arg4[%c5, %c0_94, %c0_95] : memref<16x32x64xbf16, #tpu.memory_space<vmem>>, vector<1x32x64xbf16>
    %80 = vector.shape_cast %79 : vector<1x32x64xbf16> to vector<32x64xbf16>
    %cst_96 = arith.constant dense<0.000000e+00> : vector<144x64xf32>
    %81 = tpu.matmul %78, %80, %cst_96 {dimension_numbers = #tpu.dot_dimension_numbers<[1], [0], [0], [1], [0, 0, 1, 1], [], []>} : vector<144x32xbf16>, vector<32x64xbf16>, vector<144x64xf32> -> vector<144x64xf32>
    %82 = arith.addf %74, %81 : vector<144x64xf32>
    %c0_97 = arith.constant 0 : index
    %c1_98 = arith.constant 1 : index
    %c1_99 = arith.constant 1 : index
    %c0_100 = arith.constant 0 : index
    %c0_101 = arith.constant 0 : index
    %c0_102 = arith.constant 0 : index
    %83 = vector.load %arg13[%c0_97, %c1_98, %c1_99, %c0_100, %c0_101, %c0_102] : memref<4x2x4x2x16x32xf32, #tpu.memory_space<vmem>>, vector<3x1x3x1x16x32xf32>
    %84 = vector.shape_cast %83 : vector<3x1x3x1x16x32xf32> to vector<3x3x16x32xf32>
    %85 = vector.shape_cast %84 : vector<3x3x16x32xf32> to vector<144x32xf32>
    %86 = arith.truncf %85 : vector<144x32xf32> to vector<144x32xbf16>
    %c6 = arith.constant 6 : index
    %c0_103 = arith.constant 0 : index
    %c0_104 = arith.constant 0 : index
    %87 = vector.load %arg4[%c6, %c0_103, %c0_104] : memref<16x32x64xbf16, #tpu.memory_space<vmem>>, vector<1x32x64xbf16>
    %88 = vector.shape_cast %87 : vector<1x32x64xbf16> to vector<32x64xbf16>
    %cst_105 = arith.constant dense<0.000000e+00> : vector<144x64xf32>
    %89 = tpu.matmul %86, %88, %cst_105 {dimension_numbers = #tpu.dot_dimension_numbers<[1], [0], [0], [1], [0, 0, 1, 1], [], []>} : vector<144x32xbf16>, vector<32x64xbf16>, vector<144x64xf32> -> vector<144x64xf32>
    %90 = arith.addf %82, %89 : vector<144x64xf32>
    %c0_106 = arith.constant 0 : index
    %c1_107 = arith.constant 1 : index
    %c1_108 = arith.constant 1 : index
    %c1_109 = arith.constant 1 : index
    %c0_110 = arith.constant 0 : index
    %c0_111 = arith.constant 0 : index
    %91 = vector.load %arg13[%c0_106, %c1_107, %c1_108, %c1_109, %c0_110, %c0_111] : memref<4x2x4x2x16x32xf32, #tpu.memory_space<vmem>>, vector<3x1x3x1x16x32xf32>
    %92 = vector.shape_cast %91 : vector<3x1x3x1x16x32xf32> to vector<3x3x16x32xf32>
    %93 = vector.shape_cast %92 : vector<3x3x16x32xf32> to vector<144x32xf32>
    %94 = arith.truncf %93 : vector<144x32xf32> to vector<144x32xbf16>
    %c7 = arith.constant 7 : index
    %c0_112 = arith.constant 0 : index
    %c0_113 = arith.constant 0 : index
    %95 = vector.load %arg4[%c7, %c0_112, %c0_113] : memref<16x32x64xbf16, #tpu.memory_space<vmem>>, vector<1x32x64xbf16>
    %96 = vector.shape_cast %95 : vector<1x32x64xbf16> to vector<32x64xbf16>
    %cst_114 = arith.constant dense<0.000000e+00> : vector<144x64xf32>
    %97 = tpu.matmul %94, %96, %cst_114 {dimension_numbers = #tpu.dot_dimension_numbers<[1], [0], [0], [1], [0, 0, 1, 1], [], []>} : vector<144x32xbf16>, vector<32x64xbf16>, vector<144x64xf32> -> vector<144x64xf32>
    %98 = arith.addf %90, %97 : vector<144x64xf32>
    %c1_115 = arith.constant 1 : index
    %c0_116 = arith.constant 0 : index
    %c0_117 = arith.constant 0 : index
    %c0_118 = arith.constant 0 : index
    %c0_119 = arith.constant 0 : index
    %c0_120 = arith.constant 0 : index
    %99 = vector.load %arg13[%c1_115, %c0_116, %c0_117, %c0_118, %c0_119, %c0_120] : memref<4x2x4x2x16x32xf32, #tpu.memory_space<vmem>>, vector<3x1x3x1x16x32xf32>
    %100 = vector.shape_cast %99 : vector<3x1x3x1x16x32xf32> to vector<3x3x16x32xf32>
    %101 = vector.shape_cast %100 : vector<3x3x16x32xf32> to vector<144x32xf32>
    %102 = arith.truncf %101 : vector<144x32xf32> to vector<144x32xbf16>
    %c8 = arith.constant 8 : index
    %c0_121 = arith.constant 0 : index
    %c0_122 = arith.constant 0 : index
    %103 = vector.load %arg4[%c8, %c0_121, %c0_122] : memref<16x32x64xbf16, #tpu.memory_space<vmem>>, vector<1x32x64xbf16>
    %104 = vector.shape_cast %103 : vector<1x32x64xbf16> to vector<32x64xbf16>
    %cst_123 = arith.constant dense<0.000000e+00> : vector<144x64xf32>
    %105 = tpu.matmul %102, %104, %cst_123 {dimension_numbers = #tpu.dot_dimension_numbers<[1], [0], [0], [1], [0, 0, 1, 1], [], []>} : vector<144x32xbf16>, vector<32x64xbf16>, vector<144x64xf32> -> vector<144x64xf32>
    %106 = arith.addf %98, %105 : vector<144x64xf32>
    %c1_124 = arith.constant 1 : index
    %c0_125 = arith.constant 0 : index
    %c0_126 = arith.constant 0 : index
    %c1_127 = arith.constant 1 : index
    %c0_128 = arith.constant 0 : index
    %c0_129 = arith.constant 0 : index
    %107 = vector.load %arg13[%c1_124, %c0_125, %c0_126, %c1_127, %c0_128, %c0_129] : memref<4x2x4x2x16x32xf32, #tpu.memory_space<vmem>>, vector<3x1x3x1x16x32xf32>
    %108 = vector.shape_cast %107 : vector<3x1x3x1x16x32xf32> to vector<3x3x16x32xf32>
    %109 = vector.shape_cast %108 : vector<3x3x16x32xf32> to vector<144x32xf32>
    %110 = arith.truncf %109 : vector<144x32xf32> to vector<144x32xbf16>
    %c9 = arith.constant 9 : index
    %c0_130 = arith.constant 0 : index
    %c0_131 = arith.constant 0 : index
    %111 = vector.load %arg4[%c9, %c0_130, %c0_131] : memref<16x32x64xbf16, #tpu.memory_space<vmem>>, vector<1x32x64xbf16>
    %112 = vector.shape_cast %111 : vector<1x32x64xbf16> to vector<32x64xbf16>
    %cst_132 = arith.constant dense<0.000000e+00> : vector<144x64xf32>
    %113 = tpu.matmul %110, %112, %cst_132 {dimension_numbers = #tpu.dot_dimension_numbers<[1], [0], [0], [1], [0, 0, 1, 1], [], []>} : vector<144x32xbf16>, vector<32x64xbf16>, vector<144x64xf32> -> vector<144x64xf32>
    %114 = arith.addf %106, %113 : vector<144x64xf32>
    %c1_133 = arith.constant 1 : index
    %c0_134 = arith.constant 0 : index
    %c1_135 = arith.constant 1 : index
    %c0_136 = arith.constant 0 : index
    %c0_137 = arith.constant 0 : index
    %c0_138 = arith.constant 0 : index
    %115 = vector.load %arg13[%c1_133, %c0_134, %c1_135, %c0_136, %c0_137, %c0_138] : memref<4x2x4x2x16x32xf32, #tpu.memory_space<vmem>>, vector<3x1x3x1x16x32xf32>
    %116 = vector.shape_cast %115 : vector<3x1x3x1x16x32xf32> to vector<3x3x16x32xf32>
    %117 = vector.shape_cast %116 : vector<3x3x16x32xf32> to vector<144x32xf32>
    %118 = arith.truncf %117 : vector<144x32xf32> to vector<144x32xbf16>
    %c10 = arith.constant 10 : index
    %c0_139 = arith.constant 0 : index
    %c0_140 = arith.constant 0 : index
    %119 = vector.load %arg4[%c10, %c0_139, %c0_140] : memref<16x32x64xbf16, #tpu.memory_space<vmem>>, vector<1x32x64xbf16>
    %120 = vector.shape_cast %119 : vector<1x32x64xbf16> to vector<32x64xbf16>
    %cst_141 = arith.constant dense<0.000000e+00> : vector<144x64xf32>
    %121 = tpu.matmul %118, %120, %cst_141 {dimension_numbers = #tpu.dot_dimension_numbers<[1], [0], [0], [1], [0, 0, 1, 1], [], []>} : vector<144x32xbf16>, vector<32x64xbf16>, vector<144x64xf32> -> vector<144x64xf32>
    %122 = arith.addf %114, %121 : vector<144x64xf32>
    %c1_142 = arith.constant 1 : index
    %c0_143 = arith.constant 0 : index
    %c1_144 = arith.constant 1 : index
    %c1_145 = arith.constant 1 : index
    %c0_146 = arith.constant 0 : index
    %c0_147 = arith.constant 0 : index
    %123 = vector.load %arg13[%c1_142, %c0_143, %c1_144, %c1_145, %c0_146, %c0_147] : memref<4x2x4x2x16x32xf32, #tpu.memory_space<vmem>>, vector<3x1x3x1x16x32xf32>
    %124 = vector.shape_cast %123 : vector<3x1x3x1x16x32xf32> to vector<3x3x16x32xf32>
    %125 = vector.shape_cast %124 : vector<3x3x16x32xf32> to vector<144x32xf32>
    %126 = arith.truncf %125 : vector<144x32xf32> to vector<144x32xbf16>
    %c11 = arith.constant 11 : index
    %c0_148 = arith.constant 0 : index
    %c0_149 = arith.constant 0 : index
    %127 = vector.load %arg4[%c11, %c0_148, %c0_149] : memref<16x32x64xbf16, #tpu.memory_space<vmem>>, vector<1x32x64xbf16>
    %128 = vector.shape_cast %127 : vector<1x32x64xbf16> to vector<32x64xbf16>
    %cst_150 = arith.constant dense<0.000000e+00> : vector<144x64xf32>
    %129 = tpu.matmul %126, %128, %cst_150 {dimension_numbers = #tpu.dot_dimension_numbers<[1], [0], [0], [1], [0, 0, 1, 1], [], []>} : vector<144x32xbf16>, vector<32x64xbf16>, vector<144x64xf32> -> vector<144x64xf32>
    %130 = arith.addf %122, %129 : vector<144x64xf32>
    %c1_151 = arith.constant 1 : index
    %c1_152 = arith.constant 1 : index
    %c0_153 = arith.constant 0 : index
    %c0_154 = arith.constant 0 : index
    %c0_155 = arith.constant 0 : index
    %c0_156 = arith.constant 0 : index
    %131 = vector.load %arg13[%c1_151, %c1_152, %c0_153, %c0_154, %c0_155, %c0_156] : memref<4x2x4x2x16x32xf32, #tpu.memory_space<vmem>>, vector<3x1x3x1x16x32xf32>
    %132 = vector.shape_cast %131 : vector<3x1x3x1x16x32xf32> to vector<3x3x16x32xf32>
    %133 = vector.shape_cast %132 : vector<3x3x16x32xf32> to vector<144x32xf32>
    %134 = arith.truncf %133 : vector<144x32xf32> to vector<144x32xbf16>
    %c12 = arith.constant 12 : index
    %c0_157 = arith.constant 0 : index
    %c0_158 = arith.constant 0 : index
    %135 = vector.load %arg4[%c12, %c0_157, %c0_158] : memref<16x32x64xbf16, #tpu.memory_space<vmem>>, vector<1x32x64xbf16>
    %136 = vector.shape_cast %135 : vector<1x32x64xbf16> to vector<32x64xbf16>
    %cst_159 = arith.constant dense<0.000000e+00> : vector<144x64xf32>
    %137 = tpu.matmul %134, %136, %cst_159 {dimension_numbers = #tpu.dot_dimension_numbers<[1], [0], [0], [1], [0, 0, 1, 1], [], []>} : vector<144x32xbf16>, vector<32x64xbf16>, vector<144x64xf32> -> vector<144x64xf32>
    %138 = arith.addf %130, %137 : vector<144x64xf32>
    %c1_160 = arith.constant 1 : index
    %c1_161 = arith.constant 1 : index
    %c0_162 = arith.constant 0 : index
    %c1_163 = arith.constant 1 : index
    %c0_164 = arith.constant 0 : index
    %c0_165 = arith.constant 0 : index
    %139 = vector.load %arg13[%c1_160, %c1_161, %c0_162, %c1_163, %c0_164, %c0_165] : memref<4x2x4x2x16x32xf32, #tpu.memory_space<vmem>>, vector<3x1x3x1x16x32xf32>
    %140 = vector.shape_cast %139 : vector<3x1x3x1x16x32xf32> to vector<3x3x16x32xf32>
    %141 = vector.shape_cast %140 : vector<3x3x16x32xf32> to vector<144x32xf32>
    %142 = arith.truncf %141 : vector<144x32xf32> to vector<144x32xbf16>
    %c13 = arith.constant 13 : index
    %c0_166 = arith.constant 0 : index
    %c0_167 = arith.constant 0 : index
    %143 = vector.load %arg4[%c13, %c0_166, %c0_167] : memref<16x32x64xbf16, #tpu.memory_space<vmem>>, vector<1x32x64xbf16>
    %144 = vector.shape_cast %143 : vector<1x32x64xbf16> to vector<32x64xbf16>
    %cst_168 = arith.constant dense<0.000000e+00> : vector<144x64xf32>
    %145 = tpu.matmul %142, %144, %cst_168 {dimension_numbers = #tpu.dot_dimension_numbers<[1], [0], [0], [1], [0, 0, 1, 1], [], []>} : vector<144x32xbf16>, vector<32x64xbf16>, vector<144x64xf32> -> vector<144x64xf32>
    %146 = arith.addf %138, %145 : vector<144x64xf32>
    %c1_169 = arith.constant 1 : index
    %c1_170 = arith.constant 1 : index
    %c1_171 = arith.constant 1 : index
    %c0_172 = arith.constant 0 : index
    %c0_173 = arith.constant 0 : index
    %c0_174 = arith.constant 0 : index
    %147 = vector.load %arg13[%c1_169, %c1_170, %c1_171, %c0_172, %c0_173, %c0_174] : memref<4x2x4x2x16x32xf32, #tpu.memory_space<vmem>>, vector<3x1x3x1x16x32xf32>
    %148 = vector.shape_cast %147 : vector<3x1x3x1x16x32xf32> to vector<3x3x16x32xf32>
    %149 = vector.shape_cast %148 : vector<3x3x16x32xf32> to vector<144x32xf32>
    %150 = arith.truncf %149 : vector<144x32xf32> to vector<144x32xbf16>
    %c14 = arith.constant 14 : index
    %c0_175 = arith.constant 0 : index
    %c0_176 = arith.constant 0 : index
    %151 = vector.load %arg4[%c14, %c0_175, %c0_176] : memref<16x32x64xbf16, #tpu.memory_space<vmem>>, vector<1x32x64xbf16>
    %152 = vector.shape_cast %151 : vector<1x32x64xbf16> to vector<32x64xbf16>
    %cst_177 = arith.constant dense<0.000000e+00> : vector<144x64xf32>
    %153 = tpu.matmul %150, %152, %cst_177 {dimension_numbers = #tpu.dot_dimension_numbers<[1], [0], [0], [1], [0, 0, 1, 1], [], []>} : vector<144x32xbf16>, vector<32x64xbf16>, vector<144x64xf32> -> vector<144x64xf32>
    %154 = arith.addf %146, %153 : vector<144x64xf32>
    %c1_178 = arith.constant 1 : index
    %c1_179 = arith.constant 1 : index
    %c1_180 = arith.constant 1 : index
    %c1_181 = arith.constant 1 : index
    %c0_182 = arith.constant 0 : index
    %c0_183 = arith.constant 0 : index
    %155 = vector.load %arg13[%c1_178, %c1_179, %c1_180, %c1_181, %c0_182, %c0_183] : memref<4x2x4x2x16x32xf32, #tpu.memory_space<vmem>>, vector<3x1x3x1x16x32xf32>
    %156 = vector.shape_cast %155 : vector<3x1x3x1x16x32xf32> to vector<3x3x16x32xf32>
    %157 = vector.shape_cast %156 : vector<3x3x16x32xf32> to vector<144x32xf32>
    %158 = arith.truncf %157 : vector<144x32xf32> to vector<144x32xbf16>
    %c15 = arith.constant 15 : index
    %c0_184 = arith.constant 0 : index
    %c0_185 = arith.constant 0 : index
    %159 = vector.load %arg4[%c15, %c0_184, %c0_185] : memref<16x32x64xbf16, #tpu.memory_space<vmem>>, vector<1x32x64xbf16>
    %160 = vector.shape_cast %159 : vector<1x32x64xbf16> to vector<32x64xbf16>
    %cst_186 = arith.constant dense<0.000000e+00> : vector<144x64xf32>
    %161 = tpu.matmul %158, %160, %cst_186 {dimension_numbers = #tpu.dot_dimension_numbers<[1], [0], [0], [1], [0, 0, 1, 1], [], []>} : vector<144x32xbf16>, vector<32x64xbf16>, vector<144x64xf32> -> vector<144x64xf32>
    %162 = arith.addf %154, %161 : vector<144x64xf32>
    %c0_187 = arith.constant 0 : index
    %c0_188 = arith.constant 0 : index
    %163 = vector.load %arg5[%c0_187, %c0_188] : memref<1x64xf32, #tpu.memory_space<vmem>>, vector<1x64xf32>
    %164 = vector.broadcast %163 : vector<1x64xf32> to vector<144x64xf32>
    %165 = arith.addf %162, %164 : vector<144x64xf32>
    %cst_189 = arith.constant 0.000000e+00 : f32
    %166 = vector.broadcast %cst_189 : f32 to vector<144x64xf32>
    %167 = arith.maximumf %165, %166 : vector<144x64xf32>
    %168 = vector.shape_cast %167 : vector<144x64xf32> to vector<3x3x16x64xf32>
    %c0_190 = arith.constant 0 : index
    %c0_191 = arith.constant 0 : index
    %c0_192 = arith.constant 0 : index
    %c0_193 = arith.constant 0 : index
    %169 = vector.load %arg14[%c0_190, %c0_191, %c0_192, %c0_193] : memref<3x3x16x64xf32, #tpu.memory_space<vmem>>, vector<3x3x16x64xf32>
    tpu.vector_store %arg14[%c0_190, %c0_191, %c0_192, %c0_193], %168 {strides = array<i32>} : memref<3x3x16x64xf32, #tpu.memory_space<vmem>>, vector<3x3x16x64xf32>,
    %cst_194 = arith.constant 0.000000e+00 : f32
    %170 = vector.broadcast %cst_194 : f32 to vector<16x64xf32>
    %c0_195 = arith.constant 0 : index
    %c0_196 = arith.constant 0 : index
    %c0_197 = arith.constant 0 : index
    %c0_198 = arith.constant 0 : index
    %171 = vector.load %arg14[%c0_195, %c0_196, %c0_197, %c0_198] : memref<3x3x16x64xf32, #tpu.memory_space<vmem>>, vector<1x1x16x64xf32>
    %172 = vector.shape_cast %171 : vector<1x1x16x64xf32> to vector<16x64xf32>
    %173 = arith.truncf %172 : vector<16x64xf32> to vector<16x64xbf16>
    %c0_199 = arith.constant 0 : index
    %c0_200 = arith.constant 0 : index
    %c0_201 = arith.constant 0 : index
    %174 = vector.load %arg6[%c0_199, %c0_200, %c0_201] : memref<9x64x64xbf16, #tpu.memory_space<vmem>>, vector<1x64x64xbf16>
    %175 = vector.shape_cast %174 : vector<1x64x64xbf16> to vector<64x64xbf16>
    %cst_202 = arith.constant dense<0.000000e+00> : vector<16x64xf32>
    %176 = tpu.matmul %173, %175, %cst_202 {dimension_numbers = #tpu.dot_dimension_numbers<[1], [0], [0], [1], [0, 0, 1, 1], [], []>} : vector<16x64xbf16>, vector<64x64xbf16>, vector<16x64xf32> -> vector<16x64xf32>
    %177 = arith.addf %170, %176 : vector<16x64xf32>
    %c0_203 = arith.constant 0 : index
    %c1_204 = arith.constant 1 : index
    %c0_205 = arith.constant 0 : index
    %c0_206 = arith.constant 0 : index
    %178 = vector.load %arg14[%c0_203, %c1_204, %c0_205, %c0_206] : memref<3x3x16x64xf32, #tpu.memory_space<vmem>>, vector<1x1x16x64xf32>
    %179 = vector.shape_cast %178 : vector<1x1x16x64xf32> to vector<16x64xf32>
    %180 = arith.truncf %179 : vector<16x64xf32> to vector<16x64xbf16>
    %c1_207 = arith.constant 1 : index
    %c0_208 = arith.constant 0 : index
    %c0_209 = arith.constant 0 : index
    %181 = vector.load %arg6[%c1_207, %c0_208, %c0_209] : memref<9x64x64xbf16, #tpu.memory_space<vmem>>, vector<1x64x64xbf16>
    %182 = vector.shape_cast %181 : vector<1x64x64xbf16> to vector<64x64xbf16>
    %cst_210 = arith.constant dense<0.000000e+00> : vector<16x64xf32>
    %183 = tpu.matmul %180, %182, %cst_210 {dimension_numbers = #tpu.dot_dimension_numbers<[1], [0], [0], [1], [0, 0, 1, 1], [], []>} : vector<16x64xbf16>, vector<64x64xbf16>, vector<16x64xf32> -> vector<16x64xf32>
    %184 = arith.addf %177, %183 : vector<16x64xf32>
    %c0_211 = arith.constant 0 : index
    %c2_212 = arith.constant 2 : index
    %c0_213 = arith.constant 0 : index
    %c0_214 = arith.constant 0 : index
    %185 = vector.load %arg14[%c0_211, %c2_212, %c0_213, %c0_214] : memref<3x3x16x64xf32, #tpu.memory_space<vmem>>, vector<1x1x16x64xf32>
    %186 = vector.shape_cast %185 : vector<1x1x16x64xf32> to vector<16x64xf32>
    %187 = arith.truncf %186 : vector<16x64xf32> to vector<16x64xbf16>
    %c2_215 = arith.constant 2 : index
    %c0_216 = arith.constant 0 : index
    %c0_217 = arith.constant 0 : index
    %188 = vector.load %arg6[%c2_215, %c0_216, %c0_217] : memref<9x64x64xbf16, #tpu.memory_space<vmem>>, vector<1x64x64xbf16>
    %189 = vector.shape_cast %188 : vector<1x64x64xbf16> to vector<64x64xbf16>
    %cst_218 = arith.constant dense<0.000000e+00> : vector<16x64xf32>
    %190 = tpu.matmul %187, %189, %cst_218 {dimension_numbers = #tpu.dot_dimension_numbers<[1], [0], [0], [1], [0, 0, 1, 1], [], []>} : vector<16x64xbf16>, vector<64x64xbf16>, vector<16x64xf32> -> vector<16x64xf32>
    %191 = arith.addf %184, %190 : vector<16x64xf32>
    %c1_219 = arith.constant 1 : index
    %c0_220 = arith.constant 0 : index
    %c0_221 = arith.constant 0 : index
    %c0_222 = arith.constant 0 : index
    %192 = vector.load %arg14[%c1_219, %c0_220, %c0_221, %c0_222] : memref<3x3x16x64xf32, #tpu.memory_space<vmem>>, vector<1x1x16x64xf32>
    %193 = vector.shape_cast %192 : vector<1x1x16x64xf32> to vector<16x64xf32>
    %194 = arith.truncf %193 : vector<16x64xf32> to vector<16x64xbf16>
    %c3_223 = arith.constant 3 : index
    %c0_224 = arith.constant 0 : index
    %c0_225 = arith.constant 0 : index
    %195 = vector.load %arg6[%c3_223, %c0_224, %c0_225] : memref<9x64x64xbf16, #tpu.memory_space<vmem>>, vector<1x64x64xbf16>
    %196 = vector.shape_cast %195 : vector<1x64x64xbf16> to vector<64x64xbf16>
    %cst_226 = arith.constant dense<0.000000e+00> : vector<16x64xf32>
    %197 = tpu.matmul %194, %196, %cst_226 {dimension_numbers = #tpu.dot_dimension_numbers<[1], [0], [0], [1], [0, 0, 1, 1], [], []>} : vector<16x64xbf16>, vector<64x64xbf16>, vector<16x64xf32> -> vector<16x64xf32>
    %198 = arith.addf %191, %197 : vector<16x64xf32>
    %c1_227 = arith.constant 1 : index
    %c1_228 = arith.constant 1 : index
    %c0_229 = arith.constant 0 : index
    %c0_230 = arith.constant 0 : index
    %199 = vector.load %arg14[%c1_227, %c1_228, %c0_229, %c0_230] : memref<3x3x16x64xf32, #tpu.memory_space<vmem>>, vector<1x1x16x64xf32>
    %200 = vector.shape_cast %199 : vector<1x1x16x64xf32> to vector<16x64xf32>
    %201 = arith.truncf %200 : vector<16x64xf32> to vector<16x64xbf16>
    %c4_231 = arith.constant 4 : index
    %c0_232 = arith.constant 0 : index
    %c0_233 = arith.constant 0 : index
    %202 = vector.load %arg6[%c4_231, %c0_232, %c0_233] : memref<9x64x64xbf16, #tpu.memory_space<vmem>>, vector<1x64x64xbf16>
    %203 = vector.shape_cast %202 : vector<1x64x64xbf16> to vector<64x64xbf16>
    %cst_234 = arith.constant dense<0.000000e+00> : vector<16x64xf32>
    %204 = tpu.matmul %201, %203, %cst_234 {dimension_numbers = #tpu.dot_dimension_numbers<[1], [0], [0], [1], [0, 0, 1, 1], [], []>} : vector<16x64xbf16>, vector<64x64xbf16>, vector<16x64xf32> -> vector<16x64xf32>
    %205 = arith.addf %198, %204 : vector<16x64xf32>
    %c1_235 = arith.constant 1 : index
    %c2_236 = arith.constant 2 : index
    %c0_237 = arith.constant 0 : index
    %c0_238 = arith.constant 0 : index
    %206 = vector.load %arg14[%c1_235, %c2_236, %c0_237, %c0_238] : memref<3x3x16x64xf32, #tpu.memory_space<vmem>>, vector<1x1x16x64xf32>
    %207 = vector.shape_cast %206 : vector<1x1x16x64xf32> to vector<16x64xf32>
    %208 = arith.truncf %207 : vector<16x64xf32> to vector<16x64xbf16>
    %c5_239 = arith.constant 5 : index
    %c0_240 = arith.constant 0 : index
    %c0_241 = arith.constant 0 : index
    %209 = vector.load %arg6[%c5_239, %c0_240, %c0_241] : memref<9x64x64xbf16, #tpu.memory_space<vmem>>, vector<1x64x64xbf16>
    %210 = vector.shape_cast %209 : vector<1x64x64xbf16> to vector<64x64xbf16>
    %cst_242 = arith.constant dense<0.000000e+00> : vector<16x64xf32>
    %211 = tpu.matmul %208, %210, %cst_242 {dimension_numbers = #tpu.dot_dimension_numbers<[1], [0], [0], [1], [0, 0, 1, 1], [], []>} : vector<16x64xbf16>, vector<64x64xbf16>, vector<16x64xf32> -> vector<16x64xf32>
    %212 = arith.addf %205, %211 : vector<16x64xf32>
    %c2_243 = arith.constant 2 : index
    %c0_244 = arith.constant 0 : index
    %c0_245 = arith.constant 0 : index
    %c0_246 = arith.constant 0 : index
    %213 = vector.load %arg14[%c2_243, %c0_244, %c0_245, %c0_246] : memref<3x3x16x64xf32, #tpu.memory_space<vmem>>, vector<1x1x16x64xf32>
    %214 = vector.shape_cast %213 : vector<1x1x16x64xf32> to vector<16x64xf32>
    %215 = arith.truncf %214 : vector<16x64xf32> to vector<16x64xbf16>
    %c6_247 = arith.constant 6 : index
    %c0_248 = arith.constant 0 : index
    %c0_249 = arith.constant 0 : index
    %216 = vector.load %arg6[%c6_247, %c0_248, %c0_249] : memref<9x64x64xbf16, #tpu.memory_space<vmem>>, vector<1x64x64xbf16>
    %217 = vector.shape_cast %216 : vector<1x64x64xbf16> to vector<64x64xbf16>
    %cst_250 = arith.constant dense<0.000000e+00> : vector<16x64xf32>
    %218 = tpu.matmul %215, %217, %cst_250 {dimension_numbers = #tpu.dot_dimension_numbers<[1], [0], [0], [1], [0, 0, 1, 1], [], []>} : vector<16x64xbf16>, vector<64x64xbf16>, vector<16x64xf32> -> vector<16x64xf32>
    %219 = arith.addf %212, %218 : vector<16x64xf32>
    %c2_251 = arith.constant 2 : index
    %c1_252 = arith.constant 1 : index
    %c0_253 = arith.constant 0 : index
    %c0_254 = arith.constant 0 : index
    %220 = vector.load %arg14[%c2_251, %c1_252, %c0_253, %c0_254] : memref<3x3x16x64xf32, #tpu.memory_space<vmem>>, vector<1x1x16x64xf32>
    %221 = vector.shape_cast %220 : vector<1x1x16x64xf32> to vector<16x64xf32>
    %222 = arith.truncf %221 : vector<16x64xf32> to vector<16x64xbf16>
    %c7_255 = arith.constant 7 : index
    %c0_256 = arith.constant 0 : index
    %c0_257 = arith.constant 0 : index
    %223 = vector.load %arg6[%c7_255, %c0_256, %c0_257] : memref<9x64x64xbf16, #tpu.memory_space<vmem>>, vector<1x64x64xbf16>
    %224 = vector.shape_cast %223 : vector<1x64x64xbf16> to vector<64x64xbf16>
    %cst_258 = arith.constant dense<0.000000e+00> : vector<16x64xf32>
    %225 = tpu.matmul %222, %224, %cst_258 {dimension_numbers = #tpu.dot_dimension_numbers<[1], [0], [0], [1], [0, 0, 1, 1], [], []>} : vector<16x64xbf16>, vector<64x64xbf16>, vector<16x64xf32> -> vector<16x64xf32>
    %226 = arith.addf %219, %225 : vector<16x64xf32>
    %c2_259 = arith.constant 2 : index
    %c2_260 = arith.constant 2 : index
    %c0_261 = arith.constant 0 : index
    %c0_262 = arith.constant 0 : index
    %227 = vector.load %arg14[%c2_259, %c2_260, %c0_261, %c0_262] : memref<3x3x16x64xf32, #tpu.memory_space<vmem>>, vector<1x1x16x64xf32>
    %228 = vector.shape_cast %227 : vector<1x1x16x64xf32> to vector<16x64xf32>
    %229 = arith.truncf %228 : vector<16x64xf32> to vector<16x64xbf16>
    %c8_263 = arith.constant 8 : index
    %c0_264 = arith.constant 0 : index
    %c0_265 = arith.constant 0 : index
    %230 = vector.load %arg6[%c8_263, %c0_264, %c0_265] : memref<9x64x64xbf16, #tpu.memory_space<vmem>>, vector<1x64x64xbf16>
    %231 = vector.shape_cast %230 : vector<1x64x64xbf16> to vector<64x64xbf16>
    %cst_266 = arith.constant dense<0.000000e+00> : vector<16x64xf32>
    %232 = tpu.matmul %229, %231, %cst_266 {dimension_numbers = #tpu.dot_dimension_numbers<[1], [0], [0], [1], [0, 0, 1, 1], [], []>} : vector<16x64xbf16>, vector<64x64xbf16>, vector<16x64xf32> -> vector<16x64xf32>
    %233 = arith.addf %226, %232 : vector<16x64xf32>
    %c0_267 = arith.constant 0 : index
    %c0_268 = arith.constant 0 : index
    %234 = vector.load %arg7[%c0_267, %c0_268] : memref<1x64xf32, #tpu.memory_space<vmem>>, vector<1x64xf32>
    %235 = vector.broadcast %234 : vector<1x64xf32> to vector<16x64xf32>
    %236 = arith.addf %233, %235 : vector<16x64xf32>
    %cst_269 = arith.constant 0.000000e+00 : f32
    %237 = vector.broadcast %cst_269 : f32 to vector<16x64xf32>
    %238 = arith.maximumf %236, %237 : vector<16x64xf32>
    %239 = vector.shape_cast %238 : vector<16x64xf32> to vector<1x1x16x64xf32>
    %c0_270 = arith.constant 0 : index
    %c0_271 = arith.constant 0 : index
    %c0_272 = arith.constant 0 : index
    %c0_273 = arith.constant 0 : index
    %240 = vector.load %arg15[%c0_270, %c0_271, %c0_272, %c0_273] : memref<1x1x16x64xf32, #tpu.memory_space<vmem>>, vector<1x1x16x64xf32>
    tpu.vector_store %arg15[%c0_270, %c0_271, %c0_272, %c0_273], %239 {strides = array<i32>} : memref<1x1x16x64xf32, #tpu.memory_space<vmem>>, vector<1x1x16x64xf32>,
    %cst_274 = arith.constant 0.000000e+00 : f32
    %241 = vector.broadcast %cst_274 : f32 to vector<16x512xf32>
    %c0_275 = arith.constant 0 : index
    %c0_276 = arith.constant 0 : index
    %c0_277 = arith.constant 0 : index
    %c0_278 = arith.constant 0 : index
    %242 = vector.load %arg15[%c0_275, %c0_276, %c0_277, %c0_278] : memref<1x1x16x64xf32, #tpu.memory_space<vmem>>, vector<1x1x16x64xf32>
    %243 = vector.shape_cast %242 : vector<1x1x16x64xf32> to vector<16x64xf32>
    %244 = arith.truncf %243 : vector<16x64xf32> to vector<16x64xbf16>
    %c0_279 = arith.constant 0 : index
    %c0_280 = arith.constant 0 : index
    %c0_281 = arith.constant 0 : index
    %245 = vector.load %arg8[%c0_279, %c0_280, %c0_281] : memref<1x64x512xbf16, #tpu.memory_space<vmem>>, vector<1x64x512xbf16>
    %246 = vector.shape_cast %245 : vector<1x64x512xbf16> to vector<64x512xbf16>
    %cst_282 = arith.constant dense<0.000000e+00> : vector<16x512xf32>
    %247 = tpu.matmul %244, %246, %cst_282 {dimension_numbers = #tpu.dot_dimension_numbers<[1], [0], [0], [1], [0, 0, 1, 1], [], []>} : vector<16x64xbf16>, vector<64x512xbf16>, vector<16x512xf32> -> vector<16x512xf32>
    %248 = arith.addf %241, %247 : vector<16x512xf32>
    %c0_283 = arith.constant 0 : index
    %c0_284 = arith.constant 0 : index
    %249 = vector.load %arg9[%c0_283, %c0_284] : memref<1x512xf32, #tpu.memory_space<vmem>>, vector<1x512xf32>
    %250 = vector.broadcast %249 : vector<1x512xf32> to vector<16x512xf32>
    %251 = arith.addf %248, %250 : vector<16x512xf32>
    %cst_285 = arith.constant 0.000000e+00 : f32
    %252 = vector.broadcast %cst_285 : f32 to vector<16x512xf32>
    %253 = arith.maximumf %251, %252 : vector<16x512xf32>
    %254 = arith.truncf %253 : vector<16x512xf32> to vector<16x512xbf16>
    %c0_286 = arith.constant 0 : index
    %c0_287 = arith.constant 0 : index
    %255 = vector.load %arg10[%c0_286, %c0_287] : memref<512x6xbf16, #tpu.memory_space<vmem>>, vector<512x6xbf16>
    %cst_288 = arith.constant dense<0.000000e+00> : vector<16x6xf32>
    %256 = tpu.matmul %254, %255, %cst_288 {dimension_numbers = #tpu.dot_dimension_numbers<[1], [0], [0], [1], [0, 0, 1, 1], [], []>} : vector<16x512xbf16>, vector<512x6xbf16>, vector<16x6xf32> -> vector<16x6xf32>
    %c0_289 = arith.constant 0 : index
    %c0_290 = arith.constant 0 : index
    %257 = vector.load %arg11[%c0_289, %c0_290] : memref<1x6xf32, #tpu.memory_space<vmem>>, vector<1x6xf32>
    %258 = vector.broadcast %257 : vector<1x6xf32> to vector<16x6xf32>
    %259 = arith.addf %256, %258 : vector<16x6xf32>
    %c0_291 = arith.constant 0 : index
    %c0_292 = arith.constant 0 : index
    %260 = vector.load %arg12[%c0_291, %c0_292] : memref<16x6xf32, #tpu.memory_space<vmem>>, vector<16x6xf32>
    tpu.vector_store %arg12[%c0_291, %c0_292], %259 {strides = array<i32>} : memref<16x6xf32, #tpu.memory_space<vmem>>, vector<16x6xf32>,
    return
  }
  func.func @transform_0(%arg0: i32) -> (i32, i32, i32, i32) {
    %c0_i32 = arith.constant 0 : i32
    %c0_i32_0 = arith.constant 0 : i32
    %c0_i32_1 = arith.constant 0 : i32
    %c0_i32_2 = arith.constant 0 : i32
    return %c0_i32, %c0_i32_0, %arg0, %c0_i32_1 : i32, i32, i32, i32
  }
  func.func @transform_1(%arg0: i32) -> (i32, i32, i32) {
    %c0_i32 = arith.constant 0 : i32
    %c0_i32_0 = arith.constant 0 : i32
    %c0_i32_1 = arith.constant 0 : i32
    %c0_i32_2 = arith.constant 0 : i32
    return %c0_i32, %c0_i32_0, %c0_i32_1 : i32, i32, i32
  }
  func.func @transform_2(%arg0: i32) -> (i32, i32) {
    %c0_i32 = arith.constant 0 : i32
    %c0_i32_0 = arith.constant 0 : i32
    %c0_i32_1 = arith.constant 0 : i32
    return %c0_i32, %c0_i32_0 : i32, i32
  }
  func.func @transform_3(%arg0: i32) -> (i32, i32, i32) {
    %c0_i32 = arith.constant 0 : i32
    %c0_i32_0 = arith.constant 0 : i32
    %c0_i32_1 = arith.constant 0 : i32
    %c0_i32_2 = arith.constant 0 : i32
    return %c0_i32, %c0_i32_0, %c0_i32_1 : i32, i32, i32
  }
  func.func @transform_4(%arg0: i32) -> (i32, i32) {
    %c0_i32 = arith.constant 0 : i32
    %c0_i32_0 = arith.constant 0 : i32
    %c0_i32_1 = arith.constant 0 : i32
    return %c0_i32, %c0_i32_0 : i32, i32
  }
  func.func @transform_5(%arg0: i32) -> (i32, i32, i32) {
    %c0_i32 = arith.constant 0 : i32
    %c0_i32_0 = arith.constant 0 : i32
    %c0_i32_1 = arith.constant 0 : i32
    %c0_i32_2 = arith.constant 0 : i32
    return %c0_i32, %c0_i32_0, %c0_i32_1 : i32, i32, i32
  }
  func.func @transform_6(%arg0: i32) -> (i32, i32) {
    %c0_i32 = arith.constant 0 : i32
    %c0_i32_0 = arith.constant 0 : i32
    %c0_i32_1 = arith.constant 0 : i32
    return %c0_i32, %c0_i32_0 : i32, i32
  }
  func.func @transform_7(%arg0: i32) -> (i32, i32, i32) {
    %c0_i32 = arith.constant 0 : i32
    %c0_i32_0 = arith.constant 0 : i32
    %c0_i32_1 = arith.constant 0 : i32
    %c0_i32_2 = arith.constant 0 : i32
    return %c0_i32, %c0_i32_0, %c0_i32_1 : i32, i32, i32
  }
  func.func @transform_8(%arg0: i32) -> (i32, i32) {
    %c0_i32 = arith.constant 0 : i32
    %c0_i32_0 = arith.constant 0 : i32
    %c0_i32_1 = arith.constant 0 : i32
    return %c0_i32, %c0_i32_0 : i32, i32
  }
  func.func @transform_9(%arg0: i32) -> (i32, i32) {
    %c0_i32 = arith.constant 0 : i32
    %c0_i32_0 = arith.constant 0 : i32
    %c0_i32_1 = arith.constant 0 : i32
    return %c0_i32, %c0_i32_0 : i32, i32
  }
  func.func @transform_10(%arg0: i32) -> (i32, i32) {
    %c0_i32 = arith.constant 0 : i32
    %c0_i32_0 = arith.constant 0 : i32
    %c0_i32_1 = arith.constant 0 : i32
    return %c0_i32, %c0_i32_0 : i32, i32
  }
  func.func @transform_11(%arg0: i32) -> (i32, i32) {
    %c0_i32 = arith.constant 0 : i32
    %c0_i32_0 = arith.constant 0 : i32
    return %arg0, %c0_i32 : i32, i32
  }
}

</mosaic_0001>

<bundles_post_ra>
// kernel: atari_pgn_forward.1
= control target key start
LH: loop header
LB: loop body
LE: loop exit
PB: predicated region body
PF: predicated region fallthrough
CT: control target
= control target key end

     0   :  { %s12269_s17 = smov 0   ;;  %s12271_s18 = smov 0   ;;  %s14172_s0 = inlined_call_operand.vmem [shape: bf16[9,9,32,64], index: 0, kind: input, shape index: {}]   ;;  %s14173_s1 = inlined_call_operand.vmem [shape: bf16[4,64,32], index: 1, kind: input, shape index: {}]   ;;  %s14174_s2 = inlined_call_operand.vmem [shape: f32[1,32], index: 2, kind: input, shape index: {}]   ;;  %s14175_s3 = inlined_call_operand.vmem [shape: bf16[16,32,64], index: 3, kind: input, shape index: {}]   ;;  %s14176_s4 = inlined_call_operand.vmem [shape: f32[1,64], index: 4, kind: input, shape index: {}]   ;;  %s14177_s5 = inlined_call_operand.vmem [shape: bf16[9,64,64], index: 5, kind: input, shape index: {}]   ;;  %s14178_s6 = inlined_call_operand.vmem [shape: f32[1,64], index: 6, kind: input, shape index: {}]   ;;  %s14179_s7 = inlined_call_operand.vmem [shape: bf16[1,64,512], index: 7, kind: input, shape index: {}]   ;;  %s14180_s8 = inlined_call_operand.vmem [shape: f32[1,512], index: 8, kind: input, shape index: {}]   ;;  %s14181_s9 = inlined_call_operand.vmem [shape: bf16[512,6], index: 9, kind: input, shape index: {}]   ;;  %s14182_s10 = inlined_call_operand.vmem [shape: f32[1,6], index: 10, kind: input, shape index: {}]   ;;  %s14183_s11 = inlined_call_operand.vmem [shape: f32[32,6], index: 11, kind: output, shape index: {}]  }
   0x1   :  { %s12273_s19 = smov 0  }
   0x2 LB: > { %s9255_s20 = sadd.s32 4294967295, %s12207_s19   ;;  %s12286_s21 = sadd.s32 1, %s12207_s19   ;;  %s12207_s19 = sphi %s12273_s19, %s14186_s19   ;;  %s12203_s18 = sphi %s12271_s18, %s14185_s18   ;;  %s12199_s17 = sphi %s12269_s17, %s14184_s17  }
   0x3   : > { %s25_s22 = ssub.s32 %s12207_s19, %s12286_s21  ;;  %s28_s23 = sadd.s32 1, %s12203_s18 }
   0x4   : > { %p26_p0 = scmp.eq.s32.totalorder %s25_s22, 0  ;;  %p35_p1 = scmp.ne.s32.totalorder %s12203_s18, %s12199_s17 }
   0x5   : > { %p36_p2 = scmp.eq.s32.totalorder %s12207_s19, 0  ;;  %p9258_p4 = scmp.ge.s32.totalorder %s12207_s19, 2 }
   0x6   : > { %s12295_s24 = scalar_select %p26_p0, %s12203_s18, %s28_s23  }
   0x7   : > { %p37_p3 = por %p36_p2, %p35_p1  ;;  %327 = sbr.rel (%p9258_p4) target bundleno = 97 (0x61), region = 56 }
   0xc   : > { %330 = sbr.rel (!%p37_p3) target bundleno = 97 (0x61), region = 60  ;;  %s332_s25 = sand.u32 (%p37_p3), 1, %s12203_s18  }
   0xd   : > { %s11763_s26 = sshll.u32 (%p37_p3), %s12207_s19, 3  ;;  %s12152_s27 = smul.u32 (%p37_p3), 648, %s332_s25 }
   0xe   : > { %s12303_s30 = scalar_lea.vmem (%p37_p3), %s14172_s0, %s11763_s26 }
   0xf   : > { %v354_v0 = vld [vmem:[%s12303_s30] sm:$0xff] (%p37_p3)   ;;  %v358_v1 = vld [vmem:[%s12303_s30 + $0x10] sm:$0xff] (%p37_p3)   ;;  %s12308_s12 = scalar_lea.vmem (%p37_p3), [#allocation5], %s12152_s27 }
  0x10   : > { %v362_v2 = vld [vmem:[%s12303_s30 + $0x20] sm:$0xff] (%p37_p3)   ;;  %355 = vst [vmem:[%s12308_s12] sm:$0xff] (%p37_p3), %v354_v0   ;;  %v366_v3 = vld [vmem:[%s12303_s30 + $0x30] sm:$0xff] (%p37_p3)  }
  0x11   : > { %359 = vst [vmem:[%s12308_s12 + $0x8] sm:$0xff] %v358_v1   ;;  %v370_v4 = vld [vmem:[%s12303_s30 + $0x40] sm:$0xff]   ;;  %v374_v5 = vld [vmem:[%s12303_s30 + $0x50] sm:$0xff]  }
  0x12   : > { %363 = vst [vmem:[%s12308_s12 + $0x10] sm:$0xff] %v362_v2   ;;  %v378_v6 = vld [vmem:[%s12303_s30 + $0x60] sm:$0xff]   ;;  %v382_v7 = vld [vmem:[%s12303_s30 + $0x70] sm:$0xff]  }
  0x13   : > { %367 = vst [vmem:[%s12308_s12 + $0x18] sm:$0xff] %v366_v3   ;;  %v386_v8 = vld [vmem:[%s12303_s30 + $0x80] sm:$0xff]   ;;  %v390_v9 = vld [vmem:[%s12303_s30 + $0x90] sm:$0xff]  }
  0x14   : > { %371 = vst [vmem:[%s12308_s12 + $0x20] sm:$0xff] %v370_v4   ;;  %v394_v10 = vld [vmem:[%s12303_s30 + $0xa0] sm:$0xff]   ;;  %v398_v11 = vld [vmem:[%s12303_s30 + $0xb0] sm:$0xff]  }
  0x15   : > { %375 = vst [vmem:[%s12308_s12 + $0x28] sm:$0xff] %v374_v5   ;;  %v402_v12 = vld [vmem:[%s12303_s30 + $0xc0] sm:$0xff]   ;;  %v406_v13 = vld [vmem:[%s12303_s30 + $0xd0] sm:$0xff]  }
  0x16   : > { %379 = vst [vmem:[%s12308_s12 + $0x30] sm:$0xff] %v378_v6   ;;  %v410_v14 = vld [vmem:[%s12303_s30 + $0xe0] sm:$0xff]   ;;  %v414_v15 = vld [vmem:[%s12303_s30 + $0xf0] sm:$0xff]  }
  0x17   : > { %383 = vst [vmem:[%s12308_s12 + $0x38] sm:$0xff] %v382_v7   ;;  %v418_v16 = vld [vmem:[%s12303_s30 + $0x100] sm:$0xff]   ;;  %v422_v17 = vld [vmem:[%s12303_s30 + $0x110] sm:$0xff]  }
  0x18   : > { %387 = vst [vmem:[%s12308_s12 + $0x40] sm:$0xff] %v386_v8   ;;  %v426_v18 = vld [vmem:[%s12303_s30 + $0x120] sm:$0xff]   ;;  %v430_v19 = vld [vmem:[%s12303_s30 + $0x130] sm:$0xff]  }
  0x19   : > { %391 = vst [vmem:[%s12308_s12 + $0x48] sm:$0xff] %v390_v9   ;;  %v434_v20 = vld [vmem:[%s12303_s30 + $0x140] sm:$0xff]   ;;  %v438_v21 = vld [vmem:[%s12303_s30 + $0x150] sm:$0xff]  }
  0x1a   : > { %395 = vst [vmem:[%s12308_s12 + $0x50] sm:$0xff] %v394_v10   ;;  %v442_v22 = vld [vmem:[%s12303_s30 + $0x160] sm:$0xff]   ;;  %v446_v23 = vld [vmem:[%s12303_s30 + $0x170] sm:$0xff]  }
  0x1b   : > { %399 = vst [vmem:[%s12308_s12 + $0x58] sm:$0xff] %v398_v11   ;;  %v450_v24 = vld [vmem:[%s12303_s30 + $0x180] sm:$0xff]   ;;  %v454_v25 = vld [vmem:[%s12303_s30 + $0x190] sm:$0xff]  }
  0x1c   : > { %403 = vst [vmem:[%s12308_s12 + $0x60] sm:$0xff] %v402_v12   ;;  %v458_v26 = vld [vmem:[%s12303_s30 + $0x1a0] sm:$0xff]   ;;  %v462_v27 = vld [vmem:[%s12303_s30 + $0x1b0] sm:$0xff]  }
  0x1d   : > { %407 = vst [vmem:[%s12308_s12 + $0x68] sm:$0xff] %v406_v13   ;;  %v466_v28 = vld [vmem:[%s12303_s30 + $0x1c0] sm:$0xff]   ;;  %v470_v29 = vld [vmem:[%s12303_s30 + $0x1d0] sm:$0xff]  }
  0x1e   : > { %411 = vst [vmem:[%s12308_s12 + $0x70] sm:$0xff] %v410_v14   ;;  %v474_v30 = vld [vmem:[%s12303_s30 + $0x1e0] sm:$0xff]   ;;  %v478_v31 = vld [vmem:[%s12303_s30 + $0x1f0] sm:$0xff]  }
  0x1f   : > { %415 = vst [vmem:[%s12308_s12 + $0x78] sm:$0xff] %v414_v15   ;;  %v482_v32 = vld [vmem:[%s12303_s30 + $0x200] sm:$0xff]   ;;  %v486_v33 = vld [vmem:[%s12303_s30 + $0x210] sm:$0xff]  }
  0x20   : > { %419 = vst [vmem:[%s12308_s12 + $0x80] sm:$0xff] %v418_v16   ;;  %v490_v34 = vld [vmem:[%s12303_s30 + $0x220] sm:$0xff]   ;;  %v494_v35 = vld [vmem:[%s12303_s30 + $0x230] sm:$0xff]  }
  0x21   : > { %423 = vst [vmem:[%s12308_s12 + $0x88] sm:$0xff] %v422_v17   ;;  %v498_v36 = vld [vmem:[%s12303_s30 + $0x240] sm:$0xff]   ;;  %v502_v37 = vld [vmem:[%s12303_s30 + $0x250] sm:$0xff]  }
  0x22   : > { %427 = vst [vmem:[%s12308_s12 + $0x90] sm:$0xff] %v426_v18   ;;  %v506_v38 = vld [vmem:[%s12303_s30 + $0x260] sm:$0xff]   ;;  %v510_v39 = vld [vmem:[%s12303_s30 + $0x270] sm:$0xff]  }
  0x23   : > { %431 = vst [vmem:[%s12308_s12 + $0x98] sm:$0xff] %v430_v19   ;;  %v514_v40 = vld [vmem:[%s12303_s30 + $0x280] sm:$0xff]   ;;  %v518_v41 = vld [vmem:[%s12303_s30 + $0x290] sm:$0xff]  }
  0x24   : > { %435 = vst [vmem:[%s12308_s12 + $0xa0] sm:$0xff] %v434_v20   ;;  %v522_v42 = vld [vmem:[%s12303_s30 + $0x2a0] sm:$0xff]   ;;  %v526_v43 = vld [vmem:[%s12303_s30 + $0x2b0] sm:$0xff]  }
  0x25   : > { %439 = vst [vmem:[%s12308_s12 + $0xa8] sm:$0xff] %v438_v21   ;;  %v530_v44 = vld [vmem:[%s12303_s30 + $0x2c0] sm:$0xff]   ;;  %v534_v45 = vld [vmem:[%s12303_s30 + $0x2d0] sm:$0xff]  }
  0x26   : > { %443 = vst [vmem:[%s12308_s12 + $0xb0] sm:$0xff] %v442_v22   ;;  %v538_v46 = vld [vmem:[%s12303_s30 + $0x2e0] sm:$0xff]   ;;  %v542_v47 = vld [vmem:[%s12303_s30 + $0x2f0] sm:$0xff]  }
  0x27   : > { %447 = vst [vmem:[%s12308_s12 + $0xb8] sm:$0xff] %v446_v23   ;;  %v546_v48 = vld [vmem:[%s12303_s30 + $0x300] sm:$0xff]   ;;  %v550_v49 = vld [vmem:[%s12303_s30 + $0x310] sm:$0xff]  }
  0x28   : > { %451 = vst [vmem:[%s12308_s12 + $0xc0] sm:$0xff] %v450_v24   ;;  %v554_v50 = vld [vmem:[%s12303_s30 + $0x320] sm:$0xff]   ;;  %v558_v51 = vld [vmem:[%s12303_s30 + $0x330] sm:$0xff]  }
  0x29   : > { %455 = vst [vmem:[%s12308_s12 + $0xc8] sm:$0xff] %v454_v25   ;;  %v562_v52 = vld [vmem:[%s12303_s30 + $0x340] sm:$0xff]   ;;  %v566_v53 = vld [vmem:[%s12303_s30 + $0x350] sm:$0xff]  }
  0x2a   : > { %459 = vst [vmem:[%s12308_s12 + $0xd0] sm:$0xff] %v458_v26   ;;  %v570_v54 = vld [vmem:[%s12303_s30 + $0x360] sm:$0xff]   ;;  %v574_v55 = vld [vmem:[%s12303_s30 + $0x370] sm:$0xff]  }
  0x2b   : > { %463 = vst [vmem:[%s12308_s12 + $0xd8] sm:$0xff] %v462_v27   ;;  %v578_v56 = vld [vmem:[%s12303_s30 + $0x380] sm:$0xff]   ;;  %v582_v57 = vld [vmem:[%s12303_s30 + $0x390] sm:$0xff]  }
  0x2c   : > { %467 = vst [vmem:[%s12308_s12 + $0xe0] sm:$0xff] %v466_v28   ;;  %v586_v58 = vld [vmem:[%s12303_s30 + $0x3a0] sm:$0xff]   ;;  %v590_v59 = vld [vmem:[%s12303_s30 + $0x3b0] sm:$0xff]  }
  0x2d   : > { %471 = vst [vmem:[%s12308_s12 + $0xe8] sm:$0xff] %v470_v29   ;;  %v594_v60 = vld [vmem:[%s12303_s30 + $0x3c0] sm:$0xff]   ;;  %v598_v61 = vld [vmem:[%s12303_s30 + $0x3d0] sm:$0xff]  }
  0x2e   : > { %475 = vst [vmem:[%s12308_s12 + $0xf0] sm:$0xff] %v474_v30   ;;  %v602_v62 = vld [vmem:[%s12303_s30 + $0x3e0] sm:$0xff]   ;;  %v606_v63 = vld [vmem:[%s12303_s30 + $0x3f0] sm:$0xff]  }
  0x2f   : > { %479 = vst [vmem:[%s12308_s12 + $0xf8] sm:$0xff] %v478_v31   ;;  %v610_v0 = vld [vmem:[%s12303_s30 + $0x400] sm:$0xff]   ;;  %v614_v1 = vld [vmem:[%s12303_s30 + $0x410] sm:$0xff]  }
  0x30   : > { %483 = vst [vmem:[%s12308_s12 + $0x100] sm:$0xff] %v482_v32   ;;  %v618_v2 = vld [vmem:[%s12303_s30 + $0x420] sm:$0xff]   ;;  %v622_v3 = vld [vmem:[%s12303_s30 + $0x430] sm:$0xff]  }
  0x31   : > { %487 = vst [vmem:[%s12308_s12 + $0x108] sm:$0xff] %v486_v33   ;;  %v626_v4 = vld [vmem:[%s12303_s30 + $0x440] sm:$0xff]   ;;  %v630_v5 = vld [vmem:[%s12303_s30 + $0x450] sm:$0xff]  }
  0x32   : > { %491 = vst [vmem:[%s12308_s12 + $0x110] sm:$0xff] %v490_v34   ;;  %v634_v6 = vld [vmem:[%s12303_s30 + $0x460] sm:$0xff]   ;;  %v638_v7 = vld [vmem:[%s12303_s30 + $0x470] sm:$0xff]  }
  0x33   : > { %495 = vst [vmem:[%s12308_s12 + $0x118] sm:$0xff] %v494_v35   ;;  %v642_v8 = vld [vmem:[%s12303_s30 + $0x480] sm:$0xff]   ;;  %v646_v9 = vld [vmem:[%s12303_s30 + $0x490] sm:$0xff]  }
  0x34   : > { %499 = vst [vmem:[%s12308_s12 + $0x120] sm:$0xff] %v498_v36   ;;  %v650_v10 = vld [vmem:[%s12303_s30 + $0x4a0] sm:$0xff]   ;;  %v654_v11 = vld [vmem:[%s12303_s30 + $0x4b0] sm:$0xff]  }
  0x35   : > { %503 = vst [vmem:[%s12308_s12 + $0x128] sm:$0xff] %v502_v37   ;;  %v658_v12 = vld [vmem:[%s12303_s30 + $0x4c0] sm:$0xff]   ;;  %v662_v13 = vld [vmem:[%s12303_s30 + $0x4d0] sm:$0xff]  }
  0x36   : > { %507 = vst [vmem:[%s12308_s12 + $0x130] sm:$0xff] %v506_v38   ;;  %v666_v14 = vld [vmem:[%s12303_s30 + $0x4e0] sm:$0xff]   ;;  %v670_v15 = vld [vmem:[%s12303_s30 + $0x4f0] sm:$0xff]  }
  0x37   : > { %511 = vst [vmem:[%s12308_s12 + $0x138] sm:$0xff] %v510_v39   ;;  %v674_v16 = vld [vmem:[%s12303_s30 + $0x500] sm:$0xff]  }
  0x38   : > { %515 = vst [vmem:[%s12308_s12 + $0x140] sm:$0xff] %v514_v40  }
  0x39   : > { %519 = vst [vmem:[%s12308_s12 + $0x148] sm:$0xff] %v518_v41  }
  0x3a   : > { %523 = vst [vmem:[%s12308_s12 + $0x150] sm:$0xff] %v522_v42  }
  0x3b   : > { %527 = vst [vmem:[%s12308_s12 + $0x158] sm:$0xff] %v526_v43  }
  0x3c   : > { %531 = vst [vmem:[%s12308_s12 + $0x160] sm:$0xff] %v530_v44  }
  0x3d   : > { %535 = vst [vmem:[%s12308_s12 + $0x168] sm:$0xff] %v534_v45  }
  0x3e   : > { %539 = vst [vmem:[%s12308_s12 + $0x170] sm:$0xff] %v538_v46  }
  0x3f   : > { %543 = vst [vmem:[%s12308_s12 + $0x178] sm:$0xff] %v542_v47  }
  0x40   : > { %547 = vst [vmem:[%s12308_s12 + $0x180] sm:$0xff] %v546_v48  }
  0x41   : > { %551 = vst [vmem:[%s12308_s12 + $0x188] sm:$0xff] %v550_v49  }
  0x42   : > { %555 = vst [vmem:[%s12308_s12 + $0x190] sm:$0xff] %v554_v50  }
  0x43   : > { %559 = vst [vmem:[%s12308_s12 + $0x198] sm:$0xff] %v558_v51  }
  0x44   : > { %563 = vst [vmem:[%s12308_s12 + $0x1a0] sm:$0xff] %v562_v52  }
  0x45   : > { %567 = vst [vmem:[%s12308_s12 + $0x1a8] sm:$0xff] %v566_v53  }
  0x46   : > { %571 = vst [vmem:[%s12308_s12 + $0x1b0] sm:$0xff] %v570_v54  }
  0x47   : > { %575 = vst [vmem:[%s12308_s12 + $0x1b8] sm:$0xff] %v574_v55  }
  0x48   : > { %579 = vst [vmem:[%s12308_s12 + $0x1c0] sm:$0xff] %v578_v56  }
  0x49   : > { %583 = vst [vmem:[%s12308_s12 + $0x1c8] sm:$0xff] %v582_v57  }
  0x4a   : > { %587 = vst [vmem:[%s12308_s12 + $0x1d0] sm:$0xff] %v586_v58  }
  0x4b   : > { %591 = vst [vmem:[%s12308_s12 + $0x1d8] sm:$0xff] %v590_v59  }
  0x4c   : > { %595 = vst [vmem:[%s12308_s12 + $0x1e0] sm:$0xff] %v594_v60  }
  0x4d   : > { %599 = vst [vmem:[%s12308_s12 + $0x1e8] sm:$0xff] %v598_v61  }
  0x4e   : > { %603 = vst [vmem:[%s12308_s12 + $0x1f0] sm:$0xff] %v602_v62  }
  0x4f   : > { %607 = vst [vmem:[%s12308_s12 + $0x1f8] sm:$0xff] %v606_v63  }
  0x50   : > { %611 = vst [vmem:[%s12308_s12 + $0x200] sm:$0xff] %v610_v0  }
  0x51   : > { %615 = vst [vmem:[%s12308_s12 + $0x208] sm:$0xff] %v614_v1  }
  0x52   : > { %619 = vst [vmem:[%s12308_s12 + $0x210] sm:$0xff] %v618_v2  }
  0x53   : > { %623 = vst [vmem:[%s12308_s12 + $0x218] sm:$0xff] %v622_v3  }
  0x54   : > { %627 = vst [vmem:[%s12308_s12 + $0x220] sm:$0xff] %v626_v4  }
  0x55   : > { %631 = vst [vmem:[%s12308_s12 + $0x228] sm:$0xff] %v630_v5  }
  0x56   : > { %635 = vst [vmem:[%s12308_s12 + $0x230] sm:$0xff] %v634_v6  }
  0x57   : > { %639 = vst [vmem:[%s12308_s12 + $0x238] sm:$0xff] %v638_v7  }
  0x58   : > { %643 = vst [vmem:[%s12308_s12 + $0x240] sm:$0xff] %v642_v8  }
  0x59   : > { %647 = vst [vmem:[%s12308_s12 + $0x248] sm:$0xff] %v646_v9  }
  0x5a   : > { %651 = vst [vmem:[%s12308_s12 + $0x250] sm:$0xff] %v650_v10  }
  0x5b   : > { %655 = vst [vmem:[%s12308_s12 + $0x258] sm:$0xff] %v654_v11  }
  0x5c   : > { %659 = vst [vmem:[%s12308_s12 + $0x260] sm:$0xff] %v658_v12  }
  0x5d   : > { %663 = vst [vmem:[%s12308_s12 + $0x268] sm:$0xff] %v662_v13  }
  0x5e   : > { %667 = vst [vmem:[%s12308_s12 + $0x270] sm:$0xff] %v666_v14  }
  0x5f   : > { %671 = vst [vmem:[%s12308_s12 + $0x278] sm:$0xff] %v670_v15  }
  0x60   : > { %675 = vst [vmem:[%s12308_s12 + $0x280] sm:$0xff] %v674_v16  }
  0x61 PF: > { %p9261_p5 = scmp.ge.s32.totalorder %s12207_s19, 1  ;;  %p1024_p6 = scmp.lt.s32.totalorder %s12207_s19, 3 }
  0x63   : > { %p1025_p7 = pnand %p9261_p5, %p1024_p6 }
  0x64   : > { %s1031_s12 = sand.u32 (!%p1025_p7), 1, %s12199_s17   ;;  %s9262_s27 = sshll.u32 (!%p1025_p7), %s9255_s20, 1 }
  0x65   : > { %1028 = sbr.rel (%p1025_p7) target bundleno = 2309 (0x905), region = 101  ;;  %p1072_p8 = scmp.lt.s32.totalorder (!%p1025_p7), %s9262_s27, 3 }
  0x66   : > { %s12153_s22 = smul.u32 (!%p1025_p7), 648, %s1031_s12 }
  0x68   : > { %s12526_s30 = scalar_lea.vmem (!%p1025_p7), [#allocation5], %s12153_s22 }
  0x6a   : > { %v11899_v17 = vld [vmem:[%s14173_s1 + $0x38] sm:$0xff]  ;;  %v11898_v21 = vld [vmem:[%s14173_s1 + $0x30] sm:$0xff]  ;;  %v11897_v25 = vld [vmem:[%s14173_s1 + $0x28] sm:$0xff]  ;;  %vm1696_vm0 = vcmask 523264   ;;  %vm5733_vm1 = vcmask 261120   ;;  %s14188_s27 = smov (!%p1072_p8, %s9262_s27), 3 }
  0x6b   : > { %v11831_v18 = vld [vmem:[%s14173_s1 + $0x18] sm:$0xff]  ;;  %1893 = vmatpush.bf16.msra.mxu0 %v11899_v17  ;;  %v11830_v22 = vld [vmem:[%s14173_s1 + $0x10] sm:$0xff]  ;;  %v11829_v26 = vld [vmem:[%s14173_s1 + $0x8] sm:$0xff]  ;;  %s9263_s29 = sshll.u32 %s14188_s27, 3  ;;  %vm9190_vm2 = vcmask 48128  }
  0x6c   : > { %v11967_v19 = vld [vmem:[%s14173_s1 + $0x58] sm:$0xff]  ;;  %2758 = vmatpush.bf16.msra.mxu1 %v11831_v18  ;;  %v11966_v23 = vld [vmem:[%s14173_s1 + $0x50] sm:$0xff]  ;;  %v11965_v27 = vld [vmem:[%s14173_s1 + $0x48] sm:$0xff]  ;;  %s1075_s19 = scalar_lea.vmem %s14183_s11, %s9263_s29 }
  0x6d   : > { %v12035_v20 = vld [vmem:[%s14173_s1 + $0x78] sm:$0xff]  ;;  %3761 = vmatpush.bf16.msra.mxu2 %v11967_v19  ;;  %v12034_v24 = vld [vmem:[%s14173_s1 + $0x70] sm:$0xff]  ;;  %v12033_v28 = vld [vmem:[%s14173_s1 + $0x68] sm:$0xff] }
  0x6e   : > { %4892 = vmatpush.bf16.msra.mxu3 %v12035_v20  ;;  %v11896_v29 = vld [vmem:[%s14173_s1 + $0x20] sm:$0xff]  ;;  %v12041_v33 = vld [vmem:[%s14175_s3 + $0x28] sm:$0xff]  ;;  %v12039_v34 = vld [vmem:[%s14175_s3 + $0x18] sm:$0xff] }
  0x6f   : > { %1894 = vmatpush.bf16.msra.mxu0 %v11898_v21  ;;  %v11828_v30 = vld [vmem:[%s14173_s1] sm:$0xff]  ;;  %v11832_v35 = vld [vmem:[%s12526_s30 + $0x8] sm:$0xff]  ;;  %v11968_v38 = vld [vmem:[%s12526_s30 + $0x50] sm:$0xff] }
  0x70   : > { %2759 = vmatpush.bf16.msra.mxu1 %v11830_v22  ;;  %v11964_v31 = vld [vmem:[%s14173_s1 + $0x40] sm:$0xff]  ;;  %v11900_v37 = vld [vmem:[%s12526_s30 + $0x48] sm:$0xff]  ;;  %v12043_v39 = vld [vmem:[%s14175_s3 + $0x38] sm:$0xff] }
  0x71   : > { %3762 = vmatpush.bf16.msra.mxu2 %v11966_v23  ;;  %v12032_v32 = vld [vmem:[%s14173_s1 + $0x60] sm:$0xff]  ;;  %v12037_v40 = vld [vmem:[%s14175_s3 + $0x8] sm:$0xff]  ;;  %v11833_v41 = vld [vmem:[%s12526_s30 + $0x10] sm:$0xff] }
  0x72   : > { %4893 = vmatpush.bf16.msra.mxu3 %v12034_v24  ;;  %v11764_v36 = vld [vmem:[%s12526_s30] sm:$0xff]  ;;  %v11765_v42 = vld [vmem:[%s12526_s30 + $0x8] sm:$0xff]  ;;  %v11901_v43 = vld [vmem:[%s12526_s30 + $0x50] sm:$0xff] }
  0x73   : > { %1895 = vmatpush.bf16.msra.mxu0 %v11897_v25  ;;  %v11969_v44 = vld [vmem:[%s12526_s30 + $0x58] sm:$0xff]  ;;  %v11766_v46 = vld [vmem:[%s12526_s30 + $0x10] sm:$0xff]  ;;  %v11970_v48 = vld [vmem:[%s12526_s30 + $0x60] sm:$0xff] }
  0x74   : > { %2760 = vmatpush.bf16.msra.mxu1 %v11829_v26  ;;  %v11834_v45 = vld [vmem:[%s12526_s30 + $0x18] sm:$0xff]  ;;  %v11835_v49 = vld [vmem:[%s12526_s30 + $0x20] sm:$0xff]  ;;  %v11971_v52 = vld [vmem:[%s12526_s30 + $0x68] sm:$0xff] }
  0x75   : > { %3763 = vmatpush.bf16.msra.mxu2 %v11965_v27  ;;  %v11902_v47 = vld [vmem:[%s12526_s30 + $0x58] sm:$0xff]  ;;  %v11903_v51 = vld [vmem:[%s12526_s30 + $0x60] sm:$0xff]  ;;  %v11836_v53 = vld [vmem:[%s12526_s30 + $0x28] sm:$0xff] }
  0x76   : > { %4894 = vmatpush.bf16.msra.mxu3 %v12033_v28  ;;  %v11767_v50 = vld [vmem:[%s12526_s30 + $0x18] sm:$0xff]  ;;  %v11768_v54 = vld [vmem:[%s12526_s30 + $0x20] sm:$0xff]  ;;  %v11904_v55 = vld [vmem:[%s12526_s30 + $0x68] sm:$0xff] }
  0x77   : > { %1896 = vmatpush.bf16.msra.mxu0 %v11896_v29  ;;  %v11972_v56 = vld [vmem:[%s12526_s30 + $0x70] sm:$0xff]  ;;  %v11769_v58 = vld [vmem:[%s12526_s30 + $0x28] sm:$0xff]  ;;  %v11973_v60 = vld [vmem:[%s12526_s30 + $0x78] sm:$0xff] }
  0x78   : > { %2761 = vmatpush.bf16.msra.mxu1 %v11828_v30  ;;  %v11837_v57 = vld [vmem:[%s12526_s30 + $0x30] sm:$0xff]  ;;  %v11838_v61 = vld [vmem:[%s12526_s30 + $0x38] sm:$0xff]  ;;  %v11974_v0 = vld [vmem:[%s12526_s30 + $0x80] sm:$0xff] }
  0x79   : > { %3764 = vmatpush.bf16.msra.mxu2 %v11964_v31  ;;  %v11905_v59 = vld [vmem:[%s12526_s30 + $0x70] sm:$0xff]  ;;  %v11906_v63 = vld [vmem:[%s12526_s30 + $0x78] sm:$0xff]  ;;  %v11839_v1 = vld [vmem:[%s12526_s30 + $0x40] sm:$0xff] }
  0x7a   : > { %4895 = vmatpush.bf16.msra.mxu3 %v12032_v32  ;;  %9672 = vmatmul.msk.bf16.vlgmr.msra.gmra.mxu0 %vm1696_vm0, %v11832_v35  ;;  %v11770_v62 = vld [vmem:[%s12526_s30 + $0x30] sm:$0xff]  ;;  %v11771_v2 = vld [vmem:[%s12526_s30 + $0x38] sm:$0xff]  ;;  %v11907_v3 = vld [vmem:[%s12526_s30 + $0x80] sm:$0xff] }
  0x7b   : > { %5971 = vmatpush.bf16.msrb.mxu0 %v12039_v34  ;;  %10008 = vmatmul.msk.bf16.vlgmr.msra.gmra.mxu1 %vm1696_vm0, %v11764_v36  ;;  %v11975_v4 = vld [vmem:[%s12526_s30 + $0x88] sm:$0xff]  ;;  %v11840_v5 = vld [vmem:[%s12526_s30 + $0x50] sm:$0xff]  ;;  %v11976_v10 = vld [vmem:[%s12526_s30 + $0x98] sm:$0xff] }
  0x7c   : > { %10480 = vmatmul.msk.bf16.vlgmr.msra.gmra.mxu2 %vm1696_vm0, %v11900_v37  ;;  %6064 = vmatpush.bf16.msrb.mxu1 %v12037_v40  ;;  %v11772_v6 = vld [vmem:[%s12526_s30 + $0x48] sm:$0xff]  ;;  %v11908_v9 = vld [vmem:[%s12526_s30 + $0x90] sm:$0xff]  ;;  %v12609_v18 = vld [vmem:[%s14174_s2] ss:$0 sm:$0xff] }
  0x7d   : > { %6190 = vmatpush.bf16.msrb.mxu2 %v12041_v33  ;;  %10952 = vmatmul.msk.bf16.vlgmr.msra.gmra.mxu3 %vm1696_vm0, %v11968_v38  ;;  %v11841_v24 = vld [vmem:[%s12526_s30 + $0x58] sm:$0xff]  ;;  %v11773_v25 = vld [vmem:[%s12526_s30 + $0x50] sm:$0xff]  ;;  %v11977_v31 = vld [vmem:[%s12526_s30 + $0xa0] sm:$0xff] }
  0x7e   : > { %6334 = vmatpush.bf16.msrb.mxu3 %v12043_v39  ;;  %v11909_v30 = vld [vmem:[%s12526_s30 + $0x98] sm:$0xff] }
  0x8a   : > { %9673 = vmatmul.msk.bf16.gmra.mxu0 %vm1696_vm0, %v11833_v41 }
  0x8b   : > { %10009 = vmatmul.msk.bf16.gmra.mxu1 %vm1696_vm0, %v11765_v42 }
  0x8c   : > { %10481 = vmatmul.msk.bf16.gmra.mxu2 %vm1696_vm0, %v11901_v43 }
  0x8d   : > { %10953 = vmatmul.msk.bf16.gmra.mxu3 %vm1696_vm0, %v11969_v44 }
  0x9a   : > { %9674 = vmatmul.msk.bf16.gmra.mxu0 %vm1696_vm0, %v11834_v45 }
  0x9b   : > { %10010 = vmatmul.msk.bf16.gmra.mxu1 %vm1696_vm0, %v11766_v46 }
  0x9c   : > { %10482 = vmatmul.msk.bf16.gmra.mxu2 %vm1696_vm0, %v11902_v47 }
  0x9d   : > { %10954 = vmatmul.msk.bf16.gmra.mxu3 %vm1696_vm0, %v11970_v48  ;;  %v11842_v48 = vld [vmem:[%s12526_s30 + $0x60] sm:$0xff] }
  0xaa   : > { %9675 = vmatmul.msk.bf16.gmra.mxu0 %vm1696_vm0, %v11835_v49  ;;  %v11774_v49 = vld [vmem:[%s12526_s30 + $0x58] sm:$0xff] }
  0xab   : > { %10011 = vmatmul.msk.bf16.gmra.mxu1 %vm1696_vm0, %v11767_v50 }
  0xac   : > { %10483 = vmatmul.msk.bf16.gmra.mxu2 %vm1696_vm0, %v11903_v51 }
  0xad   : > { %10955 = vmatmul.msk.bf16.gmra.mxu3 %vm1696_vm0, %v11971_v52 }
  0xba   : > { %9676 = vmatmul.msk.bf16.gmra.mxu0 %vm1696_vm0, %v11836_v53 }
  0xbb   : > { %10012 = vmatmul.msk.bf16.gmra.mxu1 %vm1696_vm0, %v11768_v54  ;;  %v11910_v54 = vld [vmem:[%s12526_s30 + $0xa0] sm:$0xff] }
  0xbc   : > { %10484 = vmatmul.msk.bf16.gmra.mxu2 %vm1696_vm0, %v11904_v55  ;;  %v11978_v55 = vld [vmem:[%s12526_s30 + $0xa8] sm:$0xff] }
  0xbd   : > { %10956 = vmatmul.msk.bf16.gmra.mxu3 %vm1696_vm0, %v11972_v56 }
  0xca   : > { %9677 = vmatmul.msk.bf16.gmra.mxu0 %vm1696_vm0, %v11837_v57 }
  0xcb   : > { %10013 = vmatmul.msk.bf16.gmra.mxu1 %vm1696_vm0, %v11769_v58 }
  0xcc   : > { %10485 = vmatmul.msk.bf16.gmra.mxu2 %vm1696_vm0, %v11905_v59 }
  0xcd   : > { %10957 = vmatmul.msk.bf16.gmra.mxu3 %vm1696_vm0, %v11973_v60 }
  0xda   : > { %9678 = vmatmul.msk.bf16.gmra.mxu0 %vm1696_vm0, %v11838_v61 }
  0xdb   : > { %10014 = vmatmul.msk.bf16.gmra.mxu1 %vm1696_vm0, %v11770_v62 }
  0xdc   : > { %10486 = vmatmul.msk.bf16.gmra.mxu2 %vm1696_vm0, %v11906_v63 }
  0xdd   : > { %10958 = vmatmul.msk.bf16.gmra.mxu3 %vm1696_vm0, %v11974_v0 }
  0xea   : > { %9679 = vmatmul.msk.bf16.gmra.mxu0 %vm1696_vm0, %v11839_v1 }
  0xeb   : > { %10015 = vmatmul.msk.bf16.gmra.mxu1 %vm1696_vm0, %v11771_v2 }
  0xec   : > { %10487 = vmatmul.msk.bf16.gmra.mxu2 %vm1696_vm0, %v11907_v3 }
  0xed   : > { %10959 = vmatmul.msk.bf16.gmra.mxu3 %vm1696_vm0, %v11975_v4 }
  0xf7   : > { %v1898_v7 = vpop.f32.mrf.mxu0 }
  0xf8   : > { %v2763_v8 = vpop.f32.mrf.mxu1 }
  0xf9   : > { %v2764_v11 = vadd.f32 %v2763_v8, %v1898_v7  ;;  %v11843_v8 = vld [vmem:[%s12526_s30 + $0x68] sm:$0xff] }
  0xfa   : > { %9680 = vmatmul.msk.bf16.gmra.mxu0 %vm1696_vm0, %v11840_v5 }
  0xfb   : > { %10016 = vmatmul.msk.bf16.gmra.mxu1 %vm1696_vm0, %v11772_v6 }
  0xfc   : > { %10488 = vmatmul.msk.bf16.gmra.mxu2 %vm1696_vm0, %v11908_v9  ;;  %v11775_v9 = vld [vmem:[%s12526_s30 + $0x60] sm:$0xff] }
  0xfd   : > { %10960 = vmatmul.msk.bf16.gmra.mxu3 %vm1696_vm0, %v11976_v10 }
  0xff   : > { %v3766_v12 = vpop.f32.mrf.mxu2  ;;  %v1900_v15 = vpop.f32.mrf.mxu0 }
 0x100   : > { %v4897_v13 = vpop.f32.mrf.mxu3  ;;  %v4086_v14 = vadd.f32 %v3766_v12, %v2764_v11  ;;  %v2765_v16 = vpop.f32.mrf.mxu1 }
 0x101   : > { %v2766_v21 = vadd.f32 %v2765_v16, %v1900_v15  ;;  %v11979_v15 = vld [vmem:[%s12526_s30 + $0xb0] sm:$0xff] }
 0x102   : > { %v5217_v17 = vadd.f32 %v4897_v13, %v4086_v14  ;;  %v11911_v14 = vld [vmem:[%s12526_s30 + $0xa8] sm:$0xff] }
 0x104   : > { %v5345_v19 = vmul.f32 0.00390625, %v5217_v17 }
 0x106   : > { %v5477_v20 = vadd.f32 %v12609_v18, %v5345_v19 }
 0x107   : > { %v3768_v22 = vpop.f32.mrf.mxu2  ;;  %v1903_v28 = vpop.f32.mrf.mxu0 }
 0x108   : > { %v4899_v23 = vpop.f32.mrf.mxu3  ;;  %v5605_v26 = vmax.f32 %v5477_v20, 0.0  ;;  %v4087_v27 = vadd.f32 %v3768_v22, %v2766_v21  ;;  %v2768_v29 = vpop.f32.mrf.mxu1 }
 0x109   : > { %v2769_v35 = vadd.f32 %v2768_v29, %v1903_v28 }
 0x10a   : > { %5734 = vst.msk [vmem:[#allocation2] sm:$0xff] %vm5733_vm1, %v5605_v26  ;;  %v5218_v32 = vadd.f32 %v4899_v23, %v4087_v27  ;;  %9681 = vmatmul.msk.bf16.gmra.mxu0 %vm1696_vm0, %v11841_v24 }
 0x10b   : > { %10017 = vmatmul.msk.bf16.gmra.mxu1 %vm1696_vm0, %v11773_v25 }
 0x10c   : > { %v5346_v33 = vmul.f32 0.00390625, %v5218_v32  ;;  %10489 = vmatmul.msk.bf16.gmra.mxu2 %vm1696_vm0, %v11909_v30 }
 0x10d   : > { %10961 = vmatmul.msk.bf16.gmra.mxu3 %vm1696_vm0, %v11977_v31 }
 0x10e   : > { %v5478_v34 = vadd.f32 %v12609_v18, %v5346_v33  ;;  %v11844_v33 = vld [vmem:[%s12526_s30 + $0x70] sm:$0xff] }
 0x10f   : > { %v3771_v36 = vpop.f32.mrf.mxu2  ;;  %v1905_v40 = vpop.f32.mrf.mxu0 }
 0x110   : > { %v4902_v37 = vpop.f32.mrf.mxu3  ;;  %v5606_v38 = vmax.f32 %v5478_v34, 0.0  ;;  %v4088_v39 = vadd.f32 %v3771_v36, %v2769_v35  ;;  %v2770_v41 = vpop.f32.mrf.mxu1  ;;  %v11776_v34 = vld [vmem:[%s12526_s30 + $0x68] sm:$0xff] }
 0x111   : > { %v2771_v45 = vadd.f32 %v2770_v41, %v1905_v40  ;;  %v11980_v40 = vld [vmem:[%s12526_s30 + $0xb8] sm:$0xff] }
 0x112   : > { %5735 = vst.msk [vmem:[#allocation2 + $0x8] sm:$0xff] %vm5733_vm1, %v5606_v38  ;;  %v5219_v42 = vadd.f32 %v4902_v37, %v4088_v39  ;;  %v11912_v39 = vld [vmem:[%s12526_s30 + $0xb0] sm:$0xff] }
 0x114   : > { %v5347_v43 = vmul.f32 0.00390625, %v5219_v42 }
 0x116   : > { %v5479_v44 = vadd.f32 %v12609_v18, %v5347_v43 }
 0x117   : > { %v3773_v46 = vpop.f32.mrf.mxu2  ;;  %v1908_v52 = vpop.f32.mrf.mxu0 }
 0x118   : > { %v4904_v47 = vpop.f32.mrf.mxu3  ;;  %v5607_v50 = vmax.f32 %v5479_v44, 0.0  ;;  %v4089_v51 = vadd.f32 %v3773_v46, %v2771_v45  ;;  %v2773_v53 = vpop.f32.mrf.mxu1 }
 0x119   : > { %v2774_v59 = vadd.f32 %v2773_v53, %v1908_v52 }
 0x11a   : > { %5736 = vst.msk [vmem:[#allocation2 + $0x10] sm:$0xff] %vm5733_vm1, %v5607_v50  ;;  %v5220_v56 = vadd.f32 %v4904_v47, %v4089_v51  ;;  %9682 = vmatmul.msk.bf16.gmra.mxu0 %vm1696_vm0, %v11842_v48 }
 0x11b   : > { %10018 = vmatmul.msk.bf16.gmra.mxu1 %vm1696_vm0, %v11774_v49 }
 0x11c   : > { %v5348_v57 = vmul.f32 0.00390625, %v5220_v56  ;;  %10490 = vmatmul.msk.bf16.gmra.mxu2 %vm1696_vm0, %v11910_v54 }
 0x11d   : > { %10962 = vmatmul.msk.bf16.gmra.mxu3 %vm1696_vm0, %v11978_v55 }
 0x11e   : > { %v5480_v58 = vadd.f32 %v12609_v18, %v5348_v57  ;;  %v11845_v57 = vld [vmem:[%s12526_s30 + $0x78] sm:$0xff] }
 0x11f   : > { %v3776_v60 = vpop.f32.mrf.mxu2  ;;  %v1910_v0 = vpop.f32.mrf.mxu0 }
 0x120   : > { %v4907_v61 = vpop.f32.mrf.mxu3  ;;  %v5608_v62 = vmax.f32 %v5480_v58, 0.0  ;;  %v4090_v63 = vadd.f32 %v3776_v60, %v2774_v59  ;;  %v2775_v1 = vpop.f32.mrf.mxu1  ;;  %v11777_v58 = vld [vmem:[%s12526_s30 + $0x70] sm:$0xff] }
 0x121   : > { %v2776_v5 = vadd.f32 %v2775_v1, %v1910_v0  ;;  %v11981_v0 = vld [vmem:[%s12526_s30 + $0xc0] sm:$0xff] }
 0x122   : > { %5737 = vst.msk [vmem:[#allocation2 + $0x18] sm:$0xff] %vm5733_vm1, %v5608_v62  ;;  %v5221_v2 = vadd.f32 %v4907_v61, %v4090_v63  ;;  %v11913_v63 = vld [vmem:[%s12526_s30 + $0xb8] sm:$0xff] }
 0x124   : > { %v5349_v3 = vmul.f32 0.00390625, %v5221_v2 }
 0x126   : > { %v5481_v4 = vadd.f32 %v12609_v18, %v5349_v3 }
 0x127   : > { %v3778_v6 = vpop.f32.mrf.mxu2  ;;  %v1913_v12 = vpop.f32.mrf.mxu0 }
 0x128   : > { %v4909_v7 = vpop.f32.mrf.mxu3  ;;  %v5609_v10 = vmax.f32 %v5481_v4, 0.0  ;;  %v4091_v11 = vadd.f32 %v3778_v6, %v2776_v5  ;;  %v2778_v13 = vpop.f32.mrf.mxu1 }
 0x129   : > { %v2779_v20 = vadd.f32 %v2778_v13, %v1913_v12 }
 0x12a   : > { %5738 = vst.msk [vmem:[#allocation2 + $0x20] sm:$0xff] %vm5733_vm1, %v5609_v10  ;;  %v5222_v16 = vadd.f32 %v4909_v7, %v4091_v11  ;;  %9683 = vmatmul.msk.bf16.gmra.mxu0 %vm1696_vm0, %v11843_v8 }
 0x12b   : > { %10019 = vmatmul.msk.bf16.gmra.mxu1 %vm1696_vm0, %v11775_v9 }
 0x12c   : > { %v5350_v17 = vmul.f32 0.00390625, %v5222_v16  ;;  %10491 = vmatmul.msk.bf16.gmra.mxu2 %vm1696_vm0, %v11911_v14 }
 0x12d   : > { %10963 = vmatmul.msk.bf16.gmra.mxu3 %vm1696_vm0, %v11979_v15 }
 0x12e   : > { %v5482_v19 = vadd.f32 %v12609_v18, %v5350_v17  ;;  %v11846_v17 = vld [vmem:[%s12526_s30 + $0x80] sm:$0xff] }
 0x12f   : > { %v3781_v21 = vpop.f32.mrf.mxu2  ;;  %v1915_v25 = vpop.f32.mrf.mxu0 }
 0x130   : > { %v4912_v22 = vpop.f32.mrf.mxu3  ;;  %v5610_v23 = vmax.f32 %v5482_v19, 0.0  ;;  %v4092_v24 = vadd.f32 %v3781_v21, %v2779_v20  ;;  %v2780_v26 = vpop.f32.mrf.mxu1  ;;  %v11778_v19 = vld [vmem:[%s12526_s30 + $0x78] sm:$0xff] }
 0x131   : > { %v2781_v30 = vadd.f32 %v2780_v26, %v1915_v25  ;;  %v11982_v25 = vld [vmem:[%s12526_s30 + $0xc8] sm:$0xff] }
 0x132   : > { %5739 = vst.msk [vmem:[#allocation2 + $0x28] sm:$0xff] %vm5733_vm1, %v5610_v23  ;;  %v5223_v27 = vadd.f32 %v4912_v22, %v4092_v24  ;;  %v11914_v24 = vld [vmem:[%s12526_s30 + $0xc0] sm:$0xff] }
 0x134   : > { %v5351_v28 = vmul.f32 0.00390625, %v5223_v27 }
 0x136   : > { %v5483_v29 = vadd.f32 %v12609_v18, %v5351_v28 }
 0x137   : > { %v3783_v31 = vpop.f32.mrf.mxu2  ;;  %v1918_v37 = vpop.f32.mrf.mxu0 }
 0x138   : > { %v4914_v32 = vpop.f32.mrf.mxu3  ;;  %v5611_v35 = vmax.f32 %v5483_v29, 0.0  ;;  %v4093_v36 = vadd.f32 %v3783_v31, %v2781_v30  ;;  %v2783_v38 = vpop.f32.mrf.mxu1 }
 0x139   : > { %v2784_v44 = vadd.f32 %v2783_v38, %v1918_v37 }
 0x13a   : > { %5740 = vst.msk [vmem:[#allocation2 + $0x30] sm:$0xff] %vm5733_vm1, %v5611_v35  ;;  %v5224_v41 = vadd.f32 %v4914_v32, %v4093_v36  ;;  %9684 = vmatmul.msk.bf16.gmra.mxu0 %vm1696_vm0, %v11844_v33 }
 0x13b   : > { %10020 = vmatmul.msk.bf16.gmra.mxu1 %vm1696_vm0, %v11776_v34 }
 0x13c   : > { %v5352_v42 = vmul.f32 0.00390625, %v5224_v41  ;;  %10492 = vmatmul.msk.bf16.gmra.mxu2 %vm1696_vm0, %v11912_v39 }
 0x13d   : > { %10964 = vmatmul.msk.bf16.gmra.mxu3 %vm1696_vm0, %v11980_v40 }
 0x13e   : > { %v5484_v43 = vadd.f32 %v12609_v18, %v5352_v42  ;;  %v11847_v42 = vld [vmem:[%s12526_s30 + $0x88] sm:$0xff] }
 0x13f   : > { %v3786_v45 = vpop.f32.mrf.mxu2  ;;  %v1920_v49 = vpop.f32.mrf.mxu0 }
 0x140   : > { %v4917_v46 = vpop.f32.mrf.mxu3  ;;  %v5612_v47 = vmax.f32 %v5484_v43, 0.0  ;;  %v4094_v48 = vadd.f32 %v3786_v45, %v2784_v44  ;;  %v2785_v50 = vpop.f32.mrf.mxu1  ;;  %v11779_v43 = vld [vmem:[%s12526_s30 + $0x80] sm:$0xff] }
 0x141   : > { %v2786_v54 = vadd.f32 %v2785_v50, %v1920_v49  ;;  %v11983_v49 = vld [vmem:[%s12526_s30 + $0xd0] sm:$0xff] }
 0x142   : > { %5741 = vst.msk [vmem:[#allocation2 + $0x38] sm:$0xff] %vm5733_vm1, %v5612_v47  ;;  %v5225_v51 = vadd.f32 %v4917_v46, %v4094_v48  ;;  %v11915_v48 = vld [vmem:[%s12526_s30 + $0xc8] sm:$0xff] }
 0x144   : > { %v5353_v52 = vmul.f32 0.00390625, %v5225_v51 }
 0x146   : > { %v5485_v53 = vadd.f32 %v12609_v18, %v5353_v52 }
 0x147   : > { %v3788_v55 = vpop.f32.mrf.mxu2  ;;  %v1923_v61 = vpop.f32.mrf.mxu0 }
 0x148   : > { %v4919_v56 = vpop.f32.mrf.mxu3  ;;  %v5613_v59 = vmax.f32 %v5485_v53, 0.0  ;;  %v4095_v60 = vadd.f32 %v3788_v55, %v2786_v54  ;;  %v2788_v62 = vpop.f32.mrf.mxu1 }
 0x149   : > { %v2789_v4 = vadd.f32 %v2788_v62, %v1923_v61 }
 0x14a   : > { %5742 = vst.msk [vmem:[#allocation2 + $0x40] sm:$0xff] %vm5733_vm1, %v5613_v59  ;;  %v5226_v1 = vadd.f32 %v4919_v56, %v4095_v60  ;;  %9685 = vmatmul.msk.bf16.gmra.mxu0 %vm1696_vm0, %v11845_v57 }
 0x14b   : > { %10021 = vmatmul.msk.bf16.gmra.mxu1 %vm1696_vm0, %v11777_v58 }
 0x14c   : > { %v5354_v2 = vmul.f32 0.00390625, %v5226_v1  ;;  %10493 = vmatmul.msk.bf16.gmra.mxu2 %vm1696_vm0, %v11913_v63 }
 0x14d   : > { %10965 = vmatmul.msk.bf16.gmra.mxu3 %vm1696_vm0, %v11981_v0 }
 0x14e   : > { %v5486_v3 = vadd.f32 %v12609_v18, %v5354_v2  ;;  %v11848_v2 = vld [vmem:[%s12526_s30 + $0x98] sm:$0xff] }
 0x14f   : > { %v3791_v5 = vpop.f32.mrf.mxu2  ;;  %v1925_v9 = vpop.f32.mrf.mxu0 }
 0x150   : > { %v4922_v6 = vpop.f32.mrf.mxu3  ;;  %v5614_v7 = vmax.f32 %v5486_v3, 0.0  ;;  %v4096_v8 = vadd.f32 %v3791_v5, %v2789_v4  ;;  %v2790_v10 = vpop.f32.mrf.mxu1  ;;  %v11780_v3 = vld [vmem:[%s12526_s30 + $0x90] sm:$0xff] }
 0x151   : > { %v2791_v14 = vadd.f32 %v2790_v10, %v1925_v9  ;;  %v11984_v9 = vld [vmem:[%s12526_s30 + $0xe0] sm:$0xff] }
 0x152   : > { %5743 = vst.msk [vmem:[#allocation2 + $0x48] sm:$0xff] %vm5733_vm1, %v5614_v7  ;;  %v5227_v11 = vadd.f32 %v4922_v6, %v4096_v8  ;;  %v11916_v8 = vld [vmem:[%s12526_s30 + $0xd8] sm:$0xff] }
 0x154   : > { %v5355_v12 = vmul.f32 0.00390625, %v5227_v11 }
 0x156   : > { %v5487_v13 = vadd.f32 %v12609_v18, %v5355_v12 }
 0x157   : > { %v3793_v15 = vpop.f32.mrf.mxu2  ;;  %v1928_v22 = vpop.f32.mrf.mxu0 }
 0x158   : > { %v4924_v16 = vpop.f32.mrf.mxu3  ;;  %v5615_v20 = vmax.f32 %v5487_v13, 0.0  ;;  %v4097_v21 = vadd.f32 %v3793_v15, %v2791_v14  ;;  %v2793_v23 = vpop.f32.mrf.mxu1 }
 0x159   : > { %v2794_v29 = vadd.f32 %v2793_v23, %v1928_v22 }
 0x15a   : > { %5744 = vst.msk [vmem:[#allocation2 + $0x50] sm:$0xff] %vm5733_vm1, %v5615_v20  ;;  %v5228_v26 = vadd.f32 %v4924_v16, %v4097_v21  ;;  %9686 = vmatmul.msk.bf16.gmra.mxu0 %vm1696_vm0, %v11846_v17 }
 0x15b   : > { %10022 = vmatmul.msk.bf16.gmra.mxu1 %vm1696_vm0, %v11778_v19 }
 0x15c   : > { %v5356_v27 = vmul.f32 0.00390625, %v5228_v26  ;;  %10494 = vmatmul.msk.bf16.gmra.mxu2 %vm1696_vm0, %v11914_v24 }
 0x15d   : > { %10966 = vmatmul.msk.bf16.gmra.mxu3 %vm1696_vm0, %v11982_v25 }
 0x15e   : > { %v5488_v28 = vadd.f32 %v12609_v18, %v5356_v27  ;;  %v11849_v27 = vld [vmem:[%s12526_s30 + $0xa0] sm:$0xff] }
 0x15f   : > { %v3796_v30 = vpop.f32.mrf.mxu2  ;;  %v1930_v34 = vpop.f32.mrf.mxu0 }
 0x160   : > { %v4927_v31 = vpop.f32.mrf.mxu3  ;;  %v5616_v32 = vmax.f32 %v5488_v28, 0.0  ;;  %v4098_v33 = vadd.f32 %v3796_v30, %v2794_v29  ;;  %v2795_v35 = vpop.f32.mrf.mxu1  ;;  %v11781_v28 = vld [vmem:[%s12526_s30 + $0x98] sm:$0xff] }
 0x161   : > { %v2796_v39 = vadd.f32 %v2795_v35, %v1930_v34  ;;  %v11985_v34 = vld [vmem:[%s12526_s30 + $0xe8] sm:$0xff] }
 0x162   : > { %5745 = vst.msk [vmem:[#allocation2 + $0x58] sm:$0xff] %vm5733_vm1, %v5616_v32  ;;  %v5229_v36 = vadd.f32 %v4927_v31, %v4098_v33  ;;  %v11917_v33 = vld [vmem:[%s12526_s30 + $0xe0] sm:$0xff] }
 0x164   : > { %v5357_v37 = vmul.f32 0.00390625, %v5229_v36 }
 0x166   : > { %v5489_v38 = vadd.f32 %v12609_v18, %v5357_v37 }
 0x167   : > { %v3798_v40 = vpop.f32.mrf.mxu2  ;;  %v1933_v46 = vpop.f32.mrf.mxu0 }
 0x168   : > { %v4929_v41 = vpop.f32.mrf.mxu3  ;;  %v5617_v44 = vmax.f32 %v5489_v38, 0.0  ;;  %v4099_v45 = vadd.f32 %v3798_v40, %v2796_v39  ;;  %v2798_v47 = vpop.f32.mrf.mxu1 }
 0x169   : > { %v2799_v53 = vadd.f32 %v2798_v47, %v1933_v46 }
 0x16a   : > { %5746 = vst.msk [vmem:[#allocation2 + $0x60] sm:$0xff] %vm5733_vm1, %v5617_v44  ;;  %v5230_v50 = vadd.f32 %v4929_v41, %v4099_v45  ;;  %9687 = vmatmul.msk.bf16.gmra.mxu0 %vm1696_vm0, %v11847_v42 }
 0x16b   : > { %10023 = vmatmul.msk.bf16.gmra.mxu1 %vm1696_vm0, %v11779_v43 }
 0x16c   : > { %v5358_v51 = vmul.f32 0.00390625, %v5230_v50  ;;  %10495 = vmatmul.msk.bf16.gmra.mxu2 %vm1696_vm0, %v11915_v48 }
 0x16d   : > { %10967 = vmatmul.msk.bf16.gmra.mxu3 %vm1696_vm0, %v11983_v49 }
 0x16e   : > { %v5490_v52 = vadd.f32 %v12609_v18, %v5358_v51  ;;  %v11850_v51 = vld [vmem:[%s12526_s30 + $0xa8] sm:$0xff] }
 0x16f   : > { %v3801_v54 = vpop.f32.mrf.mxu2  ;;  %v1935_v58 = vpop.f32.mrf.mxu0 }
 0x170   : > { %v4932_v55 = vpop.f32.mrf.mxu3  ;;  %v5618_v56 = vmax.f32 %v5490_v52, 0.0  ;;  %v4100_v57 = vadd.f32 %v3801_v54, %v2799_v53  ;;  %v2800_v59 = vpop.f32.mrf.mxu1  ;;  %v11782_v52 = vld [vmem:[%s12526_s30 + $0xa0] sm:$0xff] }
 0x171   : > { %v2801_v63 = vadd.f32 %v2800_v59, %v1935_v58  ;;  %v11986_v58 = vld [vmem:[%s12526_s30 + $0xf0] sm:$0xff] }
 0x172   : > { %5747 = vst.msk [vmem:[#allocation2 + $0x68] sm:$0xff] %vm5733_vm1, %v5618_v56  ;;  %v5231_v60 = vadd.f32 %v4932_v55, %v4100_v57  ;;  %v11918_v57 = vld [vmem:[%s12526_s30 + $0xe8] sm:$0xff] }
 0x174   : > { %v5359_v61 = vmul.f32 0.00390625, %v5231_v60 }
 0x176   : > { %v5491_v62 = vadd.f32 %v12609_v18, %v5359_v61 }
 0x177   : > { %v3803_v0 = vpop.f32.mrf.mxu2  ;;  %v1938_v6 = vpop.f32.mrf.mxu0 }
 0x178   : > { %v4934_v1 = vpop.f32.mrf.mxu3  ;;  %v5619_v4 = vmax.f32 %v5491_v62, 0.0  ;;  %v4101_v5 = vadd.f32 %v3803_v0, %v2801_v63  ;;  %v2803_v7 = vpop.f32.mrf.mxu1 }
 0x179   : > { %v2804_v13 = vadd.f32 %v2803_v7, %v1938_v6 }
 0x17a   : > { %5748 = vst.msk [vmem:[#allocation2 + $0x70] sm:$0xff] %vm5733_vm1, %v5619_v4  ;;  %v5232_v10 = vadd.f32 %v4934_v1, %v4101_v5  ;;  %9688 = vmatmul.msk.bf16.gmra.mxu0 %vm1696_vm0, %v11848_v2 }
 0x17b   : > { %10024 = vmatmul.msk.bf16.gmra.mxu1 %vm1696_vm0, %v11780_v3 }
 0x17c   : > { %v5360_v11 = vmul.f32 0.00390625, %v5232_v10  ;;  %10496 = vmatmul.msk.bf16.gmra.mxu2 %vm1696_vm0, %v11916_v8 }
 0x17d   : > { %10968 = vmatmul.msk.bf16.gmra.mxu3 %vm1696_vm0, %v11984_v9 }
 0x17e   : > { %v5492_v12 = vadd.f32 %v12609_v18, %v5360_v11  ;;  %v11851_v11 = vld [vmem:[%s12526_s30 + $0xb0] sm:$0xff] }
 0x17f   : > { %v3806_v14 = vpop.f32.mrf.mxu2  ;;  %v1940_v19 = vpop.f32.mrf.mxu0 }
 0x180   : > { %v4937_v15 = vpop.f32.mrf.mxu3  ;;  %v5620_v16 = vmax.f32 %v5492_v12, 0.0  ;;  %v4102_v17 = vadd.f32 %v3806_v14, %v2804_v13  ;;  %v2805_v20 = vpop.f32.mrf.mxu1  ;;  %v11783_v12 = vld [vmem:[%s12526_s30 + $0xa8] sm:$0xff] }
 0x181   : > { %v2806_v24 = vadd.f32 %v2805_v20, %v1940_v19  ;;  %v11987_v19 = vld [vmem:[%s12526_s30 + $0xf8] sm:$0xff] }
 0x182   : > { %5749 = vst.msk [vmem:[#allocation2 + $0x78] sm:$0xff] %vm5733_vm1, %v5620_v16  ;;  %v5233_v21 = vadd.f32 %v4937_v15, %v4102_v17  ;;  %v11919_v17 = vld [vmem:[%s12526_s30 + $0xf0] sm:$0xff] }
 0x184   : > { %v5361_v22 = vmul.f32 0.00390625, %v5233_v21 }
 0x186   : > { %v5493_v23 = vadd.f32 %v12609_v18, %v5361_v22 }
 0x187   : > { %v3808_v25 = vpop.f32.mrf.mxu2  ;;  %v1943_v31 = vpop.f32.mrf.mxu0 }
 0x188   : > { %v4939_v26 = vpop.f32.mrf.mxu3  ;;  %v5621_v29 = vmax.f32 %v5493_v23, 0.0  ;;  %v4103_v30 = vadd.f32 %v3808_v25, %v2806_v24  ;;  %v2808_v32 = vpop.f32.mrf.mxu1 }
 0x189   : > { %v2809_v38 = vadd.f32 %v2808_v32, %v1943_v31 }
 0x18a   : > { %5750 = vst.msk [vmem:[#allocation2 + $0x80] sm:$0xff] %vm5733_vm1, %v5621_v29  ;;  %v5234_v35 = vadd.f32 %v4939_v26, %v4103_v30  ;;  %9689 = vmatmul.msk.bf16.gmra.mxu0 %vm1696_vm0, %v11849_v27 }
 0x18b   : > { %10025 = vmatmul.msk.bf16.gmra.mxu1 %vm1696_vm0, %v11781_v28 }
 0x18c   : > { %v5362_v36 = vmul.f32 0.00390625, %v5234_v35  ;;  %10497 = vmatmul.msk.bf16.gmra.mxu2 %vm1696_vm0, %v11917_v33 }
 0x18d   : > { %10969 = vmatmul.msk.bf16.gmra.mxu3 %vm1696_vm0, %v11985_v34 }
 0x18e   : > { %v5494_v37 = vadd.f32 %v12609_v18, %v5362_v36  ;;  %v11852_v36 = vld [vmem:[%s12526_s30 + $0xb8] sm:$0xff] }
 0x18f   : > { %v3811_v39 = vpop.f32.mrf.mxu2  ;;  %v1945_v43 = vpop.f32.mrf.mxu0 }
 0x190   : > { %v4942_v40 = vpop.f32.mrf.mxu3  ;;  %v5622_v41 = vmax.f32 %v5494_v37, 0.0  ;;  %v4104_v42 = vadd.f32 %v3811_v39, %v2809_v38  ;;  %v2810_v44 = vpop.f32.mrf.mxu1  ;;  %v11784_v37 = vld [vmem:[%s12526_s30 + $0xb0] sm:$0xff] }
 0x191   : > { %v2811_v48 = vadd.f32 %v2810_v44, %v1945_v43  ;;  %v11988_v43 = vld [vmem:[%s12526_s30 + $0x100] sm:$0xff] }
 0x192   : > { %5751 = vst.msk [vmem:[#allocation2 + $0x88] sm:$0xff] %vm5733_vm1, %v5622_v41  ;;  %v5235_v45 = vadd.f32 %v4942_v40, %v4104_v42  ;;  %v11920_v42 = vld [vmem:[%s12526_s30 + $0xf8] sm:$0xff] }
 0x194   : > { %v5363_v46 = vmul.f32 0.00390625, %v5235_v45 }
 0x196   : > { %v5495_v47 = vadd.f32 %v12609_v18, %v5363_v46 }
 0x197   : > { %v3813_v49 = vpop.f32.mrf.mxu2  ;;  %v1948_v55 = vpop.f32.mrf.mxu0 }
 0x198   : > { %v4944_v50 = vpop.f32.mrf.mxu3  ;;  %v5623_v53 = vmax.f32 %v5495_v47, 0.0  ;;  %v4105_v54 = vadd.f32 %v3813_v49, %v2811_v48  ;;  %v2813_v56 = vpop.f32.mrf.mxu1 }
 0x199   : > { %v2814_v62 = vadd.f32 %v2813_v56, %v1948_v55 }
 0x19a   : > { %5752 = vst.msk [vmem:[#allocation2 + $0x90] sm:$0xff] %vm5733_vm1, %v5623_v53  ;;  %v5236_v59 = vadd.f32 %v4944_v50, %v4105_v54  ;;  %9690 = vmatmul.msk.bf16.gmra.mxu0 %vm1696_vm0, %v11850_v51 }
 0x19b   : > { %10026 = vmatmul.msk.bf16.gmra.mxu1 %vm1696_vm0, %v11782_v52 }
 0x19c   : > { %v5364_v60 = vmul.f32 0.00390625, %v5236_v59  ;;  %10498 = vmatmul.msk.bf16.gmra.mxu2 %vm1696_vm0, %v11918_v57 }
 0x19d   : > { %10970 = vmatmul.msk.bf16.gmra.mxu3 %vm1696_vm0, %v11986_v58 }
 0x19e   : > { %v5496_v61 = vadd.f32 %v12609_v18, %v5364_v60  ;;  %v11853_v60 = vld [vmem:[%s12526_s30 + $0xc0] sm:$0xff] }
 0x19f   : > { %v3816_v63 = vpop.f32.mrf.mxu2  ;;  %v1950_v3 = vpop.f32.mrf.mxu0 }
 0x1a0   : > { %v4947_v0 = vpop.f32.mrf.mxu3  ;;  %v5624_v1 = vmax.f32 %v5496_v61, 0.0  ;;  %v4106_v2 = vadd.f32 %v3816_v63, %v2814_v62  ;;  %v2815_v4 = vpop.f32.mrf.mxu1  ;;  %v11785_v61 = vld [vmem:[%s12526_s30 + $0xb8] sm:$0xff] }
 0x1a1   : > { %v2816_v8 = vadd.f32 %v2815_v4, %v1950_v3  ;;  %v11989_v3 = vld [vmem:[%s12526_s30 + $0x108] sm:$0xff] }
 0x1a2   : > { %5753 = vst.msk [vmem:[#allocation2 + $0x98] sm:$0xff] %vm5733_vm1, %v5624_v1  ;;  %v5237_v5 = vadd.f32 %v4947_v0, %v4106_v2  ;;  %v11921_v2 = vld [vmem:[%s12526_s30 + $0x100] sm:$0xff] }
 0x1a4   : > { %v5365_v6 = vmul.f32 0.00390625, %v5237_v5 }
 0x1a6   : > { %v5497_v7 = vadd.f32 %v12609_v18, %v5365_v6 }
 0x1a7   : > { %v3818_v9 = vpop.f32.mrf.mxu2  ;;  %v1953_v15 = vpop.f32.mrf.mxu0 }
 0x1a8   : > { %v4949_v10 = vpop.f32.mrf.mxu3  ;;  %v5625_v13 = vmax.f32 %v5497_v7, 0.0  ;;  %v4107_v14 = vadd.f32 %v3818_v9, %v2816_v8  ;;  %v2818_v16 = vpop.f32.mrf.mxu1 }
 0x1a9   : > { %v2819_v23 = vadd.f32 %v2818_v16, %v1953_v15 }
 0x1aa   : > { %5754 = vst.msk [vmem:[#allocation2 + $0xa0] sm:$0xff] %vm5733_vm1, %v5625_v13  ;;  %v5238_v20 = vadd.f32 %v4949_v10, %v4107_v14  ;;  %9691 = vmatmul.msk.bf16.gmra.mxu0 %vm1696_vm0, %v11851_v11 }
 0x1ab   : > { %10027 = vmatmul.msk.bf16.gmra.mxu1 %vm1696_vm0, %v11783_v12 }
 0x1ac   : > { %v5366_v21 = vmul.f32 0.00390625, %v5238_v20  ;;  %10499 = vmatmul.msk.bf16.gmra.mxu2 %vm1696_vm0, %v11919_v17 }
 0x1ad   : > { %10971 = vmatmul.msk.bf16.gmra.mxu3 %vm1696_vm0, %v11987_v19 }
 0x1ae   : > { %v5498_v22 = vadd.f32 %v12609_v18, %v5366_v21  ;;  %v11854_v21 = vld [vmem:[%s12526_s30 + $0xc8] sm:$0xff] }
 0x1af   : > { %v3821_v24 = vpop.f32.mrf.mxu2  ;;  %v1955_v28 = vpop.f32.mrf.mxu0 }
 0x1b0   : > { %v4952_v25 = vpop.f32.mrf.mxu3  ;;  %v5626_v26 = vmax.f32 %v5498_v22, 0.0  ;;  %v4108_v27 = vadd.f32 %v3821_v24, %v2819_v23  ;;  %v2820_v29 = vpop.f32.mrf.mxu1  ;;  %v11786_v22 = vld [vmem:[%s12526_s30 + $0xc0] sm:$0xff] }
 0x1b1   : > { %v2821_v33 = vadd.f32 %v2820_v29, %v1955_v28  ;;  %v11990_v28 = vld [vmem:[%s12526_s30 + $0x110] sm:$0xff] }
 0x1b2   : > { %5755 = vst.msk [vmem:[#allocation2 + $0xa8] sm:$0xff] %vm5733_vm1, %v5626_v26  ;;  %v5239_v30 = vadd.f32 %v4952_v25, %v4108_v27  ;;  %v11922_v27 = vld [vmem:[%s12526_s30 + $0x108] sm:$0xff] }
 0x1b4   : > { %v5367_v31 = vmul.f32 0.00390625, %v5239_v30 }
 0x1b6   : > { %v5499_v32 = vadd.f32 %v12609_v18, %v5367_v31 }
 0x1b7   : > { %v3823_v34 = vpop.f32.mrf.mxu2  ;;  %v1958_v40 = vpop.f32.mrf.mxu0 }
 0x1b8   : > { %v4954_v35 = vpop.f32.mrf.mxu3  ;;  %v5627_v38 = vmax.f32 %v5499_v32, 0.0  ;;  %v4109_v39 = vadd.f32 %v3823_v34, %v2821_v33  ;;  %v2823_v41 = vpop.f32.mrf.mxu1 }
 0x1b9   : > { %v2824_v47 = vadd.f32 %v2823_v41, %v1958_v40 }
 0x1ba   : > { %5756 = vst.msk [vmem:[#allocation2 + $0xb0] sm:$0xff] %vm5733_vm1, %v5627_v38  ;;  %v5240_v44 = vadd.f32 %v4954_v35, %v4109_v39  ;;  %9692 = vmatmul.msk.bf16.gmra.mxu0 %vm1696_vm0, %v11852_v36 }
 0x1bb   : > { %10028 = vmatmul.msk.bf16.gmra.mxu1 %vm1696_vm0, %v11784_v37 }
 0x1bc   : > { %v5368_v45 = vmul.f32 0.00390625, %v5240_v44  ;;  %10500 = vmatmul.msk.bf16.gmra.mxu2 %vm1696_vm0, %v11920_v42 }
 0x1bd   : > { %10972 = vmatmul.msk.bf16.gmra.mxu3 %vm1696_vm0, %v11988_v43 }
 0x1be   : > { %v5500_v46 = vadd.f32 %v12609_v18, %v5368_v45  ;;  %v11855_v45 = vld [vmem:[%s12526_s30 + $0xd0] sm:$0xff] }
 0x1bf   : > { %v3826_v48 = vpop.f32.mrf.mxu2  ;;  %v1960_v52 = vpop.f32.mrf.mxu0 }
 0x1c0   : > { %v4957_v49 = vpop.f32.mrf.mxu3  ;;  %v5628_v50 = vmax.f32 %v5500_v46, 0.0  ;;  %v4110_v51 = vadd.f32 %v3826_v48, %v2824_v47  ;;  %v2825_v53 = vpop.f32.mrf.mxu1  ;;  %v11787_v46 = vld [vmem:[%s12526_s30 + $0xc8] sm:$0xff] }
 0x1c1   : > { %v2826_v57 = vadd.f32 %v2825_v53, %v1960_v52  ;;  %v11991_v52 = vld [vmem:[%s12526_s30 + $0x118] sm:$0xff] }
 0x1c2   : > { %5757 = vst.msk [vmem:[#allocation2 + $0xb8] sm:$0xff] %vm5733_vm1, %v5628_v50  ;;  %v5241_v54 = vadd.f32 %v4957_v49, %v4110_v51  ;;  %v11923_v51 = vld [vmem:[%s12526_s30 + $0x110] sm:$0xff] }
 0x1c4   : > { %v5369_v55 = vmul.f32 0.00390625, %v5241_v54 }
 0x1c6   : > { %v5501_v56 = vadd.f32 %v12609_v18, %v5369_v55 }
 0x1c7   : > { %v3828_v58 = vpop.f32.mrf.mxu2  ;;  %v1963_v0 = vpop.f32.mrf.mxu0 }
 0x1c8   : > { %v4959_v59 = vpop.f32.mrf.mxu3  ;;  %v5629_v62 = vmax.f32 %v5501_v56, 0.0  ;;  %v4111_v63 = vadd.f32 %v3828_v58, %v2826_v57  ;;  %v2828_v1 = vpop.f32.mrf.mxu1 }
 0x1c9   : > { %v2829_v7 = vadd.f32 %v2828_v1, %v1963_v0 }
 0x1ca   : > { %5758 = vst.msk [vmem:[#allocation2 + $0xc0] sm:$0xff] %vm5733_vm1, %v5629_v62  ;;  %v5242_v4 = vadd.f32 %v4959_v59, %v4111_v63  ;;  %9693 = vmatmul.msk.bf16.gmra.mxu0 %vm1696_vm0, %v11853_v60 }
 0x1cb   : > { %10029 = vmatmul.msk.bf16.gmra.mxu1 %vm1696_vm0, %v11785_v61 }
 0x1cc   : > { %v5370_v5 = vmul.f32 0.00390625, %v5242_v4  ;;  %10501 = vmatmul.msk.bf16.gmra.mxu2 %vm1696_vm0, %v11921_v2 }
 0x1cd   : > { %10973 = vmatmul.msk.bf16.gmra.mxu3 %vm1696_vm0, %v11989_v3 }
 0x1ce   : > { %v5502_v6 = vadd.f32 %v12609_v18, %v5370_v5  ;;  %v11856_v5 = vld [vmem:[%s12526_s30 + $0xe0] sm:$0xff] }
 0x1cf   : > { %v3831_v8 = vpop.f32.mrf.mxu2  ;;  %v1965_v12 = vpop.f32.mrf.mxu0 }
 0x1d0   : > { %v4962_v9 = vpop.f32.mrf.mxu3  ;;  %v5630_v10 = vmax.f32 %v5502_v6, 0.0  ;;  %v4112_v11 = vadd.f32 %v3831_v8, %v2829_v7  ;;  %v2830_v13 = vpop.f32.mrf.mxu1  ;;  %v11788_v6 = vld [vmem:[%s12526_s30 + $0xd8] sm:$0xff] }
 0x1d1   : > { %v2831_v17 = vadd.f32 %v2830_v13, %v1965_v12  ;;  %v11992_v12 = vld [vmem:[%s12526_s30 + $0x128] sm:$0xff] }
 0x1d2   : > { %5759 = vst.msk [vmem:[#allocation2 + $0xc8] sm:$0xff] %vm5733_vm1, %v5630_v10  ;;  %v5243_v14 = vadd.f32 %v4962_v9, %v4112_v11  ;;  %v11924_v11 = vld [vmem:[%s12526_s30 + $0x120] sm:$0xff] }
 0x1d4   : > { %v5371_v15 = vmul.f32 0.00390625, %v5243_v14 }
 0x1d6   : > { %v5503_v16 = vadd.f32 %v12609_v18, %v5371_v15 }
 0x1d7   : > { %v3833_v19 = vpop.f32.mrf.mxu2  ;;  %v1968_v25 = vpop.f32.mrf.mxu0 }
 0x1d8   : > { %v4964_v20 = vpop.f32.mrf.mxu3  ;;  %v5631_v23 = vmax.f32 %v5503_v16, 0.0  ;;  %v4113_v24 = vadd.f32 %v3833_v19, %v2831_v17  ;;  %v2833_v26 = vpop.f32.mrf.mxu1 }
 0x1d9   : > { %v2834_v32 = vadd.f32 %v2833_v26, %v1968_v25 }
 0x1da   : > { %5760 = vst.msk [vmem:[#allocation2 + $0xd0] sm:$0xff] %vm5733_vm1, %v5631_v23  ;;  %v5244_v29 = vadd.f32 %v4964_v20, %v4113_v24  ;;  %9694 = vmatmul.msk.bf16.gmra.mxu0 %vm1696_vm0, %v11854_v21 }
 0x1db   : > { %10030 = vmatmul.msk.bf16.gmra.mxu1 %vm1696_vm0, %v11786_v22 }
 0x1dc   : > { %v5372_v30 = vmul.f32 0.00390625, %v5244_v29  ;;  %10502 = vmatmul.msk.bf16.gmra.mxu2 %vm1696_vm0, %v11922_v27 }
 0x1dd   : > { %10974 = vmatmul.msk.bf16.gmra.mxu3 %vm1696_vm0, %v11990_v28 }
 0x1de   : > { %v5504_v31 = vadd.f32 %v12609_v18, %v5372_v30  ;;  %v11857_v30 = vld [vmem:[%s12526_s30 + $0xe8] sm:$0xff] }
 0x1df   : > { %v3836_v33 = vpop.f32.mrf.mxu2  ;;  %v1970_v37 = vpop.f32.mrf.mxu0 }
 0x1e0   : > { %v4967_v34 = vpop.f32.mrf.mxu3  ;;  %v5632_v35 = vmax.f32 %v5504_v31, 0.0  ;;  %v4114_v36 = vadd.f32 %v3836_v33, %v2834_v32  ;;  %v2835_v38 = vpop.f32.mrf.mxu1  ;;  %v11789_v31 = vld [vmem:[%s12526_s30 + $0xe0] sm:$0xff] }
 0x1e1   : > { %v2836_v42 = vadd.f32 %v2835_v38, %v1970_v37  ;;  %v11993_v37 = vld [vmem:[%s12526_s30 + $0x130] sm:$0xff] }
 0x1e2   : > { %5761 = vst.msk [vmem:[#allocation2 + $0xd8] sm:$0xff] %vm5733_vm1, %v5632_v35  ;;  %v5245_v39 = vadd.f32 %v4967_v34, %v4114_v36  ;;  %v11925_v36 = vld [vmem:[%s12526_s30 + $0x128] sm:$0xff] }
 0x1e4   : > { %v5373_v40 = vmul.f32 0.00390625, %v5245_v39 }
 0x1e6   : > { %v5505_v41 = vadd.f32 %v12609_v18, %v5373_v40 }
 0x1e7   : > { %v3838_v43 = vpop.f32.mrf.mxu2  ;;  %v1973_v49 = vpop.f32.mrf.mxu0 }
 0x1e8   : > { %v4969_v44 = vpop.f32.mrf.mxu3  ;;  %v5633_v47 = vmax.f32 %v5505_v41, 0.0  ;;  %v4115_v48 = vadd.f32 %v3838_v43, %v2836_v42  ;;  %v2838_v50 = vpop.f32.mrf.mxu1 }
 0x1e9   : > { %v2839_v56 = vadd.f32 %v2838_v50, %v1973_v49  ;;  %v12818_v50 = vld [vmem:[%s14174_s2] ss:$0 sm:$0xff] }
 0x1ea   : > { %5762 = vst.msk [vmem:[#allocation2 + $0xe0] sm:$0xff] %vm5733_vm1, %v5633_v47  ;;  %v5246_v53 = vadd.f32 %v4969_v44, %v4115_v48  ;;  %9695 = vmatmul.msk.bf16.gmra.mxu0 %vm1696_vm0, %v11855_v45 }
 0x1eb   : > { %10031 = vmatmul.msk.bf16.gmra.mxu1 %vm1696_vm0, %v11787_v46 }
 0x1ec   : > { %v5374_v54 = vmul.f32 0.00390625, %v5246_v53  ;;  %10503 = vmatmul.msk.bf16.gmra.mxu2 %vm1696_vm0, %v11923_v51 }
 0x1ed   : > { %10975 = vmatmul.msk.bf16.gmra.mxu3 %vm1696_vm0, %v11991_v52 }
 0x1ee   : > { %v5506_v55 = vadd.f32 %v12609_v18, %v5374_v54  ;;  %v11858_v54 = vld [vmem:[%s12526_s30 + $0xf0] sm:$0xff] }
 0x1ef   : > { %v3841_v57 = vpop.f32.mrf.mxu2  ;;  %v1975_v61 = vpop.f32.mrf.mxu0 }
 0x1f0   : > { %v4972_v58 = vpop.f32.mrf.mxu3  ;;  %v5634_v59 = vmax.f32 %v5506_v55, 0.0  ;;  %v4116_v60 = vadd.f32 %v3841_v57, %v2839_v56  ;;  %v2840_v62 = vpop.f32.mrf.mxu1  ;;  %v11790_v55 = vld [vmem:[%s12526_s30 + $0xe8] sm:$0xff] }
 0x1f1   : > { %v2841_v2 = vadd.f32 %v2840_v62, %v1975_v61  ;;  %v11994_v61 = vld [vmem:[%s12526_s30 + $0x138] sm:$0xff] }
 0x1f2   : > { %5763 = vst.msk [vmem:[#allocation2 + $0xe8] sm:$0xff] %vm5733_vm1, %v5634_v59  ;;  %v5247_v63 = vadd.f32 %v4972_v58, %v4116_v60  ;;  %v11926_v60 = vld [vmem:[%s12526_s30 + $0x130] sm:$0xff] }
 0x1f4   : > { %v5375_v0 = vmul.f32 0.00390625, %v5247_v63 }
 0x1f6   : > { %v5507_v1 = vadd.f32 %v12609_v18, %v5375_v0 }
 0x1f7   : > { %v3843_v3 = vpop.f32.mrf.mxu2  ;;  %v1978_v9 = vpop.f32.mrf.mxu0 }
 0x1f8   : > { %v4974_v4 = vpop.f32.mrf.mxu3  ;;  %v5635_v7 = vmax.f32 %v5507_v1, 0.0  ;;  %v4117_v8 = vadd.f32 %v3843_v3, %v2841_v2  ;;  %v2843_v10 = vpop.f32.mrf.mxu1 }
 0x1f9   : > { %v2844_v16 = vadd.f32 %v2843_v10, %v1978_v9 }
 0x1fa   : > { %5764 = vst.msk [vmem:[#allocation2 + $0xf0] sm:$0xff] %vm5733_vm1, %v5635_v7  ;;  %v5248_v13 = vadd.f32 %v4974_v4, %v4117_v8  ;;  %9696 = vmatmul.msk.bf16.gmra.mxu0 %vm1696_vm0, %v11856_v5 }
 0x1fb   : > { %10032 = vmatmul.msk.bf16.gmra.mxu1 %vm1696_vm0, %v11788_v6 }
 0x1fc   : > { %v5376_v14 = vmul.f32 0.00390625, %v5248_v13  ;;  %10504 = vmatmul.msk.bf16.gmra.mxu2 %vm1696_vm0, %v11924_v11 }
 0x1fd   : > { %10976 = vmatmul.msk.bf16.gmra.mxu3 %vm1696_vm0, %v11992_v12 }
 0x1fe   : > { %v5508_v15 = vadd.f32 %v12609_v18, %v5376_v14  ;;  %v11859_v14 = vld [vmem:[%s12526_s30 + $0xf8] sm:$0xff] }
 0x1ff   : > { %v3846_v17 = vpop.f32.mrf.mxu2  ;;  %v1980_v22 = vpop.f32.mrf.mxu0 }
 0x200   : > { %v4977_v19 = vpop.f32.mrf.mxu3  ;;  %v5636_v20 = vmax.f32 %v5508_v15, 0.0  ;;  %v4118_v21 = vadd.f32 %v3846_v17, %v2844_v16  ;;  %v2845_v23 = vpop.f32.mrf.mxu1  ;;  %v11791_v15 = vld [vmem:[%s12526_s30 + $0xf0] sm:$0xff] }
 0x201   : > { %v2846_v27 = vadd.f32 %v2845_v23, %v1980_v22  ;;  %v11995_v22 = vld [vmem:[%s12526_s30 + $0x140] sm:$0xff] }
 0x202   : > { %5765 = vst.msk [vmem:[#allocation2 + $0xf8] sm:$0xff] %vm5733_vm1, %v5636_v20  ;;  %v5249_v24 = vadd.f32 %v4977_v19, %v4118_v21  ;;  %v11927_v21 = vld [vmem:[%s12526_s30 + $0x138] sm:$0xff] }
 0x204   : > { %v5377_v25 = vmul.f32 0.00390625, %v5249_v24 }
 0x206   : > { %v5509_v26 = vadd.f32 %v12609_v18, %v5377_v25 }
 0x207   : > { %v3848_v28 = vpop.f32.mrf.mxu2  ;;  %v1983_v34 = vpop.f32.mrf.mxu0 }
 0x208   : > { %v4979_v29 = vpop.f32.mrf.mxu3  ;;  %v5637_v32 = vmax.f32 %v5509_v26, 0.0  ;;  %v4119_v33 = vadd.f32 %v3848_v28, %v2846_v27  ;;  %v2848_v35 = vpop.f32.mrf.mxu1 }
 0x209   : > { %v2849_v41 = vadd.f32 %v2848_v35, %v1983_v34 }
 0x20a   : > { %5766 = vst.msk [vmem:[#allocation2 + $0x100] sm:$0xff] %vm5733_vm1, %v5637_v32  ;;  %v5250_v38 = vadd.f32 %v4979_v29, %v4119_v33  ;;  %9697 = vmatmul.msk.bf16.gmra.mxu0 %vm1696_vm0, %v11857_v30 }
 0x20b   : > { %10033 = vmatmul.msk.bf16.gmra.mxu1 %vm1696_vm0, %v11789_v31 }
 0x20c   : > { %v5378_v39 = vmul.f32 0.00390625, %v5250_v38  ;;  %10505 = vmatmul.msk.bf16.gmra.mxu2 %vm1696_vm0, %v11925_v36 }
 0x20d   : > { %10977 = vmatmul.msk.bf16.gmra.mxu3 %vm1696_vm0, %v11993_v37 }
 0x20e   : > { %v5510_v40 = vadd.f32 %v12609_v18, %v5378_v39  ;;  %v11860_v39 = vld [vmem:[%s12526_s30 + $0x100] sm:$0xff] }
 0x20f   : > { %v3851_v42 = vpop.f32.mrf.mxu2  ;;  %v1985_v46 = vpop.f32.mrf.mxu0 }
 0x210   : > { %v4982_v43 = vpop.f32.mrf.mxu3  ;;  %v5638_v44 = vmax.f32 %v5510_v40, 0.0  ;;  %v4120_v45 = vadd.f32 %v3851_v42, %v2849_v41  ;;  %v2850_v47 = vpop.f32.mrf.mxu1  ;;  %v11792_v40 = vld [vmem:[%s12526_s30 + $0xf8] sm:$0xff] }
 0x211   : > { %v2851_v51 = vadd.f32 %v2850_v47, %v1985_v46  ;;  %v11996_v46 = vld [vmem:[%s12526_s30 + $0x148] sm:$0xff] }
 0x212   : > { %5767 = vst.msk [vmem:[#allocation2 + $0x108] sm:$0xff] %vm5733_vm1, %v5638_v44  ;;  %v5251_v48 = vadd.f32 %v4982_v43, %v4120_v45  ;;  %v11928_v45 = vld [vmem:[%s12526_s30 + $0x140] sm:$0xff] }
 0x214   : > { %v5379_v49 = vmul.f32 0.00390625, %v5251_v48 }
 0x216   : > { %v5511_v18 = vadd.f32 %v12818_v50, %v5379_v49 }
 0x217   : > { %v3853_v52 = vpop.f32.mrf.mxu2  ;;  %v1988_v58 = vpop.f32.mrf.mxu0 }
 0x218   : > { %v4984_v53 = vpop.f32.mrf.mxu3  ;;  %v5639_v56 = vmax.f32 %v5511_v18, 0.0  ;;  %v4121_v57 = vadd.f32 %v3853_v52, %v2851_v51  ;;  %v2853_v59 = vpop.f32.mrf.mxu1 }
 0x219   : > { %v2854_v1 = vadd.f32 %v2853_v59, %v1988_v58 }
 0x21a   : > { %5768 = vst.msk [vmem:[#allocation2 + $0x110] sm:$0xff] %vm5733_vm1, %v5639_v56  ;;  %v5252_v62 = vadd.f32 %v4984_v53, %v4121_v57  ;;  %9698 = vmatmul.msk.bf16.gmra.mxu0 %vm1696_vm0, %v11858_v54 }
 0x21b   : > { %10034 = vmatmul.msk.bf16.gmra.mxu1 %vm1696_vm0, %v11790_v55 }
 0x21c   : > { %v5380_v63 = vmul.f32 0.00390625, %v5252_v62  ;;  %10506 = vmatmul.msk.bf16.gmra.mxu2 %vm1696_vm0, %v11926_v60 }
 0x21d   : > { %10978 = vmatmul.msk.bf16.gmra.mxu3 %vm1696_vm0, %v11994_v61 }
 0x21e   : > { %v5512_v0 = vadd.f32 %v12818_v50, %v5380_v63  ;;  %v11861_v63 = vld [vmem:[%s12526_s30 + $0x108] sm:$0xff] }
 0x21f   : > { %v3856_v2 = vpop.f32.mrf.mxu2  ;;  %v1990_v6 = vpop.f32.mrf.mxu0 }
 0x220   : > { %v4987_v3 = vpop.f32.mrf.mxu3  ;;  %v5640_v4 = vmax.f32 %v5512_v0, 0.0  ;;  %v4122_v5 = vadd.f32 %v3856_v2, %v2854_v1  ;;  %v2855_v7 = vpop.f32.mrf.mxu1  ;;  %v11793_v0 = vld [vmem:[%s12526_s30 + $0x100] sm:$0xff] }
 0x221   : > { %v2856_v11 = vadd.f32 %v2855_v7, %v1990_v6  ;;  %v11997_v6 = vld [vmem:[%s12526_s30 + $0x150] sm:$0xff] }
 0x222   : > { %5769 = vst.msk [vmem:[#allocation2 + $0x118] sm:$0xff] %vm5733_vm1, %v5640_v4  ;;  %v5253_v8 = vadd.f32 %v4987_v3, %v4122_v5  ;;  %v11929_v5 = vld [vmem:[%s12526_s30 + $0x148] sm:$0xff] }
 0x224   : > { %v5381_v9 = vmul.f32 0.00390625, %v5253_v8 }
 0x226   : > { %v5513_v10 = vadd.f32 %v12818_v50, %v5381_v9 }
 0x227   : > { %v3858_v12 = vpop.f32.mrf.mxu2  ;;  %v1993_v19 = vpop.f32.mrf.mxu0 }
 0x228   : > { %v4989_v13 = vpop.f32.mrf.mxu3  ;;  %v5641_v16 = vmax.f32 %v5513_v10, 0.0  ;;  %v4123_v17 = vadd.f32 %v3858_v12, %v2856_v11  ;;  %v2858_v20 = vpop.f32.mrf.mxu1 }
 0x229   : > { %v2859_v26 = vadd.f32 %v2858_v20, %v1993_v19 }
 0x22a   : > { %5770 = vst.msk [vmem:[#allocation2 + $0x120] sm:$0xff] %vm5733_vm1, %v5641_v16  ;;  %v5254_v23 = vadd.f32 %v4989_v13, %v4123_v17  ;;  %9699 = vmatmul.msk.bf16.gmra.mxu0 %vm1696_vm0, %v11859_v14 }
 0x22b   : > { %10035 = vmatmul.msk.bf16.gmra.mxu1 %vm1696_vm0, %v11791_v15 }
 0x22c   : > { %v5382_v24 = vmul.f32 0.00390625, %v5254_v23  ;;  %10507 = vmatmul.msk.bf16.gmra.mxu2 %vm1696_vm0, %v11927_v21 }
 0x22d   : > { %10979 = vmatmul.msk.bf16.gmra.mxu3 %vm1696_vm0, %v11995_v22 }
 0x22e   : > { %v5514_v25 = vadd.f32 %v12818_v50, %v5382_v24  ;;  %v11862_v24 = vld [vmem:[%s12526_s30 + $0x110] sm:$0xff] }
 0x22f   : > { %v3861_v27 = vpop.f32.mrf.mxu2  ;;  %v1995_v31 = vpop.f32.mrf.mxu0 }
 0x230   : > { %v4992_v28 = vpop.f32.mrf.mxu3  ;;  %v5642_v29 = vmax.f32 %v5514_v25, 0.0  ;;  %v4124_v30 = vadd.f32 %v3861_v27, %v2859_v26  ;;  %v2860_v32 = vpop.f32.mrf.mxu1  ;;  %v11794_v25 = vld [vmem:[%s12526_s30 + $0x108] sm:$0xff] }
 0x231   : > { %v2861_v36 = vadd.f32 %v2860_v32, %v1995_v31  ;;  %v11998_v31 = vld [vmem:[%s12526_s30 + $0x158] sm:$0xff] }
 0x232   : > { %5771 = vst.msk [vmem:[#allocation2 + $0x128] sm:$0xff] %vm5733_vm1, %v5642_v29  ;;  %v5255_v33 = vadd.f32 %v4992_v28, %v4124_v30  ;;  %v11930_v30 = vld [vmem:[%s12526_s30 + $0x150] sm:$0xff] }
 0x234   : > { %v5383_v34 = vmul.f32 0.00390625, %v5255_v33 }
 0x236   : > { %v5515_v35 = vadd.f32 %v12818_v50, %v5383_v34 }
 0x237   : > { %v3863_v37 = vpop.f32.mrf.mxu2  ;;  %v1998_v43 = vpop.f32.mrf.mxu0 }
 0x238   : > { %v4994_v38 = vpop.f32.mrf.mxu3  ;;  %v5643_v41 = vmax.f32 %v5515_v35, 0.0  ;;  %v4125_v42 = vadd.f32 %v3863_v37, %v2861_v36  ;;  %v2863_v44 = vpop.f32.mrf.mxu1 }
 0x239   : > { %v2864_v18 = vadd.f32 %v2863_v44, %v1998_v43  ;;  %v12040_v43 = vld [vmem:[%s14175_s3 + $0x20] sm:$0xff]  ;;  %v12038_v44 = vld [vmem:[%s14175_s3 + $0x10] sm:$0xff] }
 0x23a   : > { %5772 = vst.msk [vmem:[#allocation2 + $0x130] sm:$0xff] %vm5733_vm1, %v5643_v41  ;;  %v5256_v47 = vadd.f32 %v4994_v38, %v4125_v42  ;;  %9700 = vmatmul.msk.bf16.gmra.mxu0 %vm1696_vm0, %v11860_v39  ;;  %6191 = vmatpush.bf16.msrb.mxu2 %v12040_v43  ;;  %v11933_v43 = vld [vmem:[%s12526_s30 + $0x170] sm:$0xff] }
 0x23b   : > { %10036 = vmatmul.msk.bf16.gmra.mxu1 %vm1696_vm0, %v11792_v40  ;;  %5972 = vmatpush.bf16.msrb.mxu0 %v12038_v44  ;;  %v12001_v44 = vld [vmem:[%s12526_s30 + $0x178] sm:$0xff] }
 0x23c   : > { %v5384_v48 = vmul.f32 0.00390625, %v5256_v47  ;;  %10508 = vmatmul.msk.bf16.gmra.mxu2 %vm1696_vm0, %v11928_v45  ;;  %v12042_v45 = vld [vmem:[%s14175_s3 + $0x30] sm:$0xff] }
 0x23d   : > { %10980 = vmatmul.msk.bf16.gmra.mxu3 %vm1696_vm0, %v11996_v46 }
 0x23e   : > { %v5516_v49 = vadd.f32 %v12818_v50, %v5384_v48  ;;  %6335 = vmatpush.bf16.msrb.mxu3 %v12042_v45 }
 0x23f   : > { %v3866_v51 = vpop.f32.mrf.mxu2  ;;  %v2000_v55 = vpop.f32.mrf.mxu0 }
 0x240   : > { %v4997_v52 = vpop.f32.mrf.mxu3  ;;  %v5644_v53 = vmax.f32 %v5516_v49, 0.0  ;;  %v4126_v54 = vadd.f32 %v3866_v51, %v2864_v18  ;;  %v2865_v56 = vpop.f32.mrf.mxu1  ;;  %v11863_v51 = vld [vmem:[%s12526_s30 + $0x118] sm:$0xff] }
 0x241   : > { %v2866_v60 = vadd.f32 %v2865_v56, %v2000_v55 }
 0x242   : > { %5773 = vst.msk [vmem:[#allocation2 + $0x138] sm:$0xff] %vm5733_vm1, %v5644_v53  ;;  %v5257_v57 = vadd.f32 %v4997_v52, %v4126_v54  ;;  %v11795_v52 = vld [vmem:[%s12526_s30 + $0x110] sm:$0xff] }
 0x244   : > { %v5385_v58 = vmul.f32 0.00390625, %v5257_v57  ;;  %v11931_v57 = vld [vmem:[%s12526_s30 + $0x158] sm:$0xff] }
 0x246   : > { %v5517_v59 = vadd.f32 %v12818_v50, %v5385_v58  ;;  %v11999_v58 = vld [vmem:[%s12526_s30 + $0x160] sm:$0xff] }
 0x247   : > { %v3868_v61 = vpop.f32.mrf.mxu2  ;;  %v2003_v3 = vpop.f32.mrf.mxu0 }
 0x248   : > { %v4999_v62 = vpop.f32.mrf.mxu3  ;;  %v5645_v1 = vmax.f32 %v5517_v59, 0.0  ;;  %v4127_v2 = vadd.f32 %v3868_v61, %v2866_v60  ;;  %v2868_v4 = vpop.f32.mrf.mxu1  ;;  %v12036_v60 = vld [vmem:[%s14175_s3] sm:$0xff] }
 0x249   : > { %v2869_v10 = vadd.f32 %v2868_v4, %v2003_v3  ;;  %6065 = vmatpush.bf16.msrb.mxu1 %v12036_v60 }
 0x24a   : > { %5774 = vst.msk [vmem:[#allocation2 + $0x140] sm:$0xff] %vm5733_vm1, %v5645_v1  ;;  %v5258_v7 = vadd.f32 %v4999_v62, %v4127_v2  ;;  %9701 = vmatmul.msk.bf16.gmra.mxu0 %vm1696_vm0, %v11861_v63 }
 0x24b   : > { %10037 = vmatmul.msk.bf16.gmra.mxu1 %vm1696_vm0, %v11793_v0 }
 0x24c   : > { %v5386_v8 = vmul.f32 0.00390625, %v5258_v7  ;;  %10509 = vmatmul.msk.bf16.gmra.mxu2 %vm1696_vm0, %v11929_v5 }
 0x24d   : > { %10981 = vmatmul.msk.bf16.gmra.mxu3 %vm1696_vm0, %v11997_v6 }
 0x24e   : > { %v5518_v9 = vadd.f32 %v12818_v50, %v5386_v8 }
 0x24f   : > { %v3871_v11 = vpop.f32.mrf.mxu2  ;;  %v2005_v15 = vpop.f32.mrf.mxu0 }
 0x250   : > { %v5002_v12 = vpop.f32.mrf.mxu3  ;;  %v5646_v13 = vmax.f32 %v5518_v9, 0.0  ;;  %v4128_v14 = vadd.f32 %v3871_v11, %v2869_v10  ;;  %v2870_v16 = vpop.f32.mrf.mxu1 }
 0x251   : > { %v2871_v21 = vadd.f32 %v2870_v16, %v2005_v15 }
 0x252   : > { %5775 = vst.msk [vmem:[#allocation2 + $0x148] sm:$0xff] %vm5733_vm1, %v5646_v13  ;;  %v5259_v17 = vadd.f32 %v5002_v12, %v4128_v14  ;;  %v11864_v12 = vld [vmem:[%s12526_s30 + $0x128] sm:$0xff]  ;;  %v11796_v13 = vld [vmem:[%s12526_s30 + $0x120] sm:$0xff] }
 0x254   : > { %v5387_v19 = vmul.f32 0.00390625, %v5259_v17 }
 0x256   : > { %v5519_v20 = vadd.f32 %v12818_v50, %v5387_v19  ;;  %v11932_v19 = vld [vmem:[%s12526_s30 + $0x168] sm:$0xff] }
 0x257   : > { %v3873_v22 = vpop.f32.mrf.mxu2  ;;  %v2008_v28 = vpop.f32.mrf.mxu0 }
 0x258   : > { %v5004_v23 = vpop.f32.mrf.mxu3  ;;  %v5647_v26 = vmax.f32 %v5519_v20, 0.0  ;;  %v4129_v27 = vadd.f32 %v3873_v22, %v2871_v21  ;;  %v2873_v29 = vpop.f32.mrf.mxu1  ;;  %v12000_v20 = vld [vmem:[%s12526_s30 + $0x170] sm:$0xff] }
 0x259   : > { %v2874_v35 = vadd.f32 %v2873_v29, %v2008_v28 }
 0x25a   : > { %5776 = vst.msk [vmem:[#allocation2 + $0x150] sm:$0xff] %vm5733_vm1, %v5647_v26  ;;  %v5260_v32 = vadd.f32 %v5004_v23, %v4129_v27  ;;  %9702 = vmatmul.msk.bf16.gmra.mxu0 %vm1696_vm0, %v11862_v24 }
 0x25b   : > { %10038 = vmatmul.msk.bf16.gmra.mxu1 %vm1696_vm0, %v11794_v25 }
 0x25c   : > { %v5388_v33 = vmul.f32 0.00390625, %v5260_v32  ;;  %10510 = vmatmul.msk.bf16.gmra.mxu2 %vm1696_vm0, %v11930_v30 }
 0x25d   : > { %10982 = vmatmul.msk.bf16.gmra.mxu3 %vm1696_vm0, %v11998_v31 }
 0x25e   : > { %v5520_v34 = vadd.f32 %v12818_v50, %v5388_v33 }
 0x25f   : > { %v3876_v36 = vpop.f32.mrf.mxu2  ;;  %v2010_v40 = vpop.f32.mrf.mxu0 }
 0x260   : > { %v5007_v37 = vpop.f32.mrf.mxu3  ;;  %v5648_v38 = vmax.f32 %v5520_v34, 0.0  ;;  %v4130_v39 = vadd.f32 %v3876_v36, %v2874_v35  ;;  %v2875_v41 = vpop.f32.mrf.mxu1 }
 0x261   : > { %v2876_v48 = vadd.f32 %v2875_v41, %v2010_v40 }
 0x262   : > { %5777 = vst.msk [vmem:[#allocation2 + $0x158] sm:$0xff] %vm5733_vm1, %v5648_v38  ;;  %v5261_v42 = vadd.f32 %v5007_v37, %v4130_v39  ;;  %v11865_v37 = vld [vmem:[%s12526_s30 + $0x130] sm:$0xff]  ;;  %v11797_v38 = vld [vmem:[%s12526_s30 + $0x128] sm:$0xff] }
 0x264   : > { %v5389_v46 = vmul.f32 0.00390625, %v5261_v42 }
 0x266   : > { %v5521_v47 = vadd.f32 %v12818_v50, %v5389_v46 }
 0x267   : > { %v3878_v49 = vpop.f32.mrf.mxu2  ;;  %v2013_v55 = vpop.f32.mrf.mxu0 }
 0x268   : > { %v5009_v18 = vpop.f32.mrf.mxu3  ;;  %v5649_v53 = vmax.f32 %v5521_v47, 0.0  ;;  %v4131_v54 = vadd.f32 %v3878_v49, %v2876_v48  ;;  %v2878_v56 = vpop.f32.mrf.mxu1 }
 0x269   : > { %v2879_v63 = vadd.f32 %v2878_v56, %v2013_v55 }
 0x26a   : > { %5778 = vst.msk [vmem:[#allocation2 + $0x160] sm:$0xff] %vm5733_vm1, %v5649_v53  ;;  %v5262_v59 = vadd.f32 %v5009_v18, %v4131_v54  ;;  %9703 = vmatmul.msk.bf16.gmra.mxu0 %vm1696_vm0, %v11863_v51 }
 0x26b   : > { %10039 = vmatmul.msk.bf16.gmra.mxu1 %vm1696_vm0, %v11795_v52 }
 0x26c   : > { %v5390_v61 = vmul.f32 0.00390625, %v5262_v59  ;;  %10511 = vmatmul.msk.bf16.gmra.mxu2 %vm1696_vm0, %v11931_v57 }
 0x26d   : > { %10983 = vmatmul.msk.bf16.gmra.mxu3 %vm1696_vm0, %v11999_v58 }
 0x26e   : > { %v5522_v62 = vadd.f32 %v12818_v50, %v5390_v61  ;;  %v11866_v61 = vld [vmem:[%s12526_s30 + $0x138] sm:$0xff] }
 0x26f   : > { %v3881_v0 = vpop.f32.mrf.mxu2  ;;  %v2015_v4 = vpop.f32.mrf.mxu0 }
 0x270   : > { %v5012_v1 = vpop.f32.mrf.mxu3  ;;  %v5650_v2 = vmax.f32 %v5522_v62, 0.0  ;;  %v4132_v3 = vadd.f32 %v3881_v0, %v2879_v63  ;;  %v2880_v5 = vpop.f32.mrf.mxu1  ;;  %v11798_v62 = vld [vmem:[%s12526_s30 + $0x130] sm:$0xff] }
 0x271   : > { %v2881_v9 = vadd.f32 %v2880_v5, %v2015_v4  ;;  %v12002_v4 = vld [vmem:[%s12526_s30 + $0x180] sm:$0xff] }
 0x272   : > { %5779 = vst.msk [vmem:[#allocation2 + $0x168] sm:$0xff] %vm5733_vm1, %v5650_v2  ;;  %v5263_v6 = vadd.f32 %v5012_v1, %v4132_v3  ;;  %v11934_v3 = vld [vmem:[%s12526_s30 + $0x178] sm:$0xff] }
 0x274   : > { %v5391_v7 = vmul.f32 0.00390625, %v5263_v6 }
 0x276   : > { %v5523_v8 = vadd.f32 %v12818_v50, %v5391_v7 }
 0x277   : > { %v3883_v10 = vpop.f32.mrf.mxu2  ;;  %v2018_v16 = vpop.f32.mrf.mxu0 }
 0x278   : > { %v5014_v11 = vpop.f32.mrf.mxu3  ;;  %v5651_v14 = vmax.f32 %v5523_v8, 0.0  ;;  %v4133_v15 = vadd.f32 %v3883_v10, %v2881_v9  ;;  %v2883_v17 = vpop.f32.mrf.mxu1 }
 0x279   : > { %v2884_v24 = vadd.f32 %v2883_v17, %v2018_v16 }
 0x27a   : > { %5780 = vst.msk [vmem:[#allocation2 + $0x170] sm:$0xff] %vm5733_vm1, %v5651_v14  ;;  %v5264_v21 = vadd.f32 %v5014_v11, %v4133_v15  ;;  %9704 = vmatmul.msk.bf16.gmra.mxu0 %vm1696_vm0, %v11864_v12 }
 0x27b   : > { %10040 = vmatmul.msk.bf16.gmra.mxu1 %vm1696_vm0, %v11796_v13 }
 0x27c   : > { %v5392_v22 = vmul.f32 0.00390625, %v5264_v21  ;;  %10512 = vmatmul.msk.bf16.gmra.mxu2 %vm1696_vm0, %v11932_v19 }
 0x27d   : > { %10984 = vmatmul.msk.bf16.gmra.mxu3 %vm1696_vm0, %v12000_v20 }
 0x27e   : > { %v5524_v23 = vadd.f32 %v12818_v50, %v5392_v22  ;;  %v11867_v22 = vld [vmem:[%s12526_s30 + $0x140] sm:$0xff] }
 0x27f   : > { %v3886_v25 = vpop.f32.mrf.mxu2  ;;  %v2020_v29 = vpop.f32.mrf.mxu0 }
 0x280   : > { %v5017_v26 = vpop.f32.mrf.mxu3  ;;  %v5652_v27 = vmax.f32 %v5524_v23, 0.0  ;;  %v4134_v28 = vadd.f32 %v3886_v25, %v2884_v24  ;;  %v2885_v30 = vpop.f32.mrf.mxu1  ;;  %v11799_v23 = vld [vmem:[%s12526_s30 + $0x138] sm:$0xff] }
 0x281   : > { %v2886_v34 = vadd.f32 %v2885_v30, %v2020_v29  ;;  %v12003_v29 = vld [vmem:[%s12526_s30 + $0x188] sm:$0xff] }
 0x282   : > { %5781 = vst.msk [vmem:[#allocation2 + $0x178] sm:$0xff] %vm5733_vm1, %v5652_v27  ;;  %v5265_v31 = vadd.f32 %v5017_v26, %v4134_v28  ;;  %v11935_v28 = vld [vmem:[%s12526_s30 + $0x180] sm:$0xff] }
 0x284   : > { %v5393_v32 = vmul.f32 0.00390625, %v5265_v31 }
 0x286   : > { %v5525_v33 = vadd.f32 %v12818_v50, %v5393_v32 }
 0x287   : > { %v3888_v35 = vpop.f32.mrf.mxu2  ;;  %v2023_v41 = vpop.f32.mrf.mxu0 }
 0x288   : > { %v5019_v36 = vpop.f32.mrf.mxu3  ;;  %v5653_v39 = vmax.f32 %v5525_v33, 0.0  ;;  %v4135_v40 = vadd.f32 %v3888_v35, %v2886_v34  ;;  %v2888_v42 = vpop.f32.mrf.mxu1 }
 0x289   : > { %v2889_v48 = vadd.f32 %v2888_v42, %v2023_v41 }
 0x28a   : > { %5782 = vst.msk [vmem:[#allocation2 + $0x180] sm:$0xff] %vm5733_vm1, %v5653_v39  ;;  %v5266_v45 = vadd.f32 %v5019_v36, %v4135_v40  ;;  %9705 = vmatmul.msk.bf16.gmra.mxu0 %vm1696_vm0, %v11865_v37 }
 0x28b   : > { %10041 = vmatmul.msk.bf16.gmra.mxu1 %vm1696_vm0, %v11797_v38 }
 0x28c   : > { %v5394_v46 = vmul.f32 0.00390625, %v5266_v45  ;;  %10513 = vmatmul.msk.bf16.gmra.mxu2 %vm1696_vm0, %v11933_v43 }
 0x28d   : > { %10985 = vmatmul.msk.bf16.gmra.mxu3 %vm1696_vm0, %v12001_v44 }
 0x28e   : > { %v5526_v47 = vadd.f32 %v12818_v50, %v5394_v46  ;;  %v11868_v46 = vld [vmem:[%s12526_s30 + $0x148] sm:$0xff] }
 0x28f   : > { %v3891_v49 = vpop.f32.mrf.mxu2  ;;  %v2025_v53 = vpop.f32.mrf.mxu0 }
 0x290   : > { %v5022_v18 = vpop.f32.mrf.mxu3  ;;  %v5654_v51 = vmax.f32 %v5526_v47, 0.0  ;;  %v4136_v52 = vadd.f32 %v3891_v49, %v2889_v48  ;;  %v2890_v54 = vpop.f32.mrf.mxu1  ;;  %v11800_v47 = vld [vmem:[%s12526_s30 + $0x140] sm:$0xff] }
 0x291   : > { %v2891_v58 = vadd.f32 %v2890_v54, %v2025_v53  ;;  %v12004_v53 = vld [vmem:[%s12526_s30 + $0x190] sm:$0xff] }
 0x292   : > { %5783 = vst.msk [vmem:[#allocation2 + $0x188] sm:$0xff] %vm5733_vm1, %v5654_v51  ;;  %v5267_v55 = vadd.f32 %v5022_v18, %v4136_v52  ;;  %v11936_v52 = vld [vmem:[%s12526_s30 + $0x188] sm:$0xff] }
 0x294   : > { %v5395_v56 = vmul.f32 0.00390625, %v5267_v55 }
 0x296   : > { %v5527_v57 = vadd.f32 %v12818_v50, %v5395_v56 }
 0x297   : > { %v3893_v59 = vpop.f32.mrf.mxu2  ;;  %v2028_v1 = vpop.f32.mrf.mxu0 }
 0x298   : > { %v5024_v60 = vpop.f32.mrf.mxu3  ;;  %v5655_v63 = vmax.f32 %v5527_v57, 0.0  ;;  %v4137_v0 = vadd.f32 %v3893_v59, %v2891_v58  ;;  %v2893_v2 = vpop.f32.mrf.mxu1 }
 0x299   : > { %v2894_v8 = vadd.f32 %v2893_v2, %v2028_v1 }
 0x29a   : > { %5784 = vst.msk [vmem:[#allocation2 + $0x190] sm:$0xff] %vm5733_vm1, %v5655_v63  ;;  %v5268_v5 = vadd.f32 %v5024_v60, %v4137_v0  ;;  %9706 = vmatmul.msk.bf16.gmra.mxu0 %vm1696_vm0, %v11866_v61 }
 0x29b   : > { %10042 = vmatmul.msk.bf16.gmra.mxu1 %vm1696_vm0, %v11798_v62 }
 0x29c   : > { %v5396_v6 = vmul.f32 0.00390625, %v5268_v5  ;;  %10514 = vmatmul.msk.bf16.gmra.mxu2 %vm1696_vm0, %v11934_v3 }
 0x29d   : > { %10986 = vmatmul.msk.bf16.gmra.mxu3 %vm1696_vm0, %v12002_v4 }
 0x29e   : > { %v5528_v7 = vadd.f32 %v12818_v50, %v5396_v6  ;;  %v11869_v6 = vld [vmem:[%s12526_s30 + $0x150] sm:$0xff] }
 0x29f   : > { %v3896_v9 = vpop.f32.mrf.mxu2  ;;  %v2030_v13 = vpop.f32.mrf.mxu0 }
 0x2a0   : > { %v5027_v10 = vpop.f32.mrf.mxu3  ;;  %v5656_v11 = vmax.f32 %v5528_v7, 0.0  ;;  %v4138_v12 = vadd.f32 %v3896_v9, %v2894_v8  ;;  %v2895_v14 = vpop.f32.mrf.mxu1  ;;  %v11801_v7 = vld [vmem:[%s12526_s30 + $0x148] sm:$0xff] }
 0x2a1   : > { %v2896_v19 = vadd.f32 %v2895_v14, %v2030_v13  ;;  %v12005_v13 = vld [vmem:[%s12526_s30 + $0x198] sm:$0xff] }
 0x2a2   : > { %5785 = vst.msk [vmem:[#allocation2 + $0x198] sm:$0xff] %vm5733_vm1, %v5656_v11  ;;  %v5269_v15 = vadd.f32 %v5027_v10, %v4138_v12  ;;  %v11937_v12 = vld [vmem:[%s12526_s30 + $0x190] sm:$0xff] }
 0x2a4   : > { %v5397_v16 = vmul.f32 0.00390625, %v5269_v15 }
 0x2a6   : > { %v5529_v17 = vadd.f32 %v12818_v50, %v5397_v16 }
 0x2a7   : > { %v3898_v20 = vpop.f32.mrf.mxu2  ;;  %v2033_v26 = vpop.f32.mrf.mxu0 }
 0x2a8   : > { %v5029_v21 = vpop.f32.mrf.mxu3  ;;  %v5657_v24 = vmax.f32 %v5529_v17, 0.0  ;;  %v4139_v25 = vadd.f32 %v3898_v20, %v2896_v19  ;;  %v2898_v27 = vpop.f32.mrf.mxu1 }
 0x2a9   : > { %v2899_v33 = vadd.f32 %v2898_v27, %v2033_v26 }
 0x2aa   : > { %5786 = vst.msk [vmem:[#allocation2 + $0x1a0] sm:$0xff] %vm5733_vm1, %v5657_v24  ;;  %v5270_v30 = vadd.f32 %v5029_v21, %v4139_v25  ;;  %9707 = vmatmul.msk.bf16.gmra.mxu0 %vm1696_vm0, %v11867_v22 }
 0x2ab   : > { %10043 = vmatmul.msk.bf16.gmra.mxu1 %vm1696_vm0, %v11799_v23 }
 0x2ac   : > { %v5398_v31 = vmul.f32 0.00390625, %v5270_v30  ;;  %10515 = vmatmul.msk.bf16.gmra.mxu2 %vm1696_vm0, %v11935_v28 }
 0x2ad   : > { %10987 = vmatmul.msk.bf16.gmra.mxu3 %vm1696_vm0, %v12003_v29 }
 0x2ae   : > { %v5530_v32 = vadd.f32 %v12818_v50, %v5398_v31  ;;  %v11870_v31 = vld [vmem:[%s12526_s30 + $0x158] sm:$0xff] }
 0x2af   : > { %v3901_v34 = vpop.f32.mrf.mxu2  ;;  %v2035_v38 = vpop.f32.mrf.mxu0 }
 0x2b0   : > { %v5032_v35 = vpop.f32.mrf.mxu3  ;;  %v5658_v36 = vmax.f32 %v5530_v32, 0.0  ;;  %v4140_v37 = vadd.f32 %v3901_v34, %v2899_v33  ;;  %v2900_v39 = vpop.f32.mrf.mxu1  ;;  %v11802_v32 = vld [vmem:[%s12526_s30 + $0x150] sm:$0xff] }
 0x2b1   : > { %v2901_v43 = vadd.f32 %v2900_v39, %v2035_v38  ;;  %v12006_v38 = vld [vmem:[%s12526_s30 + $0x1a0] sm:$0xff] }
 0x2b2   : > { %5787 = vst.msk [vmem:[#allocation2 + $0x1a8] sm:$0xff] %vm5733_vm1, %v5658_v36  ;;  %v5271_v40 = vadd.f32 %v5032_v35, %v4140_v37  ;;  %v11938_v37 = vld [vmem:[%s12526_s30 + $0x198] sm:$0xff] }
 0x2b4   : > { %v5399_v41 = vmul.f32 0.00390625, %v5271_v40 }
 0x2b6   : > { %v5531_v42 = vadd.f32 %v12818_v50, %v5399_v41 }
 0x2b7   : > { %v3903_v44 = vpop.f32.mrf.mxu2  ;;  %v2038_v18 = vpop.f32.mrf.mxu0 }
 0x2b8   : > { %v5034_v45 = vpop.f32.mrf.mxu3  ;;  %v5659_v48 = vmax.f32 %v5531_v42, 0.0  ;;  %v4141_v49 = vadd.f32 %v3903_v44, %v2901_v43  ;;  %v2903_v51 = vpop.f32.mrf.mxu1 }
 0x2b9   : > { %v2904_v57 = vadd.f32 %v2903_v51, %v2038_v18 }
 0x2ba   : > { %5788 = vst.msk [vmem:[#allocation2 + $0x1b0] sm:$0xff] %vm5733_vm1, %v5659_v48  ;;  %v5272_v54 = vadd.f32 %v5034_v45, %v4141_v49  ;;  %9708 = vmatmul.msk.bf16.gmra.mxu0 %vm1696_vm0, %v11868_v46 }
 0x2bb   : > { %10044 = vmatmul.msk.bf16.gmra.mxu1 %vm1696_vm0, %v11800_v47 }
 0x2bc   : > { %v5400_v55 = vmul.f32 0.00390625, %v5272_v54  ;;  %10516 = vmatmul.msk.bf16.gmra.mxu2 %vm1696_vm0, %v11936_v52 }
 0x2bd   : > { %10988 = vmatmul.msk.bf16.gmra.mxu3 %vm1696_vm0, %v12004_v53 }
 0x2be   : > { %v5532_v56 = vadd.f32 %v12818_v50, %v5400_v55  ;;  %v11871_v55 = vld [vmem:[%s12526_s30 + $0x160] sm:$0xff] }
 0x2bf   : > { %v3906_v58 = vpop.f32.mrf.mxu2  ;;  %v2040_v62 = vpop.f32.mrf.mxu0 }
 0x2c0   : > { %v5037_v59 = vpop.f32.mrf.mxu3  ;;  %v5660_v60 = vmax.f32 %v5532_v56, 0.0  ;;  %v4142_v61 = vadd.f32 %v3906_v58, %v2904_v57  ;;  %v2905_v63 = vpop.f32.mrf.mxu1  ;;  %v11803_v56 = vld [vmem:[%s12526_s30 + $0x158] sm:$0xff] }
 0x2c1   : > { %v2906_v3 = vadd.f32 %v2905_v63, %v2040_v62  ;;  %v12007_v62 = vld [vmem:[%s12526_s30 + $0x1a8] sm:$0xff] }
 0x2c2   : > { %5789 = vst.msk [vmem:[#allocation2 + $0x1b8] sm:$0xff] %vm5733_vm1, %v5660_v60  ;;  %v5273_v0 = vadd.f32 %v5037_v59, %v4142_v61  ;;  %v11939_v61 = vld [vmem:[%s12526_s30 + $0x1a0] sm:$0xff] }
 0x2c4   : > { %v5401_v1 = vmul.f32 0.00390625, %v5273_v0 }
 0x2c6   : > { %v5533_v2 = vadd.f32 %v12818_v50, %v5401_v1 }
 0x2c7   : > { %v3908_v4 = vpop.f32.mrf.mxu2  ;;  %v2043_v10 = vpop.f32.mrf.mxu0 }
 0x2c8   : > { %v5039_v5 = vpop.f32.mrf.mxu3  ;;  %v5661_v8 = vmax.f32 %v5533_v2, 0.0  ;;  %v4143_v9 = vadd.f32 %v3908_v4, %v2906_v3  ;;  %v2908_v11 = vpop.f32.mrf.mxu1 }
 0x2c9   : > { %v2909_v17 = vadd.f32 %v2908_v11, %v2043_v10 }
 0x2ca   : > { %5790 = vst.msk [vmem:[#allocation2 + $0x1c0] sm:$0xff] %vm5733_vm1, %v5661_v8  ;;  %v5274_v14 = vadd.f32 %v5039_v5, %v4143_v9  ;;  %9709 = vmatmul.msk.bf16.gmra.mxu0 %vm1696_vm0, %v11869_v6 }
 0x2cb   : > { %10045 = vmatmul.msk.bf16.gmra.mxu1 %vm1696_vm0, %v11801_v7 }
 0x2cc   : > { %v5402_v15 = vmul.f32 0.00390625, %v5274_v14  ;;  %10517 = vmatmul.msk.bf16.gmra.mxu2 %vm1696_vm0, %v11937_v12 }
 0x2cd   : > { %10989 = vmatmul.msk.bf16.gmra.mxu3 %vm1696_vm0, %v12005_v13 }
 0x2ce   : > { %v5534_v16 = vadd.f32 %v12818_v50, %v5402_v15  ;;  %v11872_v15 = vld [vmem:[%s12526_s30 + $0x170] sm:$0xff] }
 0x2cf   : > { %v3911_v19 = vpop.f32.mrf.mxu2  ;;  %v2045_v23 = vpop.f32.mrf.mxu0 }
 0x2d0   : > { %v5042_v20 = vpop.f32.mrf.mxu3  ;;  %v5662_v21 = vmax.f32 %v5534_v16, 0.0  ;;  %v4144_v22 = vadd.f32 %v3911_v19, %v2909_v17  ;;  %v2910_v24 = vpop.f32.mrf.mxu1  ;;  %v11804_v16 = vld [vmem:[%s12526_s30 + $0x168] sm:$0xff] }
 0x2d1   : > { %v2911_v28 = vadd.f32 %v2910_v24, %v2045_v23  ;;  %v12008_v23 = vld [vmem:[%s12526_s30 + $0x1b8] sm:$0xff] }
 0x2d2   : > { %5791 = vst.msk [vmem:[#allocation2 + $0x1c8] sm:$0xff] %vm5733_vm1, %v5662_v21  ;;  %v5275_v25 = vadd.f32 %v5042_v20, %v4144_v22  ;;  %v11940_v22 = vld [vmem:[%s12526_s30 + $0x1b0] sm:$0xff] }
 0x2d4   : > { %v5403_v26 = vmul.f32 0.00390625, %v5275_v25 }
 0x2d6   : > { %v5535_v27 = vadd.f32 %v12818_v50, %v5403_v26 }
 0x2d7   : > { %v3913_v29 = vpop.f32.mrf.mxu2  ;;  %v2048_v35 = vpop.f32.mrf.mxu0 }
 0x2d8   : > { %v5044_v30 = vpop.f32.mrf.mxu3  ;;  %v5663_v33 = vmax.f32 %v5535_v27, 0.0  ;;  %v4145_v34 = vadd.f32 %v3913_v29, %v2911_v28  ;;  %v2913_v36 = vpop.f32.mrf.mxu1 }
 0x2d9   : > { %v2914_v42 = vadd.f32 %v2913_v36, %v2048_v35 }
 0x2da   : > { %5792 = vst.msk [vmem:[#allocation2 + $0x1d0] sm:$0xff] %vm5733_vm1, %v5663_v33  ;;  %v5276_v39 = vadd.f32 %v5044_v30, %v4145_v34  ;;  %9710 = vmatmul.msk.bf16.gmra.mxu0 %vm1696_vm0, %v11870_v31 }
 0x2db   : > { %10046 = vmatmul.msk.bf16.gmra.mxu1 %vm1696_vm0, %v11802_v32 }
 0x2dc   : > { %v5404_v40 = vmul.f32 0.00390625, %v5276_v39  ;;  %10518 = vmatmul.msk.bf16.gmra.mxu2 %vm1696_vm0, %v11938_v37 }
 0x2dd   : > { %10990 = vmatmul.msk.bf16.gmra.mxu3 %vm1696_vm0, %v12006_v38 }
 0x2de   : > { %v5536_v41 = vadd.f32 %v12818_v50, %v5404_v40  ;;  %v11873_v40 = vld [vmem:[%s12526_s30 + $0x178] sm:$0xff] }
 0x2df   : > { %v3916_v43 = vpop.f32.mrf.mxu2  ;;  %v2050_v47 = vpop.f32.mrf.mxu0 }
 0x2e0   : > { %v5047_v44 = vpop.f32.mrf.mxu3  ;;  %v5664_v45 = vmax.f32 %v5536_v41, 0.0  ;;  %v4146_v46 = vadd.f32 %v3916_v43, %v2914_v42  ;;  %v2915_v48 = vpop.f32.mrf.mxu1  ;;  %v11805_v41 = vld [vmem:[%s12526_s30 + $0x170] sm:$0xff] }
 0x2e1   : > { %v2916_v52 = vadd.f32 %v2915_v48, %v2050_v47  ;;  %v12009_v47 = vld [vmem:[%s12526_s30 + $0x1c0] sm:$0xff] }
 0x2e2   : > { %5793 = vst.msk [vmem:[#allocation2 + $0x1d8] sm:$0xff] %vm5733_vm1, %v5664_v45  ;;  %v5277_v49 = vadd.f32 %v5047_v44, %v4146_v46  ;;  %v11941_v46 = vld [vmem:[%s12526_s30 + $0x1b8] sm:$0xff] }
 0x2e4   : > { %v5405_v18 = vmul.f32 0.00390625, %v5277_v49 }
 0x2e6   : > { %v5537_v51 = vadd.f32 %v12818_v50, %v5405_v18 }
 0x2e7   : > { %v3918_v53 = vpop.f32.mrf.mxu2  ;;  %v2053_v59 = vpop.f32.mrf.mxu0 }
 0x2e8   : > { %v5049_v54 = vpop.f32.mrf.mxu3  ;;  %v5665_v57 = vmax.f32 %v5537_v51, 0.0  ;;  %v4147_v58 = vadd.f32 %v3918_v53, %v2916_v52  ;;  %v2918_v60 = vpop.f32.mrf.mxu1 }
 0x2e9   : > { %v2919_v2 = vadd.f32 %v2918_v60, %v2053_v59 }
 0x2ea   : > { %5794 = vst.msk [vmem:[#allocation2 + $0x1e0] sm:$0xff] %vm5733_vm1, %v5665_v57  ;;  %v5278_v63 = vadd.f32 %v5049_v54, %v4147_v58  ;;  %9711 = vmatmul.msk.bf16.gmra.mxu0 %vm1696_vm0, %v11871_v55 }
 0x2eb   : > { %10047 = vmatmul.msk.bf16.gmra.mxu1 %vm1696_vm0, %v11803_v56 }
 0x2ec   : > { %v5406_v0 = vmul.f32 0.00390625, %v5278_v63  ;;  %10519 = vmatmul.msk.bf16.gmra.mxu2 %vm1696_vm0, %v11939_v61 }
 0x2ed   : > { %10991 = vmatmul.msk.bf16.gmra.mxu3 %vm1696_vm0, %v12007_v62 }
 0x2ee   : > { %v5538_v1 = vadd.f32 %v12818_v50, %v5406_v0  ;;  %v11874_v0 = vld [vmem:[%s12526_s30 + $0x180] sm:$0xff] }
 0x2ef   : > { %v3921_v3 = vpop.f32.mrf.mxu2  ;;  %v2055_v7 = vpop.f32.mrf.mxu0 }
 0x2f0   : > { %v5052_v4 = vpop.f32.mrf.mxu3  ;;  %v5666_v5 = vmax.f32 %v5538_v1, 0.0  ;;  %v4148_v6 = vadd.f32 %v3921_v3, %v2919_v2  ;;  %v2920_v8 = vpop.f32.mrf.mxu1  ;;  %v11806_v1 = vld [vmem:[%s12526_s30 + $0x178] sm:$0xff] }
 0x2f1   : > { %v2921_v12 = vadd.f32 %v2920_v8, %v2055_v7  ;;  %v12010_v7 = vld [vmem:[%s12526_s30 + $0x1c8] sm:$0xff] }
 0x2f2   : > { %5795 = vst.msk [vmem:[#allocation2 + $0x1e8] sm:$0xff] %vm5733_vm1, %v5666_v5  ;;  %v5279_v9 = vadd.f32 %v5052_v4, %v4148_v6  ;;  %v11942_v6 = vld [vmem:[%s12526_s30 + $0x1c0] sm:$0xff] }
 0x2f4   : > { %v5407_v10 = vmul.f32 0.00390625, %v5279_v9 }
 0x2f6   : > { %v5539_v11 = vadd.f32 %v12818_v50, %v5407_v10 }
 0x2f7   : > { %v3923_v13 = vpop.f32.mrf.mxu2  ;;  %v2058_v20 = vpop.f32.mrf.mxu0 }
 0x2f8   : > { %v5054_v14 = vpop.f32.mrf.mxu3  ;;  %v5667_v17 = vmax.f32 %v5539_v11, 0.0  ;;  %v4149_v19 = vadd.f32 %v3923_v13, %v2921_v12  ;;  %v2923_v21 = vpop.f32.mrf.mxu1 }
 0x2f9   : > { %v2924_v27 = vadd.f32 %v2923_v21, %v2058_v20  ;;  %v13039_v21 = vld [vmem:[%s14174_s2] ss:$0 sm:$0xff] }
 0x2fa   : > { %5796 = vst.msk [vmem:[#allocation2 + $0x1f0] sm:$0xff] %vm5733_vm1, %v5667_v17  ;;  %v5280_v24 = vadd.f32 %v5054_v14, %v4149_v19  ;;  %9712 = vmatmul.msk.bf16.gmra.mxu0 %vm1696_vm0, %v11872_v15 }
 0x2fb   : > { %10048 = vmatmul.msk.bf16.gmra.mxu1 %vm1696_vm0, %v11804_v16 }
 0x2fc   : > { %v5408_v25 = vmul.f32 0.00390625, %v5280_v24  ;;  %10520 = vmatmul.msk.bf16.gmra.mxu2 %vm1696_vm0, %v11940_v22 }
 0x2fd   : > { %10992 = vmatmul.msk.bf16.gmra.mxu3 %vm1696_vm0, %v12008_v23 }
 0x2fe   : > { %v5540_v26 = vadd.f32 %v12818_v50, %v5408_v25  ;;  %v11875_v25 = vld [vmem:[%s12526_s30 + $0x188] sm:$0xff] }
 0x2ff   : > { %v3926_v28 = vpop.f32.mrf.mxu2  ;;  %v2060_v32 = vpop.f32.mrf.mxu0 }
 0x300   : > { %v5057_v29 = vpop.f32.mrf.mxu3  ;;  %v5668_v30 = vmax.f32 %v5540_v26, 0.0  ;;  %v4150_v31 = vadd.f32 %v3926_v28, %v2924_v27  ;;  %v2925_v33 = vpop.f32.mrf.mxu1  ;;  %v11807_v26 = vld [vmem:[%s12526_s30 + $0x180] sm:$0xff] }
 0x301   : > { %v2926_v37 = vadd.f32 %v2925_v33, %v2060_v32  ;;  %v12011_v32 = vld [vmem:[%s12526_s30 + $0x1d0] sm:$0xff] }
 0x302   : > { %5797 = vst.msk [vmem:[#allocation2 + $0x1f8] sm:$0xff] %vm5733_vm1, %v5668_v30  ;;  %v5281_v34 = vadd.f32 %v5057_v29, %v4150_v31  ;;  %v11943_v31 = vld [vmem:[%s12526_s30 + $0x1c8] sm:$0xff] }
 0x304   : > { %v5409_v35 = vmul.f32 0.00390625, %v5281_v34 }
 0x306   : > { %v5541_v36 = vadd.f32 %v12818_v50, %v5409_v35 }
 0x307   : > { %v3928_v38 = vpop.f32.mrf.mxu2  ;;  %v2063_v44 = vpop.f32.mrf.mxu0 }
 0x308   : > { %v5059_v39 = vpop.f32.mrf.mxu3  ;;  %v5669_v42 = vmax.f32 %v5541_v36, 0.0  ;;  %v4151_v43 = vadd.f32 %v3928_v38, %v2926_v37  ;;  %v2928_v45 = vpop.f32.mrf.mxu1 }
 0x309   : > { %v2929_v51 = vadd.f32 %v2928_v45, %v2063_v44 }
 0x30a   : > { %5798 = vst.msk [vmem:[#allocation2 + $0x200] sm:$0xff] %vm5733_vm1, %v5669_v42  ;;  %v5282_v48 = vadd.f32 %v5059_v39, %v4151_v43  ;;  %9713 = vmatmul.msk.bf16.gmra.mxu0 %vm1696_vm0, %v11873_v40 }
 0x30b   : > { %10049 = vmatmul.msk.bf16.gmra.mxu1 %vm1696_vm0, %v11805_v41 }
 0x30c   : > { %v5410_v49 = vmul.f32 0.00390625, %v5282_v48  ;;  %10521 = vmatmul.msk.bf16.gmra.mxu2 %vm1696_vm0, %v11941_v46 }
 0x30d   : > { %10993 = vmatmul.msk.bf16.gmra.mxu3 %vm1696_vm0, %v12009_v47 }
 0x30e   : > { %v5542_v18 = vadd.f32 %v12818_v50, %v5410_v49  ;;  %v11876_v49 = vld [vmem:[%s12526_s30 + $0x190] sm:$0xff] }
 0x30f   : > { %v3931_v52 = vpop.f32.mrf.mxu2  ;;  %v2065_v56 = vpop.f32.mrf.mxu0 }
 0x310   : > { %v5062_v53 = vpop.f32.mrf.mxu3  ;;  %v5670_v54 = vmax.f32 %v5542_v18, 0.0  ;;  %v4152_v55 = vadd.f32 %v3931_v52, %v2929_v51  ;;  %v2930_v57 = vpop.f32.mrf.mxu1  ;;  %v11808_v18 = vld [vmem:[%s12526_s30 + $0x188] sm:$0xff] }
 0x311   : > { %v2931_v61 = vadd.f32 %v2930_v57, %v2065_v56  ;;  %v12012_v56 = vld [vmem:[%s12526_s30 + $0x1d8] sm:$0xff] }
 0x312   : > { %5799 = vst.msk [vmem:[#allocation2 + $0x208] sm:$0xff] %vm5733_vm1, %v5670_v54  ;;  %v5283_v58 = vadd.f32 %v5062_v53, %v4152_v55  ;;  %v11944_v55 = vld [vmem:[%s12526_s30 + $0x1d0] sm:$0xff] }
 0x314   : > { %v5411_v59 = vmul.f32 0.00390625, %v5283_v58 }
 0x316   : > { %v5543_v60 = vadd.f32 %v12818_v50, %v5411_v59 }
 0x317   : > { %v3933_v62 = vpop.f32.mrf.mxu2  ;;  %v2068_v4 = vpop.f32.mrf.mxu0 }
 0x318   : > { %v5064_v63 = vpop.f32.mrf.mxu3  ;;  %v5671_v2 = vmax.f32 %v5543_v60, 0.0  ;;  %v4153_v3 = vadd.f32 %v3933_v62, %v2931_v61  ;;  %v2933_v5 = vpop.f32.mrf.mxu1 }
 0x319   : > { %v2934_v11 = vadd.f32 %v2933_v5, %v2068_v4 }
 0x31a   : > { %5800 = vst.msk [vmem:[#allocation2 + $0x210] sm:$0xff] %vm5733_vm1, %v5671_v2  ;;  %v5284_v8 = vadd.f32 %v5064_v63, %v4153_v3  ;;  %9714 = vmatmul.msk.bf16.gmra.mxu0 %vm1696_vm0, %v11874_v0 }
 0x31b   : > { %10050 = vmatmul.msk.bf16.gmra.mxu1 %vm1696_vm0, %v11806_v1 }
 0x31c   : > { %v5412_v9 = vmul.f32 0.00390625, %v5284_v8  ;;  %10522 = vmatmul.msk.bf16.gmra.mxu2 %vm1696_vm0, %v11942_v6 }
 0x31d   : > { %10994 = vmatmul.msk.bf16.gmra.mxu3 %vm1696_vm0, %v12010_v7 }
 0x31e   : > { %v5544_v10 = vadd.f32 %v12818_v50, %v5412_v9  ;;  %v11877_v9 = vld [vmem:[%s12526_s30 + $0x198] sm:$0xff] }
 0x31f   : > { %v3936_v12 = vpop.f32.mrf.mxu2  ;;  %v2070_v16 = vpop.f32.mrf.mxu0 }
 0x320   : > { %v5067_v13 = vpop.f32.mrf.mxu3  ;;  %v5672_v14 = vmax.f32 %v5544_v10, 0.0  ;;  %v4154_v15 = vadd.f32 %v3936_v12, %v2934_v11  ;;  %v2935_v17 = vpop.f32.mrf.mxu1  ;;  %v11809_v10 = vld [vmem:[%s12526_s30 + $0x190] sm:$0xff] }
 0x321   : > { %v2936_v22 = vadd.f32 %v2935_v17, %v2070_v16  ;;  %v12013_v16 = vld [vmem:[%s12526_s30 + $0x1e0] sm:$0xff] }
 0x322   : > { %5801 = vst.msk [vmem:[#allocation2 + $0x218] sm:$0xff] %vm5733_vm1, %v5672_v14  ;;  %v5285_v19 = vadd.f32 %v5067_v13, %v4154_v15  ;;  %v11945_v15 = vld [vmem:[%s12526_s30 + $0x1d8] sm:$0xff] }
 0x324   : > { %v5413_v20 = vmul.f32 0.00390625, %v5285_v19 }
 0x326   : > { %v5545_v50 = vadd.f32 %v13039_v21, %v5413_v20 }
 0x327   : > { %v3938_v23 = vpop.f32.mrf.mxu2  ;;  %v2073_v29 = vpop.f32.mrf.mxu0 }
 0x328   : > { %v5069_v24 = vpop.f32.mrf.mxu3  ;;  %v5673_v27 = vmax.f32 %v5545_v50, 0.0  ;;  %v4155_v28 = vadd.f32 %v3938_v23, %v2936_v22  ;;  %v2938_v30 = vpop.f32.mrf.mxu1 }
 0x329   : > { %v2939_v36 = vadd.f32 %v2938_v30, %v2073_v29 }
 0x32a   : > { %5802 = vst.msk [vmem:[#allocation2 + $0x220] sm:$0xff] %vm5733_vm1, %v5673_v27  ;;  %v5286_v33 = vadd.f32 %v5069_v24, %v4155_v28  ;;  %9715 = vmatmul.msk.bf16.gmra.mxu0 %vm1696_vm0, %v11875_v25 }
 0x32b   : > { %10051 = vmatmul.msk.bf16.gmra.mxu1 %vm1696_vm0, %v11807_v26 }
 0x32c   : > { %v5414_v34 = vmul.f32 0.00390625, %v5286_v33  ;;  %10523 = vmatmul.msk.bf16.gmra.mxu2 %vm1696_vm0, %v11943_v31 }
 0x32d   : > { %10995 = vmatmul.msk.bf16.gmra.mxu3 %vm1696_vm0, %v12011_v32 }
 0x32e   : > { %v5546_v35 = vadd.f32 %v13039_v21, %v5414_v34  ;;  %v11878_v34 = vld [vmem:[%s12526_s30 + $0x1a0] sm:$0xff] }
 0x32f   : > { %v3941_v37 = vpop.f32.mrf.mxu2  ;;  %v2075_v41 = vpop.f32.mrf.mxu0 }
 0x330   : > { %v5072_v38 = vpop.f32.mrf.mxu3  ;;  %v5674_v39 = vmax.f32 %v5546_v35, 0.0  ;;  %v4156_v40 = vadd.f32 %v3941_v37, %v2939_v36  ;;  %v2940_v42 = vpop.f32.mrf.mxu1  ;;  %v11810_v35 = vld [vmem:[%s12526_s30 + $0x198] sm:$0xff] }
 0x331   : > { %v2941_v46 = vadd.f32 %v2940_v42, %v2075_v41  ;;  %v12014_v41 = vld [vmem:[%s12526_s30 + $0x1e8] sm:$0xff] }
 0x332   : > { %5803 = vst.msk [vmem:[#allocation2 + $0x228] sm:$0xff] %vm5733_vm1, %v5674_v39  ;;  %v5287_v43 = vadd.f32 %v5072_v38, %v4156_v40  ;;  %v11946_v40 = vld [vmem:[%s12526_s30 + $0x1e0] sm:$0xff] }
 0x334   : > { %v5415_v44 = vmul.f32 0.00390625, %v5287_v43 }
 0x336   : > { %v5547_v45 = vadd.f32 %v13039_v21, %v5415_v44 }
 0x337   : > { %v3943_v47 = vpop.f32.mrf.mxu2  ;;  %v2078_v53 = vpop.f32.mrf.mxu0 }
 0x338   : > { %v5074_v48 = vpop.f32.mrf.mxu3  ;;  %v5675_v51 = vmax.f32 %v5547_v45, 0.0  ;;  %v4157_v52 = vadd.f32 %v3943_v47, %v2941_v46  ;;  %v2943_v54 = vpop.f32.mrf.mxu1 }
 0x339   : > { %v2944_v60 = vadd.f32 %v2943_v54, %v2078_v53 }
 0x33a   : > { %5804 = vst.msk [vmem:[#allocation2 + $0x230] sm:$0xff] %vm5733_vm1, %v5675_v51  ;;  %v5288_v57 = vadd.f32 %v5074_v48, %v4157_v52  ;;  %9716 = vmatmul.msk.bf16.gmra.mxu0 %vm1696_vm0, %v11876_v49 }
 0x33b   : > { %10052 = vmatmul.msk.bf16.gmra.mxu1 %vm1696_vm0, %v11808_v18 }
 0x33c   : > { %v5416_v58 = vmul.f32 0.00390625, %v5288_v57  ;;  %10524 = vmatmul.msk.bf16.gmra.mxu2 %vm1696_vm0, %v11944_v55 }
 0x33d   : > { %10996 = vmatmul.msk.bf16.gmra.mxu3 %vm1696_vm0, %v12012_v56 }
 0x33e   : > { %v5548_v59 = vadd.f32 %v13039_v21, %v5416_v58  ;;  %v11879_v58 = vld [vmem:[%s12526_s30 + $0x1a8] sm:$0xff] }
 0x33f   : > { %v3946_v61 = vpop.f32.mrf.mxu2  ;;  %v2080_v1 = vpop.f32.mrf.mxu0 }
 0x340   : > { %v5077_v62 = vpop.f32.mrf.mxu3  ;;  %v5676_v63 = vmax.f32 %v5548_v59, 0.0  ;;  %v4158_v0 = vadd.f32 %v3946_v61, %v2944_v60  ;;  %v2945_v2 = vpop.f32.mrf.mxu1  ;;  %v11811_v59 = vld [vmem:[%s12526_s30 + $0x1a0] sm:$0xff] }
 0x341   : > { %v2946_v6 = vadd.f32 %v2945_v2, %v2080_v1  ;;  %v12015_v1 = vld [vmem:[%s12526_s30 + $0x1f0] sm:$0xff] }
 0x342   : > { %5805 = vst.msk [vmem:[#allocation2 + $0x238] sm:$0xff] %vm5733_vm1, %v5676_v63  ;;  %v5289_v3 = vadd.f32 %v5077_v62, %v4158_v0  ;;  %v11947_v0 = vld [vmem:[%s12526_s30 + $0x1e8] sm:$0xff] }
 0x344   : > { %v5417_v4 = vmul.f32 0.00390625, %v5289_v3 }
 0x346   : > { %v5549_v5 = vadd.f32 %v13039_v21, %v5417_v4 }
 0x347   : > { %v3948_v7 = vpop.f32.mrf.mxu2  ;;  %v2083_v13 = vpop.f32.mrf.mxu0 }
 0x348   : > { %v5079_v8 = vpop.f32.mrf.mxu3  ;;  %v5677_v11 = vmax.f32 %v5549_v5, 0.0  ;;  %v4159_v12 = vadd.f32 %v3948_v7, %v2946_v6  ;;  %v2948_v14 = vpop.f32.mrf.mxu1 }
 0x349   : > { %v2949_v50 = vadd.f32 %v2948_v14, %v2083_v13 }
 0x34a   : > { %5806 = vst.msk [vmem:[#allocation2 + $0x240] sm:$0xff] %vm5733_vm1, %v5677_v11  ;;  %v5290_v17 = vadd.f32 %v5079_v8, %v4159_v12  ;;  %9717 = vmatmul.msk.bf16.gmra.mxu0 %vm1696_vm0, %v11877_v9 }
 0x34b   : > { %10053 = vmatmul.msk.bf16.gmra.mxu1 %vm1696_vm0, %v11809_v10 }
 0x34c   : > { %v5418_v19 = vmul.f32 0.00390625, %v5290_v17  ;;  %10525 = vmatmul.msk.bf16.gmra.mxu2 %vm1696_vm0, %v11945_v15 }
 0x34d   : > { %10997 = vmatmul.msk.bf16.gmra.mxu3 %vm1696_vm0, %v12013_v16 }
 0x34e   : > { %v5550_v20 = vadd.f32 %v13039_v21, %v5418_v19  ;;  %v11880_v19 = vld [vmem:[%s12526_s30 + $0x1b8] sm:$0xff] }
 0x34f   : > { %v3951_v22 = vpop.f32.mrf.mxu2  ;;  %v2085_v26 = vpop.f32.mrf.mxu0 }
 0x350   : > { %v5082_v23 = vpop.f32.mrf.mxu3  ;;  %v5678_v24 = vmax.f32 %v5550_v20, 0.0  ;;  %v4160_v25 = vadd.f32 %v3951_v22, %v2949_v50  ;;  %v2950_v27 = vpop.f32.mrf.mxu1  ;;  %v11812_v20 = vld [vmem:[%s12526_s30 + $0x1b0] sm:$0xff] }
 0x351   : > { %v2951_v31 = vadd.f32 %v2950_v27, %v2085_v26  ;;  %v12016_v26 = vld [vmem:[%s12526_s30 + $0x200] sm:$0xff] }
 0x352   : > { %5807 = vst.msk [vmem:[#allocation2 + $0x248] sm:$0xff] %vm5733_vm1, %v5678_v24  ;;  %v5291_v28 = vadd.f32 %v5082_v23, %v4160_v25  ;;  %v11948_v25 = vld [vmem:[%s12526_s30 + $0x1f8] sm:$0xff] }
 0x354   : > { %v5419_v29 = vmul.f32 0.00390625, %v5291_v28 }
 0x356   : > { %v5551_v30 = vadd.f32 %v13039_v21, %v5419_v29 }
 0x357   : > { %v3953_v32 = vpop.f32.mrf.mxu2  ;;  %v2088_v38 = vpop.f32.mrf.mxu0 }
 0x358   : > { %v5084_v33 = vpop.f32.mrf.mxu3  ;;  %v5679_v36 = vmax.f32 %v5551_v30, 0.0  ;;  %v4161_v37 = vadd.f32 %v3953_v32, %v2951_v31  ;;  %v2953_v39 = vpop.f32.mrf.mxu1 }
 0x359   : > { %v2954_v45 = vadd.f32 %v2953_v39, %v2088_v38 }
 0x35a   : > { %5808 = vst.msk [vmem:[#allocation2 + $0x250] sm:$0xff] %vm5733_vm1, %v5679_v36  ;;  %v5292_v42 = vadd.f32 %v5084_v33, %v4161_v37  ;;  %9718 = vmatmul.msk.bf16.gmra.mxu0 %vm1696_vm0, %v11878_v34 }
 0x35b   : > { %10054 = vmatmul.msk.bf16.gmra.mxu1 %vm1696_vm0, %v11810_v35 }
 0x35c   : > { %v5420_v43 = vmul.f32 0.00390625, %v5292_v42  ;;  %10526 = vmatmul.msk.bf16.gmra.mxu2 %vm1696_vm0, %v11946_v40 }
 0x35d   : > { %10998 = vmatmul.msk.bf16.gmra.mxu3 %vm1696_vm0, %v12014_v41 }
 0x35e   : > { %v5552_v44 = vadd.f32 %v13039_v21, %v5420_v43  ;;  %v11881_v43 = vld [vmem:[%s12526_s30 + $0x1c0] sm:$0xff] }
 0x35f   : > { %v3956_v46 = vpop.f32.mrf.mxu2  ;;  %v2090_v18 = vpop.f32.mrf.mxu0 }
 0x360   : > { %v5087_v47 = vpop.f32.mrf.mxu3  ;;  %v5680_v48 = vmax.f32 %v5552_v44, 0.0  ;;  %v4162_v49 = vadd.f32 %v3956_v46, %v2954_v45  ;;  %v2955_v51 = vpop.f32.mrf.mxu1  ;;  %v11813_v44 = vld [vmem:[%s12526_s30 + $0x1b8] sm:$0xff] }
 0x361   : > { %v2956_v55 = vadd.f32 %v2955_v51, %v2090_v18  ;;  %v12017_v18 = vld [vmem:[%s12526_s30 + $0x208] sm:$0xff] }
 0x362   : > { %5809 = vst.msk [vmem:[#allocation2 + $0x258] sm:$0xff] %vm5733_vm1, %v5680_v48  ;;  %v5293_v52 = vadd.f32 %v5087_v47, %v4162_v49  ;;  %v11949_v49 = vld [vmem:[%s12526_s30 + $0x200] sm:$0xff] }
 0x364   : > { %v5421_v53 = vmul.f32 0.00390625, %v5293_v52 }
 0x366   : > { %v5553_v54 = vadd.f32 %v13039_v21, %v5421_v53 }
 0x367   : > { %v3958_v56 = vpop.f32.mrf.mxu2  ;;  %v2093_v62 = vpop.f32.mrf.mxu0 }
 0x368   : > { %v5089_v57 = vpop.f32.mrf.mxu3  ;;  %v5681_v60 = vmax.f32 %v5553_v54, 0.0  ;;  %v4163_v61 = vadd.f32 %v3958_v56, %v2956_v55  ;;  %v2958_v63 = vpop.f32.mrf.mxu1 }
 0x369   : > { %v2959_v5 = vadd.f32 %v2958_v63, %v2093_v62 }
 0x36a   : > { %5810 = vst.msk [vmem:[#allocation2 + $0x260] sm:$0xff] %vm5733_vm1, %v5681_v60  ;;  %v5294_v2 = vadd.f32 %v5089_v57, %v4163_v61  ;;  %9719 = vmatmul.msk.bf16.gmra.mxu0 %vm1696_vm0, %v11879_v58 }
 0x36b   : > { %10055 = vmatmul.msk.bf16.gmra.mxu1 %vm1696_vm0, %v11811_v59 }
 0x36c   : > { %v5422_v3 = vmul.f32 0.00390625, %v5294_v2  ;;  %10527 = vmatmul.msk.bf16.gmra.mxu2 %vm1696_vm0, %v11947_v0 }
 0x36d   : > { %10999 = vmatmul.msk.bf16.gmra.mxu3 %vm1696_vm0, %v12015_v1 }
 0x36e   : > { %v5554_v4 = vadd.f32 %v13039_v21, %v5422_v3  ;;  %v11882_v3 = vld [vmem:[%s12526_s30 + $0x1c8] sm:$0xff] }
 0x36f   : > { %v3961_v6 = vpop.f32.mrf.mxu2  ;;  %v2095_v10 = vpop.f32.mrf.mxu0 }
 0x370   : > { %v5092_v7 = vpop.f32.mrf.mxu3  ;;  %v5682_v8 = vmax.f32 %v5554_v4, 0.0  ;;  %v4164_v9 = vadd.f32 %v3961_v6, %v2959_v5  ;;  %v2960_v11 = vpop.f32.mrf.mxu1  ;;  %v11814_v4 = vld [vmem:[%s12526_s30 + $0x1c0] sm:$0xff] }
 0x371   : > { %v2961_v15 = vadd.f32 %v2960_v11, %v2095_v10  ;;  %v12018_v10 = vld [vmem:[%s12526_s30 + $0x210] sm:$0xff] }
 0x372   : > { %5811 = vst.msk [vmem:[#allocation2 + $0x268] sm:$0xff] %vm5733_vm1, %v5682_v8  ;;  %v5295_v12 = vadd.f32 %v5092_v7, %v4164_v9  ;;  %v11950_v9 = vld [vmem:[%s12526_s30 + $0x208] sm:$0xff] }
 0x374   : > { %v5423_v13 = vmul.f32 0.00390625, %v5295_v12 }
 0x376   : > { %v5555_v14 = vadd.f32 %v13039_v21, %v5423_v13 }
 0x377   : > { %v3963_v16 = vpop.f32.mrf.mxu2  ;;  %v2098_v23 = vpop.f32.mrf.mxu0 }
 0x378   : > { %v5094_v17 = vpop.f32.mrf.mxu3  ;;  %v5683_v50 = vmax.f32 %v5555_v14, 0.0  ;;  %v4165_v22 = vadd.f32 %v3963_v16, %v2961_v15  ;;  %v2963_v24 = vpop.f32.mrf.mxu1 }
 0x379   : > { %v2964_v30 = vadd.f32 %v2963_v24, %v2098_v23 }
 0x37a   : > { %5812 = vst.msk [vmem:[#allocation2 + $0x270] sm:$0xff] %vm5733_vm1, %v5683_v50  ;;  %v5296_v27 = vadd.f32 %v5094_v17, %v4165_v22  ;;  %9720 = vmatmul.msk.bf16.gmra.mxu0 %vm1696_vm0, %v11880_v19 }
 0x37b   : > { %10056 = vmatmul.msk.bf16.gmra.mxu1 %vm1696_vm0, %v11812_v20 }
 0x37c   : > { %v5424_v28 = vmul.f32 0.00390625, %v5296_v27  ;;  %10528 = vmatmul.msk.bf16.gmra.mxu2 %vm1696_vm0, %v11948_v25 }
 0x37d   : > { %11000 = vmatmul.msk.bf16.gmra.mxu3 %vm1696_vm0, %v12016_v26 }
 0x37e   : > { %v5556_v29 = vadd.f32 %v13039_v21, %v5424_v28  ;;  %v11883_v28 = vld [vmem:[%s12526_s30 + $0x1d0] sm:$0xff] }
 0x37f   : > { %v3966_v31 = vpop.f32.mrf.mxu2  ;;  %v2100_v35 = vpop.f32.mrf.mxu0 }
 0x380   : > { %v5097_v32 = vpop.f32.mrf.mxu3  ;;  %v5684_v33 = vmax.f32 %v5556_v29, 0.0  ;;  %v4166_v34 = vadd.f32 %v3966_v31, %v2964_v30  ;;  %v2965_v36 = vpop.f32.mrf.mxu1  ;;  %v11815_v29 = vld [vmem:[%s12526_s30 + $0x1c8] sm:$0xff] }
 0x381   : > { %v2966_v40 = vadd.f32 %v2965_v36, %v2100_v35  ;;  %v12019_v35 = vld [vmem:[%s12526_s30 + $0x218] sm:$0xff] }
 0x382   : > { %5813 = vst.msk [vmem:[#allocation2 + $0x278] sm:$0xff] %vm5733_vm1, %v5684_v33  ;;  %v5297_v37 = vadd.f32 %v5097_v32, %v4166_v34  ;;  %v11951_v34 = vld [vmem:[%s12526_s30 + $0x210] sm:$0xff] }
 0x384   : > { %v5425_v38 = vmul.f32 0.00390625, %v5297_v37 }
 0x386   : > { %v5557_v39 = vadd.f32 %v13039_v21, %v5425_v38 }
 0x387   : > { %v3968_v41 = vpop.f32.mrf.mxu2  ;;  %v2103_v47 = vpop.f32.mrf.mxu0 }
 0x388   : > { %v5099_v42 = vpop.f32.mrf.mxu3  ;;  %v5685_v45 = vmax.f32 %v5557_v39, 0.0  ;;  %v4167_v46 = vadd.f32 %v3968_v41, %v2966_v40  ;;  %v2968_v48 = vpop.f32.mrf.mxu1 }
 0x389   : > { %v2969_v54 = vadd.f32 %v2968_v48, %v2103_v47 }
 0x38a   : > { %5814 = vst.msk [vmem:[#allocation2 + $0x280] sm:$0xff] %vm5733_vm1, %v5685_v45  ;;  %v5298_v51 = vadd.f32 %v5099_v42, %v4167_v46  ;;  %9721 = vmatmul.msk.bf16.gmra.mxu0 %vm1696_vm0, %v11881_v43 }
 0x38b   : > { %10057 = vmatmul.msk.bf16.gmra.mxu1 %vm1696_vm0, %v11813_v44 }
 0x38c   : > { %v5426_v52 = vmul.f32 0.00390625, %v5298_v51  ;;  %10529 = vmatmul.msk.bf16.gmra.mxu2 %vm1696_vm0, %v11949_v49 }
 0x38d   : > { %11001 = vmatmul.msk.bf16.gmra.mxu3 %vm1696_vm0, %v12017_v18 }
 0x38e   : > { %v5558_v53 = vadd.f32 %v13039_v21, %v5426_v52  ;;  %v11884_v52 = vld [vmem:[%s12526_s30 + $0x1d8] sm:$0xff] }
 0x38f   : > { %v3971_v55 = vpop.f32.mrf.mxu2  ;;  %v2105_v59 = vpop.f32.mrf.mxu0 }
 0x390   : > { %v5102_v56 = vpop.f32.mrf.mxu3  ;;  %v5686_v57 = vmax.f32 %v5558_v53, 0.0  ;;  %v4168_v58 = vadd.f32 %v3971_v55, %v2969_v54  ;;  %v2970_v60 = vpop.f32.mrf.mxu1  ;;  %v11816_v53 = vld [vmem:[%s12526_s30 + $0x1d0] sm:$0xff] }
 0x391   : > { %v2971_v0 = vadd.f32 %v2970_v60, %v2105_v59  ;;  %v12020_v59 = vld [vmem:[%s12526_s30 + $0x220] sm:$0xff] }
 0x392   : > { %5815 = vst.msk [vmem:[#allocation2 + $0x288] sm:$0xff] %vm5733_vm1, %v5686_v57  ;;  %v5299_v61 = vadd.f32 %v5102_v56, %v4168_v58  ;;  %v11952_v58 = vld [vmem:[%s12526_s30 + $0x218] sm:$0xff] }
 0x394   : > { %v5427_v62 = vmul.f32 0.00390625, %v5299_v61 }
 0x396   : > { %v5559_v63 = vadd.f32 %v13039_v21, %v5427_v62 }
 0x397   : > { %v3973_v1 = vpop.f32.mrf.mxu2  ;;  %v2108_v7 = vpop.f32.mrf.mxu0 }
 0x398   : > { %v5104_v2 = vpop.f32.mrf.mxu3  ;;  %v5687_v5 = vmax.f32 %v5559_v63, 0.0  ;;  %v4169_v6 = vadd.f32 %v3973_v1, %v2971_v0  ;;  %v2973_v8 = vpop.f32.mrf.mxu1 }
 0x399   : > { %v2974_v14 = vadd.f32 %v2973_v8, %v2108_v7 }
 0x39a   : > { %5816 = vst.msk [vmem:[#allocation2 + $0x290] sm:$0xff] %vm5733_vm1, %v5687_v5  ;;  %v5300_v11 = vadd.f32 %v5104_v2, %v4169_v6  ;;  %9722 = vmatmul.msk.bf16.gmra.mxu0 %vm1696_vm0, %v11882_v3 }
 0x39b   : > { %10058 = vmatmul.msk.bf16.gmra.mxu1 %vm1696_vm0, %v11814_v4 }
 0x39c   : > { %v5428_v12 = vmul.f32 0.00390625, %v5300_v11  ;;  %10530 = vmatmul.msk.bf16.gmra.mxu2 %vm1696_vm0, %v11950_v9 }
 0x39d   : > { %11002 = vmatmul.msk.bf16.gmra.mxu3 %vm1696_vm0, %v12018_v10 }
 0x39e   : > { %v5560_v13 = vadd.f32 %v13039_v21, %v5428_v12  ;;  %v11885_v12 = vld [vmem:[%s12526_s30 + $0x1e0] sm:$0xff] }
 0x39f   : > { %v3976_v15 = vpop.f32.mrf.mxu2  ;;  %v2110_v20 = vpop.f32.mrf.mxu0 }
 0x3a0   : > { %v5107_v16 = vpop.f32.mrf.mxu3  ;;  %v5688_v17 = vmax.f32 %v5560_v13, 0.0  ;;  %v4170_v19 = vadd.f32 %v3976_v15, %v2974_v14  ;;  %v2975_v50 = vpop.f32.mrf.mxu1  ;;  %v11817_v13 = vld [vmem:[%s12526_s30 + $0x1d8] sm:$0xff] }
 0x3a1   : > { %v2976_v25 = vadd.f32 %v2975_v50, %v2110_v20  ;;  %v12021_v20 = vld [vmem:[%s12526_s30 + $0x228] sm:$0xff] }
 0x3a2   : > { %5817 = vst.msk [vmem:[#allocation2 + $0x298] sm:$0xff] %vm5733_vm1, %v5688_v17  ;;  %v5301_v22 = vadd.f32 %v5107_v16, %v4170_v19  ;;  %v11953_v19 = vld [vmem:[%s12526_s30 + $0x220] sm:$0xff] }
 0x3a4   : > { %v5429_v23 = vmul.f32 0.00390625, %v5301_v22 }
 0x3a6   : > { %v5561_v24 = vadd.f32 %v13039_v21, %v5429_v23 }
 0x3a7   : > { %v3978_v26 = vpop.f32.mrf.mxu2  ;;  %v2113_v32 = vpop.f32.mrf.mxu0 }
 0x3a8   : > { %v5109_v27 = vpop.f32.mrf.mxu3  ;;  %v5689_v30 = vmax.f32 %v5561_v24, 0.0  ;;  %v4171_v31 = vadd.f32 %v3978_v26, %v2976_v25  ;;  %v2978_v33 = vpop.f32.mrf.mxu1 }
 0x3a9   : > { %v2979_v39 = vadd.f32 %v2978_v33, %v2113_v32 }
 0x3aa   : > { %5818 = vst.msk [vmem:[#allocation2 + $0x2a0] sm:$0xff] %vm5733_vm1, %v5689_v30  ;;  %v5302_v36 = vadd.f32 %v5109_v27, %v4171_v31  ;;  %9723 = vmatmul.msk.bf16.gmra.mxu0 %vm1696_vm0, %v11883_v28 }
 0x3ab   : > { %10059 = vmatmul.msk.bf16.gmra.mxu1 %vm1696_vm0, %v11815_v29 }
 0x3ac   : > { %v5430_v37 = vmul.f32 0.00390625, %v5302_v36  ;;  %10531 = vmatmul.msk.bf16.gmra.mxu2 %vm1696_vm0, %v11951_v34 }
 0x3ad   : > { %11003 = vmatmul.msk.bf16.gmra.mxu3 %vm1696_vm0, %v12019_v35 }
 0x3ae   : > { %v5562_v38 = vadd.f32 %v13039_v21, %v5430_v37  ;;  %v11886_v37 = vld [vmem:[%s12526_s30 + $0x1e8] sm:$0xff] }
 0x3af   : > { %v3981_v40 = vpop.f32.mrf.mxu2  ;;  %v2115_v44 = vpop.f32.mrf.mxu0 }
 0x3b0   : > { %v5112_v41 = vpop.f32.mrf.mxu3  ;;  %v5690_v42 = vmax.f32 %v5562_v38, 0.0  ;;  %v4172_v43 = vadd.f32 %v3981_v40, %v2979_v39  ;;  %v2980_v45 = vpop.f32.mrf.mxu1  ;;  %v11818_v38 = vld [vmem:[%s12526_s30 + $0x1e0] sm:$0xff] }
 0x3b1   : > { %v2981_v49 = vadd.f32 %v2980_v45, %v2115_v44  ;;  %v12022_v44 = vld [vmem:[%s12526_s30 + $0x230] sm:$0xff] }
 0x3b2   : > { %5819 = vst.msk [vmem:[#allocation2 + $0x2a8] sm:$0xff] %vm5733_vm1, %v5690_v42  ;;  %v5303_v46 = vadd.f32 %v5112_v41, %v4172_v43  ;;  %v11954_v43 = vld [vmem:[%s12526_s30 + $0x228] sm:$0xff] }
 0x3b4   : > { %v5431_v47 = vmul.f32 0.00390625, %v5303_v46 }
 0x3b6   : > { %v5563_v48 = vadd.f32 %v13039_v21, %v5431_v47 }
 0x3b7   : > { %v3983_v18 = vpop.f32.mrf.mxu2  ;;  %v2118_v56 = vpop.f32.mrf.mxu0 }
 0x3b8   : > { %v5114_v51 = vpop.f32.mrf.mxu3  ;;  %v5691_v54 = vmax.f32 %v5563_v48, 0.0  ;;  %v4173_v55 = vadd.f32 %v3983_v18, %v2981_v49  ;;  %v2983_v57 = vpop.f32.mrf.mxu1 }
 0x3b9   : > { %v2984_v63 = vadd.f32 %v2983_v57, %v2118_v56 }
 0x3ba   : > { %5820 = vst.msk [vmem:[#allocation2 + $0x2b0] sm:$0xff] %vm5733_vm1, %v5691_v54  ;;  %v5304_v60 = vadd.f32 %v5114_v51, %v4173_v55  ;;  %9724 = vmatmul.msk.bf16.gmra.mxu0 %vm1696_vm0, %v11884_v52 }
 0x3bb   : > { %10060 = vmatmul.msk.bf16.gmra.mxu1 %vm1696_vm0, %v11816_v53 }
 0x3bc   : > { %v5432_v61 = vmul.f32 0.00390625, %v5304_v60  ;;  %10532 = vmatmul.msk.bf16.gmra.mxu2 %vm1696_vm0, %v11952_v58 }
 0x3bd   : > { %11004 = vmatmul.msk.bf16.gmra.mxu3 %vm1696_vm0, %v12020_v59 }
 0x3be   : > { %v5564_v62 = vadd.f32 %v13039_v21, %v5432_v61  ;;  %v11887_v61 = vld [vmem:[%s12526_s30 + $0x1f0] sm:$0xff] }
 0x3bf   : > { %v3986_v0 = vpop.f32.mrf.mxu2  ;;  %v2120_v4 = vpop.f32.mrf.mxu0 }
 0x3c0   : > { %v5117_v1 = vpop.f32.mrf.mxu3  ;;  %v5692_v2 = vmax.f32 %v5564_v62, 0.0  ;;  %v4174_v3 = vadd.f32 %v3986_v0, %v2984_v63  ;;  %v2985_v5 = vpop.f32.mrf.mxu1  ;;  %v11819_v62 = vld [vmem:[%s12526_s30 + $0x1e8] sm:$0xff] }
 0x3c1   : > { %v2986_v9 = vadd.f32 %v2985_v5, %v2120_v4  ;;  %v12023_v4 = vld [vmem:[%s12526_s30 + $0x238] sm:$0xff] }
 0x3c2   : > { %5821 = vst.msk [vmem:[#allocation2 + $0x2b8] sm:$0xff] %vm5733_vm1, %v5692_v2  ;;  %v5305_v6 = vadd.f32 %v5117_v1, %v4174_v3  ;;  %v11955_v3 = vld [vmem:[%s12526_s30 + $0x230] sm:$0xff] }
 0x3c4   : > { %v5433_v7 = vmul.f32 0.00390625, %v5305_v6 }
 0x3c6   : > { %v5565_v8 = vadd.f32 %v13039_v21, %v5433_v7 }
 0x3c7   : > { %v3988_v10 = vpop.f32.mrf.mxu2  ;;  %v2123_v16 = vpop.f32.mrf.mxu0 }
 0x3c8   : > { %v5119_v11 = vpop.f32.mrf.mxu3  ;;  %v5693_v14 = vmax.f32 %v5565_v8, 0.0  ;;  %v4175_v15 = vadd.f32 %v3988_v10, %v2986_v9  ;;  %v2988_v17 = vpop.f32.mrf.mxu1 }
 0x3c9   : > { %v2989_v24 = vadd.f32 %v2988_v17, %v2123_v16 }
 0x3ca   : > { %5822 = vst.msk [vmem:[#allocation2 + $0x2c0] sm:$0xff] %vm5733_vm1, %v5693_v14  ;;  %v5306_v50 = vadd.f32 %v5119_v11, %v4175_v15  ;;  %9725 = vmatmul.msk.bf16.gmra.mxu0 %vm1696_vm0, %v11885_v12 }
 0x3cb   : > { %10061 = vmatmul.msk.bf16.gmra.mxu1 %vm1696_vm0, %v11817_v13 }
 0x3cc   : > { %v5434_v22 = vmul.f32 0.00390625, %v5306_v50  ;;  %10533 = vmatmul.msk.bf16.gmra.mxu2 %vm1696_vm0, %v11953_v19 }
 0x3cd   : > { %11005 = vmatmul.msk.bf16.gmra.mxu3 %vm1696_vm0, %v12021_v20 }
 0x3ce   : > { %v5566_v23 = vadd.f32 %v13039_v21, %v5434_v22  ;;  %v11888_v22 = vld [vmem:[%s12526_s30 + $0x200] sm:$0xff] }
 0x3cf   : > { %v3991_v25 = vpop.f32.mrf.mxu2  ;;  %v2125_v29 = vpop.f32.mrf.mxu0 }
 0x3d0   : > { %v5122_v26 = vpop.f32.mrf.mxu3  ;;  %v5694_v27 = vmax.f32 %v5566_v23, 0.0  ;;  %v4176_v28 = vadd.f32 %v3991_v25, %v2989_v24  ;;  %v2990_v30 = vpop.f32.mrf.mxu1  ;;  %v11820_v23 = vld [vmem:[%s12526_s30 + $0x1f8] sm:$0xff] }
 0x3d1   : > { %v2991_v34 = vadd.f32 %v2990_v30, %v2125_v29  ;;  %v12024_v29 = vld [vmem:[%s12526_s30 + $0x248] sm:$0xff] }
 0x3d2   : > { %5823 = vst.msk [vmem:[#allocation2 + $0x2c8] sm:$0xff] %vm5733_vm1, %v5694_v27  ;;  %v5307_v31 = vadd.f32 %v5122_v26, %v4176_v28  ;;  %v11956_v28 = vld [vmem:[%s12526_s30 + $0x240] sm:$0xff] }
 0x3d4   : > { %v5435_v32 = vmul.f32 0.00390625, %v5307_v31 }
 0x3d6   : > { %v5567_v33 = vadd.f32 %v13039_v21, %v5435_v32 }
 0x3d7   : > { %v3993_v35 = vpop.f32.mrf.mxu2  ;;  %v2128_v41 = vpop.f32.mrf.mxu0 }
 0x3d8   : > { %v5124_v36 = vpop.f32.mrf.mxu3  ;;  %v5695_v39 = vmax.f32 %v5567_v33, 0.0  ;;  %v4177_v40 = vadd.f32 %v3993_v35, %v2991_v34  ;;  %v2993_v42 = vpop.f32.mrf.mxu1 }
 0x3d9   : > { %v2994_v48 = vadd.f32 %v2993_v42, %v2128_v41 }
 0x3da   : > { %5824 = vst.msk [vmem:[#allocation2 + $0x2d0] sm:$0xff] %vm5733_vm1, %v5695_v39  ;;  %v5308_v45 = vadd.f32 %v5124_v36, %v4177_v40  ;;  %9726 = vmatmul.msk.bf16.gmra.mxu0 %vm1696_vm0, %v11886_v37 }
 0x3db   : > { %10062 = vmatmul.msk.bf16.gmra.mxu1 %vm1696_vm0, %v11818_v38 }
 0x3dc   : > { %v5436_v46 = vmul.f32 0.00390625, %v5308_v45  ;;  %10534 = vmatmul.msk.bf16.gmra.mxu2 %vm1696_vm0, %v11954_v43 }
 0x3dd   : > { %11006 = vmatmul.msk.bf16.gmra.mxu3 %vm1696_vm0, %v12022_v44 }
 0x3de   : > { %v5568_v47 = vadd.f32 %v13039_v21, %v5436_v46  ;;  %v11889_v46 = vld [vmem:[%s12526_s30 + $0x208] sm:$0xff] }
 0x3df   : > { %v3996_v49 = vpop.f32.mrf.mxu2  ;;  %v2130_v53 = vpop.f32.mrf.mxu0 }
 0x3e0   : > { %v5127_v18 = vpop.f32.mrf.mxu3  ;;  %v5696_v51 = vmax.f32 %v5568_v47, 0.0  ;;  %v4178_v52 = vadd.f32 %v3996_v49, %v2994_v48  ;;  %v2995_v54 = vpop.f32.mrf.mxu1  ;;  %v11821_v47 = vld [vmem:[%s12526_s30 + $0x200] sm:$0xff] }
 0x3e1   : > { %v2996_v58 = vadd.f32 %v2995_v54, %v2130_v53  ;;  %v12025_v53 = vld [vmem:[%s12526_s30 + $0x250] sm:$0xff] }
 0x3e2   : > { %5825 = vst.msk [vmem:[#allocation2 + $0x2d8] sm:$0xff] %vm5733_vm1, %v5696_v51  ;;  %v5309_v55 = vadd.f32 %v5127_v18, %v4178_v52  ;;  %v11957_v52 = vld [vmem:[%s12526_s30 + $0x248] sm:$0xff] }
 0x3e4   : > { %v5437_v56 = vmul.f32 0.00390625, %v5309_v55 }
 0x3e6   : > { %v5569_v57 = vadd.f32 %v13039_v21, %v5437_v56 }
 0x3e7   : > { %v3998_v59 = vpop.f32.mrf.mxu2  ;;  %v2133_v1 = vpop.f32.mrf.mxu0 }
 0x3e8   : > { %v5129_v60 = vpop.f32.mrf.mxu3  ;;  %v5697_v63 = vmax.f32 %v5569_v57, 0.0  ;;  %v4179_v0 = vadd.f32 %v3998_v59, %v2996_v58  ;;  %v2998_v2 = vpop.f32.mrf.mxu1 }
 0x3e9   : > { %v2999_v8 = vadd.f32 %v2998_v2, %v2133_v1 }
 0x3ea   : > { %5826 = vst.msk [vmem:[#allocation2 + $0x2e0] sm:$0xff] %vm5733_vm1, %v5697_v63  ;;  %v5310_v5 = vadd.f32 %v5129_v60, %v4179_v0  ;;  %9727 = vmatmul.msk.bf16.gmra.mxu0 %vm1696_vm0, %v11887_v61 }
 0x3eb   : > { %10063 = vmatmul.msk.bf16.gmra.mxu1 %vm1696_vm0, %v11819_v62 }
 0x3ec   : > { %v5438_v6 = vmul.f32 0.00390625, %v5310_v5  ;;  %10535 = vmatmul.msk.bf16.gmra.mxu2 %vm1696_vm0, %v11955_v3 }
 0x3ed   : > { %11007 = vmatmul.msk.bf16.gmra.mxu3 %vm1696_vm0, %v12023_v4 }
 0x3ee   : > { %v5570_v7 = vadd.f32 %v13039_v21, %v5438_v6  ;;  %v11890_v6 = vld [vmem:[%s12526_s30 + $0x210] sm:$0xff] }
 0x3ef   : > { %v4001_v9 = vpop.f32.mrf.mxu2  ;;  %v2135_v13 = vpop.f32.mrf.mxu0 }
 0x3f0   : > { %v5132_v10 = vpop.f32.mrf.mxu3  ;;  %v5698_v11 = vmax.f32 %v5570_v7, 0.0  ;;  %v4180_v12 = vadd.f32 %v4001_v9, %v2999_v8  ;;  %v3000_v14 = vpop.f32.mrf.mxu1  ;;  %v11822_v7 = vld [vmem:[%s12526_s30 + $0x208] sm:$0xff] }
 0x3f1   : > { %v3001_v19 = vadd.f32 %v3000_v14, %v2135_v13  ;;  %v12026_v13 = vld [vmem:[%s12526_s30 + $0x258] sm:$0xff] }
 0x3f2   : > { %5827 = vst.msk [vmem:[#allocation2 + $0x2e8] sm:$0xff] %vm5733_vm1, %v5698_v11  ;;  %v5311_v15 = vadd.f32 %v5132_v10, %v4180_v12  ;;  %v11958_v12 = vld [vmem:[%s12526_s30 + $0x250] sm:$0xff] }
 0x3f4   : > { %v5439_v16 = vmul.f32 0.00390625, %v5311_v15 }
 0x3f6   : > { %v5571_v17 = vadd.f32 %v13039_v21, %v5439_v16 }
 0x3f7   : > { %v4003_v20 = vpop.f32.mrf.mxu2  ;;  %v2138_v26 = vpop.f32.mrf.mxu0 }
 0x3f8   : > { %v5134_v50 = vpop.f32.mrf.mxu3  ;;  %v5699_v24 = vmax.f32 %v5571_v17, 0.0  ;;  %v4181_v25 = vadd.f32 %v4003_v20, %v3001_v19  ;;  %v3003_v27 = vpop.f32.mrf.mxu1 }
 0x3f9   : > { %v3004_v33 = vadd.f32 %v3003_v27, %v2138_v26 }
 0x3fa   : > { %5828 = vst.msk [vmem:[#allocation2 + $0x2f0] sm:$0xff] %vm5733_vm1, %v5699_v24  ;;  %v5312_v30 = vadd.f32 %v5134_v50, %v4181_v25  ;;  %9728 = vmatmul.msk.bf16.gmra.mxu0 %vm1696_vm0, %v11888_v22 }
 0x3fb   : > { %10064 = vmatmul.msk.bf16.gmra.mxu1 %vm1696_vm0, %v11820_v23 }
 0x3fc   : > { %v5440_v31 = vmul.f32 0.00390625, %v5312_v30  ;;  %10536 = vmatmul.msk.bf16.gmra.mxu2 %vm1696_vm0, %v11956_v28 }
 0x3fd   : > { %11008 = vmatmul.msk.bf16.gmra.mxu3 %vm1696_vm0, %v12024_v29 }
 0x3fe   : > { %v5572_v32 = vadd.f32 %v13039_v21, %v5440_v31  ;;  %v11891_v31 = vld [vmem:[%s12526_s30 + $0x218] sm:$0xff] }
 0x3ff   : > { %v4006_v34 = vpop.f32.mrf.mxu2  ;;  %v2140_v38 = vpop.f32.mrf.mxu0 }
 0x400   : > { %v5137_v35 = vpop.f32.mrf.mxu3  ;;  %v5700_v36 = vmax.f32 %v5572_v32, 0.0  ;;  %v4182_v37 = vadd.f32 %v4006_v34, %v3004_v33  ;;  %v3005_v39 = vpop.f32.mrf.mxu1  ;;  %v11823_v32 = vld [vmem:[%s12526_s30 + $0x210] sm:$0xff] }
 0x401   : > { %v3006_v43 = vadd.f32 %v3005_v39, %v2140_v38  ;;  %v12027_v38 = vld [vmem:[%s12526_s30 + $0x260] sm:$0xff] }
 0x402   : > { %5829 = vst.msk [vmem:[#allocation2 + $0x2f8] sm:$0xff] %vm5733_vm1, %v5700_v36  ;;  %v5313_v40 = vadd.f32 %v5137_v35, %v4182_v37  ;;  %v11959_v37 = vld [vmem:[%s12526_s30 + $0x258] sm:$0xff] }
 0x404   : > { %v5441_v41 = vmul.f32 0.00390625, %v5313_v40 }
 0x406   : > { %v5573_v42 = vadd.f32 %v13039_v21, %v5441_v41 }
 0x407   : > { %v4008_v44 = vpop.f32.mrf.mxu2  ;;  %v2143_v18 = vpop.f32.mrf.mxu0 }
 0x408   : > { %v5139_v45 = vpop.f32.mrf.mxu3  ;;  %v5701_v48 = vmax.f32 %v5573_v42, 0.0  ;;  %v4183_v49 = vadd.f32 %v4008_v44, %v3006_v43  ;;  %v3008_v51 = vpop.f32.mrf.mxu1 }
 0x409   : > { %v3009_v57 = vadd.f32 %v3008_v51, %v2143_v18 }
 0x40a   : > { %5830 = vst.msk [vmem:[#allocation2 + $0x300] sm:$0xff] %vm5733_vm1, %v5701_v48  ;;  %v5314_v54 = vadd.f32 %v5139_v45, %v4183_v49  ;;  %9729 = vmatmul.msk.bf16.gmra.mxu0 %vm1696_vm0, %v11889_v46 }
 0x40b   : > { %10065 = vmatmul.msk.bf16.gmra.mxu1 %vm1696_vm0, %v11821_v47 }
 0x40c   : > { %v5442_v55 = vmul.f32 0.00390625, %v5314_v54  ;;  %10537 = vmatmul.msk.bf16.gmra.mxu2 %vm1696_vm0, %v11957_v52 }
 0x40d   : > { %11009 = vmatmul.msk.bf16.gmra.mxu3 %vm1696_vm0, %v12025_v53 }
 0x40e   : > { %v5574_v56 = vadd.f32 %v13039_v21, %v5442_v55  ;;  %v11892_v55 = vld [vmem:[%s12526_s30 + $0x220] sm:$0xff] }
 0x40f   : > { %v4011_v58 = vpop.f32.mrf.mxu2  ;;  %v2145_v62 = vpop.f32.mrf.mxu0 }
 0x410   : > { %v5142_v59 = vpop.f32.mrf.mxu3  ;;  %v5702_v60 = vmax.f32 %v5574_v56, 0.0  ;;  %v4184_v61 = vadd.f32 %v4011_v58, %v3009_v57  ;;  %v3010_v63 = vpop.f32.mrf.mxu1  ;;  %v11824_v56 = vld [vmem:[%s12526_s30 + $0x218] sm:$0xff] }
 0x411   : > { %v3011_v3 = vadd.f32 %v3010_v63, %v2145_v62  ;;  %v12028_v62 = vld [vmem:[%s12526_s30 + $0x268] sm:$0xff] }
 0x412   : > { %5831 = vst.msk [vmem:[#allocation2 + $0x308] sm:$0xff] %vm5733_vm1, %v5702_v60  ;;  %v5315_v0 = vadd.f32 %v5142_v59, %v4184_v61  ;;  %v11960_v61 = vld [vmem:[%s12526_s30 + $0x260] sm:$0xff] }
 0x414   : > { %v5443_v1 = vmul.f32 0.00390625, %v5315_v0 }
 0x416   : > { %v5575_v2 = vadd.f32 %v13039_v21, %v5443_v1 }
 0x417   : > { %v4013_v4 = vpop.f32.mrf.mxu2  ;;  %v2148_v10 = vpop.f32.mrf.mxu0 }
 0x418   : > { %v5144_v5 = vpop.f32.mrf.mxu3  ;;  %v5703_v8 = vmax.f32 %v5575_v2, 0.0  ;;  %v4185_v9 = vadd.f32 %v4013_v4, %v3011_v3  ;;  %v3013_v11 = vpop.f32.mrf.mxu1 }
 0x419   : > { %v3014_v17 = vadd.f32 %v3013_v11, %v2148_v10 }
 0x41a   : > { %5832 = vst.msk [vmem:[#allocation2 + $0x310] sm:$0xff] %vm5733_vm1, %v5703_v8  ;;  %v5316_v14 = vadd.f32 %v5144_v5, %v4185_v9  ;;  %9730 = vmatmul.msk.bf16.gmra.mxu0 %vm1696_vm0, %v11890_v6 }
 0x41b   : > { %10066 = vmatmul.msk.bf16.gmra.mxu1 %vm1696_vm0, %v11822_v7 }
 0x41c   : > { %v5444_v15 = vmul.f32 0.00390625, %v5316_v14  ;;  %10538 = vmatmul.msk.bf16.gmra.mxu2 %vm1696_vm0, %v11958_v12 }
 0x41d   : > { %11010 = vmatmul.msk.bf16.gmra.mxu3 %vm1696_vm0, %v12026_v13 }
 0x41e   : > { %v5576_v16 = vadd.f32 %v13039_v21, %v5444_v15  ;;  %v11893_v15 = vld [vmem:[%s12526_s30 + $0x228] sm:$0xff] }
 0x41f   : > { %v4016_v19 = vpop.f32.mrf.mxu2  ;;  %v2150_v23 = vpop.f32.mrf.mxu0 }
 0x420   : > { %v5147_v20 = vpop.f32.mrf.mxu3  ;;  %v5704_v50 = vmax.f32 %v5576_v16, 0.0  ;;  %v4186_v22 = vadd.f32 %v4016_v19, %v3014_v17  ;;  %v3015_v24 = vpop.f32.mrf.mxu1  ;;  %v11825_v16 = vld [vmem:[%s12526_s30 + $0x220] sm:$0xff] }
 0x421   : > { %v3016_v28 = vadd.f32 %v3015_v24, %v2150_v23  ;;  %v12029_v23 = vld [vmem:[%s12526_s30 + $0x270] sm:$0xff] }
 0x422   : > { %5833 = vst.msk [vmem:[#allocation2 + $0x318] sm:$0xff] %vm5733_vm1, %v5704_v50  ;;  %v5317_v25 = vadd.f32 %v5147_v20, %v4186_v22  ;;  %v11961_v22 = vld [vmem:[%s12526_s30 + $0x268] sm:$0xff] }
 0x424   : > { %v5445_v26 = vmul.f32 0.00390625, %v5317_v25 }
 0x426   : > { %v5577_v27 = vadd.f32 %v13039_v21, %v5445_v26 }
 0x427   : > { %v4018_v29 = vpop.f32.mrf.mxu2  ;;  %v2153_v35 = vpop.f32.mrf.mxu0 }
 0x428   : > { %v5149_v30 = vpop.f32.mrf.mxu3  ;;  %v5705_v33 = vmax.f32 %v5577_v27, 0.0  ;;  %v4187_v34 = vadd.f32 %v4018_v29, %v3016_v28  ;;  %v3018_v36 = vpop.f32.mrf.mxu1 }
 0x429   : > { %v3019_v42 = vadd.f32 %v3018_v36, %v2153_v35 }
 0x42a   : > { %5834 = vst.msk [vmem:[#allocation2 + $0x320] sm:$0xff] %vm5733_vm1, %v5705_v33  ;;  %v5318_v39 = vadd.f32 %v5149_v30, %v4187_v34  ;;  %9731 = vmatmul.msk.bf16.gmra.mxu0 %vm1696_vm0, %v11891_v31 }
 0x42b   : > { %10067 = vmatmul.msk.bf16.gmra.mxu1 %vm1696_vm0, %v11823_v32 }
 0x42c   : > { %v5446_v40 = vmul.f32 0.00390625, %v5318_v39  ;;  %10539 = vmatmul.msk.bf16.gmra.mxu2 %vm1696_vm0, %v11959_v37 }
 0x42d   : > { %11011 = vmatmul.msk.bf16.gmra.mxu3 %vm1696_vm0, %v12027_v38 }
 0x42e   : > { %v5578_v41 = vadd.f32 %v13039_v21, %v5446_v40  ;;  %v11894_v40 = vld [vmem:[%s12526_s30 + $0x230] sm:$0xff] }
 0x42f   : > { %v4021_v43 = vpop.f32.mrf.mxu2  ;;  %v2155_v47 = vpop.f32.mrf.mxu0 }
 0x430   : > { %v5152_v44 = vpop.f32.mrf.mxu3  ;;  %v5706_v45 = vmax.f32 %v5578_v41, 0.0  ;;  %v4188_v46 = vadd.f32 %v4021_v43, %v3019_v42  ;;  %v3020_v48 = vpop.f32.mrf.mxu1  ;;  %v11826_v41 = vld [vmem:[%s12526_s30 + $0x228] sm:$0xff] }
 0x431   : > { %v3021_v52 = vadd.f32 %v3020_v48, %v2155_v47  ;;  %v12030_v47 = vld [vmem:[%s12526_s30 + $0x278] sm:$0xff] }
 0x432   : > { %5835 = vst.msk [vmem:[#allocation2 + $0x328] sm:$0xff] %vm5733_vm1, %v5706_v45  ;;  %v5319_v49 = vadd.f32 %v5152_v44, %v4188_v46  ;;  %v11962_v46 = vld [vmem:[%s12526_s30 + $0x270] sm:$0xff] }
 0x434   : > { %v5447_v18 = vmul.f32 0.00390625, %v5319_v49 }
 0x436   : > { %v5579_v51 = vadd.f32 %v13039_v21, %v5447_v18  ;;  %v13258_v21 = vld [vmem:[%s14174_s2] ss:$0 sm:$0xff] }
 0x437   : > { %v4023_v53 = vpop.f32.mrf.mxu2  ;;  %v2158_v59 = vpop.f32.mrf.mxu0 }
 0x438   : > { %v5154_v54 = vpop.f32.mrf.mxu3  ;;  %v5707_v57 = vmax.f32 %v5579_v51, 0.0  ;;  %v4189_v58 = vadd.f32 %v4023_v53, %v3021_v52  ;;  %v3023_v60 = vpop.f32.mrf.mxu1 }
 0x439   : > { %v3024_v2 = vadd.f32 %v3023_v60, %v2158_v59  ;;  %v12049_v59 = vld [vmem:[%s14175_s3 + $0x68] sm:$0xff] }
 0x43a   : > { %5836 = vst.msk [vmem:[#allocation2 + $0x330] sm:$0xff] %vm5733_vm1, %v5707_v57  ;;  %v5320_v63 = vadd.f32 %v5154_v54, %v4189_v58  ;;  %9732 = vmatmul.msk.bf16.gmra.mxu0 %vm1696_vm0, %v11892_v55  ;;  %v12045_v60 = vld [vmem:[%s14175_s3 + $0x48] sm:$0xff]  ;;  %6766 = vmatpush.bf16.msra.mxu2 %v12049_v59 }
 0x43b   : > { %10068 = vmatmul.msk.bf16.gmra.mxu1 %vm1696_vm0, %v11824_v56  ;;  %6478 = vmatpush.bf16.msra.mxu0 %v12045_v60 }
 0x43c   : > { %v5448_v0 = vmul.f32 0.00390625, %v5320_v63  ;;  %10540 = vmatmul.msk.bf16.gmra.mxu2 %vm1696_vm0, %v11960_v61  ;;  %v12051_v61 = vld [vmem:[%s14175_s3 + $0x78] sm:$0xff] }
 0x43d   : > { %11012 = vmatmul.msk.bf16.gmra.mxu3 %vm1696_vm0, %v12028_v62 }
 0x43e   : > { %v5580_v1 = vadd.f32 %v13258_v21, %v5448_v0  ;;  %6910 = vmatpush.bf16.msra.mxu3 %v12051_v61  ;;  %v6116_v61 = vld [vmem:[#allocation2 + $0x48] sm:$0xff] }
 0x43f   : > { %v4026_v3 = vpop.f32.mrf.mxu2  ;;  %v2160_v7 = vpop.f32.mrf.mxu0 }
 0x440   : > { %v5157_v4 = vpop.f32.mrf.mxu3  ;;  %v5708_v5 = vmax.f32 %v5580_v1, 0.0  ;;  %v4190_v6 = vadd.f32 %v4026_v3, %v3024_v2  ;;  %v3025_v8 = vpop.f32.mrf.mxu1  ;;  %v11895_v3 = vld [vmem:[%s12526_s30 + $0x238] sm:$0xff] }
 0x441   : > { %v3026_v12 = vadd.f32 %v3025_v8, %v2160_v7 }
 0x442   : > { %5837 = vst.msk [vmem:[#allocation2 + $0x338] sm:$0xff] %vm5733_vm1, %v5708_v5  ;;  %v5321_v9 = vadd.f32 %v5157_v4, %v4190_v6  ;;  %v11827_v4 = vld [vmem:[%s12526_s30 + $0x230] sm:$0xff] }
 0x444   : > { %v5449_v10 = vmul.f32 0.00390625, %v5321_v9  ;;  %v11963_v9 = vld [vmem:[%s12526_s30 + $0x278] sm:$0xff] }
 0x446   : > { %v5581_v11 = vadd.f32 %v13258_v21, %v5449_v10  ;;  %v12031_v10 = vld [vmem:[%s12526_s30 + $0x280] sm:$0xff] }
 0x447   : > { %v4028_v13 = vpop.f32.mrf.mxu2  ;;  %v2163_v20 = vpop.f32.mrf.mxu0 }
 0x448   : > { %v5159_v14 = vpop.f32.mrf.mxu3  ;;  %v5709_v17 = vmax.f32 %v5581_v11, 0.0  ;;  %v4191_v19 = vadd.f32 %v4028_v13, %v3026_v12  ;;  %v3028_v50 = vpop.f32.mrf.mxu1  ;;  %v12047_v12 = vld [vmem:[%s14175_s3 + $0x58] sm:$0xff] }
 0x449   : > { %v3029_v27 = vadd.f32 %v3028_v50, %v2163_v20  ;;  %6622 = vmatpush.bf16.msra.mxu1 %v12047_v12 }
 0x44a   : > { %5838 = vst.msk [vmem:[#allocation2 + $0x340] sm:$0xff] %vm5733_vm1, %v5709_v17  ;;  %v5322_v24 = vadd.f32 %v5159_v14, %v4191_v19  ;;  %9733 = vmatmul.msk.bf16.gmra.mxu0 %vm1696_vm0, %v11893_v15 }
 0x44b   : > { %10069 = vmatmul.msk.bf16.gmra.mxu1 %vm1696_vm0, %v11825_v16 }
 0x44c   : > { %v5450_v25 = vmul.f32 0.00390625, %v5322_v24  ;;  %10541 = vmatmul.msk.bf16.gmra.mxu2 %vm1696_vm0, %v11961_v22 }
 0x44d   : > { %11013 = vmatmul.msk.bf16.gmra.mxu3 %vm1696_vm0, %v12029_v23 }
 0x44e   : > { %v5582_v26 = vadd.f32 %v13258_v21, %v5450_v25 }
 0x44f   : > { %v4031_v28 = vpop.f32.mrf.mxu2  ;;  %v2165_v32 = vpop.f32.mrf.mxu0 }
 0x450   : > { %v5162_v29 = vpop.f32.mrf.mxu3  ;;  %v5710_v30 = vmax.f32 %v5582_v26, 0.0  ;;  %v4192_v31 = vadd.f32 %v4031_v28, %v3029_v27  ;;  %v3030_v33 = vpop.f32.mrf.mxu1  ;;  %v5895_v27 = vld [vmem:[#allocation2 + $0x18] sm:$0xff]  ;;  %v5863_v28 = vld [vmem:[#allocation2 + $0x8] sm:$0xff] }
 0x451   : > { %v3031_v37 = vadd.f32 %v3030_v33, %v2165_v32  ;;  %v6258_v32 = vld [vmem:[#allocation2 + $0x38] sm:$0xff] }
 0x452   : > { %5839 = vst.msk [vmem:[#allocation2 + $0x348] sm:$0xff] %vm5733_vm1, %v5710_v30  ;;  %v5323_v34 = vadd.f32 %v5162_v29, %v4192_v31  ;;  %v6114_v31 = vld [vmem:[#allocation2 + $0x28] sm:$0xff] }
 0x454   : > { %v5451_v35 = vmul.f32 0.00390625, %v5323_v34 }
 0x456   : > { %v5583_v36 = vadd.f32 %v13258_v21, %v5451_v35 }
 0x457   : > { %v4033_v38 = vpop.f32.mrf.mxu2  ;;  %v2168_v44 = vpop.f32.mrf.mxu0 }
 0x458   : > { %v5164_v39 = vpop.f32.mrf.mxu3  ;;  %v5711_v42 = vmax.f32 %v5583_v36, 0.0  ;;  %v4193_v43 = vadd.f32 %v4033_v38, %v3031_v37  ;;  %v3033_v45 = vpop.f32.mrf.mxu1  ;;  %v5894_v37 = vld [vmem:[#allocation2 + $0x10] sm:$0xff]  ;;  %v5862_v38 = vld [vmem:[#allocation2] sm:$0xff] }
 0x459   : > { %v3034_v51 = vadd.f32 %v3033_v45, %v2168_v44 }
 0x45a   : > { %5840 = vst.msk [vmem:[#allocation2 + $0x350] sm:$0xff] %vm5733_vm1, %v5711_v42  ;;  %v5324_v48 = vadd.f32 %v5164_v39, %v4193_v43  ;;  %9734 = vmatmul.msk.bf16.gmra.mxu0 %vm1696_vm0, %v11894_v40  ;;  %v5912_v39 = vpack.c.bf16 %v5895_v27, %v5894_v37  ;;  %v5880_v40 = vpack.c.bf16 %v5863_v28, %v5862_v38  ;;  %v6257_v42 = vld [vmem:[#allocation2 + $0x30] sm:$0xff] }
 0x45b   : > { %10070 = vmatmul.msk.bf16.gmra.mxu1 %vm1696_vm0, %v11826_v41  ;;  %v6113_v41 = vld [vmem:[#allocation2 + $0x20] sm:$0xff]  ;;  %v6275_v45 = vpack.c.bf16 %v6258_v32, %v6257_v42 }
 0x45c   : > { %v5452_v49 = vmul.f32 0.00390625, %v5324_v48  ;;  %10542 = vmatmul.msk.bf16.gmra.mxu2 %vm1696_vm0, %v11962_v46  ;;  %v6131_v44 = vpack.c.bf16 %v6114_v31, %v6113_v41  ;;  %v6261_v31 = vld [vmem:[#allocation2 + $0x70] sm:$0xff] }
 0x45d   : > { %11014 = vmatmul.msk.bf16.gmra.mxu3 %vm1696_vm0, %v12030_v47 }
 0x45e   : > { %v5584_v18 = vadd.f32 %v13258_v21, %v5452_v49 }
 0x45f   : > { %v4036_v52 = vpop.f32.mrf.mxu2  ;;  %v2170_v56 = vpop.f32.mrf.mxu0 }
 0x460   : > { %v5167_v53 = vpop.f32.mrf.mxu3  ;;  %v5712_v54 = vmax.f32 %v5584_v18, 0.0  ;;  %v4194_v55 = vadd.f32 %v4036_v52, %v3034_v51  ;;  %v3035_v57 = vpop.f32.mrf.mxu1 }
 0x461   : > { %v3036_v0 = vadd.f32 %v3035_v57, %v2170_v56 }
 0x462   : > { %5841 = vst.msk [vmem:[#allocation2 + $0x358] sm:$0xff] %vm5733_vm1, %v5712_v54  ;;  %v5325_v58 = vadd.f32 %v5167_v53, %v4194_v55 }
 0x464   : > { %v5453_v62 = vmul.f32 0.00390625, %v5325_v58 }
 0x466   : > { %v5585_v63 = vadd.f32 %v13258_v21, %v5453_v62  ;;  %v6260_v62 = vld [vmem:[#allocation2 + $0x58] sm:$0xff] }
 0x467   : > { %v4038_v1 = vpop.f32.mrf.mxu2  ;;  %v2173_v7 = vpop.f32.mrf.mxu0 }
 0x468   : > { %v5169_v2 = vpop.f32.mrf.mxu3  ;;  %v5713_v5 = vmax.f32 %v5585_v63, 0.0  ;;  %v4195_v6 = vadd.f32 %v4038_v1, %v3036_v0  ;;  %v3038_v8 = vpop.f32.mrf.mxu1 }
 0x469   : > { %v3039_v15 = vadd.f32 %v3038_v8, %v2173_v7 }
 0x46a   : > { %5842 = vst.msk [vmem:[#allocation2 + $0x360] sm:$0xff] %vm5733_vm1, %v5713_v5  ;;  %v5326_v11 = vadd.f32 %v5169_v2, %v4195_v6  ;;  %9735 = vmatmul.msk.bf16.gmra.mxu0 %vm1696_vm0, %v11895_v3  ;;  %v6115_v3 = vld [vmem:[#allocation2 + $0x40] sm:$0xff] }
 0x46b   : > { %10071 = vmatmul.msk.bf16.gmra.mxu1 %vm1696_vm0, %v11827_v4  ;;  %v6259_v4 = vld [vmem:[#allocation2 + $0x50] sm:$0xff]  ;;  %v6132_v6 = vpack.c.bf16 %v6116_v61, %v6115_v3  ;;  %v12048_v3 = vld [vmem:[%s14175_s3 + $0x60] sm:$0xff] }
 0x46c   : > { %v5454_v13 = vmul.f32 0.00390625, %v5326_v11  ;;  %10543 = vmatmul.msk.bf16.gmra.mxu2 %vm1696_vm0, %v11963_v9  ;;  %v6276_v7 = vpack.c.bf16 %v6260_v62, %v6259_v4  ;;  %v6119_v62 = vld [vmem:[#allocation2 + $0x120] sm:$0xff] }
 0x46d   : > { %11015 = vmatmul.msk.bf16.gmra.mxu3 %vm1696_vm0, %v12031_v10  ;;  %v12044_v4 = vld [vmem:[%s14175_s3 + $0x40] sm:$0xff]  ;;  %6767 = vmatpush.bf16.msra.mxu2 %v12048_v3 }
 0x46e   : > { %v5586_v14 = vadd.f32 %v13258_v21, %v5454_v13  ;;  %6479 = vmatpush.bf16.msra.mxu0 %v12044_v4 }
 0x46f   : > { %v4041_v16 = vpop.f32.mrf.mxu2  ;;  %v2175_v50 = vpop.f32.mrf.mxu0 }
 0x470   : > { %v5172_v17 = vpop.f32.mrf.mxu3  ;;  %v5714_v19 = vmax.f32 %v5586_v14, 0.0  ;;  %v4196_v20 = vadd.f32 %v4041_v16, %v3039_v15  ;;  %v3040_v22 = vpop.f32.mrf.mxu1 }
 0x471   : > { %v3041_v26 = vadd.f32 %v3040_v22, %v2175_v50 }
 0x472   : > { %5843 = vst.msk [vmem:[#allocation2 + $0x368] sm:$0xff] %vm5733_vm1, %v5714_v19  ;;  %v5327_v23 = vadd.f32 %v5172_v17, %v4196_v20 }
 0x474   : > { %v5455_v24 = vmul.f32 0.00390625, %v5327_v23 }
 0x476   : > { %v5587_v25 = vadd.f32 %v13258_v21, %v5455_v24  ;;  %v6118_v24 = vld [vmem:[#allocation2 + $0x68] sm:$0xff] }
 0x477   : > { %v4043_v29 = vpop.f32.mrf.mxu2  ;;  %v2178_v35 = vpop.f32.mrf.mxu0 }
 0x478   : > { %v5174_v30 = vpop.f32.mrf.mxu3  ;;  %v5715_v33 = vmax.f32 %v5587_v25, 0.0  ;;  %v4197_v34 = vadd.f32 %v4043_v29, %v3041_v26  ;;  %v3043_v36 = vpop.f32.mrf.mxu1  ;;  %v6262_v25 = vld [vmem:[#allocation2 + $0x78] sm:$0xff] }
 0x479   : > { %v3044_v48 = vadd.f32 %v3043_v36, %v2178_v35 }
 0x47a   : > { %5844 = vst.msk [vmem:[#allocation2 + $0x370] sm:$0xff] %vm5733_vm1, %v5715_v33  ;;  %v5328_v43 = vadd.f32 %v5174_v30, %v4197_v34  ;;  %11028 = vmatmul.msk.bf16.vlgmr.msrb.gmra.mxu0 %vm5733_vm1, %v5912_v39  ;;  %v6117_v30 = vld [vmem:[#allocation2 + $0x60] sm:$0xff]  ;;  %v6277_v34 = vpack.c.bf16 %v6262_v25, %v6261_v31 }
 0x47b   : > { %11045 = vmatmul.msk.bf16.vlgmr.msrb.gmra.mxu1 %vm5733_vm1, %v5880_v40  ;;  %v6133_v33 = vpack.c.bf16 %v6118_v24, %v6117_v30  ;;  %v6266_v24 = vld [vmem:[#allocation2 + $0x158] sm:$0xff]  ;;  %v6265_v30 = vld [vmem:[#allocation2 + $0x150] sm:$0xff] }
 0x47c   : > { %v5456_v46 = vmul.f32 0.00390625, %v5328_v43  ;;  %11066 = vmatmul.msk.bf16.vlgmr.msrb.gmra.mxu2 %vm5733_vm1, %v6131_v44 }
 0x47d   : > { %11087 = vmatmul.msk.bf16.vlgmr.msrb.gmra.mxu3 %vm5733_vm1, %v6275_v45 }
 0x47e   : > { %v5588_v47 = vadd.f32 %v13258_v21, %v5456_v46 }
 0x47f   : > { %v4046_v49 = vpop.f32.mrf.mxu2  ;;  %v2180_v53 = vpop.f32.mrf.mxu0 }
 0x480   : > { %v5177_v18 = vpop.f32.mrf.mxu3  ;;  %v5716_v51 = vmax.f32 %v5588_v47, 0.0  ;;  %v4198_v52 = vadd.f32 %v4046_v49, %v3044_v48  ;;  %v3045_v54 = vpop.f32.mrf.mxu1  ;;  %v5901_v48 = vld [vmem:[#allocation2 + $0x118] sm:$0xff]  ;;  %v5869_v49 = vld [vmem:[#allocation2 + $0x108] sm:$0xff] }
 0x481   : > { %v3046_v58 = vadd.f32 %v3045_v54, %v2180_v53  ;;  %v6264_v53 = vld [vmem:[#allocation2 + $0x138] sm:$0xff] }
 0x482   : > { %5845 = vst.msk [vmem:[#allocation2 + $0x378] sm:$0xff] %vm5733_vm1, %v5716_v51  ;;  %v5329_v55 = vadd.f32 %v5177_v18, %v4198_v52  ;;  %v6120_v52 = vld [vmem:[#allocation2 + $0x128] sm:$0xff] }
 0x484   : > { %v5457_v56 = vmul.f32 0.00390625, %v5329_v55 }
 0x486   : > { %v5589_v57 = vadd.f32 %v13258_v21, %v5457_v56 }
 0x487   : > { %v4048_v59 = vpop.f32.mrf.mxu2  ;;  %v2183_v1 = vpop.f32.mrf.mxu0 }
 0x488   : > { %v5179_v60 = vpop.f32.mrf.mxu3  ;;  %v5717_v63 = vmax.f32 %v5589_v57, 0.0  ;;  %v4199_v0 = vadd.f32 %v4048_v59, %v3046_v58  ;;  %v3048_v2 = vpop.f32.mrf.mxu1  ;;  %v5900_v58 = vld [vmem:[#allocation2 + $0x110] sm:$0xff]  ;;  %v5868_v59 = vld [vmem:[#allocation2 + $0x100] sm:$0xff] }
 0x489   : > { %v3049_v10 = vadd.f32 %v3048_v2, %v2183_v1  ;;  %v5883_v61 = vpack.c.bf16 %v5869_v49, %v5868_v59  ;;  %v6134_v1 = vpack.c.bf16 %v6120_v52, %v6119_v62  ;;  %v6124_v49 = vld [vmem:[#allocation2 + $0x168] sm:$0xff] }
 0x48a   : > { %5846 = vst.msk [vmem:[#allocation2 + $0x380] sm:$0xff] %vm5733_vm1, %v5717_v63  ;;  %v5330_v5 = vadd.f32 %v5179_v60, %v4199_v0  ;;  %11029 = vmatmul.msk.bf16.gmra.mxu0 %vm5733_vm1, %v6275_v45  ;;  %v5915_v60 = vpack.c.bf16 %v5901_v48, %v5900_v58  ;;  %v6263_v63 = vld [vmem:[#allocation2 + $0x130] sm:$0xff] }
 0x48b   : > { %11046 = vmatmul.msk.bf16.gmra.mxu1 %vm5733_vm1, %v6131_v44  ;;  %v6278_v2 = vpack.c.bf16 %v6264_v53, %v6263_v63 }
 0x48c   : > { %v5458_v8 = vmul.f32 0.00390625, %v5330_v5  ;;  %11067 = vmatmul.msk.bf16.gmra.mxu2 %vm5733_vm1, %v6132_v6  ;;  %v12050_v5 = vld [vmem:[%s14175_s3 + $0x70] sm:$0xff] }
 0x48d   : > { %11088 = vmatmul.msk.bf16.gmra.mxu3 %vm5733_vm1, %v6276_v7 }
 0x48e   : > { %v5590_v9 = vadd.f32 %v13258_v21, %v5458_v8  ;;  %6911 = vmatpush.bf16.msra.mxu3 %v12050_v5 }
 0x48f   : > { %v4051_v11 = vpop.f32.mrf.mxu2  ;;  %v2185_v15 = vpop.f32.mrf.mxu0 }
 0x490   : > { %v5182_v12 = vpop.f32.mrf.mxu3  ;;  %v5718_v13 = vmax.f32 %v5590_v9, 0.0  ;;  %v4200_v14 = vadd.f32 %v4051_v11, %v3049_v10  ;;  %v3050_v16 = vpop.f32.mrf.mxu1 }
 0x491   : > { %v3051_v50 = vadd.f32 %v3050_v16, %v2185_v15  ;;  %v12046_v16 = vld [vmem:[%s14175_s3 + $0x50] sm:$0xff] }
 0x492   : > { %5847 = vst.msk [vmem:[#allocation2 + $0x388] sm:$0xff] %vm5733_vm1, %v5718_v13  ;;  %v5331_v17 = vadd.f32 %v5182_v12, %v4200_v14  ;;  %6623 = vmatpush.bf16.msra.mxu1 %v12046_v16 }
 0x494   : > { %v5459_v19 = vmul.f32 0.00390625, %v5331_v17 }
 0x496   : > { %v5591_v20 = vadd.f32 %v13258_v21, %v5459_v19 }
 0x497   : > { %v4053_v22 = vpop.f32.mrf.mxu2  ;;  %v2188_v28 = vpop.f32.mrf.mxu0 }
 0x498   : > { %v5184_v23 = vpop.f32.mrf.mxu3  ;;  %v5719_v26 = vmax.f32 %v5591_v20, 0.0  ;;  %v4201_v27 = vadd.f32 %v4053_v22, %v3051_v50  ;;  %v3053_v29 = vpop.f32.mrf.mxu1 }
 0x499   : > { %v3054_v37 = vadd.f32 %v3053_v29, %v2188_v28  ;;  %v6121_v29 = vld [vmem:[#allocation2 + $0x140] sm:$0xff] }
 0x49a   : > { %5848 = vst.msk [vmem:[#allocation2 + $0x390] sm:$0xff] %vm5733_vm1, %v5719_v26  ;;  %v5332_v32 = vadd.f32 %v5184_v23, %v4201_v27  ;;  %11030 = vmatmul.msk.bf16.gmra.mxu0 %vm5733_vm1, %v6276_v7  ;;  %v6122_v23 = vld [vmem:[#allocation2 + $0x148] sm:$0xff] }
 0x49b   : > { %11047 = vmatmul.msk.bf16.gmra.mxu1 %vm5733_vm1, %v6132_v6 }
 0x49c   : > { %v5460_v35 = vmul.f32 0.00390625, %v5332_v32  ;;  %11068 = vmatmul.msk.bf16.gmra.mxu2 %vm5733_vm1, %v6133_v33  ;;  %v6135_v32 = vpack.c.bf16 %v6122_v23, %v6121_v29  ;;  %v6279_v33 = vpack.c.bf16 %v6266_v24, %v6265_v30  ;;  %v6125_v24 = vld [vmem:[#allocation2 + $0x220] sm:$0xff] }
 0x49d   : > { %11089 = vmatmul.msk.bf16.gmra.mxu3 %vm5733_vm1, %v6277_v34 }
 0x49e   : > { %v5592_v36 = vadd.f32 %v13258_v21, %v5460_v35 }
 0x49f   : > { %v4056_v38 = vpop.f32.mrf.mxu2  ;;  %v2190_v42 = vpop.f32.mrf.mxu0 }
 0x4a0   : > { %v5187_v39 = vpop.f32.mrf.mxu3  ;;  %v5720_v40 = vmax.f32 %v5592_v36, 0.0  ;;  %v4202_v41 = vadd.f32 %v4056_v38, %v3054_v37  ;;  %v3055_v43 = vpop.f32.mrf.mxu1 }
 0x4a1   : > { %v3056_v47 = vadd.f32 %v3055_v43, %v2190_v42 }
 0x4a2   : > { %5849 = vst.msk [vmem:[#allocation2 + $0x398] sm:$0xff] %vm5733_vm1, %v5720_v40  ;;  %v5333_v44 = vadd.f32 %v5187_v39, %v4202_v41 }
 0x4a4   : > { %v5461_v45 = vmul.f32 0.00390625, %v5333_v44 }
 0x4a6   : > { %v5593_v46 = vadd.f32 %v13258_v21, %v5461_v45 }
 0x4a7   : > { %v4058_v18 = vpop.f32.mrf.mxu2  ;;  %v2193_v56 = vpop.f32.mrf.mxu0 }
 0x4a8   : > { %v5189_v51 = vpop.f32.mrf.mxu3  ;;  %v5721_v54 = vmax.f32 %v5593_v46, 0.0  ;;  %v4203_v55 = vadd.f32 %v4058_v18, %v3056_v47  ;;  %v3058_v57 = vpop.f32.mrf.mxu1  ;;  %v6268_v18 = vld [vmem:[#allocation2 + $0x178] sm:$0xff] }
 0x4a9   : > { %v3059_v8 = vadd.f32 %v3058_v57, %v2193_v56  ;;  %v6267_v56 = vld [vmem:[#allocation2 + $0x170] sm:$0xff] }
 0x4aa   : > { %5850 = vst.msk [vmem:[#allocation2 + $0x3a0] sm:$0xff] %vm5733_vm1, %v5721_v54  ;;  %v5334_v0 = vadd.f32 %v5189_v51, %v4203_v55  ;;  %11031 = vmatmul.msk.bf16.gmra.mxu0 %vm5733_vm1, %v5915_v60  ;;  %v6123_v55 = vld [vmem:[#allocation2 + $0x160] sm:$0xff]  ;;  %v6280_v59 = vpack.c.bf16 %v6268_v18, %v6267_v56  ;;  %v12057_v56 = vld [vmem:[%s14175_s3 + $0xa8] sm:$0xff] }
 0x4ab   : > { %11048 = vmatmul.msk.bf16.gmra.mxu1 %vm5733_vm1, %v5883_v61  ;;  %v6136_v58 = vpack.c.bf16 %v6124_v49, %v6123_v55  ;;  %v6127_v18 = vld [vmem:[#allocation2 + $0x240] sm:$0xff]  ;;  %7342 = vmatpush.bf16.msrb.mxu2 %v12057_v56 }
 0x4ac   : > { %v5462_v6 = vmul.f32 0.00390625, %v5334_v0  ;;  %11069 = vmatmul.msk.bf16.gmra.mxu2 %vm5733_vm1, %v6134_v1 }
 0x4ad   : > { %11090 = vmatmul.msk.bf16.gmra.mxu3 %vm5733_vm1, %v6278_v2 }
 0x4ae   : > { %v5594_v7 = vadd.f32 %v13258_v21, %v5462_v6 }
 0x4af   : > { %v4061_v9 = vpop.f32.mrf.mxu2  ;;  %v2195_v13 = vpop.f32.mrf.mxu0 }
 0x4b0   : > { %v5192_v10 = vpop.f32.mrf.mxu3  ;;  %v5722_v11 = vmax.f32 %v5594_v7, 0.0  ;;  %v4204_v12 = vadd.f32 %v4061_v9, %v3059_v8  ;;  %v3060_v14 = vpop.f32.mrf.mxu1  ;;  %v5907_v9 = vld [vmem:[#allocation2 + $0x218] sm:$0xff] }
 0x4b1   : > { %v3061_v20 = vadd.f32 %v3060_v14, %v2195_v13  ;;  %v6126_v13 = vld [vmem:[#allocation2 + $0x228] sm:$0xff]  ;;  %v6270_v14 = vld [vmem:[#allocation2 + $0x238] sm:$0xff] }
 0x4b2   : > { %5851 = vst.msk [vmem:[#allocation2 + $0x3a8] sm:$0xff] %vm5733_vm1, %v5722_v11  ;;  %v5335_v15 = vadd.f32 %v5192_v10, %v4204_v12  ;;  %v5875_v10 = vld [vmem:[#allocation2 + $0x208] sm:$0xff] }
 0x4b4   : > { %v5463_v17 = vmul.f32 0.00390625, %v5335_v15 }
 0x4b6   : > { %v5595_v19 = vadd.f32 %v13258_v21, %v5463_v17 }
 0x4b7   : > { %v4063_v50 = vpop.f32.mrf.mxu2  ;;  %v2198_v27 = vpop.f32.mrf.mxu0 }
 0x4b8   : > { %v5194_v22 = vpop.f32.mrf.mxu3  ;;  %v5723_v25 = vmax.f32 %v5595_v19, 0.0  ;;  %v4205_v26 = vadd.f32 %v4063_v50, %v3061_v20  ;;  %v3063_v28 = vpop.f32.mrf.mxu1  ;;  %v5906_v20 = vld [vmem:[#allocation2 + $0x210] sm:$0xff]  ;;  %v5874_v50 = vld [vmem:[#allocation2 + $0x200] sm:$0xff] }
 0x4b9   : > { %v3064_v36 = vadd.f32 %v3063_v28, %v2198_v27  ;;  %v5886_v23 = vpack.c.bf16 %v5875_v10, %v5874_v50  ;;  %v6137_v27 = vpack.c.bf16 %v6126_v13, %v6125_v24  ;;  %v6130_v10 = vld [vmem:[#allocation2 + $0x268] sm:$0xff] }
 0x4ba   : > { %5852 = vst.msk [vmem:[#allocation2 + $0x3b0] sm:$0xff] %vm5733_vm1, %v5723_v25  ;;  %v5336_v31 = vadd.f32 %v5194_v22, %v4205_v26  ;;  %11032 = vmatmul.msk.bf16.gmra.mxu0 %vm5733_vm1, %v6278_v2  ;;  %v5918_v22 = vpack.c.bf16 %v5907_v9, %v5906_v20  ;;  %v6269_v25 = vld [vmem:[#allocation2 + $0x230] sm:$0xff] }
 0x4bb   : > { %11049 = vmatmul.msk.bf16.gmra.mxu1 %vm5733_vm1, %v6134_v1  ;;  %v6281_v28 = vpack.c.bf16 %v6270_v14, %v6269_v25 }
 0x4bc   : > { %v5464_v34 = vmul.f32 0.00390625, %v5336_v31  ;;  %11070 = vmatmul.msk.bf16.gmra.mxu2 %vm5733_vm1, %v6135_v32 }
 0x4bd   : > { %11091 = vmatmul.msk.bf16.gmra.mxu3 %vm5733_vm1, %v6279_v33 }
 0x4be   : > { %v5596_v35 = vadd.f32 %v13258_v21, %v5464_v34 }
 0x4bf   : > { %v4066_v37 = vpop.f32.mrf.mxu2  ;;  %v2200_v41 = vpop.f32.mrf.mxu0 }
 0x4c0   : > { %v5197_v38 = vpop.f32.mrf.mxu3  ;;  %v5724_v39 = vmax.f32 %v5596_v35, 0.0  ;;  %v4206_v40 = vadd.f32 %v4066_v37, %v3064_v36  ;;  %v3065_v42 = vpop.f32.mrf.mxu1 }
 0x4c1   : > { %v3066_v46 = vadd.f32 %v3065_v42, %v2200_v41 }
 0x4c2   : > { %5853 = vst.msk [vmem:[#allocation2 + $0x3b8] sm:$0xff] %vm5733_vm1, %v5724_v39  ;;  %v5337_v43 = vadd.f32 %v5197_v38, %v4206_v40 }
 0x4c4   : > { %v5465_v44 = vmul.f32 0.00390625, %v5337_v43 }
 0x4c6   : > { %v5597_v45 = vadd.f32 %v13258_v21, %v5465_v44  ;;  %v6128_v44 = vld [vmem:[#allocation2 + $0x248] sm:$0xff] }
 0x4c7   : > { %v4068_v47 = vpop.f32.mrf.mxu2  ;;  %v2203_v53 = vpop.f32.mrf.mxu0 }
 0x4c8   : > { %v5199_v48 = vpop.f32.mrf.mxu3  ;;  %v5725_v51 = vmax.f32 %v5597_v45, 0.0  ;;  %v4207_v52 = vadd.f32 %v4068_v47, %v3066_v46  ;;  %v3068_v54 = vpop.f32.mrf.mxu1  ;;  %v6272_v45 = vld [vmem:[#allocation2 + $0x258] sm:$0xff] }
 0x4c9   : > { %v3069_v62 = vadd.f32 %v3068_v54, %v2203_v53  ;;  %v6138_v53 = vpack.c.bf16 %v6128_v44, %v6127_v18 }
 0x4ca   : > { %5854 = vst.msk [vmem:[#allocation2 + $0x3c0] sm:$0xff] %vm5733_vm1, %v5725_v51  ;;  %v5338_v57 = vadd.f32 %v5199_v48, %v4207_v52  ;;  %11033 = vmatmul.msk.bf16.gmra.mxu0 %vm5733_vm1, %v6279_v33  ;;  %v6271_v51 = vld [vmem:[#allocation2 + $0x250] sm:$0xff] }
 0x4cb   : > { %11050 = vmatmul.msk.bf16.gmra.mxu1 %vm5733_vm1, %v6135_v32  ;;  %v6282_v54 = vpack.c.bf16 %v6272_v45, %v6271_v51 }
 0x4cc   : > { %v5466_v60 = vmul.f32 0.00390625, %v5338_v57  ;;  %11071 = vmatmul.msk.bf16.gmra.mxu2 %vm5733_vm1, %v6136_v58  ;;  %v12053_v57 = vld [vmem:[%s14175_s3 + $0x88] sm:$0xff]  ;;  %v12059_v58 = vld [vmem:[%s14175_s3 + $0xb8] sm:$0xff] }
 0x4cd   : > { %11092 = vmatmul.msk.bf16.gmra.mxu3 %vm5733_vm1, %v6280_v59  ;;  %7054 = vmatpush.bf16.msrb.mxu0 %v12053_v57 }
 0x4ce   : > { %v5598_v61 = vadd.f32 %v13258_v21, %v5466_v60  ;;  %7486 = vmatpush.bf16.msrb.mxu3 %v12059_v58 }
 0x4cf   : > { %v4071_v63 = vpop.f32.mrf.mxu2  ;;  %v2205_v3 = vpop.f32.mrf.mxu0 }
 0x4d0   : > { %v5202_v0 = vpop.f32.mrf.mxu3  ;;  %v5726_v1 = vmax.f32 %v5598_v61, 0.0  ;;  %v4208_v2 = vadd.f32 %v4071_v63, %v3069_v62  ;;  %v3070_v4 = vpop.f32.mrf.mxu1 }
 0x4d1   : > { %v3071_v8 = vadd.f32 %v3070_v4, %v2205_v3  ;;  %v12055_v4 = vld [vmem:[%s14175_s3 + $0x98] sm:$0xff] }
 0x4d2   : > { %5855 = vst.msk [vmem:[#allocation2 + $0x3c8] sm:$0xff] %vm5733_vm1, %v5726_v1  ;;  %v5339_v5 = vadd.f32 %v5202_v0, %v4208_v2  ;;  %7198 = vmatpush.bf16.msrb.mxu1 %v12055_v4 }
 0x4d4   : > { %v5467_v6 = vmul.f32 0.00390625, %v5339_v5 }
 0x4d6   : > { %v5599_v7 = vadd.f32 %v13258_v21, %v5467_v6 }
 0x4d7   : > { %v4073_v11 = vpop.f32.mrf.mxu2  ;;  %v2208_v17 = vpop.f32.mrf.mxu0 }
 0x4d8   : > { %v5204_v12 = vpop.f32.mrf.mxu3  ;;  %v5727_v15 = vmax.f32 %v5599_v7, 0.0  ;;  %v4209_v16 = vadd.f32 %v4073_v11, %v3071_v8  ;;  %v3073_v19 = vpop.f32.mrf.mxu1  ;;  %v6274_v11 = vld [vmem:[#allocation2 + $0x278] sm:$0xff] }
 0x4d9   : > { %v3074_v31 = vadd.f32 %v3073_v19, %v2208_v17  ;;  %v6129_v17 = vld [vmem:[#allocation2 + $0x260] sm:$0xff]  ;;  %v6273_v19 = vld [vmem:[#allocation2 + $0x270] sm:$0xff] }
 0x4da   : > { %5856 = vst.msk [vmem:[#allocation2 + $0x3d0] sm:$0xff] %vm5733_vm1, %v5727_v15  ;;  %v5340_v26 = vadd.f32 %v5204_v12, %v4209_v16  ;;  %11034 = vmatmul.msk.bf16.gmra.mxu0 %vm5733_vm1, %v5918_v22  ;;  %v6139_v50 = vpack.c.bf16 %v6130_v10, %v6129_v17  ;;  %v6283_v22 = vpack.c.bf16 %v6274_v11, %v6273_v19  ;;  %v6838_v17 = vld [vmem:[#allocation2 + $0xf8] sm:$0xff] }
 0x4db   : > { %11051 = vmatmul.msk.bf16.gmra.mxu1 %vm5733_vm1, %v5886_v23 }
 0x4dc   : > { %v5468_v29 = vmul.f32 0.00390625, %v5340_v26  ;;  %11072 = vmatmul.msk.bf16.gmra.mxu2 %vm5733_vm1, %v6137_v27 }
 0x4dd   : > { %11093 = vmatmul.msk.bf16.gmra.mxu3 %vm5733_vm1, %v6281_v28 }
 0x4de   : > { %v5600_v30 = vadd.f32 %v13258_v21, %v5468_v29 }
 0x4df   : > { %v4076_v32 = vpop.f32.mrf.mxu2  ;;  %v2210_v36 = vpop.f32.mrf.mxu0 }
 0x4e0   : > { %v5207_v33 = vpop.f32.mrf.mxu3  ;;  %v5728_v34 = vmax.f32 %v5600_v30, 0.0  ;;  %v4210_v35 = vadd.f32 %v4076_v32, %v3074_v31  ;;  %v3075_v37 = vpop.f32.mrf.mxu1 }
 0x4e1   : > { %v3076_v41 = vadd.f32 %v3075_v37, %v2210_v36  ;;  %v6690_v37 = vld [vmem:[#allocation2 + $0xa8] sm:$0xff] }
 0x4e2   : > { %5857 = vst.msk [vmem:[#allocation2 + $0x3d8] sm:$0xff] %vm5733_vm1, %v5728_v34  ;;  %v5341_v38 = vadd.f32 %v5207_v33, %v4210_v35  ;;  %v6402_v33 = vld [vmem:[#allocation2 + $0x88] sm:$0xff]  ;;  %v6546_v34 = vld [vmem:[#allocation2 + $0x98] sm:$0xff] }
 0x4e4   : > { %v5469_v39 = vmul.f32 0.00390625, %v5341_v38  ;;  %v6834_v38 = vld [vmem:[#allocation2 + $0xb8] sm:$0xff] }
 0x4e6   : > { %v5601_v40 = vadd.f32 %v13258_v21, %v5469_v39 }
 0x4e7   : > { %v4078_v42 = vpop.f32.mrf.mxu2  ;;  %v2213_v48 = vpop.f32.mrf.mxu0 }
 0x4e8   : > { %v5209_v43 = vpop.f32.mrf.mxu3  ;;  %v5729_v46 = vmax.f32 %v5601_v40, 0.0  ;;  %v4211_v47 = vadd.f32 %v4078_v42, %v3076_v41  ;;  %v3078_v49 = vpop.f32.mrf.mxu1  ;;  %v6401_v41 = vld [vmem:[#allocation2 + $0x80] sm:$0xff]  ;;  %v6545_v42 = vld [vmem:[#allocation2 + $0x90] sm:$0xff] }
 0x4e9   : > { %v3079_v60 = vadd.f32 %v3078_v49, %v2213_v48  ;;  %v6419_v44 = vpack.c.bf16 %v6402_v33, %v6401_v41  ;;  %v6563_v45 = vpack.c.bf16 %v6546_v34, %v6545_v42  ;;  %v6696_v42 = vld [vmem:[#allocation2 + $0x1a8] sm:$0xff] }
 0x4ea   : > { %5858 = vst.msk [vmem:[#allocation2 + $0x3e0] sm:$0xff] %vm5733_vm1, %v5729_v46  ;;  %v5342_v52 = vadd.f32 %v5209_v43, %v4211_v47  ;;  %11035 = vmatmul.msk.bf16.gmra.mxu0 %vm5733_vm1, %v6281_v28  ;;  %v6689_v46 = vld [vmem:[#allocation2 + $0xa0] sm:$0xff]  ;;  %v6833_v47 = vld [vmem:[#allocation2 + $0xb0] sm:$0xff] }
 0x4eb   : > { %11052 = vmatmul.msk.bf16.gmra.mxu1 %vm5733_vm1, %v6137_v27  ;;  %v6707_v49 = vpack.c.bf16 %v6690_v37, %v6689_v46  ;;  %v6851_v18 = vpack.c.bf16 %v6834_v38, %v6833_v47  ;;  %v12052_v37 = vld [vmem:[%s14175_s3 + $0x80] sm:$0xff]  ;;  %v12058_v38 = vld [vmem:[%s14175_s3 + $0xb0] sm:$0xff] }
 0x4ec   : > { %v5470_v55 = vmul.f32 0.00390625, %v5342_v52  ;;  %11073 = vmatmul.msk.bf16.gmra.mxu2 %vm5733_vm1, %v6138_v53  ;;  %7055 = vmatpush.bf16.msrb.mxu0 %v12052_v37  ;;  %v6407_v47 = vld [vmem:[#allocation2 + $0x180] sm:$0xff] }
 0x4ed   : > { %11094 = vmatmul.msk.bf16.gmra.mxu3 %vm5733_vm1, %v6282_v54  ;;  %v6699_v37 = vld [vmem:[#allocation2 + $0x1e0] sm:$0xff] }
 0x4ee   : > { %v5602_v59 = vadd.f32 %v13258_v21, %v5470_v55  ;;  %7487 = vmatpush.bf16.msrb.mxu3 %v12058_v38  ;;  %v6843_v38 = vld [vmem:[#allocation2 + $0x1f0] sm:$0xff] }
 0x4ef   : > { %v4081_v61 = vpop.f32.mrf.mxu2  ;;  %v2215_v1 = vpop.f32.mrf.mxu0 }
 0x4f0   : > { %v5212_v62 = vpop.f32.mrf.mxu3  ;;  %v5730_v63 = vmax.f32 %v5602_v59, 0.0  ;;  %v4212_v0 = vadd.f32 %v4081_v61, %v3079_v60  ;;  %v3080_v2 = vpop.f32.mrf.mxu1  ;;  %v6692_v60 = vld [vmem:[#allocation2 + $0xc8] sm:$0xff]  ;;  %v6836_v61 = vld [vmem:[#allocation2 + $0xd8] sm:$0xff] }
 0x4f1   : > { %v3081_v7 = vadd.f32 %v3080_v2, %v2215_v1  ;;  %v6691_v2 = vld [vmem:[#allocation2 + $0xc0] sm:$0xff] }
 0x4f2   : > { %5859 = vst.msk [vmem:[#allocation2 + $0x3e8] sm:$0xff] %vm5733_vm1, %v5730_v63  ;;  %v5343_v3 = vadd.f32 %v5212_v62, %v4212_v0 }
 0x4f4   : > { %v5471_v5 = vmul.f32 0.00390625, %v5343_v3  ;;  %v6835_v3 = vld [vmem:[#allocation2 + $0xd0] sm:$0xff] }
 0x4f6   : > { %v5603_v6 = vadd.f32 %v13258_v21, %v5471_v5  ;;  %v6708_v5 = vpack.c.bf16 %v6692_v60, %v6691_v2 }
 0x4f7   : > { %v4083_v8 = vpop.f32.mrf.mxu2  ;;  %v5974_v14 = vpop.f32.mrf.mxu0 }
 0x4f8   : > { %v5214_v9 = vpop.f32.mrf.mxu3  ;;  %v5731_v12 = vmax.f32 %v5603_v6, 0.0  ;;  %v4213_v13 = vadd.f32 %v4083_v8, %v3081_v7  ;;  %v6067_v15 = vpop.f32.mrf.mxu1  ;;  %v6852_v6 = vpack.c.bf16 %v6836_v61, %v6835_v3 }
 0x4f9   : > { %v6068_v16 = vadd.f32 %v6067_v15, %v5974_v14 }
 0x4fa   : > { %5860 = vst.msk [vmem:[#allocation2 + $0x3f0] sm:$0xff] %vm5733_vm1, %v5731_v12  ;;  %v5344_v20 = vadd.f32 %v5214_v9, %v4213_v13  ;;  %11036 = vmatmul.msk.bf16.gmra.mxu0 %vm5733_vm1, %v6282_v54 }
 0x4fb   : > { %11053 = vmatmul.msk.bf16.gmra.mxu1 %vm5733_vm1, %v6138_v53 }
 0x4fc   : > { %v5472_v23 = vmul.f32 0.00390625, %v5344_v20  ;;  %11074 = vmatmul.msk.bf16.gmra.mxu2 %vm5733_vm1, %v6139_v50 }
 0x4fd   : > { %11095 = vmatmul.msk.bf16.gmra.mxu3 %vm5733_vm1, %v6283_v22 }
 0x4fe   : > { %v5604_v24 = vadd.f32 %v13258_v21, %v5472_v23  ;;  %v6693_v23 = vld [vmem:[#allocation2 + $0xe0] sm:$0xff] }
 0x4ff   : > { %v6193_v25 = vpop.f32.mrf.mxu2  ;;  %v5976_v29 = vpop.f32.mrf.mxu0 }
 0x500   : > { %v6337_v26 = vpop.f32.mrf.mxu3  ;;  %v5732_v27 = vmax.f32 %v5604_v24, 0.0  ;;  %v6238_v28 = vadd.f32 %v6193_v25, %v6068_v16  ;;  %v6069_v30 = vpop.f32.mrf.mxu1  ;;  %v6694_v16 = vld [vmem:[#allocation2 + $0xe8] sm:$0xff]  ;;  %v6837_v24 = vld [vmem:[#allocation2 + $0xf0] sm:$0xff] }
 0x501   : > { %v6070_v31 = vadd.f32 %v6069_v30, %v5976_v29 }
 0x502   : > { %5861 = vst.msk [vmem:[#allocation2 + $0x3f8] sm:$0xff] %vm5733_vm1, %v5732_v27  ;;  %v13406_v32 = vadd.f32 %v6337_v26, %v6238_v28  ;;  %v6709_v26 = vpack.c.bf16 %v6694_v16, %v6693_v23  ;;  %v6853_v27 = vpack.c.bf16 %v6838_v17, %v6837_v24 }
 0x507   : > { %v6195_v35 = vpop.f32.mrf.mxu2  ;;  %v5979_v40 = vpop.f32.mrf.mxu0 }
 0x508   : > { %v6339_v36 = vpop.f32.mrf.mxu3  ;;  %v6239_v39 = vadd.f32 %v6195_v35, %v6070_v31  ;;  %v6072_v21 = vpop.f32.mrf.mxu1 }
 0x509   : > { %v6073_v43 = vadd.f32 %v6072_v21, %v5979_v40  ;;  %v6552_v40 = vld [vmem:[#allocation2 + $0x198] sm:$0xff] }
 0x50a   : > { %v13408_v48 = vadd.f32 %v6339_v36, %v6239_v39  ;;  %11108 = vmatmul.msk.bf16.vlgmr.msra.gmra.mxu0 %vm5733_vm1, %v6419_v44  ;;  %v12056_v36 = vld [vmem:[%s14175_s3 + $0xa0] sm:$0xff]  ;;  %v6408_v39 = vld [vmem:[#allocation2 + $0x188] sm:$0xff] }
 0x50b   : > { %11129 = vmatmul.msk.bf16.vlgmr.msra.gmra.mxu1 %vm5733_vm1, %v6563_v45  ;;  %7343 = vmatpush.bf16.msrb.mxu2 %v12056_v36 }
 0x50c   : > { %11150 = vmatmul.msk.bf16.vlgmr.msra.gmra.mxu2 %vm5733_vm1, %v6707_v49 }
 0x50d   : > { %11171 = vmatmul.msk.bf16.vlgmr.msra.gmra.mxu3 %vm5733_vm1, %v6851_v18 }
 0x50f   : > { %v6198_v51 = vpop.f32.mrf.mxu2  ;;  %v5981_v54 = vpop.f32.mrf.mxu0 }
 0x510   : > { %v6342_v52 = vpop.f32.mrf.mxu3  ;;  %v6240_v53 = vadd.f32 %v6198_v51, %v6073_v43  ;;  %v6074_v55 = vpop.f32.mrf.mxu1  ;;  %v6840_v43 = vld [vmem:[#allocation2 + $0x1b8] sm:$0xff]  ;;  %v6422_v51 = vpack.c.bf16 %v6408_v39, %v6407_v47 }
 0x511   : > { %v6075_v56 = vadd.f32 %v6074_v55, %v5981_v54  ;;  %v6839_v54 = vld [vmem:[#allocation2 + $0x1b0] sm:$0xff] }
 0x512   : > { %v13414_v57 = vadd.f32 %v6342_v52, %v6240_v53  ;;  %v6695_v53 = vld [vmem:[#allocation2 + $0x1a0] sm:$0xff] }
 0x517   : > { %v6200_v58 = vpop.f32.mrf.mxu2  ;;  %v5984_v63 = vpop.f32.mrf.mxu0 }
 0x518   : > { %v6344_v59 = vpop.f32.mrf.mxu3  ;;  %v6241_v62 = vadd.f32 %v6200_v58, %v6075_v56  ;;  %v6077_v0 = vpop.f32.mrf.mxu1  ;;  %v6710_v56 = vpack.c.bf16 %v6696_v42, %v6695_v53  ;;  %v6854_v58 = vpack.c.bf16 %v6840_v43, %v6839_v54  ;;  %v6702_v53 = vld [vmem:[#allocation2 + $0x2a8] sm:$0xff]  ;;  %v6846_v54 = vld [vmem:[#allocation2 + $0x2b8] sm:$0xff] }
 0x519   : > { %v6078_v1 = vadd.f32 %v6077_v0, %v5984_v63 }
 0x51a   : > { %v13416_v4 = vadd.f32 %v6344_v59, %v6241_v62  ;;  %11109 = vmatmul.msk.bf16.gmra.mxu0 %vm5733_vm1, %v6707_v49  ;;  %v6551_v49 = vld [vmem:[#allocation2 + $0x190] sm:$0xff] }
 0x51b   : > { %11130 = vmatmul.msk.bf16.gmra.mxu1 %vm5733_vm1, %v6851_v18  ;;  %v6566_v52 = vpack.c.bf16 %v6552_v40, %v6551_v49  ;;  %v12054_v59 = vld [vmem:[%s14175_s3 + $0x90] sm:$0xff]  ;;  %v6414_v49 = vld [vmem:[#allocation2 + $0x288] sm:$0xff] }
 0x51c   : > { %11151 = vmatmul.msk.bf16.gmra.mxu2 %vm5733_vm1, %v6708_v5  ;;  %7199 = vmatpush.bf16.msrb.mxu1 %v12054_v59 }
 0x51d   : > { %11172 = vmatmul.msk.bf16.gmra.mxu3 %vm5733_vm1, %v6852_v6 }
 0x51f   : > { %v6203_v7 = vpop.f32.mrf.mxu2  ;;  %v5986_v10 = vpop.f32.mrf.mxu0 }
 0x520   : > { %v6347_v8 = vpop.f32.mrf.mxu3  ;;  %v6242_v9 = vadd.f32 %v6203_v7, %v6078_v1  ;;  %v6079_v11 = vpop.f32.mrf.mxu1  ;;  %v6842_v7 = vld [vmem:[#allocation2 + $0x1d8] sm:$0xff] }
 0x521   : > { %v6080_v12 = vadd.f32 %v6079_v11, %v5986_v10 }
 0x522   : > { %v13422_v13 = vadd.f32 %v6347_v8, %v6242_v9 }
 0x527   : > { %v6205_v14 = vpop.f32.mrf.mxu2  ;;  %v5989_v20 = vpop.f32.mrf.mxu0 }
 0x528   : > { %v6349_v15 = vpop.f32.mrf.mxu3  ;;  %v6243_v19 = vadd.f32 %v6205_v14, %v6080_v12  ;;  %v6082_v50 = vpop.f32.mrf.mxu1  ;;  %v6697_v12 = vld [vmem:[#allocation2 + $0x1c0] sm:$0xff]  ;;  %v6841_v14 = vld [vmem:[#allocation2 + $0x1d0] sm:$0xff] }
 0x529   : > { %v6083_v22 = vadd.f32 %v6082_v50, %v5989_v20  ;;  %v6855_v17 = vpack.c.bf16 %v6842_v7, %v6841_v14 }
 0x52a   : > { %v13424_v25 = vadd.f32 %v6349_v15, %v6243_v19  ;;  %11110 = vmatmul.msk.bf16.gmra.mxu0 %vm5733_vm1, %v6708_v5 }
 0x52b   : > { %11131 = vmatmul.msk.bf16.gmra.mxu1 %vm5733_vm1, %v6852_v6  ;;  %v6698_v6 = vld [vmem:[#allocation2 + $0x1c8] sm:$0xff] }
 0x52c   : > { %11152 = vmatmul.msk.bf16.gmra.mxu2 %vm5733_vm1, %v6709_v26  ;;  %v6711_v16 = vpack.c.bf16 %v6698_v6, %v6697_v12 }
 0x52d   : > { %11173 = vmatmul.msk.bf16.gmra.mxu3 %vm5733_vm1, %v6853_v27 }
 0x52f   : > { %v6208_v28 = vpop.f32.mrf.mxu2  ;;  %v5991_v31 = vpop.f32.mrf.mxu0 }
 0x530   : > { %v6352_v29 = vpop.f32.mrf.mxu3  ;;  %v6244_v30 = vadd.f32 %v6208_v28, %v6083_v22  ;;  %v6084_v33 = vpop.f32.mrf.mxu1 }
 0x531   : > { %v6085_v34 = vadd.f32 %v6084_v33, %v5991_v31 }
 0x532   : > { %v13430_v35 = vadd.f32 %v6352_v29, %v6244_v30  ;;  %v6700_v29 = vld [vmem:[#allocation2 + $0x1e8] sm:$0xff]  ;;  %v6844_v30 = vld [vmem:[#allocation2 + $0x1f8] sm:$0xff] }
 0x533   : > { %v13462_v40 = vpack.c.bf16 %v6700_v29, %v6699_v37  ;;  %v6847_v29 = vld [vmem:[#allocation2 + $0x2d0] sm:$0xff]  ;;  %v12067_v37 = vld [vmem:[%s14175_s3 + $0xf8] sm:$0xff] }
 0x534   : > { %8062 = vmatpush.bf16.msra.mxu3 %v12067_v37  ;;  %v7121_v37 = vld [vmem:[#allocation2 + $0x110] sm:$0xff] }
 0x537   : > { %v6210_v21 = vpop.f32.mrf.mxu2  ;;  %v5994_v45 = vpop.f32.mrf.mxu0 }
 0x538   : > { %v6354_v41 = vpop.f32.mrf.mxu3  ;;  %v6245_v44 = vadd.f32 %v6210_v21, %v6085_v34  ;;  %v6087_v46 = vpop.f32.mrf.mxu1  ;;  %v13464_v21 = vpack.c.bf16 %v6844_v30, %v6843_v38 }
 0x539   : > { %v6088_v18 = vadd.f32 %v6087_v46, %v5994_v45 }
 0x53a   : > { %v13441_v55 = vadd.f32 %v6354_v41, %v6245_v44  ;;  %11111 = vmatmul.msk.bf16.gmra.mxu0 %vm5733_vm1, %v6422_v51 }
 0x53b   : > { %11132 = vmatmul.msk.bf16.gmra.mxu1 %vm5733_vm1, %v6566_v52 }
 0x53c   : > { %11153 = vmatmul.msk.bf16.gmra.mxu2 %vm5733_vm1, %v6710_v56 }
 0x53d   : > { %11174 = vmatmul.msk.bf16.gmra.mxu3 %vm5733_vm1, %v6854_v58 }
 0x53f   : > { %v6213_v60 = vpop.f32.mrf.mxu2  ;;  %v5996_v63 = vpop.f32.mrf.mxu0 }
 0x540   : > { %v6357_v61 = vpop.f32.mrf.mxu3  ;;  %v6246_v62 = vadd.f32 %v6213_v60, %v6088_v18  ;;  %v6089_v0 = vpop.f32.mrf.mxu1  ;;  %v6558_v18 = vld [vmem:[#allocation2 + $0x298] sm:$0xff]  ;;  %v6413_v60 = vld [vmem:[#allocation2 + $0x280] sm:$0xff] }
 0x541   : > { %v6090_v1 = vadd.f32 %v6089_v0, %v5996_v63  ;;  %v13474_v63 = vpack.c.bf16 %v6414_v49, %v6413_v60  ;;  %v12063_v49 = vld [vmem:[%s14175_s3 + $0xd8] sm:$0xff]  ;;  %v6705_v60 = vld [vmem:[#allocation2 + $0x2e0] sm:$0xff] }
 0x542   : > { %v13450_v2 = vadd.f32 %v6357_v61, %v6246_v62  ;;  %v6557_v61 = vld [vmem:[#allocation2 + $0x290] sm:$0xff]  ;;  %7774 = vmatpush.bf16.msra.mxu1 %v12063_v49 }
 0x543   : > { %v13476_v0 = vpack.c.bf16 %v6558_v18, %v6557_v61  ;;  %v6849_v61 = vld [vmem:[#allocation2 + $0x2f0] sm:$0xff] }
 0x547   : > { %v6215_v3 = vpop.f32.mrf.mxu2  ;;  %v5999_v9 = vpop.f32.mrf.mxu0 }
 0x548   : > { %v6359_v5 = vpop.f32.mrf.mxu3  ;;  %v6247_v8 = vadd.f32 %v6215_v3, %v6090_v1  ;;  %v6092_v10 = vpop.f32.mrf.mxu1  ;;  %v6701_v1 = vld [vmem:[#allocation2 + $0x2a0] sm:$0xff]  ;;  %v6845_v3 = vld [vmem:[#allocation2 + $0x2b0] sm:$0xff] }
 0x549   : > { %v6093_v11 = vadd.f32 %v6092_v10, %v5999_v9  ;;  %v13480_v6 = vpack.c.bf16 %v6702_v53, %v6701_v1  ;;  %v13482_v7 = vpack.c.bf16 %v6846_v54, %v6845_v3  ;;  %v6850_v53 = vld [vmem:[#allocation2 + $0x2f8] sm:$0xff] }
 0x54a   : > { %v13452_v15 = vadd.f32 %v6359_v5, %v6247_v8  ;;  %11112 = vmatmul.msk.bf16.gmra.mxu0 %vm5733_vm1, %v6710_v56  ;;  %v13527_v3 = vpack.c.bf16 %v6850_v53, %v6849_v61 }
 0x54b   : > { %11133 = vmatmul.msk.bf16.gmra.mxu1 %vm5733_vm1, %v6854_v58 }
 0x54c   : > { %11154 = vmatmul.msk.bf16.gmra.mxu2 %vm5733_vm1, %v6711_v16 }
 0x54d   : > { %11175 = vmatmul.msk.bf16.gmra.mxu3 %vm5733_vm1, %v6855_v17 }
 0x54f   : > { %v6218_v19 = vpop.f32.mrf.mxu2  ;;  %v6001_v22 = vpop.f32.mrf.mxu0 }
 0x550   : > { %v6362_v20 = vpop.f32.mrf.mxu3  ;;  %v6248_v50 = vadd.f32 %v6218_v19, %v6093_v11  ;;  %v6094_v23 = vpop.f32.mrf.mxu1 }
 0x551   : > { %v6095_v24 = vadd.f32 %v6094_v23, %v6001_v22 }
 0x552   : > { %v13458_v26 = vadd.f32 %v6362_v20, %v6248_v50  ;;  %v6704_v20 = vld [vmem:[#allocation2 + $0x2c8] sm:$0xff]  ;;  %v6848_v50 = vld [vmem:[#allocation2 + $0x2d8] sm:$0xff] }
 0x557   : > { %v6220_v27 = vpop.f32.mrf.mxu2  ;;  %v6004_v33 = vpop.f32.mrf.mxu0 }
 0x558   : > { %v6364_v28 = vpop.f32.mrf.mxu3  ;;  %v6249_v31 = vadd.f32 %v6220_v27, %v6095_v24  ;;  %v6097_v34 = vpop.f32.mrf.mxu1 }
 0x559   : > { %v6098_v36 = vadd.f32 %v6097_v34, %v6004_v33  ;;  %v13498_v33 = vpack.c.bf16 %v6848_v50, %v6847_v29  ;;  %v12065_v34 = vld [vmem:[%s14175_s3 + $0xe8] sm:$0xff]  ;;  %v7122_v50 = vld [vmem:[#allocation2 + $0x118] sm:$0xff] }
 0x55a   : > { %v13460_v39 = vadd.f32 %v6364_v28, %v6249_v31  ;;  %11113 = vmatmul.msk.bf16.gmra.mxu0 %vm5733_vm1, %v6711_v16  ;;  %v6703_v28 = vld [vmem:[#allocation2 + $0x2c0] sm:$0xff]  ;;  %7918 = vmatpush.bf16.msra.mxu2 %v12065_v34 }
 0x55b   : > { %11134 = vmatmul.msk.bf16.gmra.mxu1 %vm5733_vm1, %v6855_v17  ;;  %v13496_v31 = vpack.c.bf16 %v6704_v20, %v6703_v28  ;;  %v6978_v20 = vld [vmem:[#allocation2 + $0x108] sm:$0xff] }
 0x55c   : > { %11155 = vmatmul.msk.bf16.gmra.mxu2 %vm5733_vm1, %v13462_v40 }
 0x55d   : > { %11176 = vmatmul.msk.bf16.gmra.mxu3 %vm5733_vm1, %v13464_v21 }
 0x55f   : > { %v6223_v41 = vpop.f32.mrf.mxu2  ;;  %v6006_v44 = vpop.f32.mrf.mxu0 }
 0x560   : > { %v6367_v42 = vpop.f32.mrf.mxu3  ;;  %v6250_v43 = vadd.f32 %v6223_v41, %v6098_v36  ;;  %v6099_v45 = vpop.f32.mrf.mxu1  ;;  %v12061_v36 = vld [vmem:[%s14175_s3 + $0xc8] sm:$0xff] }
 0x561   : > { %v6100_v46 = vadd.f32 %v6099_v45, %v6006_v44  ;;  %7630 = vmatpush.bf16.msra.mxu0 %v12061_v36  ;;  %v6977_v36 = vld [vmem:[#allocation2 + $0x100] sm:$0xff] }
 0x562   : > { %v13472_v47 = vadd.f32 %v6367_v42, %v6250_v43 }
 0x567   : > { %v6225_v51 = vpop.f32.mrf.mxu2  ;;  %v6009_v58 = vpop.f32.mrf.mxu0 }
 0x568   : > { %v6369_v52 = vpop.f32.mrf.mxu3  ;;  %v6251_v56 = vadd.f32 %v6225_v51, %v6100_v46  ;;  %v6102_v59 = vpop.f32.mrf.mxu1 }
 0x569   : > { %v6103_v62 = vadd.f32 %v6102_v59, %v6009_v58 }
 0x56a   : > { %v13478_v5 = vadd.f32 %v6369_v52, %v6251_v56  ;;  %11114 = vmatmul.msk.bf16.gmra.mxu0 %vm5733_vm1, %v13474_v63  ;;  %v6706_v52 = vld [vmem:[#allocation2 + $0x2e8] sm:$0xff] }
 0x56b   : > { %11135 = vmatmul.msk.bf16.gmra.mxu1 %vm5733_vm1, %v13476_v0  ;;  %v13525_v1 = vpack.c.bf16 %v6706_v52, %v6705_v60 }
 0x56c   : > { %11156 = vmatmul.msk.bf16.gmra.mxu2 %vm5733_vm1, %v13480_v6 }
 0x56d   : > { %11177 = vmatmul.msk.bf16.gmra.mxu3 %vm5733_vm1, %v13482_v7 }
 0x56f   : > { %v6228_v8 = vpop.f32.mrf.mxu2  ;;  %v6011_v11 = vpop.f32.mrf.mxu0 }
 0x570   : > { %v6372_v9 = vpop.f32.mrf.mxu3  ;;  %v6252_v10 = vadd.f32 %v6228_v8, %v6103_v62  ;;  %v6104_v12 = vpop.f32.mrf.mxu1 }
 0x571   : > { %v6105_v14 = vadd.f32 %v6104_v12, %v6011_v11 }
 0x572   : > { %v13492_v16 = vadd.f32 %v6372_v9, %v6252_v10 }
 0x577   : > { %v6230_v17 = vpop.f32.mrf.mxu2  ;;  %v6014_v23 = vpop.f32.mrf.mxu0 }
 0x578   : > { %v6374_v19 = vpop.f32.mrf.mxu3  ;;  %v6253_v22 = vadd.f32 %v6230_v17, %v6105_v14  ;;  %v6107_v24 = vpop.f32.mrf.mxu1 }
 0x579   : > { %v6108_v27 = vadd.f32 %v6107_v24, %v6014_v23  ;;  %v7266_v24 = vld [vmem:[#allocation2 + $0x128] sm:$0xff] }
 0x57a   : > { %v13494_v30 = vadd.f32 %v6374_v19, %v6253_v22  ;;  %11115 = vmatmul.msk.bf16.gmra.mxu0 %vm5733_vm1, %v13480_v6 }
 0x57b   : > { %11136 = vmatmul.msk.bf16.gmra.mxu1 %vm5733_vm1, %v13482_v7 }
 0x57c   : > { %11157 = vmatmul.msk.bf16.gmra.mxu2 %vm5733_vm1, %v13496_v31 }
 0x57d   : > { %11178 = vmatmul.msk.bf16.gmra.mxu3 %vm5733_vm1, %v13498_v33 }
 0x57f   : > { %v6233_v38 = vpop.f32.mrf.mxu2  ;;  %v6016_v43 = vpop.f32.mrf.mxu0 }
 0x580   : > { %v6377_v41 = vpop.f32.mrf.mxu3  ;;  %v6254_v42 = vadd.f32 %v6233_v38, %v6108_v27  ;;  %v6109_v44 = vpop.f32.mrf.mxu1  ;;  %v7410_v27 = vld [vmem:[#allocation2 + $0x138] sm:$0xff] }
 0x581   : > { %v6110_v45 = vadd.f32 %v6109_v44, %v6016_v43  ;;  %v7265_v43 = vld [vmem:[#allocation2 + $0x120] sm:$0xff] }
 0x582   : > { %v13517_v46 = vadd.f32 %v6377_v41, %v6254_v42  ;;  %v6995_v41 = vpack.c.bf16 %v6978_v20, %v6977_v36  ;;  %v7139_v42 = vpack.c.bf16 %v7122_v50, %v7121_v37 }
 0x587   : > { %v6235_v18 = vpop.f32.mrf.mxu2  ;;  %v6481_v56 = vpop.f32.mrf.mxu0 }
 0x588   : > { %v6379_v51 = vpop.f32.mrf.mxu3  ;;  %v6255_v54 = vadd.f32 %v6235_v18, %v6110_v45  ;;  %v6625_v58 = vpop.f32.mrf.mxu1  ;;  %v6526_v59 = vadd.f32 %v6481_v56, %v13406_v32  ;;  %v7283_v45 = vpack.c.bf16 %v7266_v24, %v7265_v43 }
 0x58a   : > { %v13523_v62 = vadd.f32 %v6379_v51, %v6255_v54  ;;  %v6670_v8 = vadd.f32 %v6625_v58, %v6526_v59  ;;  %11116 = vmatmul.msk.bf16.gmra.mxu0 %vm5733_vm1, %v13496_v31 }
 0x58b   : > { %11137 = vmatmul.msk.bf16.gmra.mxu1 %vm5733_vm1, %v13498_v33 }
 0x58c   : > { %11158 = vmatmul.msk.bf16.gmra.mxu2 %vm5733_vm1, %v13525_v1 }
 0x58d   : > { %11179 = vmatmul.msk.bf16.gmra.mxu3 %vm5733_vm1, %v13527_v3 }
 0x58f   : > { %v6769_v32 = vpop.f32.mrf.mxu2  ;;  %v6483_v11 = vpop.f32.mrf.mxu0 }
 0x590   : > { %v6913_v9 = vpop.f32.mrf.mxu3  ;;  %v6814_v10 = vadd.f32 %v6769_v32, %v6670_v8  ;;  %v6627_v12 = vpop.f32.mrf.mxu1  ;;  %v6527_v14 = vadd.f32 %v6483_v11, %v13408_v48  ;;  %v7409_v48 = vld [vmem:[#allocation2 + $0x130] sm:$0xff]  ;;  %v7268_v8 = vld [vmem:[#allocation2 + $0x148] sm:$0xff]  ;;  %v7412_v32 = vld [vmem:[#allocation2 + $0x158] sm:$0xff] }
 0x591   : > { %v7427_v49 = vpack.c.bf16 %v7410_v27, %v7409_v48 }
 0x592   : > { %v13538_v17 = vadd.f32 %v6913_v9, %v6814_v10  ;;  %v6671_v19 = vadd.f32 %v6627_v12, %v6527_v14  ;;  %v7267_v14 = vld [vmem:[#allocation2 + $0x140] sm:$0xff] }
 0x593   : > { %v7284_v50 = vpack.c.bf16 %v7268_v8, %v7267_v14  ;;  %v7128_v14 = vld [vmem:[#allocation2 + $0x218] sm:$0xff] }
 0x597   : > { %v6771_v22 = vpop.f32.mrf.mxu2  ;;  %v6486_v29 = vpop.f32.mrf.mxu0 }
 0x598   : > { %v6915_v23 = vpop.f32.mrf.mxu3  ;;  %v6815_v28 = vadd.f32 %v6771_v22, %v6671_v19  ;;  %v6630_v34 = vpop.f32.mrf.mxu1  ;;  %v6528_v38 = vadd.f32 %v6486_v29, %v13414_v57  ;;  %v7411_v19 = vld [vmem:[#allocation2 + $0x150] sm:$0xff] }
 0x599   : > { %v7428_v22 = vpack.c.bf16 %v7412_v32, %v7411_v19 }
 0x59a   : > { %v13541_v44 = vadd.f32 %v6915_v23, %v6815_v28  ;;  %v6672_v18 = vadd.f32 %v6630_v34, %v6528_v38  ;;  %11192 = vmatmul.msk.bf16.vlgmr.msrb.gmra.mxu0 %vm5733_vm1, %v6995_v41  ;;  %v7270_v41 = vld [vmem:[#allocation2 + $0x168] sm:$0xff] }
 0x59b   : > { %11213 = vmatmul.msk.bf16.vlgmr.msrb.gmra.mxu1 %vm5733_vm1, %v7139_v42  ;;  %v7414_v42 = vld [vmem:[#allocation2 + $0x178] sm:$0xff] }
 0x59c   : > { %11234 = vmatmul.msk.bf16.vlgmr.msrb.gmra.mxu2 %vm5733_vm1, %v7283_v45 }
 0x59d   : > { %11255 = vmatmul.msk.bf16.vlgmr.msrb.gmra.mxu3 %vm5733_vm1, %v7427_v49 }
 0x59f   : > { %v6774_v51 = vpop.f32.mrf.mxu2  ;;  %v6488_v53 = vpop.f32.mrf.mxu0 }
 0x5a0   : > { %v6918_v52 = vpop.f32.mrf.mxu3  ;;  %v6816_v57 = vadd.f32 %v6774_v51, %v6672_v18  ;;  %v6632_v54 = vpop.f32.mrf.mxu1  ;;  %v6529_v56 = vadd.f32 %v6488_v53, %v13416_v4  ;;  %v7269_v18 = vld [vmem:[#allocation2 + $0x160] sm:$0xff]  ;;  %v7413_v51 = vld [vmem:[#allocation2 + $0x170] sm:$0xff] }
 0x5a1   : > { %v7429_v53 = vpack.c.bf16 %v7414_v42, %v7413_v51 }
 0x5a2   : > { %v13548_v58 = vadd.f32 %v6918_v52, %v6816_v57  ;;  %v6673_v59 = vadd.f32 %v6632_v54, %v6529_v56  ;;  %v7285_v57 = vpack.c.bf16 %v7270_v41, %v7269_v18 }
 0x5a7   : > { %v6776_v60 = vpop.f32.mrf.mxu2  ;;  %v6491_v10 = vpop.f32.mrf.mxu0 }
 0x5a8   : > { %v6920_v61 = vpop.f32.mrf.mxu3  ;;  %v6817_v9 = vadd.f32 %v6776_v60, %v6673_v59  ;;  %v6635_v11 = vpop.f32.mrf.mxu1  ;;  %v6530_v12 = vadd.f32 %v6491_v10, %v13422_v13  ;;  %v12060_v10 = vld [vmem:[%s14175_s3 + $0xc0] sm:$0xff] }
 0x5a9   : > { %7631 = vmatpush.bf16.msra.mxu0 %v12060_v10 }
 0x5aa   : > { %v13551_v20 = vadd.f32 %v6920_v61, %v6817_v9  ;;  %v6674_v23 = vadd.f32 %v6635_v11, %v6530_v12  ;;  %11193 = vmatmul.msk.bf16.gmra.mxu0 %vm5733_vm1, %v7283_v45  ;;  %v12064_v9 = vld [vmem:[%s14175_s3 + $0xe0] sm:$0xff]  ;;  %v12066_v11 = vld [vmem:[%s14175_s3 + $0xf0] sm:$0xff]  ;;  %v6984_v12 = vld [vmem:[#allocation2 + $0x208] sm:$0xff] }
 0x5ab   : > { %11214 = vmatmul.msk.bf16.gmra.mxu1 %vm5733_vm1, %v7427_v49  ;;  %7919 = vmatpush.bf16.msra.mxu2 %v12064_v9 }
 0x5ac   : > { %11235 = vmatmul.msk.bf16.gmra.mxu2 %vm5733_vm1, %v7284_v50  ;;  %8063 = vmatpush.bf16.msra.mxu3 %v12066_v11  ;;  %v7273_v11 = vld [vmem:[#allocation2 + $0x240] sm:$0xff] }
 0x5ad   : > { %11256 = vmatmul.msk.bf16.gmra.mxu3 %vm5733_vm1, %v7428_v22 }
 0x5af   : > { %v6779_v4 = vpop.f32.mrf.mxu2  ;;  %v6493_v28 = vpop.f32.mrf.mxu0 }
 0x5b0   : > { %v6923_v24 = vpop.f32.mrf.mxu3  ;;  %v6818_v27 = vadd.f32 %v6779_v4, %v6674_v23  ;;  %v6637_v13 = vpop.f32.mrf.mxu1  ;;  %v6531_v29 = vadd.f32 %v6493_v28, %v13424_v25  ;;  %v7127_v28 = vld [vmem:[#allocation2 + $0x210] sm:$0xff] }
 0x5b2   : > { %v13558_v34 = vadd.f32 %v6923_v24, %v6818_v27  ;;  %v6675_v36 = vadd.f32 %v6637_v13, %v6531_v29  ;;  %v6983_v27 = vld [vmem:[#allocation2 + $0x200] sm:$0xff] }
 0x5b3   : > { %v6998_v29 = vpack.c.bf16 %v6984_v12, %v6983_v27  ;;  %v7417_v12 = vld [vmem:[#allocation2 + $0x250] sm:$0xff] }
 0x5b7   : > { %v6781_v37 = vpop.f32.mrf.mxu2  ;;  %v6496_v48 = vpop.f32.mrf.mxu0 }
 0x5b8   : > { %v6925_v38 = vpop.f32.mrf.mxu3  ;;  %v6819_v43 = vadd.f32 %v6781_v37, %v6675_v36  ;;  %v6640_v45 = vpop.f32.mrf.mxu1  ;;  %v6532_v49 = vadd.f32 %v6496_v48, %v13430_v35  ;;  %v7142_v36 = vpack.c.bf16 %v7128_v14, %v7127_v28  ;;  %v7271_v37 = vld [vmem:[#allocation2 + $0x220] sm:$0xff]  ;;  %v12062_v48 = vld [vmem:[%s14175_s3 + $0xd0] sm:$0xff] }
 0x5b9   : > { %7775 = vmatpush.bf16.msra.mxu1 %v12062_v48 }
 0x5ba   : > { %v13561_v52 = vadd.f32 %v6925_v38, %v6819_v43  ;;  %v6676_v54 = vadd.f32 %v6640_v45, %v6532_v49  ;;  %11194 = vmatmul.msk.bf16.gmra.mxu0 %vm5733_vm1, %v7284_v50  ;;  %v7272_v50 = vld [vmem:[#allocation2 + $0x228] sm:$0xff]  ;;  %v7415_v38 = vld [vmem:[#allocation2 + $0x230] sm:$0xff] }
 0x5bb   : > { %11215 = vmatmul.msk.bf16.gmra.mxu1 %vm5733_vm1, %v7428_v22  ;;  %v7416_v22 = vld [vmem:[#allocation2 + $0x238] sm:$0xff]  ;;  %v7286_v42 = vpack.c.bf16 %v7272_v50, %v7271_v37 }
 0x5bc   : > { %11236 = vmatmul.msk.bf16.gmra.mxu2 %vm5733_vm1, %v7285_v57  ;;  %v7430_v43 = vpack.c.bf16 %v7416_v22, %v7415_v38  ;;  %v7420_v37 = vld [vmem:[#allocation2 + $0x278] sm:$0xff] }
 0x5bd   : > { %11257 = vmatmul.msk.bf16.gmra.mxu3 %vm5733_vm1, %v7429_v53 }
 0x5bf   : > { %v6784_v25 = vpop.f32.mrf.mxu2  ;;  %v6498_v60 = vpop.f32.mrf.mxu0 }
 0x5c0   : > { %v6928_v56 = vpop.f32.mrf.mxu3  ;;  %v6820_v59 = vadd.f32 %v6784_v25, %v6676_v54  ;;  %v6642_v35 = vpop.f32.mrf.mxu1  ;;  %v6533_v61 = vadd.f32 %v6498_v60, %v13441_v55  ;;  %v7274_v60 = vld [vmem:[#allocation2 + $0x248] sm:$0xff] }
 0x5c2   : > { %v13568_v8 = vadd.f32 %v6928_v56, %v6820_v59  ;;  %v6677_v32 = vadd.f32 %v6642_v35, %v6533_v61  ;;  %v7418_v35 = vld [vmem:[#allocation2 + $0x258] sm:$0xff] }
 0x5c7   : > { %v6786_v55 = vpop.f32.mrf.mxu2  ;;  %v6501_v4 = vpop.f32.mrf.mxu0 }
 0x5c8   : > { %v6930_v19 = vpop.f32.mrf.mxu3  ;;  %v6821_v23 = vadd.f32 %v6786_v55, %v6677_v32  ;;  %v6645_v24 = vpop.f32.mrf.mxu1  ;;  %v6534_v13 = vadd.f32 %v6501_v4, %v13450_v2  ;;  %v7287_v55 = vpack.c.bf16 %v7274_v60, %v7273_v11  ;;  %v7278_v11 = vld [vmem:[#allocation2 + $0x328] sm:$0xff] }
 0x5ca   : > { %v13580_v41 = vadd.f32 %v6930_v19, %v6821_v23  ;;  %v6678_v45 = vadd.f32 %v6645_v24, %v6534_v13  ;;  %11195 = vmatmul.msk.bf16.gmra.mxu0 %vm5733_vm1, %v6998_v29  ;;  %v7431_v19 = vpack.c.bf16 %v7418_v35, %v7417_v12  ;;  %v7422_v12 = vld [vmem:[#allocation2 + $0x338] sm:$0xff] }
 0x5cb   : > { %11216 = vmatmul.msk.bf16.gmra.mxu1 %vm5733_vm1, %v7142_v36  ;;  %v7276_v36 = vld [vmem:[#allocation2 + $0x268] sm:$0xff] }
 0x5cc   : > { %11237 = vmatmul.msk.bf16.gmra.mxu2 %vm5733_vm1, %v7286_v42 }
 0x5cd   : > { %11258 = vmatmul.msk.bf16.gmra.mxu3 %vm5733_vm1, %v7430_v43 }
 0x5cf   : > { %v6789_v2 = vpop.f32.mrf.mxu2  ;;  %v6503_v51 = vpop.f32.mrf.mxu0 }
 0x5d0   : > { %v6933_v49 = vpop.f32.mrf.mxu3  ;;  %v6822_v18 = vadd.f32 %v6789_v2, %v6678_v45  ;;  %v6647_v57 = vpop.f32.mrf.mxu1  ;;  %v6535_v53 = vadd.f32 %v6503_v51, %v13452_v15  ;;  %v7275_v45 = vld [vmem:[#allocation2 + $0x260] sm:$0xff]  ;;  %v7419_v2 = vld [vmem:[#allocation2 + $0x270] sm:$0xff] }
 0x5d1   : > { %v7432_v51 = vpack.c.bf16 %v7420_v37, %v7419_v2 }
 0x5d2   : > { %v13590_v54 = vadd.f32 %v6933_v49, %v6822_v18  ;;  %v6679_v25 = vadd.f32 %v6647_v57, %v6535_v53  ;;  %v7288_v18 = vpack.c.bf16 %v7276_v36, %v7275_v45 }
 0x5d7   : > { %v6791_v56 = vpop.f32.mrf.mxu2  ;;  %v6506_v32 = vpop.f32.mrf.mxu0 }
 0x5d8   : > { %v6935_v59 = vpop.f32.mrf.mxu3  ;;  %v6823_v61 = vadd.f32 %v6791_v56, %v6679_v25  ;;  %v6650_v9 = vpop.f32.mrf.mxu1  ;;  %v6536_v10 = vadd.f32 %v6506_v32, %v13458_v26  ;;  %v7134_v32 = vld [vmem:[#allocation2 + $0x318] sm:$0xff] }
 0x5da   : > { %v13593_v14 = vadd.f32 %v6935_v59, %v6823_v61  ;;  %v6680_v50 = vadd.f32 %v6650_v9, %v6536_v10  ;;  %11196 = vmatmul.msk.bf16.gmra.mxu0 %vm5733_vm1, %v7286_v42  ;;  %v6990_v61 = vld [vmem:[#allocation2 + $0x308] sm:$0xff] }
 0x5db   : > { %11217 = vmatmul.msk.bf16.gmra.mxu1 %vm5733_vm1, %v7430_v43 }
 0x5dc   : > { %11238 = vmatmul.msk.bf16.gmra.mxu2 %vm5733_vm1, %v7287_v55 }
 0x5dd   : > { %11259 = vmatmul.msk.bf16.gmra.mxu3 %vm5733_vm1, %v7431_v19 }
 0x5df   : > { %v6794_v15 = vpop.f32.mrf.mxu2  ;;  %v6508_v4 = vpop.f32.mrf.mxu0 }
 0x5e0   : > { %v6938_v22 = vpop.f32.mrf.mxu3  ;;  %v6824_v23 = vadd.f32 %v6794_v15, %v6680_v50  ;;  %v6652_v26 = vpop.f32.mrf.mxu1  ;;  %v6537_v24 = vadd.f32 %v6508_v4, %v13460_v39  ;;  %v6989_v15 = vld [vmem:[#allocation2 + $0x300] sm:$0xff] }
 0x5e1   : > { %v7001_v4 = vpack.c.bf16 %v6990_v61, %v6989_v15 }
 0x5e2   : > { %v13600_v27 = vadd.f32 %v6938_v22, %v6824_v23  ;;  %v6681_v28 = vadd.f32 %v6652_v26, %v6537_v24  ;;  %v7133_v22 = vld [vmem:[#allocation2 + $0x310] sm:$0xff]  ;;  %v7277_v24 = vld [vmem:[#allocation2 + $0x320] sm:$0xff] }
 0x5e3   : > { %v7145_v26 = vpack.c.bf16 %v7134_v32, %v7133_v22 }
 0x5e7   : > { %v6796_v13 = vpop.f32.mrf.mxu2  ;;  %v6511_v42 = vpop.f32.mrf.mxu0 }
 0x5e8   : > { %v6940_v29 = vpop.f32.mrf.mxu3  ;;  %v6825_v38 = vadd.f32 %v6796_v13, %v6681_v28  ;;  %v6655_v43 = vpop.f32.mrf.mxu1  ;;  %v6538_v48 = vadd.f32 %v6511_v42, %v13472_v47  ;;  %v7289_v13 = vpack.c.bf16 %v7278_v11, %v7277_v24 }
 0x5ea   : > { %v13603_v49 = vadd.f32 %v6940_v29, %v6825_v38  ;;  %v6682_v57 = vadd.f32 %v6655_v43, %v6538_v48  ;;  %11197 = vmatmul.msk.bf16.gmra.mxu0 %vm5733_vm1, %v7287_v55 }
 0x5eb   : > { %11218 = vmatmul.msk.bf16.gmra.mxu1 %vm5733_vm1, %v7431_v19 }
 0x5ec   : > { %11239 = vmatmul.msk.bf16.gmra.mxu2 %vm5733_vm1, %v7288_v18 }
 0x5ed   : > { %11260 = vmatmul.msk.bf16.gmra.mxu3 %vm5733_vm1, %v7432_v51 }
 0x5ef   : > { %v6799_v39 = vpop.f32.mrf.mxu2  ;;  %v6513_v56 = vpop.f32.mrf.mxu0 }
 0x5f0   : > { %v6943_v53 = vpop.f32.mrf.mxu3  ;;  %v6826_v25 = vadd.f32 %v6799_v39, %v6682_v57  ;;  %v6657_v47 = vpop.f32.mrf.mxu1  ;;  %v6539_v59 = vadd.f32 %v6513_v56, %v13478_v5  ;;  %v7421_v5 = vld [vmem:[#allocation2 + $0x330] sm:$0xff]  ;;  %v7280_v57 = vld [vmem:[#allocation2 + $0x348] sm:$0xff]  ;;  %v7424_v39 = vld [vmem:[#allocation2 + $0x358] sm:$0xff] }
 0x5f1   : > { %v7433_v29 = vpack.c.bf16 %v7422_v12, %v7421_v5 }
 0x5f2   : > { %v13610_v60 = vadd.f32 %v6943_v53, %v6826_v25  ;;  %v6683_v35 = vadd.f32 %v6657_v47, %v6539_v59  ;;  %v7279_v59 = vld [vmem:[#allocation2 + $0x340] sm:$0xff] }
 0x5f3   : > { %v7290_v32 = vpack.c.bf16 %v7280_v57, %v7279_v59  ;;  %v7842_v59 = vld [vmem:[#allocation2 + $0x1a8] sm:$0xff] }
 0x5f7   : > { %v6801_v9 = vpop.f32.mrf.mxu2  ;;  %v6516_v19 = vpop.f32.mrf.mxu0 }
 0x5f8   : > { %v6945_v10 = vpop.f32.mrf.mxu3  ;;  %v6827_v55 = vadd.f32 %v6801_v9, %v6683_v35  ;;  %v6660_v50 = vpop.f32.mrf.mxu1  ;;  %v6540_v23 = vadd.f32 %v6516_v19, %v13492_v16  ;;  %v7423_v35 = vld [vmem:[#allocation2 + $0x350] sm:$0xff] }
 0x5f9   : > { %v7434_v9 = vpack.c.bf16 %v7424_v39, %v7423_v35  ;;  %v7986_v35 = vld [vmem:[#allocation2 + $0x1b8] sm:$0xff] }
 0x5fa   : > { %v13613_v28 = vadd.f32 %v6945_v10, %v6827_v55  ;;  %v6684_v36 = vadd.f32 %v6660_v50, %v6540_v23  ;;  %11198 = vmatmul.msk.bf16.gmra.mxu0 %vm5733_vm1, %v7001_v4  ;;  %v7282_v4 = vld [vmem:[#allocation2 + $0x368] sm:$0xff] }
 0x5fb   : > { %11219 = vmatmul.msk.bf16.gmra.mxu1 %vm5733_vm1, %v7145_v26  ;;  %v7426_v26 = vld [vmem:[#allocation2 + $0x378] sm:$0xff] }
 0x5fc   : > { %11240 = vmatmul.msk.bf16.gmra.mxu2 %vm5733_vm1, %v7289_v13 }
 0x5fd   : > { %11261 = vmatmul.msk.bf16.gmra.mxu3 %vm5733_vm1, %v7433_v29 }
 0x5ff   : > { %v6804_v37 = vpop.f32.mrf.mxu2  ;;  %v6518_v42 = vpop.f32.mrf.mxu0 }
 0x600   : > { %v6948_v38 = vpop.f32.mrf.mxu3  ;;  %v6828_v16 = vadd.f32 %v6804_v37, %v6684_v36  ;;  %v6662_v43 = vpop.f32.mrf.mxu1  ;;  %v6541_v48 = vadd.f32 %v6518_v42, %v13494_v30  ;;  %v7281_v36 = vld [vmem:[#allocation2 + $0x360] sm:$0xff]  ;;  %v7425_v37 = vld [vmem:[#allocation2 + $0x370] sm:$0xff] }
 0x601   : > { %v7435_v42 = vpack.c.bf16 %v7426_v26, %v7425_v37 }
 0x602   : > { %v13620_v45 = vadd.f32 %v6948_v38, %v6828_v16  ;;  %v6685_v2 = vadd.f32 %v6662_v43, %v6541_v48  ;;  %v7291_v16 = vpack.c.bf16 %v7282_v4, %v7281_v36 }
 0x607   : > { %v6806_v18 = vpop.f32.mrf.mxu2  ;;  %v6521_v25 = vpop.f32.mrf.mxu0 }
 0x608   : > { %v6950_v51 = vpop.f32.mrf.mxu3  ;;  %v6829_v53 = vadd.f32 %v6806_v18, %v6685_v2  ;;  %v6665_v56 = vpop.f32.mrf.mxu1  ;;  %v6542_v47 = vadd.f32 %v6521_v25, %v13517_v46  ;;  %v7698_v25 = vld [vmem:[#allocation2 + $0x198] sm:$0xff] }
 0x60a   : > { %v13623_v61 = vadd.f32 %v6950_v51, %v6829_v53  ;;  %v6686_v10 = vadd.f32 %v6665_v56, %v6542_v47  ;;  %11199 = vmatmul.msk.bf16.gmra.mxu0 %vm5733_vm1, %v7289_v13  ;;  %v7554_v53 = vld [vmem:[#allocation2 + $0x188] sm:$0xff] }
 0x60b   : > { %11220 = vmatmul.msk.bf16.gmra.mxu1 %vm5733_vm1, %v7433_v29 }
 0x60c   : > { %11241 = vmatmul.msk.bf16.gmra.mxu2 %vm5733_vm1, %v7290_v32 }
 0x60d   : > { %11262 = vmatmul.msk.bf16.gmra.mxu3 %vm5733_vm1, %v7434_v9 }
 0x60f   : > { %v6809_v30 = vpop.f32.mrf.mxu2  ;;  %v6523_v55 = vpop.f32.mrf.mxu0 }
 0x610   : > { %v6953_v11 = vpop.f32.mrf.mxu3  ;;  %v6830_v12 = vadd.f32 %v6809_v30, %v6686_v10  ;;  %v6667_v46 = vpop.f32.mrf.mxu1  ;;  %v6543_v19 = vadd.f32 %v6523_v55, %v13523_v62  ;;  %v7553_v30 = vld [vmem:[#allocation2 + $0x180] sm:$0xff] }
 0x611   : > { %v7571_v55 = vpack.c.bf16 %v7554_v53, %v7553_v30 }
 0x612   : > { %v13630_v50 = vadd.f32 %v6953_v11, %v6830_v12  ;;  %v6687_v15 = vadd.f32 %v6667_v46, %v6543_v19  ;;  %v7697_v11 = vld [vmem:[#allocation2 + $0x190] sm:$0xff]  ;;  %v7841_v19 = vld [vmem:[#allocation2 + $0x1a0] sm:$0xff] }
 0x613   : > { %v7715_v46 = vpack.c.bf16 %v7698_v25, %v7697_v11 }
 0x617   : > { %v6811_v22 = vpop.f32.mrf.mxu2  ;;  %v7057_v5 = vpop.f32.mrf.mxu0 }
 0x618   : > { %v6955_v23 = vpop.f32.mrf.mxu3  ;;  %v6831_v24 = vadd.f32 %v6811_v22, %v6687_v15  ;;  %v7201_v13 = vpop.f32.mrf.mxu1  ;;  %v7102_v29 = vadd.f32 %v7057_v5, %v13538_v17  ;;  %v7859_v22 = vpack.c.bf16 %v7842_v59, %v7841_v19 }
 0x61a   : > { %v13633_v38 = vadd.f32 %v6955_v23, %v6831_v24  ;;  %v7246_v43 = vadd.f32 %v7201_v13, %v7102_v29  ;;  %11200 = vmatmul.msk.bf16.gmra.mxu0 %vm5733_vm1, %v7290_v32 }
 0x61b   : > { %11221 = vmatmul.msk.bf16.gmra.mxu1 %vm5733_vm1, %v7434_v9 }
 0x61c   : > { %11242 = vmatmul.msk.bf16.gmra.mxu2 %vm5733_vm1, %v7291_v16 }
 0x61d   : > { %11263 = vmatmul.msk.bf16.gmra.mxu3 %vm5733_vm1, %v7435_v42 }
 0x61f   : > { %v7345_v62 = vpop.f32.mrf.mxu2  ;;  %v7059_v18 = vpop.f32.mrf.mxu0 }
 0x620   : > { %v7489_v48 = vpop.f32.mrf.mxu3  ;;  %v7390_v2 = vadd.f32 %v7345_v62, %v7246_v43  ;;  %v7203_v17 = vpop.f32.mrf.mxu1  ;;  %v7103_v51 = vadd.f32 %v7059_v18, %v13541_v44  ;;  %v7985_v44 = vld [vmem:[#allocation2 + $0x1b0] sm:$0xff]  ;;  %v7844_v43 = vld [vmem:[#allocation2 + $0x1c8] sm:$0xff]  ;;  %v7988_v62 = vld [vmem:[#allocation2 + $0x1d8] sm:$0xff] }
 0x621   : > { %v8003_v23 = vpack.c.bf16 %v7986_v35, %v7985_v44 }
 0x622   : > { %v13640_v57 = vadd.f32 %v7489_v48, %v7390_v2  ;;  %v7247_v39 = vadd.f32 %v7203_v17, %v7103_v51  ;;  %v7843_v51 = vld [vmem:[#allocation2 + $0x1c0] sm:$0xff] }
 0x623   : > { %v7860_v25 = vpack.c.bf16 %v7844_v43, %v7843_v51 }
 0x627   : > { %v7347_v56 = vpop.f32.mrf.mxu2  ;;  %v7062_v9 = vpop.f32.mrf.mxu0 }
 0x628   : > { %v7491_v47 = vpop.f32.mrf.mxu3  ;;  %v7391_v32 = vadd.f32 %v7347_v56, %v7247_v39  ;;  %v7206_v10 = vpop.f32.mrf.mxu1  ;;  %v7104_v12 = vadd.f32 %v7062_v9, %v13548_v58  ;;  %v7987_v39 = vld [vmem:[#allocation2 + $0x1d0] sm:$0xff] }
 0x629   : > { %v8004_v56 = vpack.c.bf16 %v7988_v62, %v7987_v39 }
 0x62a   : > { %v13643_v15 = vadd.f32 %v7491_v47, %v7391_v32  ;;  %v7248_v4 = vadd.f32 %v7206_v10, %v7104_v12  ;;  %11276 = vmatmul.msk.bf16.vlgmr.msra.gmra.mxu0 %vm5733_vm1, %v7571_v55 }
 0x62b   : > { %11297 = vmatmul.msk.bf16.vlgmr.msra.gmra.mxu1 %vm5733_vm1, %v7715_v46 }
 0x62c   : > { %11318 = vmatmul.msk.bf16.vlgmr.msra.gmra.mxu2 %vm5733_vm1, %v7859_v22 }
 0x62d   : > { %11339 = vmatmul.msk.bf16.vlgmr.msra.gmra.mxu3 %vm5733_vm1, %v8003_v23 }
 0x62f   : > { %v7350_v26 = vpop.f32.mrf.mxu2  ;;  %v7064_v5 = vpop.f32.mrf.mxu0 }
 0x630   : > { %v7494_v24 = vpop.f32.mrf.mxu3  ;;  %v7392_v58 = vadd.f32 %v7350_v26, %v7248_v4  ;;  %v7208_v13 = vpop.f32.mrf.mxu1  ;;  %v7105_v29 = vadd.f32 %v7064_v5, %v13551_v20 }
 0x632   : > { %v13650_v36 = vadd.f32 %v7494_v24, %v7392_v58  ;;  %v7249_v37 = vadd.f32 %v7208_v13, %v7105_v29 }
 0x637   : > { %v7352_v16 = vpop.f32.mrf.mxu2  ;;  %v7067_v2 = vpop.f32.mrf.mxu0 }
 0x638   : > { %v7496_v42 = vpop.f32.mrf.mxu3  ;;  %v7393_v48 = vadd.f32 %v7352_v16, %v7249_v37  ;;  %v7211_v18 = vpop.f32.mrf.mxu1  ;;  %v7106_v17 = vadd.f32 %v7067_v2, %v13558_v34 }
 0x63a   : > { %v13653_v53 = vadd.f32 %v7496_v42, %v7393_v48  ;;  %v7250_v47 = vadd.f32 %v7211_v18, %v7106_v17  ;;  %11277 = vmatmul.msk.bf16.gmra.mxu0 %vm5733_vm1, %v7859_v22 }
 0x63b   : > { %11298 = vmatmul.msk.bf16.gmra.mxu1 %vm5733_vm1, %v8003_v23 }
 0x63c   : > { %11319 = vmatmul.msk.bf16.gmra.mxu2 %vm5733_vm1, %v7860_v25 }
 0x63d   : > { %11340 = vmatmul.msk.bf16.gmra.mxu3 %vm5733_vm1, %v8004_v56 }
 0x63f   : > { %v7355_v20 = vpop.f32.mrf.mxu2  ;;  %v7069_v32 = vpop.f32.mrf.mxu0 }
 0x640   : > { %v7499_v59 = vpop.f32.mrf.mxu3  ;;  %v7394_v35 = vadd.f32 %v7355_v20, %v7250_v47  ;;  %v7213_v34 = vpop.f32.mrf.mxu1  ;;  %v7107_v9 = vadd.f32 %v7069_v32, %v13561_v52 }
 0x642   : > { %v13660_v10 = vadd.f32 %v7499_v59, %v7394_v35  ;;  %v7251_v30 = vadd.f32 %v7213_v34, %v7107_v9  ;;  %v7561_v59 = vld [vmem:[#allocation2 + $0x2a0] sm:$0xff]  ;;  %v7705_v35 = vld [vmem:[#allocation2 + $0x2b0] sm:$0xff] }
 0x647   : > { %v7357_v11 = vpop.f32.mrf.mxu2  ;;  %v7072_v46 = vpop.f32.mrf.mxu0 }
 0x648   : > { %v7501_v12 = vpop.f32.mrf.mxu3  ;;  %v7395_v55 = vadd.f32 %v7357_v11, %v7251_v30  ;;  %v7216_v19 = vpop.f32.mrf.mxu1  ;;  %v7108_v44 = vadd.f32 %v7072_v46, %v13568_v8 }
 0x64a   : > { %v13663_v22 = vadd.f32 %v7501_v12, %v7395_v55  ;;  %v7252_v23 = vadd.f32 %v7216_v19, %v7108_v44  ;;  %11278 = vmatmul.msk.bf16.gmra.mxu0 %vm5733_vm1, %v7860_v25  ;;  %v7706_v25 = vld [vmem:[#allocation2 + $0x2b8] sm:$0xff] }
 0x64b   : > { %11299 = vmatmul.msk.bf16.gmra.mxu1 %vm5733_vm1, %v8004_v56  ;;  %v7719_v34 = vpack.c.bf16 %v7706_v25, %v7705_v35  ;;  %v7998_v25 = vld [vmem:[#allocation2 + $0x3b8] sm:$0xff] }
 0x64c   : > { %11320 = vmatmul.msk.bf16.gmra.mxu2 %vm5733_vm1, %v13462_v40 }
 0x64d   : > { %11341 = vmatmul.msk.bf16.gmra.mxu3 %vm5733_vm1, %v13464_v21 }
 0x64f   : > { %v7360_v52 = vpop.f32.mrf.mxu2  ;;  %v7074_v24 = vpop.f32.mrf.mxu0 }
 0x650   : > { %v7504_v4 = vpop.f32.mrf.mxu3  ;;  %v7396_v26 = vadd.f32 %v7360_v52, %v7252_v23  ;;  %v7218_v58 = vpop.f32.mrf.mxu1  ;;  %v7109_v8 = vadd.f32 %v7074_v24, %v13580_v41  ;;  %v7564_v23 = vld [vmem:[#allocation2 + $0x2c8] sm:$0xff]  ;;  %v7708_v52 = vld [vmem:[#allocation2 + $0x2d8] sm:$0xff] }
 0x652   : > { %v13672_v5 = vadd.f32 %v7504_v4, %v7396_v26  ;;  %v7253_v13 = vadd.f32 %v7218_v58, %v7109_v8  ;;  %v7563_v8 = vld [vmem:[#allocation2 + $0x2c0] sm:$0xff] }
 0x657   : > { %v7362_v29 = vpop.f32.mrf.mxu2  ;;  %v7077_v42 = vpop.f32.mrf.mxu0 }
 0x658   : > { %v7506_v37 = vpop.f32.mrf.mxu3  ;;  %v7397_v16 = vadd.f32 %v7362_v29, %v7253_v13  ;;  %v7221_v43 = vpop.f32.mrf.mxu1  ;;  %v7110_v40 = vadd.f32 %v7077_v42, %v13590_v54  ;;  %v7707_v13 = vld [vmem:[#allocation2 + $0x2d0] sm:$0xff]  ;;  %v7576_v29 = vpack.c.bf16 %v7564_v23, %v7563_v8 }
 0x659   : > { %v7999_v8 = vld [vmem:[#allocation2 + $0x3d0] sm:$0xff] }
 0x65a   : > { %v13675_v62 = vadd.f32 %v7506_v37, %v7397_v16  ;;  %v7254_v21 = vadd.f32 %v7221_v43, %v7110_v40  ;;  %11279 = vmatmul.msk.bf16.gmra.mxu0 %vm5733_vm1, %v13474_v63  ;;  %v7562_v63 = vld [vmem:[#allocation2 + $0x2a8] sm:$0xff]  ;;  %v7720_v37 = vpack.c.bf16 %v7708_v52, %v7707_v13 }
 0x65b   : > { %11300 = vmatmul.msk.bf16.gmra.mxu1 %vm5733_vm1, %v13476_v0  ;;  %v7575_v32 = vpack.c.bf16 %v7562_v63, %v7561_v59  ;;  %v7854_v63 = vld [vmem:[#allocation2 + $0x3a8] sm:$0xff] }
 0x65c   : > { %11321 = vmatmul.msk.bf16.gmra.mxu2 %vm5733_vm1, %v13480_v6  ;;  %v7856_v52 = vld [vmem:[#allocation2 + $0x3c8] sm:$0xff] }
 0x65d   : > { %11342 = vmatmul.msk.bf16.gmra.mxu3 %vm5733_vm1, %v13482_v7 }
 0x65f   : > { %v7365_v41 = vpop.f32.mrf.mxu2  ;;  %v7079_v18 = vpop.f32.mrf.mxu0 }
 0x660   : > { %v7509_v48 = vpop.f32.mrf.mxu3  ;;  %v7398_v2 = vadd.f32 %v7365_v41, %v7254_v21  ;;  %v7223_v54 = vpop.f32.mrf.mxu1  ;;  %v7111_v17 = vadd.f32 %v7079_v18, %v13593_v14  ;;  %v7566_v18 = vld [vmem:[#allocation2 + $0x388] sm:$0xff] }
 0x662   : > { %v13686_v51 = vadd.f32 %v7509_v48, %v7398_v2  ;;  %v7255_v39 = vadd.f32 %v7223_v54, %v7111_v17  ;;  %v12079_v2 = vld [vmem:[%s14177_s5 + $0x58] sm:$0xff] }
 0x663   : > { %8336 = vmatpush.bf16.msrb.mxu2 %v12079_v2  ;;  %v7710_v54 = vld [vmem:[#allocation2 + $0x398] sm:$0xff]  ;;  %v12069_v2 = vld [vmem:[%s14177_s5 + $0x8] sm:$0xff] }
 0x667   : > { %v7367_v56 = vpop.f32.mrf.mxu2  ;;  %v7082_v20 = vpop.f32.mrf.mxu0 }
 0x668   : > { %v7511_v0 = vpop.f32.mrf.mxu3  ;;  %v7399_v47 = vadd.f32 %v7367_v56, %v7255_v39  ;;  %v7226_v6 = vpop.f32.mrf.mxu1  ;;  %v7112_v7 = vadd.f32 %v7082_v20, %v13600_v27  ;;  %v7709_v20 = vld [vmem:[#allocation2 + $0x390] sm:$0xff] }
 0x669   : > { %v7721_v35 = vpack.c.bf16 %v7710_v54, %v7709_v20  ;;  %v12082_v20 = vld [vmem:[%s14177_s5 + $0x70] sm:$0xff] }
 0x66a   : > { %v13689_v9 = vadd.f32 %v7511_v0, %v7399_v47  ;;  %v7256_v30 = vadd.f32 %v7226_v6, %v7112_v7  ;;  %11280 = vmatmul.msk.bf16.gmra.mxu0 %vm5733_vm1, %v7575_v32  ;;  %v7565_v47 = vld [vmem:[#allocation2 + $0x380] sm:$0xff]  ;;  %v7997_v32 = vld [vmem:[#allocation2 + $0x3b0] sm:$0xff] }
 0x66b   : > { %11301 = vmatmul.msk.bf16.gmra.mxu1 %vm5733_vm1, %v7719_v34  ;;  %v7577_v59 = vpack.c.bf16 %v7566_v18, %v7565_v47  ;;  %v7853_v7 = vld [vmem:[#allocation2 + $0x3a0] sm:$0xff]  ;;  %v12078_v47 = vld [vmem:[%s14177_s5 + $0x50] sm:$0xff] }
 0x66c   : > { %11322 = vmatmul.msk.bf16.gmra.mxu2 %vm5733_vm1, %v13496_v31  ;;  %v7865_v34 = vpack.c.bf16 %v7854_v63, %v7853_v7  ;;  %v7858_v63 = vld [vmem:[#allocation2 + $0x3e8] sm:$0xff] }
 0x66d   : > { %11343 = vmatmul.msk.bf16.gmra.mxu3 %vm5733_vm1, %v13498_v33  ;;  %8337 = vmatpush.bf16.msrb.mxu2 %v12078_v47  ;;  %v12077_v47 = vld [vmem:[%s14177_s5 + $0x48] sm:$0xff] }
 0x66f   : > { %v7370_v14 = vpop.f32.mrf.mxu2  ;;  %v7084_v55 = vpop.f32.mrf.mxu0 }
 0x670   : > { %v7514_v11 = vpop.f32.mrf.mxu3  ;;  %v7400_v12 = vadd.f32 %v7370_v14, %v7256_v30  ;;  %v7228_v27 = vpop.f32.mrf.mxu1  ;;  %v7113_v46 = vadd.f32 %v7084_v55, %v13603_v49  ;;  %v12075_v49 = vld [vmem:[%s14177_s5 + $0x38] sm:$0xff]  ;;  %v8009_v30 = vpack.c.bf16 %v7998_v25, %v7997_v32 }
 0x671   : > { %8241 = vmatpush.bf16.msrb.mxu0 %v12075_v49  ;;  %v8002_v25 = vld [vmem:[#allocation2 + $0x3f8] sm:$0xff]  ;;  %8338 = vmatpush.bf16.msrb.mxu2 %v12077_v47 }
 0x672   : > { %v13698_v19 = vadd.f32 %v7514_v11, %v7400_v12  ;;  %v7257_v44 = vadd.f32 %v7228_v27, %v7113_v46 }
 0x677   : > { %v7372_v4 = vpop.f32.mrf.mxu2  ;;  %v7087_v58 = vpop.f32.mrf.mxu0 }
 0x678   : > { %v7516_v26 = vpop.f32.mrf.mxu3  ;;  %v7401_v24 = vadd.f32 %v7372_v4, %v7257_v44  ;;  %v7231_v31 = vpop.f32.mrf.mxu1  ;;  %v7114_v33 = vadd.f32 %v7087_v58, %v13610_v60  ;;  %v8000_v4 = vld [vmem:[#allocation2 + $0x3d8] sm:$0xff] }
 0x67a   : > { %v13701_v16 = vadd.f32 %v7516_v26, %v7401_v24  ;;  %v7258_v42 = vadd.f32 %v7231_v31, %v7114_v33  ;;  %11281 = vmatmul.msk.bf16.gmra.mxu0 %vm5733_vm1, %v7576_v29  ;;  %v7855_v31 = vld [vmem:[#allocation2 + $0x3c0] sm:$0xff]  ;;  %v8010_v33 = vpack.c.bf16 %v8000_v4, %v7999_v8 }
 0x67b   : > { %11302 = vmatmul.msk.bf16.gmra.mxu1 %vm5733_vm1, %v7720_v37  ;;  %v7866_v13 = vpack.c.bf16 %v7856_v52, %v7855_v31  ;;  %v12070_v37 = vld [vmem:[%s14177_s5 + $0x10] sm:$0xff]  ;;  %v12073_v52 = vld [vmem:[%s14177_s5 + $0x28] sm:$0xff] }
 0x67c   : > { %11323 = vmatmul.msk.bf16.gmra.mxu2 %vm5733_vm1, %v13525_v1  ;;  %v12083_v1 = vld [vmem:[%s14177_s5 + $0x78] sm:$0xff] }
 0x67d   : > { %11344 = vmatmul.msk.bf16.gmra.mxu3 %vm5733_vm1, %v13527_v3  ;;  %v12071_v3 = vld [vmem:[%s14177_s5 + $0x18] sm:$0xff] }
 0x67e   : > { %8392 = vmatpush.bf16.msrb.mxu3 %v12083_v1  ;;  %8282 = vmatpush.bf16.msrb.mxu1 %v12071_v3  ;;  %v12068_v3 = vld [vmem:[%s14177_s5] sm:$0xff] }
 0x67f   : > { %v7375_v60 = vpop.f32.mrf.mxu2  ;;  %v13712_v21 = vpop.f32.mrf.mxu0 }
 0x680   : > { %v7519_v43 = vpop.f32.mrf.mxu3  ;;  %v7402_v40 = vadd.f32 %v7375_v60, %v7258_v42  ;;  %v13714_v41 = vpop.f32.mrf.mxu1 }
 0x682   : > { %v13716_v48 = vadd.f32 %v7519_v43, %v7402_v40  ;;  %8283 = vmatpush.bf16.msrb.mxu1 %v12070_v37  ;;  %v12074_v40 = vld [vmem:[%s14177_s5 + $0x30] sm:$0xff]  ;;  %8393 = vmatpush.bf16.msrb.mxu3 %v12082_v20 }
 0x683   : > { %8242 = vmatpush.bf16.msrb.mxu0 %v12074_v40 }
 0x686   : > { %8284 = vmatpush.bf16.msrb.mxu1 %v12069_v2 }
 0x687   : > { %v13727_v17 = vpop.f32.mrf.mxu2  ;;  %v7092_v56 = vpop.f32.mrf.mxu0  ;;  %8243 = vmatpush.bf16.msrb.mxu0 %v12073_v52 }
 0x688   : > { %v13729_v39 = vpop.f32.mrf.mxu3  ;;  %v7236_v0 = vpop.f32.mrf.mxu1  ;;  %v7116_v6 = vadd.f32 %v7092_v56, %v13620_v45 }
 0x68a   : > { %v7260_v14 = vadd.f32 %v7236_v0, %v7116_v6  ;;  %11282 = vmatmul.msk.bf16.gmra.mxu0 %vm5733_vm1, %v7577_v59  ;;  %8285 = vmatpush.bf16.msrb.mxu1 %v12068_v3  ;;  %v7857_v6 = vld [vmem:[#allocation2 + $0x3e0] sm:$0xff]  ;;  %v8001_v59 = vld [vmem:[#allocation2 + $0x3f0] sm:$0xff] }
 0x68b   : > { %11303 = vmatmul.msk.bf16.gmra.mxu1 %vm5733_vm1, %v7721_v35  ;;  %v7867_v7 = vpack.c.bf16 %v7858_v63, %v7857_v6  ;;  %v8011_v32 = vpack.c.bf16 %v8002_v25, %v8001_v59  ;;  %v12076_v59 = vld [vmem:[%s14177_s5 + $0x40] sm:$0xff] }
 0x68c   : > { %11324 = vmatmul.msk.bf16.gmra.mxu2 %vm5733_vm1, %v7865_v34 }
 0x68d   : > { %11345 = vmatmul.msk.bf16.gmra.mxu3 %vm5733_vm1, %v8009_v30  ;;  %8339 = vmatpush.bf16.msrb.mxu2 %v12076_v59 }
 0x68f   : > { %v7380_v11 = vpop.f32.mrf.mxu2  ;;  %v13736_v27 = vpop.f32.mrf.mxu0 }
 0x690   : > { %v7524_v12 = vpop.f32.mrf.mxu3  ;;  %v7404_v55 = vadd.f32 %v7380_v11, %v7260_v14  ;;  %v13738_v45 = vpop.f32.mrf.mxu1 }
 0x692   : > { %v13740_v46 = vadd.f32 %v7524_v12, %v7404_v55 }
 0x697   : > { %v13742_v44 = vpop.f32.mrf.mxu2  ;;  %v7097_v26 = vpop.f32.mrf.mxu0 }
 0x698   : > { %v13744_v23 = vpop.f32.mrf.mxu3  ;;  %v7241_v24 = vpop.f32.mrf.mxu1  ;;  %v7118_v58 = vadd.f32 %v7097_v26, %v13630_v50 }
 0x69a   : > { %v7262_v29 = vadd.f32 %v7241_v24, %v7118_v58  ;;  %11283 = vmatmul.msk.bf16.gmra.mxu0 %vm5733_vm1, %v7865_v34  ;;  %v12072_v58 = vld [vmem:[%s14177_s5 + $0x20] sm:$0xff] }
 0x69b   : > { %11304 = vmatmul.msk.bf16.gmra.mxu1 %vm5733_vm1, %v8009_v30  ;;  %8244 = vmatpush.bf16.msrb.mxu0 %v12072_v58 }
 0x69c   : > { %11325 = vmatmul.msk.bf16.gmra.mxu2 %vm5733_vm1, %v7866_v13 }
 0x69d   : > { %11346 = vmatmul.msk.bf16.gmra.mxu3 %vm5733_vm1, %v8010_v33 }
 0x69f   : > { %v7385_v42 = vpop.f32.mrf.mxu2  ;;  %v13754_v60 = vpop.f32.mrf.mxu0 }
 0x6a0   : > { %v7529_v49 = vpop.f32.mrf.mxu3  ;;  %v7406_v50 = vadd.f32 %v7385_v42, %v7262_v29  ;;  %v13756_v43 = vpop.f32.mrf.mxu1 }
 0x6a2   : > { %v13764_v1 = vadd.f32 %v7529_v49, %v7406_v50 }
 0x6a7   : > { %v13769_v18 = vpop.f32.mrf.mxu2  ;;  %v7633_v56 = vpop.f32.mrf.mxu0 }
 0x6a8   : > { %v13771_v54 = vpop.f32.mrf.mxu3  ;;  %v7777_v0 = vpop.f32.mrf.mxu1  ;;  %v7678_v35 = vadd.f32 %v7633_v56, %v13640_v57  ;;  %v13787_v57 = vld [vmem:[%s14176_s4] ss:$0 sm:$0xff] }
 0x6aa   : > { %11284 = vmatmul.msk.bf16.gmra.mxu0 %vm5733_vm1, %v7866_v13  ;;  %v7822_v34 = vadd.f32 %v7777_v0, %v7678_v35 }
 0x6ab   : > { %11305 = vmatmul.msk.bf16.gmra.mxu1 %vm5733_vm1, %v8010_v33 }
 0x6ac   : > { %11326 = vmatmul.msk.bf16.gmra.mxu2 %vm5733_vm1, %v7867_v7 }
 0x6ad   : > { %11347 = vmatmul.msk.bf16.gmra.mxu3 %vm5733_vm1, %v8011_v32 }
 0x6af   : > { %v7921_v30 = vpop.f32.mrf.mxu2  ;;  %v7635_v12 = vpop.f32.mrf.mxu0 }
 0x6b0   : > { %v8065_v14 = vpop.f32.mrf.mxu3  ;;  %v7966_v11 = vadd.f32 %v7921_v30, %v7822_v34  ;;  %v7779_v55 = vpop.f32.mrf.mxu1  ;;  %v7679_v26 = vadd.f32 %v7635_v12, %v13643_v15 }
 0x6b2   : > { %v8110_v4 = vadd.f32 %v8065_v14, %v7966_v11  ;;  %v7823_v8 = vadd.f32 %v7779_v55, %v7679_v26 }
 0x6b4   : > { %v8132_v24 = vadd.f32 %v13787_v57, %v8110_v4 }
 0x6b6   : > { %v8150_v31 = vmax.f32 %v8132_v24, 0.0 }
 0x6b7   : > { %v7923_v13 = vpop.f32.mrf.mxu2  ;;  %v7638_v37 = vpop.f32.mrf.mxu0 }
 0x6b8   : > { %v8067_v33 = vpop.f32.mrf.mxu3  ;;  %8168 = vst.msk [vmem:[#allocation3] sm:$0xff] %vm1696_vm0, %v8150_v31  ;;  %v7967_v29 = vadd.f32 %v7923_v13, %v7823_v8  ;;  %v7782_v42 = vpop.f32.mrf.mxu1  ;;  %v7680_v15 = vadd.f32 %v7638_v37, %v13650_v36  ;;  %v12081_v37 = vld [vmem:[%s14177_s5 + $0x68] sm:$0xff] }
 0x6b9   : > { %8394 = vmatpush.bf16.msrb.mxu3 %v12081_v37 }
 0x6ba   : > { %v8111_v49 = vadd.f32 %v8067_v33, %v7967_v29  ;;  %v7824_v2 = vadd.f32 %v7782_v42, %v7680_v15  ;;  %v12080_v15 = vld [vmem:[%s14177_s5 + $0x60] sm:$0xff] }
 0x6bc   : > { %v8133_v50 = vadd.f32 %v13787_v57, %v8111_v49 }
 0x6bd   : > { %8395 = vmatpush.bf16.msrb.mxu3 %v12080_v15 }
 0x6be   : > { %v8151_v40 = vmax.f32 %v8133_v50, 0.0 }
 0x6bf   : > { %v7926_v3 = vpop.f32.mrf.mxu2  ;;  %v7640_v56 = vpop.f32.mrf.mxu0  ;;  %v8186_v30 = vld [vmem:[#allocation3] sm:$0xff] }
 0x6c0   : > { %v8070_v63 = vpop.f32.mrf.mxu3  ;;  %8169 = vst.msk [vmem:[#allocation3 + $0x8] sm:$0xff] %vm1696_vm0, %v8151_v40  ;;  %v7968_v25 = vadd.f32 %v7926_v3, %v7824_v2  ;;  %v7784_v0 = vpop.f32.mrf.mxu1  ;;  %v7681_v6 = vadd.f32 %v7640_v56, %v13653_v53 }
 0x6c2   : > { %v8112_v20 = vadd.f32 %v8070_v63, %v7968_v25  ;;  %v7825_v7 = vadd.f32 %v7784_v0, %v7681_v6 }
 0x6c4   : > { %v8134_v36 = vadd.f32 %v13787_v57, %v8112_v20  ;;  %v12087_v20 = vld [vmem:[%s14177_s5 + $0x98] sm:$0xff] }
 0x6c5   : > { %8448 = vmatpush.bf16.msra.mxu0 %v12087_v20 }
 0x6c6   : > { %v8152_v35 = vmax.f32 %v8134_v36, 0.0 }
 0x6c7   : > { %v7928_v32 = vpop.f32.mrf.mxu2  ;;  %v8187_v14 = vld [vmem:[#allocation3 + $0x8] sm:$0xff]  ;;  %v7643_v12 = vpop.f32.mrf.mxu0 }
 0x6c8   : > { %v8072_v34 = vpop.f32.mrf.mxu3  ;;  %8170 = vst.msk [vmem:[#allocation3 + $0x10] sm:$0xff] %vm1696_vm0, %v8152_v35  ;;  %v7969_v11 = vadd.f32 %v7928_v32, %v7825_v7  ;;  %v7787_v55 = vpop.f32.mrf.mxu1  ;;  %v8188_v53 = vpack.c.bf16 %v8187_v14, %v8186_v30  ;;  %v7682_v4 = vadd.f32 %v7643_v12, %v13660_v10  ;;  %v12086_v35 = vld [vmem:[%s14177_s5 + $0x90] sm:$0xff] }
 0x6c9   : > { %8449 = vmatpush.bf16.msra.mxu0 %v12086_v35 }
 0x6ca   : > { %v8113_v52 = vadd.f32 %v8072_v34, %v7969_v11  ;;  %11389 = vmatmul.msk.bf16.vlgmr.msrb.gmra.mxu1 %vm1696_vm0, %v8188_v53  ;;  %v7826_v58 = vadd.f32 %v7787_v55, %v7682_v4  ;;  %v12084_v4 = vld [vmem:[%s14177_s5 + $0x80] sm:$0xff] }
 0x6cc   : > { %v8135_v26 = vadd.f32 %v13787_v57, %v8113_v52 }
 0x6ce   : > { %v8153_v24 = vmax.f32 %v8135_v26, 0.0 }
 0x6cf   : > { %v7931_v31 = vpop.f32.mrf.mxu2  ;;  %v7645_v33 = vpop.f32.mrf.mxu0  ;;  %v8198_v63 = vld [vmem:[#allocation3 + $0x10] sm:$0xff] }
 0x6d0   : > { %v8075_v8 = vpop.f32.mrf.mxu3  ;;  %8171 = vst.msk [vmem:[#allocation3 + $0x18] sm:$0xff] %vm1696_vm0, %v8153_v24  ;;  %v7970_v13 = vadd.f32 %v7931_v31, %v7826_v58  ;;  %v7789_v29 = vpop.f32.mrf.mxu1  ;;  %v7683_v10 = vadd.f32 %v7645_v33, %v13663_v22 }
 0x6d2   : > { %v8114_v42 = vadd.f32 %v8075_v8, %v7970_v13  ;;  %v7827_v40 = vadd.f32 %v7789_v29, %v7683_v10 }
 0x6d4   : > { %v8136_v49 = vadd.f32 %v13787_v57, %v8114_v42  ;;  %v12091_v42 = vld [vmem:[%s14177_s5 + $0xb8] sm:$0xff] }
 0x6d5   : > { %8504 = vmatpush.bf16.msra.mxu1 %v12091_v42  ;;  %v7115_v42 = vadd.f32 %v13712_v21, %v13613_v28 }
 0x6d6   : > { %v8154_v50 = vmax.f32 %v8136_v49, 0.0 }
 0x6d7   : > { %v7933_v2 = vpop.f32.mrf.mxu2  ;;  %v8199_v25 = vld [vmem:[#allocation3 + $0x18] sm:$0xff]  ;;  %v7648_v0 = vpop.f32.mrf.mxu0 }
 0x6d8   : > { %v8077_v3 = vpop.f32.mrf.mxu3  ;;  %8172 = vst.msk [vmem:[#allocation3 + $0x20] sm:$0xff] %vm1696_vm0, %v8154_v50  ;;  %v7971_v56 = vadd.f32 %v7933_v2, %v7827_v40  ;;  %v7792_v47 = vpop.f32.mrf.mxu1  ;;  %v8200_v22 = vpack.c.bf16 %v8199_v25, %v8198_v63  ;;  %v7684_v36 = vadd.f32 %v7648_v0, %v13672_v5  ;;  %v12085_v5 = vld [vmem:[%s14177_s5 + $0x88] sm:$0xff]  ;;  %v12090_v50 = vld [vmem:[%s14177_s5 + $0xb0] sm:$0xff] }
 0x6d9   : > { %8450 = vmatpush.bf16.msra.mxu0 %v12085_v5  ;;  %8505 = vmatpush.bf16.msra.mxu1 %v12090_v50 }
 0x6da   : > { %v8115_v6 = vadd.f32 %v8077_v3, %v7971_v56  ;;  %11372 = vmatmul.msk.bf16.vlgmr.msrb.gmra.mxu0 %vm1696_vm0, %v8200_v22  ;;  %v7828_v32 = vadd.f32 %v7792_v47, %v7684_v36 }
 0x6dc   : > { %v8137_v59 = vadd.f32 %v13787_v57, %v8115_v6  ;;  %v12088_v6 = vld [vmem:[%s14177_s5 + $0xa0] sm:$0xff] }
 0x6dd   : > { %8451 = vmatpush.bf16.msra.mxu0 %v12084_v4 }
 0x6de   : > { %v8155_v7 = vmax.f32 %v8137_v59, 0.0 }
 0x6df   : > { %v7936_v34 = vpop.f32.mrf.mxu2  ;;  %v7650_v11 = vpop.f32.mrf.mxu0  ;;  %v8293_v8 = vld [vmem:[#allocation3 + $0x20] sm:$0xff] }
 0x6e0   : > { %v8080_v30 = vpop.f32.mrf.mxu3  ;;  %8173 = vst.msk [vmem:[#allocation3 + $0x28] sm:$0xff] %vm1696_vm0, %v8155_v7  ;;  %v7972_v14 = vadd.f32 %v7936_v34, %v7828_v32  ;;  %v7794_v12 = vpop.f32.mrf.mxu1  ;;  %v7685_v53 = vadd.f32 %v7650_v11, %v13675_v62 }
 0x6e2   : > { %v8116_v55 = vadd.f32 %v8080_v30, %v7972_v14  ;;  %v7829_v24 = vadd.f32 %v7794_v12, %v7685_v53  ;;  %v12095_v12 = vld [vmem:[%s14177_s5 + $0xd8] sm:$0xff] }
 0x6e3   : > { %8560 = vmatpush.bf16.msra.mxu2 %v12095_v12 }
 0x6e4   : > { %v8138_v52 = vadd.f32 %v13787_v57, %v8116_v55 }
 0x6e6   : > { %v8156_v26 = vmax.f32 %v8138_v52, 0.0  ;;  %v12094_v52 = vld [vmem:[%s14177_s5 + $0xd0] sm:$0xff] }
 0x6e7   : > { %v7938_v58 = vpop.f32.mrf.mxu2  ;;  %v8294_v13 = vld [vmem:[#allocation3 + $0x28] sm:$0xff]  ;;  %v7653_v29 = vpop.f32.mrf.mxu0  ;;  %8561 = vmatpush.bf16.msra.mxu2 %v12094_v52 }
 0x6e8   : > { %v8082_v31 = vpop.f32.mrf.mxu3  ;;  %8174 = vst.msk [vmem:[#allocation3 + $0x30] sm:$0xff] %vm1696_vm0, %v8156_v26  ;;  %v7973_v33 = vadd.f32 %v7938_v58, %v7829_v24  ;;  %v7797_v37 = vpop.f32.mrf.mxu1  ;;  %v8295_v62 = vpack.c.bf16 %v8294_v13, %v8293_v8  ;;  %v7686_v49 = vadd.f32 %v7653_v29, %v13686_v51  ;;  %v12089_v51 = vld [vmem:[%s14177_s5 + $0xa8] sm:$0xff] }
 0x6e9   : > { %8506 = vmatpush.bf16.msra.mxu1 %v12089_v51 }
 0x6ea   : > { %v8117_v10 = vadd.f32 %v8082_v31, %v7973_v33  ;;  %11414 = vmatmul.msk.bf16.vlgmr.msrb.gmra.mxu2 %vm1696_vm0, %v8295_v62  ;;  %v7830_v2 = vadd.f32 %v7797_v37, %v7686_v49  ;;  %v12092_v62 = vld [vmem:[%s14177_s5 + $0xc0] sm:$0xff] }
 0x6ec   : > { %v8139_v15 = vadd.f32 %v13787_v57, %v8117_v10 }
 0x6ed   : > { %8507 = vmatpush.bf16.msra.mxu1 %v12088_v6 }
 0x6ee   : > { %v8157_v40 = vmax.f32 %v8139_v15, 0.0 }
 0x6ef   : > { %v7941_v3 = vpop.f32.mrf.mxu2  ;;  %v7655_v56 = vpop.f32.mrf.mxu0  ;;  %v8349_v32 = vld [vmem:[#allocation3 + $0x30] sm:$0xff] }
 0x6f0   : > { %v8085_v63 = vpop.f32.mrf.mxu3  ;;  %8175 = vst.msk [vmem:[#allocation3 + $0x38] sm:$0xff] %vm1696_vm0, %v8157_v40  ;;  %v7974_v25 = vadd.f32 %v7941_v3, %v7830_v2  ;;  %v7799_v0 = vpop.f32.mrf.mxu1  ;;  %v7687_v22 = vadd.f32 %v7655_v56, %v13689_v9  ;;  %v12099_v56 = vld [vmem:[%s14177_s5 + $0xf8] sm:$0xff] }
 0x6f1   : > { %8616 = vmatpush.bf16.msra.mxu3 %v12099_v56 }
 0x6f2   : > { %v8118_v47 = vadd.f32 %v8085_v63, %v7974_v25  ;;  %v7831_v59 = vadd.f32 %v7799_v0, %v7687_v22  ;;  %v7259_v0 = vadd.f32 %v13714_v41, %v7115_v42  ;;  %v12098_v22 = vld [vmem:[%s14177_s5 + $0xf0] sm:$0xff] }
 0x6f4   : > { %v8140_v20 = vadd.f32 %v13787_v57, %v8118_v47  ;;  %v7403_v51 = vadd.f32 %v13727_v17, %v7259_v0  ;;  %v12097_v17 = vld [vmem:[%s14177_s5 + $0xe8] sm:$0xff] }
 0x6f5   : > { %8617 = vmatpush.bf16.msra.mxu3 %v12098_v22 }
 0x6f6   : > { %v8158_v36 = vmax.f32 %v8140_v20, 0.0  ;;  %v7547_v41 = vadd.f32 %v13729_v39, %v7403_v51  ;;  %v7117_v39 = vadd.f32 %v13736_v27, %v13623_v61 }
 0x6f7   : > { %v7943_v35 = vpop.f32.mrf.mxu2  ;;  %v8350_v34 = vld [vmem:[#allocation3 + $0x38] sm:$0xff]  ;;  %v7658_v14 = vpop.f32.mrf.mxu0 }
 0x6f8   : > { %v8087_v7 = vpop.f32.mrf.mxu3  ;;  %8176 = vst.msk [vmem:[#allocation3 + $0x40] sm:$0xff] %vm1696_vm0, %v8158_v36  ;;  %v7975_v30 = vadd.f32 %v7943_v35, %v7831_v59  ;;  %v7802_v11 = vpop.f32.mrf.mxu1  ;;  %v8351_v9 = vpack.c.bf16 %v8350_v34, %v8349_v32  ;;  %v7688_v55 = vadd.f32 %v7658_v14, %v13698_v19  ;;  %v12093_v19 = vld [vmem:[%s14177_s5 + $0xc8] sm:$0xff]  ;;  %v12096_v14 = vld [vmem:[%s14177_s5 + $0xe0] sm:$0xff] }
 0x6f9   : > { %8562 = vmatpush.bf16.msra.mxu2 %v12093_v19  ;;  %8618 = vmatpush.bf16.msra.mxu3 %v12097_v17  ;;  %v12102_v19 = vld [vmem:[%s14177_s5 + $0x110] sm:$0xff] }
 0x6fa   : > { %v8119_v5 = vadd.f32 %v8087_v7, %v7975_v30  ;;  %11439 = vmatmul.msk.bf16.vlgmr.msrb.gmra.mxu3 %vm1696_vm0, %v8351_v9  ;;  %v7832_v26 = vadd.f32 %v7802_v11, %v7688_v55 }
 0x6fc   : > { %v8141_v53 = vadd.f32 %v13787_v57, %v8119_v5 }
 0x6fd   : > { %8563 = vmatpush.bf16.msra.mxu2 %v12092_v62  ;;  %8619 = vmatpush.bf16.msra.mxu3 %v12096_v14 }
 0x6fe   : > { %v8159_v4 = vmax.f32 %v8141_v53, 0.0 }
 0x6ff   : > { %v7946_v24 = vpop.f32.mrf.mxu2  ;;  %v7660_v8 = vpop.f32.mrf.mxu0  ;;  %v8405_v40 = vld [vmem:[#allocation3 + $0x40] sm:$0xff] }
 0x700   : > { %v8090_v58 = vpop.f32.mrf.mxu3  ;;  %8177 = vst.msk [vmem:[#allocation3 + $0x48] sm:$0xff] %vm1696_vm0, %v8159_v4  ;;  %v7976_v31 = vadd.f32 %v7946_v24, %v7832_v26  ;;  %v7804_v13 = vpop.f32.mrf.mxu1  ;;  %v7689_v29 = vadd.f32 %v7660_v8, %v13701_v16 }
 0x702   : > { %v8120_v33 = vadd.f32 %v8090_v58, %v7976_v31  ;;  %v7833_v49 = vadd.f32 %v7804_v13, %v7689_v29  ;;  %v12103_v58 = vld [vmem:[%s14177_s5 + $0x118] sm:$0xff]  ;;  %v7261_v31 = vadd.f32 %v13738_v45, %v7117_v39 }
 0x703   : > { %8672 = vmatpush.bf16.msrb.mxu0 %v12103_v58 }
 0x704   : > { %v8142_v37 = vadd.f32 %v13787_v57, %v8120_v33  ;;  %v7405_v8 = vadd.f32 %v13742_v44, %v7261_v31  ;;  %v12101_v44 = vld [vmem:[%s14177_s5 + $0x108] sm:$0xff] }
 0x706   : > { %v8160_v10 = vmax.f32 %v8142_v37, 0.0  ;;  %v7549_v45 = vadd.f32 %v13744_v23, %v7405_v8  ;;  %v7119_v23 = vadd.f32 %v13754_v60, %v13633_v38 }
 0x707   : > { %v7948_v15 = vpop.f32.mrf.mxu2  ;;  %v8406_v2 = vld [vmem:[#allocation3 + $0x48] sm:$0xff]  ;;  %v7663_v3 = vpop.f32.mrf.mxu0  ;;  %8673 = vmatpush.bf16.msrb.mxu0 %v12102_v19  ;;  %v12118_v19 = vld [vmem:[%s14179_s7 + $0x6c] sm:$0xf0] }
 0x708   : > { %v8092_v50 = vpop.f32.mrf.mxu3  ;;  %8178 = vst.msk [vmem:[#allocation3 + $0x50] sm:$0xff] %vm1696_vm0, %v8160_v10  ;;  %v7977_v16 = vadd.f32 %v7948_v15, %v7833_v49  ;;  %v7807_v63 = vpop.f32.mrf.mxu1  ;;  %v8407_v25 = vpack.c.bf16 %v8406_v2, %v8405_v40  ;;  %v7690_v21 = vadd.f32 %v7663_v3, %v13716_v48  ;;  %v7263_v51 = vadd.f32 %v13756_v43, %v7119_v23  ;;  %v12115_v23 = vld [vmem:[%s14179_s7 + $0x54] sm:$0xf0] }
 0x70a   : > { %v8121_v28 = vadd.f32 %v8092_v50, %v7977_v16  ;;  %11464 = vmatmul.msk.bf16.vlgmr.msra.gmra.mxu0 %vm1696_vm0, %v8407_v25  ;;  %v7834_v6 = vadd.f32 %v7807_v63, %v7690_v21  ;;  %v12100_v50 = vld [vmem:[%s14177_s5 + $0x100] sm:$0xff]  ;;  %v7407_v60 = vadd.f32 %v13769_v18, %v7263_v51 }
 0x70b   : > { %8674 = vmatpush.bf16.msrb.mxu0 %v12101_v44  ;;  %v12112_v44 = vld [vmem:[%s14179_s7 + $0x44] sm:$0xf]  ;;  %v11583_v51 = vld [vmem:[%s14179_s7 + $0x20] sm:$0xf] }
 0x70c   : > { %v8143_v47 = vadd.f32 %v13787_v57, %v8121_v28 }
 0x70e   : > { %v8161_v20 = vmax.f32 %v8143_v47, 0.0 }
 0x70f   : > { %v7951_v36 = vpop.f32.mrf.mxu2  ;;  %v7665_v35 = vpop.f32.mrf.mxu0  ;;  %v8461_v55 = vld [vmem:[#allocation3 + $0x50] sm:$0xff]  ;;  %8675 = vmatpush.bf16.msrb.mxu0 %v12100_v50 }
 0x710   : > { %v8095_v59 = vpop.f32.mrf.mxu3  ;;  %8179 = vst.msk [vmem:[#allocation3 + $0x58] sm:$0xff] %vm1696_vm0, %v8161_v20  ;;  %v7978_v48 = vadd.f32 %v7951_v36, %v7834_v6  ;;  %v7809_v7 = vpop.f32.mrf.mxu1  ;;  %v7691_v34 = vadd.f32 %v7665_v35, %v7547_v41  ;;  %v12114_v50 = vld [vmem:[%s14179_s7 + $0x4c] sm:$0xf0] }
 0x712   : > { %v8122_v32 = vadd.f32 %v8095_v59, %v7978_v48  ;;  %v7835_v9 = vadd.f32 %v7809_v7, %v7691_v34  ;;  %v7551_v48 = vadd.f32 %v13771_v54, %v7407_v60  ;;  %v11591_v60 = vld [vmem:[%s14179_s7 + $0x28] sm:$0xf] }
 0x714   : > { %v8144_v30 = vadd.f32 %v13787_v57, %v8122_v32 }
 0x716   : > { %v8162_v11 = vmax.f32 %v8144_v30, 0.0 }
 0x717   : > { %v7953_v12 = vpop.f32.mrf.mxu2  ;;  %v8462_v53 = vld [vmem:[#allocation3 + $0x58] sm:$0xff]  ;;  %v7668_v4 = vpop.f32.mrf.mxu0 }
 0x718   : > { %v8097_v5 = vpop.f32.mrf.mxu3  ;;  %8180 = vst.msk [vmem:[#allocation3 + $0x60] sm:$0xff] %vm1696_vm0, %v8162_v11  ;;  %v7979_v52 = vadd.f32 %v7953_v12, %v7835_v9  ;;  %v7812_v26 = vpop.f32.mrf.mxu1  ;;  %v8463_v24 = vpack.c.bf16 %v8462_v53, %v8461_v55  ;;  %v7692_v27 = vadd.f32 %v7668_v4, %v13740_v46 }
 0x71a   : > { %v8123_v61 = vadd.f32 %v8097_v5, %v7979_v52  ;;  %11489 = vmatmul.msk.bf16.vlgmr.msra.gmra.mxu1 %vm1696_vm0, %v8463_v24  ;;  %v7836_v29 = vadd.f32 %v7812_v26, %v7692_v27  ;;  %v11615_v27 = vld [vmem:[%s14179_s7 + $0x60] sm:$0xf] }
 0x71c   : > { %v8145_v13 = vadd.f32 %v13787_v57, %v8123_v61  ;;  %v12116_v61 = vld [vmem:[%s14179_s7 + $0x64] sm:$0xf] }
 0x71e   : > { %v8163_v33 = vmax.f32 %v8145_v13, 0.0 }
 0x71f   : > { %v7956_v37 = vpop.f32.mrf.mxu2  ;;  %v7670_v42 = vpop.f32.mrf.mxu0  ;;  %v8517_v25 = vld [vmem:[#allocation3 + $0x60] sm:$0xff] }
 0x720   : > { %v8100_v62 = vpop.f32.mrf.mxu3  ;;  %8181 = vst.msk [vmem:[#allocation3 + $0x68] sm:$0xff] %vm1696_vm0, %v8163_v33  ;;  %v7980_v46 = vadd.f32 %v7956_v37, %v7836_v29  ;;  %v7814_v10 = vpop.f32.mrf.mxu1  ;;  %v7693_v15 = vadd.f32 %v7670_v42, %v7549_v45  ;;  %v11623_v33 = vld [vmem:[%s14179_s7 + $0x68] sm:$0xf]  ;;  %v12119_v29 = vld [vmem:[%s14179_s7 + $0x74] sm:$0xf0]  ;;  %v11616_v37 = vor.u32 %v12118_v19, %v11615_v27  ;;  %v12150_v19 = vld [vmem:[%s14181_s9 + $0xf0] sm:$0xff] }
 0x721   : > { %v12117_v45 = vld [vmem:[%s14179_s7 + $0x6c] sm:$0xf]  ;;  %v12135_v27 = vld [vmem:[%s14181_s9 + $0x78] sm:$0xff] }
 0x722   : > { %v8124_v49 = vadd.f32 %v8100_v62, %v7980_v46  ;;  %v7837_v16 = vadd.f32 %v7814_v10, %v7693_v15  ;;  %v11624_v62 = vor.u32 %v12119_v29, %v11623_v33  ;;  %v11625_v46 = vld [vmem:[%s14179_s7 + $0x78] sm:$0xf0]  ;;  %8810 = vmatpush.bf16.msrb.mxu1 %v11616_v37  ;;  %v11601_v10 = vld [vmem:[%s14179_s7 + $0x50] sm:$0xf0] }
 0x723   : > { %v11628_v42 = vor.u32 %v12117_v45, %v11625_v46  ;;  %v11604_v15 = vor.u32 %v12112_v44, %v11601_v10  ;;  %v12134_v29 = vld [vmem:[%s14181_s9 + $0x70] sm:$0xff]  ;;  %v12180_v46 = vld [vmem:[%s14178_s6] ss:$0 sm:$0xff]  ;;  %v12125_v10 = vld [vmem:[%s14181_s9 + $0x28] sm:$0xff] }
 0x724   : > { %v8146_v40 = vadd.f32 %v13787_v57, %v8124_v49  ;;  %8838 = vmatpush.bf16.msrb.mxu3 %v11624_v62  ;;  %v11599_v49 = vld [vmem:[%s14179_s7 + $0x40] sm:$0xf]  ;;  %v12142_v37 = vld [vmem:[%s14181_s9 + $0xb0] sm:$0xff] }
 0x725   : > { %8852 = vmatpush.bf16.msra.mxu0 %v11628_v42 }
 0x726   : > { %v8164_v2 = vmax.f32 %v8146_v40, 0.0  ;;  %v11607_v40 = vld [vmem:[%s14179_s7 + $0x48] sm:$0xf] }
 0x727   : > { %v7958_v3 = vpop.f32.mrf.mxu2  ;;  %v8518_v56 = vld [vmem:[#allocation3 + $0x68] sm:$0xff]  ;;  %v7673_v28 = vpop.f32.mrf.mxu0 }
 0x728   : > { %v8102_v63 = vpop.f32.mrf.mxu3  ;;  %8182 = vst.msk [vmem:[#allocation3 + $0x70] sm:$0xff] %vm1696_vm0, %v8164_v2  ;;  %v7981_v0 = vadd.f32 %v7958_v3, %v7837_v16  ;;  %v8519_v21 = vpack.c.bf16 %v8518_v56, %v8517_v25  ;;  %v7694_v22 = vadd.f32 %v7673_v28, %v13764_v1  ;;  %v7817_v38 = vpop.f32.mrf.mxu1  ;;  %v11600_v2 = vor.u32 %v12114_v50, %v11599_v49  ;;  %v12113_v3 = vld [vmem:[%s14179_s7 + $0x4c] sm:$0xf]  ;;  %v12108_v28 = vld [vmem:[%s14179_s7 + $0x24] sm:$0xf] }
 0x729   : > { %v11608_v16 = vor.u32 %v12115_v23, %v11607_v40  ;;  %v12149_v49 = vld [vmem:[%s14181_s9 + $0xe8] sm:$0xff] }
 0x72a   : > { %v8125_v47 = vadd.f32 %v8102_v63, %v7981_v0  ;;  %11514 = vmatmul.msk.bf16.vlgmr.msra.gmra.mxu2 %vm1696_vm0, %v8519_v21  ;;  %v7838_v36 = vadd.f32 %v7817_v38, %v7694_v22  ;;  %v11609_v63 = vld [vmem:[%s14179_s7 + $0x58] sm:$0xf0]  ;;  %8811 = vmatpush.bf16.msrb.mxu1 %v11600_v2  ;;  %v11585_v21 = vld [vmem:[%s14179_s7 + $0x30] sm:$0xf0]  ;;  %v12110_v38 = vld [vmem:[%s14179_s7 + $0x2c] sm:$0xf0] }
 0x72b   : > { %v11612_v0 = vor.u32 %v12113_v3, %v11609_v63  ;;  %8839 = vmatpush.bf16.msrb.mxu3 %v11608_v16  ;;  %v11588_v22 = vor.u32 %v12108_v28, %v11585_v21  ;;  %v12133_v40 = vld [vmem:[%s14181_s9 + $0x68] sm:$0xff] }
 0x72c   : > { %v8147_v20 = vadd.f32 %v13787_v57, %v8125_v47  ;;  %v12141_v23 = vld [vmem:[%s14181_s9 + $0xa8] sm:$0xff] }
 0x72d   : > { %8853 = vmatpush.bf16.msra.mxu0 %v11612_v0 }
 0x72e   : > { %v8165_v6 = vmax.f32 %v8147_v20, 0.0  ;;  %v12111_v20 = vld [vmem:[%s14179_s7 + $0x34] sm:$0xf0] }
 0x72f   : > { %v7961_v59 = vpop.f32.mrf.mxu2  ;;  %v7675_v43 = vpop.f32.mrf.mxu0  ;;  %v8573_v14 = vld [vmem:[#allocation3 + $0x70] sm:$0xff] }
 0x730   : > { %v8105_v41 = vpop.f32.mrf.mxu3  ;;  %8183 = vst.msk [vmem:[#allocation3 + $0x78] sm:$0xff] %vm1696_vm0, %v8165_v6  ;;  %v7982_v35 = vadd.f32 %v7961_v59, %v7838_v36  ;;  %v7695_v17 = vadd.f32 %v7675_v43, %v7551_v48  ;;  %v7819_v32 = vpop.f32.mrf.mxu1  ;;  %v11584_v6 = vor.u32 %v12110_v38, %v11583_v51  ;;  %v11592_v36 = vor.u32 %v12111_v20, %v11591_v60  ;;  %v12109_v59 = vld [vmem:[%s14179_s7 + $0x2c] sm:$0xf]  ;;  %v12104_v48 = vld [vmem:[%s14179_s7 + $0x4] sm:$0xf] }
 0x732   : > { %v8126_v7 = vadd.f32 %v8105_v41, %v7982_v35  ;;  %v7839_v30 = vadd.f32 %v7819_v32, %v7695_v17  ;;  %v11593_v41 = vld [vmem:[%s14179_s7 + $0x38] sm:$0xf0]  ;;  %v11567_v17 = vld [vmem:[%s14179_s7] sm:$0xf]  ;;  %8812 = vmatpush.bf16.msrb.mxu1 %v11584_v6  ;;  %8840 = vmatpush.bf16.msrb.mxu3 %v11592_v36 }
 0x733   : > { %v11596_v43 = vor.u32 %v12109_v59, %v11593_v41  ;;  %v12123_v36 = vld [vmem:[%s14181_s9 + $0x18] sm:$0xff]  ;;  %v12132_v41 = vld [vmem:[%s14181_s9 + $0x60] sm:$0xff] }
 0x734   : > { %v8148_v1 = vadd.f32 %v13787_v57, %v8126_v7  ;;  %v11569_v7 = vld [vmem:[%s14179_s7 + $0x10] sm:$0xf0]  ;;  %v12147_v59 = vld [vmem:[%s14181_s9 + $0xd8] sm:$0xff] }
 0x735   : > { %8854 = vmatpush.bf16.msra.mxu0 %v11596_v43  ;;  %v12146_v43 = vld [vmem:[%s14181_s9 + $0xd0] sm:$0xff] }
 0x736   : > { %v8166_v34 = vmax.f32 %v8148_v1, 0.0  ;;  %v12106_v1 = vld [vmem:[%s14179_s7 + $0xc] sm:$0xf0] }
 0x737   : > { %v7963_v18 = vpop.f32.mrf.mxu2  ;;  %v8574_v39 = vld [vmem:[#allocation3 + $0x78] sm:$0xff] }
 0x738   : > { %8184 = vst.msk [vmem:[#allocation3 + $0x80] sm:$0xff] %vm1696_vm0, %v8166_v34  ;;  %v7983_v11 = vadd.f32 %v7963_v18, %v7839_v30  ;;  %v8575_v9 = vpack.c.bf16 %v8574_v39, %v8573_v14  ;;  %v8107_v12 = vpop.f32.mrf.mxu3  ;;  %v11572_v34 = vor.u32 %v12104_v48, %v11569_v7  ;;  %v11568_v30 = vor.u32 %v12106_v1, %v11567_v17  ;;  %v11575_v18 = vld [vmem:[%s14179_s7 + $0x8] sm:$0xf]  ;;  %v12107_v14 = vld [vmem:[%s14179_s7 + $0x14] sm:$0xf0]  ;;  %v12140_v48 = vld [vmem:[%s14181_s9 + $0xa0] sm:$0xff] }
 0x739   : > { %v12105_v39 = vld [vmem:[%s14179_s7 + $0xc] sm:$0xf]  ;;  %v12131_v7 = vld [vmem:[%s14181_s9 + $0x58] sm:$0xff] }
 0x73a   : > { %v8127_v54 = vadd.f32 %v8107_v12, %v7983_v11  ;;  %11539 = vmatmul.msk.bf16.vlgmr.msra.gmra.mxu3 %vm1696_vm0, %v8575_v9  ;;  %v11576_v11 = vor.u32 %v12107_v14, %v11575_v18  ;;  %v11577_v9 = vld [vmem:[%s14179_s7 + $0x18] sm:$0xf0]  ;;  %8813 = vmatpush.bf16.msrb.mxu1 %v11568_v30  ;;  %v12121_v1 = vld [vmem:[%s14181_s9 + $0x8] sm:$0xff]  ;;  %v12138_v30 = vld [vmem:[%s14181_s9 + $0x90] sm:$0xff] }
 0x73b   : > { %v12139_v17 = vld [vmem:[%s14181_s9 + $0x98] sm:$0xff]  ;;  %v12120_v18 = vld [vmem:[%s14181_s9] sm:$0xff] }
 0x73c   : > { %v8149_v5 = vadd.f32 %v13787_v57, %v8127_v54  ;;  %v11617_v57 = vld [vmem:[%s14179_s7 + $0x70] sm:$0xf0]  ;;  %v11580_v54 = vor.u32 %v12105_v39, %v11577_v9  ;;  %8841 = vmatpush.bf16.msrb.mxu3 %v11576_v11  ;;  %v12144_v14 = vld [vmem:[%s14181_s9 + $0xc0] sm:$0xff]  ;;  %v12129_v39 = vld [vmem:[%s14181_s9 + $0x48] sm:$0xff] }
 0x73d   : > { %v11620_v13 = vor.u32 %v12116_v61, %v11617_v57  ;;  %v12137_v11 = vld [vmem:[%s14181_s9 + $0x88] sm:$0xff]  ;;  %v12128_v9 = vld [vmem:[%s14181_s9 + $0x40] sm:$0xff] }
 0x73e   : > { %v8167_v55 = vmax.f32 %v8149_v5, 0.0  ;;  %8855 = vmatpush.bf16.msra.mxu0 %v11580_v54  ;;  %v8713_v54 = vld [vmem:[%s14180_s8] sm:$0xf] }
 0x73f   : > { %v8629_v53 = vld [vmem:[#allocation3 + $0x80] sm:$0xff]  ;;  %8824 = vmatpush.bf16.msrb.mxu2 %v11620_v13  ;;  %v12126_v13 = vld [vmem:[%s14181_s9 + $0x30] sm:$0xff] }
 0x740   : > { %8185 = vst.msk [vmem:[#allocation3 + $0x88] sm:$0xff] %vm1696_vm0, %v8167_v55 }
 0x743   : > { %8825 = vmatpush.bf16.msrb.mxu2 %v11604_v15 }
 0x747   : > { %v8630_v52 = vld [vmem:[#allocation3 + $0x88] sm:$0xff]  ;;  %v8287_v24 = vpop.f32.mrf.mxu1  ;;  %8826 = vmatpush.bf16.msrb.mxu2 %v11588_v22 }
 0x748   : > { %v8631_v4 = vpack.c.bf16 %v8630_v52, %v8629_v53 }
 0x74a   : > { %11564 = vmatmul.msk.bf16.vlgmr.msrb.gmra.mxu0 %vm1696_vm0, %v8631_v4 }
 0x74b   : > { %8827 = vmatpush.bf16.msrb.mxu2 %v11572_v34  ;;  %v12130_v34 = vld [vmem:[%s14181_s9 + $0x50] sm:$0xff] }
 0x74f   : > { %v8289_v25 = vpop.f32.mrf.mxu1  ;;  %9148 = vmatpush.bf16.msra.mxu2 %v12135_v27 }
 0x753   : > { %9149 = vmatpush.bf16.msra.mxu2 %v12134_v29 }
 0x757   : > { %v8246_v26 = vpop.f32.mrf.mxu0  ;;  %9150 = vmatpush.bf16.msra.mxu2 %v12133_v40 }
 0x758   : > { %v8288_v32 = vadd.f32 %v8287_v24, %v8246_v26  ;;  %v12127_v24 = vld [vmem:[%s14181_s9 + $0x38] sm:$0xff] }
 0x759   : > { %9134 = vmatpush.bf16.msra.mxu1 %v12127_v24 }
 0x75b   : > { %9151 = vmatpush.bf16.msra.mxu2 %v12132_v41 }
 0x75d   : > { %9135 = vmatpush.bf16.msra.mxu1 %v12126_v13  ;;  %v8717_v13 = vperm.slane %v8713_v54, 2 }
 0x75f   : > { %v13941_v58 = vpop.f32.mrf.mxu0  ;;  %9152 = vmatpush.bf16.msra.mxu2 %v12131_v7 }
 0x760   : > { %v8290_v61 = vadd.f32 %v8289_v25, %v13941_v58  ;;  %v12124_v25 = vld [vmem:[%s14181_s9 + $0x20] sm:$0xff] }
 0x761   : > { %9136 = vmatpush.bf16.msra.mxu1 %v12125_v10 }
 0x763   : > { %9153 = vmatpush.bf16.msra.mxu2 %v12130_v34 }
 0x765   : > { %9137 = vmatpush.bf16.msra.mxu1 %v12124_v25  ;;  %v12181_v25 = vld [vmem:[%s14182_s10] ss:$0 sm:$0xff] }
 0x767   : > { %9154 = vmatpush.bf16.msra.mxu2 %v12129_v39 }
 0x769   : > { %9138 = vmatpush.bf16.msra.mxu1 %v12123_v36 }
 0x76b   : > { %9155 = vmatpush.bf16.msra.mxu2 %v12128_v9 }
 0x76d   : > { %v13943_v31 = vpop.f32.mrf.mxu2 }
 0x76e   : > { %v8346_v12 = vadd.f32 %v13943_v31, %v8288_v32  ;;  %v12151_v31 = vld [vmem:[%s14181_s9 + $0xf8] sm:$0xff]  ;;  %v12145_v32 = vld [vmem:[%s14181_s9 + $0xc8] sm:$0xff] }
 0x76f   : > { %9176 = vmatpush.bf16.msrb.mxu0 %v12151_v31 }
 0x773   : > { %9177 = vmatpush.bf16.msrb.mxu0 %v12150_v19 }
 0x775   : > { %v8343_v47 = vpop.f32.mrf.mxu2 }
 0x776   : > { %v8347_v58 = vadd.f32 %v8343_v47, %v8290_v61 }
 0x777   : > { %9178 = vmatpush.bf16.msrb.mxu0 %v12149_v49 }
 0x77d   : > { %v13954_v8 = vpop.f32.mrf.mxu3 }
 0x77e   : > { %v8402_v55 = vadd.f32 %v13954_v8, %v8346_v12  ;;  %v12143_v8 = vld [vmem:[%s14181_s9 + $0xb8] sm:$0xff]  ;;  %v12136_v12 = vld [vmem:[%s14181_s9 + $0x80] sm:$0xff] }
 0x77f   : > { %9162 = vmatpush.bf16.msra.mxu3 %v12143_v8 }
 0x783   : > { %9163 = vmatpush.bf16.msra.mxu3 %v12142_v37 }
 0x785   : > { %v8399_v35 = vpop.f32.mrf.mxu3 }
 0x786   : > { %v8403_v62 = vadd.f32 %v8399_v35, %v8347_v58  ;;  %v12122_v35 = vld [vmem:[%s14181_s9 + $0x10] sm:$0xff] }
 0x787   : > { %v8453_v56 = vpop.f32.mrf.mxu0  ;;  %9164 = vmatpush.bf16.msra.mxu3 %v12141_v23  ;;  %9139 = vmatpush.bf16.msra.mxu1 %v12122_v35 }
 0x788   : > { %v8458_v4 = vadd.f32 %v8453_v56, %v8402_v55  ;;  %v12148_v56 = vld [vmem:[%s14181_s9 + $0xe0] sm:$0xff] }
 0x789   : > { %9179 = vmatpush.bf16.msrb.mxu0 %v12148_v56 }
 0x78b   : > { %9165 = vmatpush.bf16.msra.mxu3 %v12140_v48  ;;  %9140 = vmatpush.bf16.msra.mxu1 %v12121_v1 }
 0x78d   : > { %9180 = vmatpush.bf16.msrb.mxu0 %v12147_v59 }
 0x78f   : > { %v8455_v53 = vpop.f32.mrf.mxu0  ;;  %9166 = vmatpush.bf16.msra.mxu3 %v12139_v17  ;;  %9141 = vmatpush.bf16.msra.mxu1 %v12120_v18 }
 0x790   : > { %v8459_v15 = vadd.f32 %v8455_v53, %v8403_v62  ;;  %v8715_v53 = vperm.slane %v8713_v54, 0 }
 0x791   : > { %9181 = vmatpush.bf16.msrb.mxu0 %v12146_v43 }
 0x793   : > { %9167 = vmatpush.bf16.msra.mxu3 %v12138_v30 }
 0x795   : > { %9182 = vmatpush.bf16.msrb.mxu0 %v12145_v32 }
 0x797   : > { %v8509_v5 = vpop.f32.mrf.mxu1  ;;  %9168 = vmatpush.bf16.msra.mxu3 %v12137_v11 }
 0x798   : > { %v8514_v57 = vadd.f32 %v8509_v5, %v8458_v4 }
 0x799   : > { %9183 = vmatpush.bf16.msrb.mxu0 %v12144_v14 }
 0x79b   : > { %9169 = vmatpush.bf16.msra.mxu3 %v12136_v12 }
 0x79f   : > { %v8511_v42 = vpop.f32.mrf.mxu1 }
 0x7a0   : > { %v8515_v16 = vadd.f32 %v8511_v42, %v8459_v15 }
 0x7ad   : > { %v8565_v52 = vpop.f32.mrf.mxu2 }
 0x7ae   : > { %v8570_v33 = vadd.f32 %v8565_v52, %v8514_v57  ;;  %v8718_v52 = vperm.slane %v8713_v54, 3  ;;  %v8716_v57 = vperm.slane %v8713_v54, 1 }
 0x7b5   : > { %v8567_v2 = vpop.f32.mrf.mxu2 }
 0x7b6   : > { %v8571_v0 = vadd.f32 %v8567_v2, %v8515_v16 }
 0x7bd   : > { %v8621_v26 = vpop.f32.mrf.mxu3 }
 0x7be   : > { %v8626_v45 = vadd.f32 %v8621_v26, %v8570_v33 }
 0x7c5   : > { %v8623_v63 = vpop.f32.mrf.mxu3 }
 0x7c6   : > { %v8627_v21 = vadd.f32 %v8623_v63, %v8571_v0 }
 0x7c7   : > { %v8677_v44 = vpop.f32.mrf.mxu0 }
 0x7c8   : > { %v8682_v50 = vadd.f32 %v8677_v44, %v8626_v45 }
 0x7ca   : > { %v8688_v3 = vadd.f32 %v12180_v46, %v8682_v50 }
 0x7cc   : > { %v8690_v28 = vmax.f32 %v8688_v3, 0.0 }
 0x7ce   : > { %8692 = vst.msk [vmem:[#allocation4] sm:$0xff] %vm1696_vm0, %v8690_v28 }
 0x7cf   : > { %v8679_v51 = vpop.f32.mrf.mxu0 }
 0x7d0   : > { %v8683_v47 = vadd.f32 %v8679_v51, %v8627_v21 }
 0x7d2   : > { %v8689_v22 = vadd.f32 %v12180_v46, %v8683_v47 }
 0x7d4   : > { %v8691_v38 = vmax.f32 %v8689_v22, 0.0 }
 0x7d5   : > { %v8694_v60 = vld [vmem:[#allocation4] sm:$0xff] }
 0x7d6   : > { %8693 = vst.msk [vmem:[#allocation4 + $0x8] sm:$0xff] %vm1696_vm0, %v8691_v38 }
 0x7dd   : > { %v8695_v20 = vld [vmem:[#allocation4 + $0x8] sm:$0xff] }
 0x7de   : > { %v8696_v6 = vpack.c.bf16 %v8695_v20, %v8694_v60 }
 0x7e0   : > { %11629 = vmatmul.msk.bf16.vlgmr.msrb.gmra.mxu1 %vm1696_vm0, %v8696_v6  ;;  %11630 = vmatmul.msk.bf16.vlgmr.msrb.gmra.mxu2 %vm1696_vm0, %v8696_v6 }
 0x7e1   : > { %11631 = vmatmul.msk.bf16.vlgmr.msrb.gmra.mxu3 %vm1696_vm0, %v8696_v6  ;;  %11632 = vmatmul.msk.bf16.vlgmr.msra.gmra.mxu0 %vm1696_vm0, %v8696_v6 }
 0x85d   : > { %v8815_v5 = vpop.f32.mrf.mxu1 }
 0x85e   : > { %v8857_v55 = vpop.f32.mrf.mxu0  ;;  %v8816_v26 = vadd.f32 %v8815_v5, %v8715_v53 }
 0x85f   : > { %v8858_v31 = vadd.f32 %v8857_v55, %v8718_v52 }
 0x860   : > { %v8862_v58 = vmax.f32 %v8816_v26, 0.0 }
 0x861   : > { %v8865_v29 = vmax.f32 %v8858_v31, 0.0 }
 0x863   : > { %v8829_v4 = vpop.f32.mrf.mxu2 }
 0x864   : > { %v8843_v24 = vpop.f32.mrf.mxu3  ;;  %v8830_v62 = vadd.f32 %v8829_v4, %v8716_v57 }
 0x865   : > { %v8817_v61 = vpop.f32.mrf.mxu1  ;;  %v8844_v46 = vadd.f32 %v8843_v24, %v8717_v13 }
 0x866   : > { %v8818_v27 = vadd.f32 %v8817_v61, %v8715_v53  ;;  %v8859_v8 = vpop.f32.mrf.mxu0  ;;  %v8863_v50 = vmax.f32 %v8830_v62, 0.0 }
 0x867   : > { %v8860_v19 = vadd.f32 %v8859_v8, %v8718_v52  ;;  %v8864_v23 = vmax.f32 %v8844_v46, 0.0 }
 0x868   : > { %v8866_v33 = vmax.f32 %v8818_v27, 0.0 }
 0x869   : > { %v8869_v37 = vmax.f32 %v8860_v19, 0.0 }
 0x86a   : > { %v8870_v45 = vpack.c.bf16 %v8866_v33, %v8862_v58 }
 0x86b   : > { %v8873_v42 = vpack.c.bf16 %v8869_v37, %v8865_v29  ;;  %v8831_v44 = vpop.f32.mrf.mxu2 }
 0x86c   : > { %v8832_v10 = vadd.f32 %v8831_v44, %v8716_v57  ;;  %v8845_v49 = vpop.f32.mrf.mxu3  ;;  %9142 = vmatmul.bf16.vlgmr.msra.gmra.mxu1 %v8870_v45 }
 0x86d   : > { %v8846_v15 = vadd.f32 %v8845_v49, %v8717_v13  ;;  %9184 = vmatmul.bf16.vlgmr.msrb.gmra.mxu0 %v8873_v42 }
 0x86e   : > { %v8867_v40 = vmax.f32 %v8832_v10, 0.0 }
 0x86f   : > { %v8868_v2 = vmax.f32 %v8846_v15, 0.0 }
 0x870   : > { %v8871_v16 = vpack.c.bf16 %v8867_v40, %v8863_v50 }
 0x871   : > { %v8872_v3 = vpack.c.bf16 %v8868_v2, %v8864_v23 }
 0x872   : > { %9156 = vmatmul.bf16.vlgmr.msra.gmra.mxu2 %v8871_v16 }
 0x873   : > { %9170 = vmatmul.bf16.vlgmr.msra.gmra.mxu3 %v8872_v3 }
 0x8e9   : > { %v9143_v63 = vpop.f32.mrf.mxu1 }
 0x8ea   : > { %v9144_v56 = vadd.f32 %v12181_v25, %v9143_v63  ;;  %v9185_v51 = vpop.f32.mrf.mxu0 }
 0x8f1   : > { %v9145_v22 = vpop.f32.mrf.mxu1 }
 0x8f2   : > { %v9146_v60 = vadd.f32 %v12181_v25, %v9145_v22  ;;  %v9187_v41 = vpop.f32.mrf.mxu0 }
 0x8f5   : > { %v9157_v0 = vpop.f32.mrf.mxu2 }
 0x8f6   : > { %v9158_v28 = vadd.f32 %v9157_v0, %v9144_v56  ;;  %v9171_v21 = vpop.f32.mrf.mxu3 }
 0x8f8   : > { %v9172_v47 = vadd.f32 %v9171_v21, %v9158_v28 }
 0x8fa   : > { %v9186_v38 = vadd.f32 %v9185_v51, %v9172_v47 }
 0x8fc   : > { %9191 = vst.msk [vmem:[%s1075_s19] sm:$0xff] %vm9190_vm2, %v9186_v38 }
 0x8fd   : > { %v9159_v20 = vpop.f32.mrf.mxu2 }
 0x8fe   : > { %v9160_v6 = vadd.f32 %v9159_v20, %v9146_v60  ;;  %v9173_v36 = vpop.f32.mrf.mxu3 }
 0x900   : > { %v9174_v59 = vadd.f32 %v9173_v36, %v9160_v6 }
 0x902   : > { %v9188_v48 = vadd.f32 %v9187_v41, %v9174_v59 }
 0x904   : > { %9192 = vst.msk [vmem:[%s1075_s19 + $0x8] sm:$0xff] %vm9190_vm2, %v9188_v48 }
 0x905 PF: > { %p18_p9 = scmp.ge.s32.totalorder %s12286_s21, 4   ;;  %s14184_s17 = smov %s12203_s18 }
 0x906   : > { %s14185_s18 = smov %s12295_s24  ;;  %s14186_s19 = smov %s12286_s21 }
 0x907   :  { %20 = sbr.rel (!%p18_p9) target bundleno = 2 (0x2), region = 192 }

</bundles_post_ra>
